<compile_context>
chip_gen: v6e
topology: v6e:2x2x1
jax: 0.10.0
libtpu: 0.0.40
codegen_flags: <defaults>
</compile_context>

<pallas_src>
import numpy as np
import jax
import jax.numpy as jnp
from jax import lax
from jax.experimental import pallas as pl
from jax.experimental.pallas import tpu as pltpu

EPS = 1e-5


# ---------------------------------------------------------------------------
# Fused dense-block kernel
# ---------------------------------------------------------------------------
def _make_dense_block_kernel(num_layers, c0, c1, g, hw, w, pad):
    """Kernel body for a static block configuration.

    Ref layout per grid step (one image):
      refs = (x, [a1, w1, a2, w2] * num_layers, out, zpad_scratch)
    """
    c3 = 3 * c1

    def kernel(*refs):
        x_ref = refs[0]
        layer_refs = refs[1:1 + 4 * num_layers]
        out_ref = refs[1 + 4 * num_layers]
        zpad_ref = refs[2 + 4 * num_layers]

        # Halo-only zeroing: only the top / bottom halo bands of the conv
        # scratch are zeroed (they implement the H padding and the dx row
        # offsets); the interior is fully overwritten by every layer.
        band = pad + 8
        zeros = jnp.zeros((band, c3), jnp.float32)
        zpad_ref[pl.ds(0, band), :] = zeros
        zpad_ref[pl.ds(hw + pad - 8, band), :] = zeros

        # Width-boundary SOURCE masks (built once per tile from an iota):
        # zeroing source pixels at x==W-1 (resp. x==0) is equivalent to masking
        # the wrapped dx=-1 (resp. dx=+1) taps at the output.
        col = lax.broadcasted_iota(jnp.int32, (hw, 1), 0) % w
        mask_m = (col != (w - 1)).astype(jnp.float32)   # feeds the dx = -1 taps
        mask_p = (col != 0).astype(jnp.float32)         # feeds the dx = +1 taps

        # Input features: first c0 channels of the block output, and the first
        # register-resident concatenation group.
        x = x_ref[...]                                   # (hw, c0) f32
        out_ref[:, 0:c0] = x
        feats = [x]
        sizes = [c0]

        for i in range(num_layers):
            a1_ref, w1_ref, a2_ref, w2_ref = layer_refs[4 * i:4 * (i + 1)]

            # ---- bottleneck relu(bn1(cat)) -> 1x1 conv, decomposed over the
            # concatenation groups so the growing feature map never round-trips
            # through VMEM (bn1 is per-channel, so it factors over the groups).
            y = None
            off = 0
            for f, sz in zip(feats, sizes):
                t = jnp.maximum(f * a1_ref[0:1, off:off + sz]
                                + a1_ref[1:2, off:off + sz], 0.0)
                wg = w1_ref[off:off + sz, :].astype(jnp.bfloat16)
                part = jnp.dot(t.astype(jnp.bfloat16), wg,
                               preferred_element_type=jnp.float32)
                y = part if y is None else y + part
                off += sz
            z = jnp.maximum(y * a2_ref[0:1, :] + a2_ref[1:2, :], 0.0)  # (hw, c1)

            # ---- 3x3 conv (padding=1): store the three pre-masked dx variants
            # into their lane groups at dx-shifted row offsets ...
            zpad_ref[pl.ds(pad + 1, hw), 0:c1]      = z * mask_m   # dx = -1
            zpad_ref[pl.ds(pad, hw), c1:2 * c1]     = z            # dx =  0
            zpad_ref[pl.ds(pad - 1, hw), 2 * c1:c3] = z * mask_p   # dx = +1

            # ... then 3 aligned (hw, 3*c1) slab loads (one per dy) and one
            # K=3*c1 MXU dot each (instead of 9 K=c1 dots + 6 mask multiplies).
            acc = None
            for d in range(3):                           # dy = d - 1
                slab = zpad_ref[pl.ds(pad + (d - 1) * w, hw), :]
                part = jnp.dot(slab.astype(jnp.bfloat16), w2_ref[d],
                               preferred_element_type=jnp.float32)
                acc = part if acc is None else acc + part

            # New features: written exactly once into their output column strip
            # and appended to the register-resident feature list.
            cin = sum(sizes)
            out_ref[:, cin:cin + g] = acc
            feats.append(acc)
            sizes.append(g)

    return kernel


# ---------------------------------------------------------------------------
# Wrappers
# ---------------------------------------------------------------------------
def _fold_bn(gamma, beta, mean, var):
    scale = gamma / jnp.sqrt(var + EPS)
    return jnp.stack([scale, beta - mean * scale], axis=0)    # (2, C)


def dense_block_forward_nhwc(x_nhwc, params):
    """Channels-last dense block (no layout transposes).  Chain blocks through
    this entry point to keep activations channels-last end-to-end."""
    n, h, w, c0 = x_nhwc.shape
    hw = h * w
    assert w % 8 == 0, "W must be a multiple of 8 (sublane-aligned slab loads)"
    assert hw >= 16, "H*W must be at least 16"
    num_layers = len(params)
    c1 = params[0]["w_conv1"].shape[0]
    g = params[0]["w_conv2"].shape[0]
    c_total = c0 + num_layers * g
    pad = w                                   # halo rows: >= W and multiple of 8

    x2d = x_nhwc.reshape(n * hw, c0)

    flat_inputs = [x2d]
    in_specs = [pl.BlockSpec((hw, c0), lambda i: (i, 0))]
    for p in params:
        cin = p["w_conv1"].shape[1]
        a1 = _fold_bn(p["gamma1"], p["beta1"], p["mean1"], p["var1"])      # (2, cin)
        a2 = _fold_bn(p["gamma2"], p["beta2"], p["mean2"], p["var2"])      # (2, c1)
        # w1 stays f32 so the per-group sublane slices in-kernel are plain f32
        # reads (values are bf16-representable; the in-kernel cast is exact).
        w1 = jnp.transpose(p["w_conv1"][:, :, 0, 0], (1, 0))               # (cin, c1)
        # (g, c1, 3, 3) -> (kh, kw, c1, g) -> (3, 3*c1, g): row kw*c1 + c matches
        # the scratch lane-group layout [dx=-1 | dx=0 | dx=+1].
        w2 = jnp.transpose(p["w_conv2"], (2, 3, 1, 0)).reshape(3, 3 * c1, g)
        w2 = w2.astype(jnp.bfloat16)
        flat_inputs += [a1, w1, a2, w2]
        in_specs += [
            pl.BlockSpec((2, cin), lambda i: (0, 0)),
            pl.BlockSpec((cin, c1), lambda i: (0, 0)),
            pl.BlockSpec((2, c1), lambda i: (0, 0)),
            pl.BlockSpec((3, 3 * c1, g), lambda i: (0, 0, 0)),
        ]

    # VMEM budget derived from the actual (double-buffered) blocks + scratch,
    # with 2x headroom, clamped to the smallest physical ceiling (v7x: 64 MiB).
    weight_bytes = sum(int(np.prod(a.shape)) * a.dtype.itemsize
                       for a in flat_inputs[1:])
    scratch_bytes = (hw + 2 * pad) * 3 * c1 * 4
    block_bytes = (2 * hw * c0 * 4 + 2 * hw * c_total * 4
                   + 2 * weight_bytes + scratch_bytes)
    vmem_limit = int(min(max(2 * block_bytes, 4 << 20), 64 << 20))

    flops = 2 * n * hw * sum((c0 + i * g) * c1 + 9 * c1 * g
                             for i in range(num_layers))
    # Weight blocks have constant index maps and stay VMEM-resident, so they are
    # counted once; advisory only.
    bytes_accessed = 4 * (x2d.size + n * hw * c_total) + weight_bytes

    kernel = _make_dense_block_kernel(num_layers, c0, c1, g, hw, w, pad)
    out2d = pl.pallas_call(
        kernel,
        out_shape=jax.ShapeDtypeStruct((n * hw, c_total), jnp.float32),
        grid=(n,),
        in_specs=in_specs,
        out_specs=pl.BlockSpec((hw, c_total), lambda i: (i, 0)),
        scratch_shapes=[pltpu.VMEM((hw + 2 * pad, 3 * c1), jnp.float32)],
        compiler_params=pltpu.CompilerParams(
            dimension_semantics=("parallel",),     # batch split across v7x's 2 TCs
            vmem_limit_bytes=vmem_limit),
        cost_estimate=pl.CostEstimate(flops=int(flops), transcendentals=0,
                                      bytes_accessed=int(bytes_accessed)),
    )(*flat_inputs)
    return out2d.reshape(n, h, w, c_total)


@jax.jit
def dense_block_forward(x_nchw, params):
    """NCHW adapter matching the torch module interface.  The two transposes are
    wrapper-side XLA passes kept only for interface parity; chained blocks should
    use dense_block_forward_nhwc directly."""
    x_nhwc = jnp.transpose(x_nchw, (0, 2, 3, 1))
    out = dense_block_forward_nhwc(x_nhwc, params)
    return jnp.transpose(out, (0, 3, 1, 2))


# ---------------------------------------------------------------------------
# Deterministic synthetic params and pure-JAX reference
# ---------------------------------------------------------------------------
def init_dense_block_params(key, num_layers, num_input_features, bn_size, growth_rate):
    params = []
    c1 = bn_size * growth_rate
    for i in range(num_layers):
        cin = num_input_features + i * growth_rate
        ks = jax.random.split(jax.random.fold_in(key, i), 10)
        w1 = jax.random.normal(ks[4], (c1, cin, 1, 1), jnp.float32) * (2.0 / cin) ** 0.5
        w2 = (jax.random.normal(ks[9], (growth_rate, c1, 3, 3), jnp.float32)
              * (2.0 / (9 * c1)) ** 0.5)
        # Conv weights are kept exactly bf16-representable: the kernel feeds the
        # MXU in bf16 (f32 accumulation) and the reference uses the same values.
        w1 = w1.astype(jnp.bfloat16).astype(jnp.float32)
        w2 = w2.astype(jnp.bfloat16).astype(jnp.float32)
        params.append(dict(
            gamma1=jax.random.uniform(ks[0], (cin,), jnp.float32, 0.5, 1.5),
            beta1=0.1 * jax.random.normal(ks[1], (cin,), jnp.float32),
            mean1=0.1 * jax.random.normal(ks[2], (cin,), jnp.float32),
            var1=jax.random.uniform(ks[3], (cin,), jnp.float32, 0.5, 1.5),
            w_conv1=w1,
            gamma2=jax.random.uniform(ks[5], (c1,), jnp.float32, 0.5, 1.5),
            beta2=0.1 * jax.random.normal(ks[6], (c1,), jnp.float32),
            mean2=0.1 * jax.random.normal(ks[7], (c1,), jnp.float32),
            var2=jax.random.uniform(ks[8], (c1,), jnp.float32, 0.5, 1.5),
            w_conv2=w2,
        ))
    return params


def _ref_dense_block(x_nchw, params):
    """Eval-mode BN + lax.conv reference.  Activations are rounded to bf16 right
    before each conv to mirror the kernel's MXU input precision; everything else,
    including accumulation, stays f32."""
    def bn(x, gamma, beta, mean, var):
        return ((x - mean[None, :, None, None])
                / jnp.sqrt(var[None, :, None, None] + EPS)
                * gamma[None, :, None, None] + beta[None, :, None, None])

    def q(x):
        return x.astype(jnp.bfloat16).astype(jnp.float32)

    feats = [x_nchw]
    for p in params:
        cat = jnp.concatenate(feats, axis=1)
        t = jax.nn.relu(bn(cat, p["gamma1"], p["beta1"], p["mean1"], p["var1"]))
        y = lax.conv_general_dilated(q(t), p["w_conv1"], (1, 1), "VALID",
                                     dimension_numbers=("NCHW", "OIHW", "NCHW"),
                                     precision=lax.Precision.HIGHEST)
        z = jax.nn.relu(bn(y, p["gamma2"], p["beta2"], p["mean2"], p["var2"]))
        new = lax.conv_general_dilated(q(z), p["w_conv2"], (1, 1), ((1, 1), (1, 1)),
                                       dimension_numbers=("NCHW", "OIHW", "NCHW"),
                                       precision=lax.Precision.HIGHEST)
        feats.append(new)
    return jnp.concatenate(feats, axis=1)


if __name__ == "__main__":
    num_layers, num_input_features, bn_size, growth_rate = 3, 16, 2, 8
    N, H, W = 2, 16, 16

    key = jax.random.PRNGKey(0)
    kx, kp = jax.random.split(key)
    x = jax.random.normal(kx, (N, num_input_features, H, W), jnp.float32)
    params = init_dense_block_params(kp, num_layers, num_input_features,
                                     bn_size, growth_rate)

    out = jax.block_until_ready(dense_block_forward(x, params))
    assert out.shape == (N, num_input_features + num_layers * growth_rate, H, W)

    # Tolerance covers bf16 rounding of MXU activation operands and f32
    # accumulation-order differences (weights are identical bf16 values on both
    # sides, accumulation is f32).
    ref = _ref_dense_block(x, params)
    np.testing.assert_allclose(np.asarray(out), np.asarray(ref),
                               rtol=1e-2, atol=1e-2)
    print("KERNEL_OK")
</pallas_src>

<mosaic_0001>
module attributes {stable_mosaic.version = 11 : i64} {
  func.func @kernel(%arg0: i32, %arg1: memref<256x16xf32, #tpu.memory_space<vmem>>, %arg2: memref<2x16xf32, #tpu.memory_space<vmem>>, %arg3: memref<16x16xf32, #tpu.memory_space<vmem>>, %arg4: memref<2x16xf32, #tpu.memory_space<vmem>>, %arg5: memref<3x48x8xbf16, #tpu.memory_space<vmem>>, %arg6: memref<2x24xf32, #tpu.memory_space<vmem>>, %arg7: memref<24x16xf32, #tpu.memory_space<vmem>>, %arg8: memref<2x16xf32, #tpu.memory_space<vmem>>, %arg9: memref<3x48x8xbf16, #tpu.memory_space<vmem>>, %arg10: memref<2x32xf32, #tpu.memory_space<vmem>>, %arg11: memref<32x16xf32, #tpu.memory_space<vmem>>, %arg12: memref<2x16xf32, #tpu.memory_space<vmem>>, %arg13: memref<3x48x8xbf16, #tpu.memory_space<vmem>>, %arg14: memref<256x40xf32, #tpu.memory_space<vmem>>, %arg15: memref<288x48xf32, #tpu.memory_space<vmem>>) attributes {dimension_semantics = [#tpu.dimension_semantics<parallel>], iteration_bounds = array<i64: 2>, scalar_prefetch = 0 : i64, scratch_operands = 1 : i64, tpu.core_type = #tpu.core_type<tc>, window_params = [{transform_indices = @transform_0, window_bounds = array<i64: 256, 16>}, {pipeline_mode = #tpu.pipeline_mode<synchronous>, transform_indices = @transform_1, window_bounds = array<i64: 2, 16>}, {pipeline_mode = #tpu.pipeline_mode<synchronous>, transform_indices = @transform_2, window_bounds = array<i64: 16, 16>}, {pipeline_mode = #tpu.pipeline_mode<synchronous>, transform_indices = @transform_3, window_bounds = array<i64: 2, 16>}, {pipeline_mode = #tpu.pipeline_mode<synchronous>, transform_indices = @transform_4, window_bounds = array<i64: 3, 48, 8>}, {pipeline_mode = #tpu.pipeline_mode<synchronous>, transform_indices = @transform_5, window_bounds = array<i64: 2, 24>}, {pipeline_mode = #tpu.pipeline_mode<synchronous>, transform_indices = @transform_6, window_bounds = array<i64: 24, 16>}, {pipeline_mode = #tpu.pipeline_mode<synchronous>, transform_indices = @transform_7, window_bounds = array<i64: 2, 16>}, {pipeline_mode = #tpu.pipeline_mode<synchronous>, transform_indices = @transform_8, window_bounds = array<i64: 3, 48, 8>}, {pipeline_mode = #tpu.pipeline_mode<synchronous>, transform_indices = @transform_9, window_bounds = array<i64: 2, 32>}, {pipeline_mode = #tpu.pipeline_mode<synchronous>, transform_indices = @transform_10, window_bounds = array<i64: 32, 16>}, {pipeline_mode = #tpu.pipeline_mode<synchronous>, transform_indices = @transform_11, window_bounds = array<i64: 2, 16>}, {pipeline_mode = #tpu.pipeline_mode<synchronous>, transform_indices = @transform_12, window_bounds = array<i64: 3, 48, 8>}, {transform_indices = @transform_13, window_bounds = array<i64: 256, 40>}]} {
    %cst = arith.constant 0.000000e+00 : f32
    %0 = vector.broadcast %cst : f32 to vector<24x48xf32>
    %c0 = arith.constant 0 : index
    %c0_0 = arith.constant 0 : index
    %1 = vector.load %arg15[%c0, %c0_0] : memref<288x48xf32, #tpu.memory_space<vmem>>, vector<24x48xf32>
    tpu.vector_store %arg15[%c0, %c0_0], %0 {strides = array<i32>} : memref<288x48xf32, #tpu.memory_space<vmem>>, vector<24x48xf32>,
    %c264 = arith.constant 264 : index
    %c0_1 = arith.constant 0 : index
    %2 = vector.load %arg15[%c264, %c0_1] : memref<288x48xf32, #tpu.memory_space<vmem>>, vector<24x48xf32>
    tpu.vector_store %arg15[%c264, %c0_1], %0 {strides = array<i32>} : memref<288x48xf32, #tpu.memory_space<vmem>>, vector<24x48xf32>,
    %3 = tpu.iota {dimensions = array<i32: 0>} : vector<256x1xi32>
    %c16_i32 = arith.constant 16 : i32
    %c0_i32 = arith.constant 0 : i32
    %4 = arith.cmpi eq, %c16_i32, %c0_i32 : i32
    %c1_i32 = arith.constant 1 : i32
    %5 = arith.select %4, %c1_i32, %c16_i32 : i32
    %6 = vector.broadcast %5 : i32 to vector<256x1xi32>
    %7 = arith.remsi %3, %6 : vector<256x1xi32>
    %c0_i32_2 = arith.constant 0 : i32
    %8 = vector.broadcast %c0_i32_2 : i32 to vector<256x1xi32>
    %9 = arith.cmpi ne, %7, %8 : vector<256x1xi32>
    %c0_i32_3 = arith.constant 0 : i32
    %10 = vector.broadcast %c0_i32_3 : i32 to vector<256x1xi32>
    %11 = arith.cmpi slt, %7, %10 : vector<256x1xi32>
    %c0_i32_4 = arith.constant 0 : i32
    %12 = arith.cmpi slt, %5, %c0_i32_4 : i32
    %13 = vector.broadcast %12 : i1 to vector<256x1xi1>
    %14 = vector.broadcast %13 : vector<256x1xi1> to vector<256x1xi1>
    %15 = arith.xori %11, %14 : vector<256x1xi1>
    %16 = arith.andi %15, %9 : vector<256x1xi1>
    %17 = vector.broadcast %5 : i32 to vector<256x1xi32>
    %18 = arith.addi %7, %17 : vector<256x1xi32>
    %19 = arith.select %16, %18, %7 : vector<256x1xi1>, vector<256x1xi32>
    %c15_i32 = arith.constant 15 : i32
    %20 = vector.broadcast %c15_i32 : i32 to vector<256x1xi32>
    %21 = arith.cmpi ne, %19, %20 : vector<256x1xi32>
    %22 = arith.extui %21 : vector<256x1xi1> to vector<256x1xi32>
    %23 = arith.sitofp %22 : vector<256x1xi32> to vector<256x1xf32>
    %c0_i32_5 = arith.constant 0 : i32
    %24 = vector.broadcast %c0_i32_5 : i32 to vector<256x1xi32>
    %25 = arith.cmpi ne, %19, %24 : vector<256x1xi32>
    %26 = arith.extui %25 : vector<256x1xi1> to vector<256x1xi32>
    %27 = arith.sitofp %26 : vector<256x1xi32> to vector<256x1xf32>
    %c0_6 = arith.constant 0 : index
    %c0_7 = arith.constant 0 : index
    %28 = vector.load %arg1[%c0_6, %c0_7] : memref<256x16xf32, #tpu.memory_space<vmem>>, vector<256x16xf32>
    %c0_8 = arith.constant 0 : index
    %c0_9 = arith.constant 0 : index
    %29 = vector.load %arg14[%c0_8, %c0_9] : memref<256x40xf32, #tpu.memory_space<vmem>>, vector<256x16xf32>
    tpu.vector_store %arg14[%c0_8, %c0_9], %28 {strides = array<i32>} : memref<256x40xf32, #tpu.memory_space<vmem>>, vector<256x16xf32>,
    %c0_10 = arith.constant 0 : index
    %c0_11 = arith.constant 0 : index
    %30 = vector.load %arg2[%c0_10, %c0_11] : memref<2x16xf32, #tpu.memory_space<vmem>>, vector<1x16xf32>
    %31 = vector.broadcast %30 : vector<1x16xf32> to vector<256x16xf32>
    %32 = arith.mulf %28, %31 : vector<256x16xf32>
    %c1 = arith.constant 1 : index
    %c0_12 = arith.constant 0 : index
    %33 = vector.load %arg2[%c1, %c0_12] : memref<2x16xf32, #tpu.memory_space<vmem>>, vector<1x16xf32>
    %34 = vector.broadcast %33 : vector<1x16xf32> to vector<256x16xf32>
    %35 = arith.addf %32, %34 : vector<256x16xf32>
    %cst_13 = arith.constant 0.000000e+00 : f32
    %36 = vector.broadcast %cst_13 : f32 to vector<256x16xf32>
    %37 = arith.maximumf %35, %36 : vector<256x16xf32>
    %c0_14 = arith.constant 0 : index
    %c0_15 = arith.constant 0 : index
    %38 = vector.load %arg3[%c0_14, %c0_15] : memref<16x16xf32, #tpu.memory_space<vmem>>, vector<16x16xf32>
    %39 = arith.truncf %38 : vector<16x16xf32> to vector<16x16xbf16>
    %40 = arith.truncf %37 : vector<256x16xf32> to vector<256x16xbf16>
    %cst_16 = arith.constant dense<0.000000e+00> : vector<256x16xf32>
    %41 = tpu.matmul %40, %39, %cst_16 {dimension_numbers = #tpu.dot_dimension_numbers<[1], [0], [0], [1], [0, 0, 1, 1], [], []>} : vector<256x16xbf16>, vector<16x16xbf16>, vector<256x16xf32> -> vector<256x16xf32>
    %c0_17 = arith.constant 0 : index
    %c0_18 = arith.constant 0 : index
    %42 = vector.load %arg4[%c0_17, %c0_18] : memref<2x16xf32, #tpu.memory_space<vmem>>, vector<1x16xf32>
    %43 = vector.broadcast %42 : vector<1x16xf32> to vector<256x16xf32>
    %44 = arith.mulf %41, %43 : vector<256x16xf32>
    %c1_19 = arith.constant 1 : index
    %c0_20 = arith.constant 0 : index
    %45 = vector.load %arg4[%c1_19, %c0_20] : memref<2x16xf32, #tpu.memory_space<vmem>>, vector<1x16xf32>
    %46 = vector.broadcast %45 : vector<1x16xf32> to vector<256x16xf32>
    %47 = arith.addf %44, %46 : vector<256x16xf32>
    %cst_21 = arith.constant 0.000000e+00 : f32
    %48 = vector.broadcast %cst_21 : f32 to vector<256x16xf32>
    %49 = arith.maximumf %47, %48 : vector<256x16xf32>
    %50 = vector.broadcast %23 : vector<256x1xf32> to vector<256x16xf32>
    %51 = arith.mulf %49, %50 : vector<256x16xf32>
    %c17 = arith.constant 17 : index
    %c0_22 = arith.constant 0 : index
    %52 = vector.load %arg15[%c17, %c0_22] : memref<288x48xf32, #tpu.memory_space<vmem>>, vector<256x16xf32>
    tpu.vector_store %arg15[%c17, %c0_22], %51 {strides = array<i32>} : memref<288x48xf32, #tpu.memory_space<vmem>>, vector<256x16xf32>,
    %c16 = arith.constant 16 : index
    %c16_23 = arith.constant 16 : index
    %53 = vector.load %arg15[%c16, %c16_23] : memref<288x48xf32, #tpu.memory_space<vmem>>, vector<256x16xf32>
    tpu.vector_store %arg15[%c16, %c16_23], %49 {strides = array<i32>} : memref<288x48xf32, #tpu.memory_space<vmem>>, vector<256x16xf32>,
    %54 = vector.broadcast %27 : vector<256x1xf32> to vector<256x16xf32>
    %55 = arith.mulf %49, %54 : vector<256x16xf32>
    %c15 = arith.constant 15 : index
    %c32 = arith.constant 32 : index
    %56 = vector.load %arg15[%c15, %c32] : memref<288x48xf32, #tpu.memory_space<vmem>>, vector<256x16xf32>
    tpu.vector_store %arg15[%c15, %c32], %55 {strides = array<i32>} : memref<288x48xf32, #tpu.memory_space<vmem>>, vector<256x16xf32>,
    %c0_24 = arith.constant 0 : index
    %c0_25 = arith.constant 0 : index
    %57 = vector.load %arg15[%c0_24, %c0_25] : memref<288x48xf32, #tpu.memory_space<vmem>>, vector<256x48xf32>
    %58 = arith.truncf %57 : vector<256x48xf32> to vector<256x48xbf16>
    %c0_26 = arith.constant 0 : index
    %c0_27 = arith.constant 0 : index
    %c0_28 = arith.constant 0 : index
    %59 = vector.load %arg5[%c0_26, %c0_27, %c0_28] : memref<3x48x8xbf16, #tpu.memory_space<vmem>>, vector<1x48x8xbf16>
    %60 = vector.shape_cast %59 : vector<1x48x8xbf16> to vector<48x8xbf16>
    %cst_29 = arith.constant dense<0.000000e+00> : vector<256x8xf32>
    %61 = tpu.matmul %58, %60, %cst_29 {dimension_numbers = #tpu.dot_dimension_numbers<[1], [0], [0], [1], [0, 0, 1, 1], [], []>} : vector<256x48xbf16>, vector<48x8xbf16>, vector<256x8xf32> -> vector<256x8xf32>
    %c16_30 = arith.constant 16 : index
    %c0_31 = arith.constant 0 : index
    %62 = vector.load %arg15[%c16_30, %c0_31] : memref<288x48xf32, #tpu.memory_space<vmem>>, vector<256x48xf32>
    %63 = arith.truncf %62 : vector<256x48xf32> to vector<256x48xbf16>
    %c1_32 = arith.constant 1 : index
    %c0_33 = arith.constant 0 : index
    %c0_34 = arith.constant 0 : index
    %64 = vector.load %arg5[%c1_32, %c0_33, %c0_34] : memref<3x48x8xbf16, #tpu.memory_space<vmem>>, vector<1x48x8xbf16>
    %65 = vector.shape_cast %64 : vector<1x48x8xbf16> to vector<48x8xbf16>
    %cst_35 = arith.constant dense<0.000000e+00> : vector<256x8xf32>
    %66 = tpu.matmul %63, %65, %cst_35 {dimension_numbers = #tpu.dot_dimension_numbers<[1], [0], [0], [1], [0, 0, 1, 1], [], []>} : vector<256x48xbf16>, vector<48x8xbf16>, vector<256x8xf32> -> vector<256x8xf32>
    %67 = arith.addf %61, %66 : vector<256x8xf32>
    %c32_36 = arith.constant 32 : index
    %c0_37 = arith.constant 0 : index
    %68 = vector.load %arg15[%c32_36, %c0_37] : memref<288x48xf32, #tpu.memory_space<vmem>>, vector<256x48xf32>
    %69 = arith.truncf %68 : vector<256x48xf32> to vector<256x48xbf16>
    %c2 = arith.constant 2 : index
    %c0_38 = arith.constant 0 : index
    %c0_39 = arith.constant 0 : index
    %70 = vector.load %arg5[%c2, %c0_38, %c0_39] : memref<3x48x8xbf16, #tpu.memory_space<vmem>>, vector<1x48x8xbf16>
    %71 = vector.shape_cast %70 : vector<1x48x8xbf16> to vector<48x8xbf16>
    %cst_40 = arith.constant dense<0.000000e+00> : vector<256x8xf32>
    %72 = tpu.matmul %69, %71, %cst_40 {dimension_numbers = #tpu.dot_dimension_numbers<[1], [0], [0], [1], [0, 0, 1, 1], [], []>} : vector<256x48xbf16>, vector<48x8xbf16>, vector<256x8xf32> -> vector<256x8xf32>
    %73 = arith.addf %67, %72 : vector<256x8xf32>
    %c0_41 = arith.constant 0 : index
    %c16_42 = arith.constant 16 : index
    %74 = vector.load %arg14[%c0_41, %c16_42] : memref<256x40xf32, #tpu.memory_space<vmem>>, vector<256x8xf32>
    tpu.vector_store %arg14[%c0_41, %c16_42], %73 {strides = array<i32>} : memref<256x40xf32, #tpu.memory_space<vmem>>, vector<256x8xf32>,
    %c0_43 = arith.constant 0 : index
    %c0_44 = arith.constant 0 : index
    %75 = vector.load %arg6[%c0_43, %c0_44] : memref<2x24xf32, #tpu.memory_space<vmem>>, vector<1x16xf32>
    %76 = vector.broadcast %75 : vector<1x16xf32> to vector<256x16xf32>
    %77 = arith.mulf %28, %76 : vector<256x16xf32>
    %c1_45 = arith.constant 1 : index
    %c0_46 = arith.constant 0 : index
    %78 = vector.load %arg6[%c1_45, %c0_46] : memref<2x24xf32, #tpu.memory_space<vmem>>, vector<1x16xf32>
    %79 = vector.broadcast %78 : vector<1x16xf32> to vector<256x16xf32>
    %80 = arith.addf %77, %79 : vector<256x16xf32>
    %cst_47 = arith.constant 0.000000e+00 : f32
    %81 = vector.broadcast %cst_47 : f32 to vector<256x16xf32>
    %82 = arith.maximumf %80, %81 : vector<256x16xf32>
    %c0_48 = arith.constant 0 : index
    %c0_49 = arith.constant 0 : index
    %83 = vector.load %arg7[%c0_48, %c0_49] : memref<24x16xf32, #tpu.memory_space<vmem>>, vector<16x16xf32>
    %84 = arith.truncf %83 : vector<16x16xf32> to vector<16x16xbf16>
    %85 = arith.truncf %82 : vector<256x16xf32> to vector<256x16xbf16>
    %cst_50 = arith.constant dense<0.000000e+00> : vector<256x16xf32>
    %86 = tpu.matmul %85, %84, %cst_50 {dimension_numbers = #tpu.dot_dimension_numbers<[1], [0], [0], [1], [0, 0, 1, 1], [], []>} : vector<256x16xbf16>, vector<16x16xbf16>, vector<256x16xf32> -> vector<256x16xf32>
    %c0_51 = arith.constant 0 : index
    %c16_52 = arith.constant 16 : index
    %87 = vector.load %arg6[%c0_51, %c16_52] : memref<2x24xf32, #tpu.memory_space<vmem>>, vector<1x8xf32>
    %88 = vector.broadcast %87 : vector<1x8xf32> to vector<256x8xf32>
    %89 = arith.mulf %73, %88 : vector<256x8xf32>
    %c1_53 = arith.constant 1 : index
    %c16_54 = arith.constant 16 : index
    %90 = vector.load %arg6[%c1_53, %c16_54] : memref<2x24xf32, #tpu.memory_space<vmem>>, vector<1x8xf32>
    %91 = vector.broadcast %90 : vector<1x8xf32> to vector<256x8xf32>
    %92 = arith.addf %89, %91 : vector<256x8xf32>
    %cst_55 = arith.constant 0.000000e+00 : f32
    %93 = vector.broadcast %cst_55 : f32 to vector<256x8xf32>
    %94 = arith.maximumf %92, %93 : vector<256x8xf32>
    %c16_56 = arith.constant 16 : index
    %c0_57 = arith.constant 0 : index
    %95 = vector.load %arg7[%c16_56, %c0_57] : memref<24x16xf32, #tpu.memory_space<vmem>>, vector<8x16xf32>
    %96 = arith.truncf %95 : vector<8x16xf32> to vector<8x16xbf16>
    %97 = arith.truncf %94 : vector<256x8xf32> to vector<256x8xbf16>
    %cst_58 = arith.constant dense<0.000000e+00> : vector<256x16xf32>
    %98 = tpu.matmul %97, %96, %cst_58 {dimension_numbers = #tpu.dot_dimension_numbers<[1], [0], [0], [1], [0, 0, 1, 1], [], []>} : vector<256x8xbf16>, vector<8x16xbf16>, vector<256x16xf32> -> vector<256x16xf32>
    %99 = arith.addf %86, %98 : vector<256x16xf32>
    %c0_59 = arith.constant 0 : index
    %c0_60 = arith.constant 0 : index
    %100 = vector.load %arg8[%c0_59, %c0_60] : memref<2x16xf32, #tpu.memory_space<vmem>>, vector<1x16xf32>
    %101 = vector.broadcast %100 : vector<1x16xf32> to vector<256x16xf32>
    %102 = arith.mulf %99, %101 : vector<256x16xf32>
    %c1_61 = arith.constant 1 : index
    %c0_62 = arith.constant 0 : index
    %103 = vector.load %arg8[%c1_61, %c0_62] : memref<2x16xf32, #tpu.memory_space<vmem>>, vector<1x16xf32>
    %104 = vector.broadcast %103 : vector<1x16xf32> to vector<256x16xf32>
    %105 = arith.addf %102, %104 : vector<256x16xf32>
    %cst_63 = arith.constant 0.000000e+00 : f32
    %106 = vector.broadcast %cst_63 : f32 to vector<256x16xf32>
    %107 = arith.maximumf %105, %106 : vector<256x16xf32>
    %108 = vector.broadcast %23 : vector<256x1xf32> to vector<256x16xf32>
    %109 = arith.mulf %107, %108 : vector<256x16xf32>
    %c17_64 = arith.constant 17 : index
    %c0_65 = arith.constant 0 : index
    %110 = vector.load %arg15[%c17_64, %c0_65] : memref<288x48xf32, #tpu.memory_space<vmem>>, vector<256x16xf32>
    tpu.vector_store %arg15[%c17_64, %c0_65], %109 {strides = array<i32>} : memref<288x48xf32, #tpu.memory_space<vmem>>, vector<256x16xf32>,
    %c16_66 = arith.constant 16 : index
    %c16_67 = arith.constant 16 : index
    %111 = vector.load %arg15[%c16_66, %c16_67] : memref<288x48xf32, #tpu.memory_space<vmem>>, vector<256x16xf32>
    tpu.vector_store %arg15[%c16_66, %c16_67], %107 {strides = array<i32>} : memref<288x48xf32, #tpu.memory_space<vmem>>, vector<256x16xf32>,
    %112 = vector.broadcast %27 : vector<256x1xf32> to vector<256x16xf32>
    %113 = arith.mulf %107, %112 : vector<256x16xf32>
    %c15_68 = arith.constant 15 : index
    %c32_69 = arith.constant 32 : index
    %114 = vector.load %arg15[%c15_68, %c32_69] : memref<288x48xf32, #tpu.memory_space<vmem>>, vector<256x16xf32>
    tpu.vector_store %arg15[%c15_68, %c32_69], %113 {strides = array<i32>} : memref<288x48xf32, #tpu.memory_space<vmem>>, vector<256x16xf32>,
    %c0_70 = arith.constant 0 : index
    %c0_71 = arith.constant 0 : index
    %115 = vector.load %arg15[%c0_70, %c0_71] : memref<288x48xf32, #tpu.memory_space<vmem>>, vector<256x48xf32>
    %116 = arith.truncf %115 : vector<256x48xf32> to vector<256x48xbf16>
    %c0_72 = arith.constant 0 : index
    %c0_73 = arith.constant 0 : index
    %c0_74 = arith.constant 0 : index
    %117 = vector.load %arg9[%c0_72, %c0_73, %c0_74] : memref<3x48x8xbf16, #tpu.memory_space<vmem>>, vector<1x48x8xbf16>
    %118 = vector.shape_cast %117 : vector<1x48x8xbf16> to vector<48x8xbf16>
    %cst_75 = arith.constant dense<0.000000e+00> : vector<256x8xf32>
    %119 = tpu.matmul %116, %118, %cst_75 {dimension_numbers = #tpu.dot_dimension_numbers<[1], [0], [0], [1], [0, 0, 1, 1], [], []>} : vector<256x48xbf16>, vector<48x8xbf16>, vector<256x8xf32> -> vector<256x8xf32>
    %c16_76 = arith.constant 16 : index
    %c0_77 = arith.constant 0 : index
    %120 = vector.load %arg15[%c16_76, %c0_77] : memref<288x48xf32, #tpu.memory_space<vmem>>, vector<256x48xf32>
    %121 = arith.truncf %120 : vector<256x48xf32> to vector<256x48xbf16>
    %c1_78 = arith.constant 1 : index
    %c0_79 = arith.constant 0 : index
    %c0_80 = arith.constant 0 : index
    %122 = vector.load %arg9[%c1_78, %c0_79, %c0_80] : memref<3x48x8xbf16, #tpu.memory_space<vmem>>, vector<1x48x8xbf16>
    %123 = vector.shape_cast %122 : vector<1x48x8xbf16> to vector<48x8xbf16>
    %cst_81 = arith.constant dense<0.000000e+00> : vector<256x8xf32>
    %124 = tpu.matmul %121, %123, %cst_81 {dimension_numbers = #tpu.dot_dimension_numbers<[1], [0], [0], [1], [0, 0, 1, 1], [], []>} : vector<256x48xbf16>, vector<48x8xbf16>, vector<256x8xf32> -> vector<256x8xf32>
    %125 = arith.addf %119, %124 : vector<256x8xf32>
    %c32_82 = arith.constant 32 : index
    %c0_83 = arith.constant 0 : index
    %126 = vector.load %arg15[%c32_82, %c0_83] : memref<288x48xf32, #tpu.memory_space<vmem>>, vector<256x48xf32>
    %127 = arith.truncf %126 : vector<256x48xf32> to vector<256x48xbf16>
    %c2_84 = arith.constant 2 : index
    %c0_85 = arith.constant 0 : index
    %c0_86 = arith.constant 0 : index
    %128 = vector.load %arg9[%c2_84, %c0_85, %c0_86] : memref<3x48x8xbf16, #tpu.memory_space<vmem>>, vector<1x48x8xbf16>
    %129 = vector.shape_cast %128 : vector<1x48x8xbf16> to vector<48x8xbf16>
    %cst_87 = arith.constant dense<0.000000e+00> : vector<256x8xf32>
    %130 = tpu.matmul %127, %129, %cst_87 {dimension_numbers = #tpu.dot_dimension_numbers<[1], [0], [0], [1], [0, 0, 1, 1], [], []>} : vector<256x48xbf16>, vector<48x8xbf16>, vector<256x8xf32> -> vector<256x8xf32>
    %131 = arith.addf %125, %130 : vector<256x8xf32>
    %c0_88 = arith.constant 0 : index
    %c24 = arith.constant 24 : index
    %132 = vector.load %arg14[%c0_88, %c24] : memref<256x40xf32, #tpu.memory_space<vmem>>, vector<256x8xf32>
    tpu.vector_store %arg14[%c0_88, %c24], %131 {strides = array<i32>} : memref<256x40xf32, #tpu.memory_space<vmem>>, vector<256x8xf32>,
    %c0_89 = arith.constant 0 : index
    %c0_90 = arith.constant 0 : index
    %133 = vector.load %arg10[%c0_89, %c0_90] : memref<2x32xf32, #tpu.memory_space<vmem>>, vector<1x16xf32>
    %134 = vector.broadcast %133 : vector<1x16xf32> to vector<256x16xf32>
    %135 = arith.mulf %28, %134 : vector<256x16xf32>
    %c1_91 = arith.constant 1 : index
    %c0_92 = arith.constant 0 : index
    %136 = vector.load %arg10[%c1_91, %c0_92] : memref<2x32xf32, #tpu.memory_space<vmem>>, vector<1x16xf32>
    %137 = vector.broadcast %136 : vector<1x16xf32> to vector<256x16xf32>
    %138 = arith.addf %135, %137 : vector<256x16xf32>
    %cst_93 = arith.constant 0.000000e+00 : f32
    %139 = vector.broadcast %cst_93 : f32 to vector<256x16xf32>
    %140 = arith.maximumf %138, %139 : vector<256x16xf32>
    %c0_94 = arith.constant 0 : index
    %c0_95 = arith.constant 0 : index
    %141 = vector.load %arg11[%c0_94, %c0_95] : memref<32x16xf32, #tpu.memory_space<vmem>>, vector<16x16xf32>
    %142 = arith.truncf %141 : vector<16x16xf32> to vector<16x16xbf16>
    %143 = arith.truncf %140 : vector<256x16xf32> to vector<256x16xbf16>
    %cst_96 = arith.constant dense<0.000000e+00> : vector<256x16xf32>
    %144 = tpu.matmul %143, %142, %cst_96 {dimension_numbers = #tpu.dot_dimension_numbers<[1], [0], [0], [1], [0, 0, 1, 1], [], []>} : vector<256x16xbf16>, vector<16x16xbf16>, vector<256x16xf32> -> vector<256x16xf32>
    %c0_97 = arith.constant 0 : index
    %c16_98 = arith.constant 16 : index
    %145 = vector.load %arg10[%c0_97, %c16_98] : memref<2x32xf32, #tpu.memory_space<vmem>>, vector<1x8xf32>
    %146 = vector.broadcast %145 : vector<1x8xf32> to vector<256x8xf32>
    %147 = arith.mulf %73, %146 : vector<256x8xf32>
    %c1_99 = arith.constant 1 : index
    %c16_100 = arith.constant 16 : index
    %148 = vector.load %arg10[%c1_99, %c16_100] : memref<2x32xf32, #tpu.memory_space<vmem>>, vector<1x8xf32>
    %149 = vector.broadcast %148 : vector<1x8xf32> to vector<256x8xf32>
    %150 = arith.addf %147, %149 : vector<256x8xf32>
    %cst_101 = arith.constant 0.000000e+00 : f32
    %151 = vector.broadcast %cst_101 : f32 to vector<256x8xf32>
    %152 = arith.maximumf %150, %151 : vector<256x8xf32>
    %c16_102 = arith.constant 16 : index
    %c0_103 = arith.constant 0 : index
    %153 = vector.load %arg11[%c16_102, %c0_103] : memref<32x16xf32, #tpu.memory_space<vmem>>, vector<8x16xf32>
    %154 = arith.truncf %153 : vector<8x16xf32> to vector<8x16xbf16>
    %155 = arith.truncf %152 : vector<256x8xf32> to vector<256x8xbf16>
    %cst_104 = arith.constant dense<0.000000e+00> : vector<256x16xf32>
    %156 = tpu.matmul %155, %154, %cst_104 {dimension_numbers = #tpu.dot_dimension_numbers<[1], [0], [0], [1], [0, 0, 1, 1], [], []>} : vector<256x8xbf16>, vector<8x16xbf16>, vector<256x16xf32> -> vector<256x16xf32>
    %157 = arith.addf %144, %156 : vector<256x16xf32>
    %c0_105 = arith.constant 0 : index
    %c24_106 = arith.constant 24 : index
    %158 = vector.load %arg10[%c0_105, %c24_106] : memref<2x32xf32, #tpu.memory_space<vmem>>, vector<1x8xf32>
    %159 = vector.broadcast %158 : vector<1x8xf32> to vector<256x8xf32>
    %160 = arith.mulf %131, %159 : vector<256x8xf32>
    %c1_107 = arith.constant 1 : index
    %c24_108 = arith.constant 24 : index
    %161 = vector.load %arg10[%c1_107, %c24_108] : memref<2x32xf32, #tpu.memory_space<vmem>>, vector<1x8xf32>
    %162 = vector.broadcast %161 : vector<1x8xf32> to vector<256x8xf32>
    %163 = arith.addf %160, %162 : vector<256x8xf32>
    %cst_109 = arith.constant 0.000000e+00 : f32
    %164 = vector.broadcast %cst_109 : f32 to vector<256x8xf32>
    %165 = arith.maximumf %163, %164 : vector<256x8xf32>
    %c24_110 = arith.constant 24 : index
    %c0_111 = arith.constant 0 : index
    %166 = vector.load %arg11[%c24_110, %c0_111] : memref<32x16xf32, #tpu.memory_space<vmem>>, vector<8x16xf32>
    %167 = arith.truncf %166 : vector<8x16xf32> to vector<8x16xbf16>
    %168 = arith.truncf %165 : vector<256x8xf32> to vector<256x8xbf16>
    %cst_112 = arith.constant dense<0.000000e+00> : vector<256x16xf32>
    %169 = tpu.matmul %168, %167, %cst_112 {dimension_numbers = #tpu.dot_dimension_numbers<[1], [0], [0], [1], [0, 0, 1, 1], [], []>} : vector<256x8xbf16>, vector<8x16xbf16>, vector<256x16xf32> -> vector<256x16xf32>
    %170 = arith.addf %157, %169 : vector<256x16xf32>
    %c0_113 = arith.constant 0 : index
    %c0_114 = arith.constant 0 : index
    %171 = vector.load %arg12[%c0_113, %c0_114] : memref<2x16xf32, #tpu.memory_space<vmem>>, vector<1x16xf32>
    %172 = vector.broadcast %171 : vector<1x16xf32> to vector<256x16xf32>
    %173 = arith.mulf %170, %172 : vector<256x16xf32>
    %c1_115 = arith.constant 1 : index
    %c0_116 = arith.constant 0 : index
    %174 = vector.load %arg12[%c1_115, %c0_116] : memref<2x16xf32, #tpu.memory_space<vmem>>, vector<1x16xf32>
    %175 = vector.broadcast %174 : vector<1x16xf32> to vector<256x16xf32>
    %176 = arith.addf %173, %175 : vector<256x16xf32>
    %cst_117 = arith.constant 0.000000e+00 : f32
    %177 = vector.broadcast %cst_117 : f32 to vector<256x16xf32>
    %178 = arith.maximumf %176, %177 : vector<256x16xf32>
    %179 = vector.broadcast %23 : vector<256x1xf32> to vector<256x16xf32>
    %180 = arith.mulf %178, %179 : vector<256x16xf32>
    %c17_118 = arith.constant 17 : index
    %c0_119 = arith.constant 0 : index
    %181 = vector.load %arg15[%c17_118, %c0_119] : memref<288x48xf32, #tpu.memory_space<vmem>>, vector<256x16xf32>
    tpu.vector_store %arg15[%c17_118, %c0_119], %180 {strides = array<i32>} : memref<288x48xf32, #tpu.memory_space<vmem>>, vector<256x16xf32>,
    %c16_120 = arith.constant 16 : index
    %c16_121 = arith.constant 16 : index
    %182 = vector.load %arg15[%c16_120, %c16_121] : memref<288x48xf32, #tpu.memory_space<vmem>>, vector<256x16xf32>
    tpu.vector_store %arg15[%c16_120, %c16_121], %178 {strides = array<i32>} : memref<288x48xf32, #tpu.memory_space<vmem>>, vector<256x16xf32>,
    %183 = vector.broadcast %27 : vector<256x1xf32> to vector<256x16xf32>
    %184 = arith.mulf %178, %183 : vector<256x16xf32>
    %c15_122 = arith.constant 15 : index
    %c32_123 = arith.constant 32 : index
    %185 = vector.load %arg15[%c15_122, %c32_123] : memref<288x48xf32, #tpu.memory_space<vmem>>, vector<256x16xf32>
    tpu.vector_store %arg15[%c15_122, %c32_123], %184 {strides = array<i32>} : memref<288x48xf32, #tpu.memory_space<vmem>>, vector<256x16xf32>,
    %c0_124 = arith.constant 0 : index
    %c0_125 = arith.constant 0 : index
    %186 = vector.load %arg15[%c0_124, %c0_125] : memref<288x48xf32, #tpu.memory_space<vmem>>, vector<256x48xf32>
    %187 = arith.truncf %186 : vector<256x48xf32> to vector<256x48xbf16>
    %c0_126 = arith.constant 0 : index
    %c0_127 = arith.constant 0 : index
    %c0_128 = arith.constant 0 : index
    %188 = vector.load %arg13[%c0_126, %c0_127, %c0_128] : memref<3x48x8xbf16, #tpu.memory_space<vmem>>, vector<1x48x8xbf16>
    %189 = vector.shape_cast %188 : vector<1x48x8xbf16> to vector<48x8xbf16>
    %cst_129 = arith.constant dense<0.000000e+00> : vector<256x8xf32>
    %190 = tpu.matmul %187, %189, %cst_129 {dimension_numbers = #tpu.dot_dimension_numbers<[1], [0], [0], [1], [0, 0, 1, 1], [], []>} : vector<256x48xbf16>, vector<48x8xbf16>, vector<256x8xf32> -> vector<256x8xf32>
    %c16_130 = arith.constant 16 : index
    %c0_131 = arith.constant 0 : index
    %191 = vector.load %arg15[%c16_130, %c0_131] : memref<288x48xf32, #tpu.memory_space<vmem>>, vector<256x48xf32>
    %192 = arith.truncf %191 : vector<256x48xf32> to vector<256x48xbf16>
    %c1_132 = arith.constant 1 : index
    %c0_133 = arith.constant 0 : index
    %c0_134 = arith.constant 0 : index
    %193 = vector.load %arg13[%c1_132, %c0_133, %c0_134] : memref<3x48x8xbf16, #tpu.memory_space<vmem>>, vector<1x48x8xbf16>
    %194 = vector.shape_cast %193 : vector<1x48x8xbf16> to vector<48x8xbf16>
    %cst_135 = arith.constant dense<0.000000e+00> : vector<256x8xf32>
    %195 = tpu.matmul %192, %194, %cst_135 {dimension_numbers = #tpu.dot_dimension_numbers<[1], [0], [0], [1], [0, 0, 1, 1], [], []>} : vector<256x48xbf16>, vector<48x8xbf16>, vector<256x8xf32> -> vector<256x8xf32>
    %196 = arith.addf %190, %195 : vector<256x8xf32>
    %c32_136 = arith.constant 32 : index
    %c0_137 = arith.constant 0 : index
    %197 = vector.load %arg15[%c32_136, %c0_137] : memref<288x48xf32, #tpu.memory_space<vmem>>, vector<256x48xf32>
    %198 = arith.truncf %197 : vector<256x48xf32> to vector<256x48xbf16>
    %c2_138 = arith.constant 2 : index
    %c0_139 = arith.constant 0 : index
    %c0_140 = arith.constant 0 : index
    %199 = vector.load %arg13[%c2_138, %c0_139, %c0_140] : memref<3x48x8xbf16, #tpu.memory_space<vmem>>, vector<1x48x8xbf16>
    %200 = vector.shape_cast %199 : vector<1x48x8xbf16> to vector<48x8xbf16>
    %cst_141 = arith.constant dense<0.000000e+00> : vector<256x8xf32>
    %201 = tpu.matmul %198, %200, %cst_141 {dimension_numbers = #tpu.dot_dimension_numbers<[1], [0], [0], [1], [0, 0, 1, 1], [], []>} : vector<256x48xbf16>, vector<48x8xbf16>, vector<256x8xf32> -> vector<256x8xf32>
    %202 = arith.addf %196, %201 : vector<256x8xf32>
    %c0_142 = arith.constant 0 : index
    %c32_143 = arith.constant 32 : index
    %203 = vector.load %arg14[%c0_142, %c32_143] : memref<256x40xf32, #tpu.memory_space<vmem>>, vector<256x8xf32>
    tpu.vector_store %arg14[%c0_142, %c32_143], %202 {strides = array<i32>} : memref<256x40xf32, #tpu.memory_space<vmem>>, vector<256x8xf32>,
    return
  }
  func.func @transform_0(%arg0: i32) -> (i32, i32) {
    %c0_i32 = arith.constant 0 : i32
    %c0_i32_0 = arith.constant 0 : i32
    return %arg0, %c0_i32 : i32, i32
  }
  func.func @transform_1(%arg0: i32) -> (i32, i32) {
    %c0_i32 = arith.constant 0 : i32
    %c0_i32_0 = arith.constant 0 : i32
    %c0_i32_1 = arith.constant 0 : i32
    return %c0_i32, %c0_i32_0 : i32, i32
  }
  func.func @transform_2(%arg0: i32) -> (i32, i32) {
    %c0_i32 = arith.constant 0 : i32
    %c0_i32_0 = arith.constant 0 : i32
    %c0_i32_1 = arith.constant 0 : i32
    return %c0_i32, %c0_i32_0 : i32, i32
  }
  func.func @transform_3(%arg0: i32) -> (i32, i32) {
    %c0_i32 = arith.constant 0 : i32
    %c0_i32_0 = arith.constant 0 : i32
    %c0_i32_1 = arith.constant 0 : i32
    return %c0_i32, %c0_i32_0 : i32, i32
  }
  func.func @transform_4(%arg0: i32) -> (i32, i32, i32) {
    %c0_i32 = arith.constant 0 : i32
    %c0_i32_0 = arith.constant 0 : i32
    %c0_i32_1 = arith.constant 0 : i32
    %c0_i32_2 = arith.constant 0 : i32
    return %c0_i32, %c0_i32_0, %c0_i32_1 : i32, i32, i32
  }
  func.func @transform_5(%arg0: i32) -> (i32, i32) {
    %c0_i32 = arith.constant 0 : i32
    %c0_i32_0 = arith.constant 0 : i32
    %c0_i32_1 = arith.constant 0 : i32
    return %c0_i32, %c0_i32_0 : i32, i32
  }
  func.func @transform_6(%arg0: i32) -> (i32, i32) {
    %c0_i32 = arith.constant 0 : i32
    %c0_i32_0 = arith.constant 0 : i32
    %c0_i32_1 = arith.constant 0 : i32
    return %c0_i32, %c0_i32_0 : i32, i32
  }
  func.func @transform_7(%arg0: i32) -> (i32, i32) {
    %c0_i32 = arith.constant 0 : i32
    %c0_i32_0 = arith.constant 0 : i32
    %c0_i32_1 = arith.constant 0 : i32
    return %c0_i32, %c0_i32_0 : i32, i32
  }
  func.func @transform_8(%arg0: i32) -> (i32, i32, i32) {
    %c0_i32 = arith.constant 0 : i32
    %c0_i32_0 = arith.constant 0 : i32
    %c0_i32_1 = arith.constant 0 : i32
    %c0_i32_2 = arith.constant 0 : i32
    return %c0_i32, %c0_i32_0, %c0_i32_1 : i32, i32, i32
  }
  func.func @transform_9(%arg0: i32) -> (i32, i32) {
    %c0_i32 = arith.constant 0 : i32
    %c0_i32_0 = arith.constant 0 : i32
    %c0_i32_1 = arith.constant 0 : i32
    return %c0_i32, %c0_i32_0 : i32, i32
  }
  func.func @transform_10(%arg0: i32) -> (i32, i32) {
    %c0_i32 = arith.constant 0 : i32
    %c0_i32_0 = arith.constant 0 : i32
    %c0_i32_1 = arith.constant 0 : i32
    return %c0_i32, %c0_i32_0 : i32, i32
  }
  func.func @transform_11(%arg0: i32) -> (i32, i32) {
    %c0_i32 = arith.constant 0 : i32
    %c0_i32_0 = arith.constant 0 : i32
    %c0_i32_1 = arith.constant 0 : i32
    return %c0_i32, %c0_i32_0 : i32, i32
  }
  func.func @transform_12(%arg0: i32) -> (i32, i32, i32) {
    %c0_i32 = arith.constant 0 : i32
    %c0_i32_0 = arith.constant 0 : i32
    %c0_i32_1 = arith.constant 0 : i32
    %c0_i32_2 = arith.constant 0 : i32
    return %c0_i32, %c0_i32_0, %c0_i32_1 : i32, i32, i32
  }
  func.func @transform_13(%arg0: i32) -> (i32, i32) {
    %c0_i32 = arith.constant 0 : i32
    %c0_i32_0 = arith.constant 0 : i32
    return %arg0, %c0_i32 : i32, i32
  }
}

</mosaic_0001>

<bundles_post_ra>
// kernel: dense_block_forward.1
= control target key start
LH: loop header
LB: loop body
LE: loop exit
PB: predicated region body
PF: predicated region fallthrough
CT: control target
= control target key end

     0   :  { %s13096_s0 = inlined_call_operand.vmem [shape: f32[512,16], index: 0, kind: input, shape index: {}]   ;;  %s13097_s1 = inlined_call_operand.vmem [shape: f32[2,16], index: 1, kind: input, shape index: {}]   ;;  %s13098_s2 = inlined_call_operand.vmem [shape: f32[16,16], index: 2, kind: input, shape index: {}]   ;;  %s13099_s3 = inlined_call_operand.vmem [shape: f32[2,16], index: 3, kind: input, shape index: {}]   ;;  %s13100_s4 = inlined_call_operand.vmem [shape: bf16[3,48,8], index: 4, kind: input, shape index: {}]   ;;  %s13101_s5 = inlined_call_operand.vmem [shape: f32[2,24], index: 5, kind: input, shape index: {}]   ;;  %s13102_s6 = inlined_call_operand.vmem [shape: f32[24,16], index: 6, kind: input, shape index: {}]   ;;  %s13103_s7 = inlined_call_operand.vmem [shape: f32[2,16], index: 7, kind: input, shape index: {}]   ;;  %s13104_s8 = inlined_call_operand.vmem [shape: bf16[3,48,8], index: 8, kind: input, shape index: {}]   ;;  %s13105_s9 = inlined_call_operand.vmem [shape: f32[2,32], index: 9, kind: input, shape index: {}]   ;;  %s13106_s10 = inlined_call_operand.vmem [shape: f32[32,16], index: 10, kind: input, shape index: {}]   ;;  %s13107_s11 = inlined_call_operand.vmem [shape: f32[2,16], index: 11, kind: input, shape index: {}]   ;;  %s13108_s12 = inlined_call_operand.vmem [shape: bf16[3,48,8], index: 12, kind: input, shape index: {}]   ;;  %s13109_s13 = inlined_call_operand.hbm [shape: f32[512,40], index: 13, kind: output, shape index: {}]  }
   0x1   :  { %13274 = sst [smem:[#allocation135_spill]] %s13096_s0 }
   0x2   :  { %13275 = sst [smem:[#allocation136_spill]] %s13097_s1 }
   0x3   :  { %13276 = sst [smem:[#allocation137_spill]] %s13098_s2 }
   0x4   :  { %18 = vsyncpa [#allocation4], 0 }
   0x5   :  { %20 = vsyncpa [#allocation4 + $0x1], 0  ;;  %s9111_s25 = smov 0   ;;  %s9113_s26 = smov 0  }
   0x6   :  { %s9115_s27 = smov 0   ;;  %s9117_s28 = smov 0  }
   0x7 LB: > { %s9132_s29 = sadd.s32 4294967295, %s9030_s28   ;;  %s7648_s30 = sadd.s32 4294967294, %s9030_s28   ;;  %s9030_s28 = sphi %s9117_s28, %s13607_s28   ;;  %s9026_s27 = sphi %s9115_s27, %s13606_s27   ;;  %s9022_s26 = sphi %s9113_s26, %s13605_s26   ;;  %s9018_s25 = sphi %s9111_s25, %s13604_s25  }
   0x8   : > { %s9136_s14 = sadd.s32 1, %s9030_s28   ;;  %s311_s15 = sadd.s32 1, %s9026_s27 }
   0x9   : > { %s308_s16 = ssub.s32 %s9030_s28, %s9136_s14  ;;  %p321_p0 = scmp.ne.s32.totalorder %s9026_s27, %s9022_s26 }
   0xa   : > { %p309_p1 = scmp.eq.s32.totalorder %s308_s16, 0  ;;  %p322_p2 = scmp.eq.s32.totalorder %s9132_s29, 1 }
   0xb   : > { %p327_p3 = scmp.ne.s32.totalorder %s9022_s26, %s9018_s25  ;;  %p328_p4 = scmp.eq.s32.totalorder %s7648_s30, 1 }
   0xc   : > { %s9147_s17 = scalar_select %p309_p1, %s9026_s27, %s311_s15  }
   0xd   : > { %p9149_p5 = por %p322_p2, %p321_p0  ;;  %p9153_p6 = por %p328_p4, %p327_p3 }
   0xe   : > { %p7651_p7 = scmp.ge.s32.totalorder %s9030_s28, 1  ;;  %p391_p8 = scmp.lt.s32.totalorder %s9030_s28, 3 }
  0x10   : > { %p392_p9 = pnand %p7651_p7, %p391_p8 }
  0x12   : > { %395 = sbr.rel (%p392_p9) target bundleno = 2231 (0x8b7), region = 72 }
  0x17   : > { %s13279_s2 = sld [smem:[#allocation137_spill]]  ;;  %s7653_s24 = sshll.u32 %s9132_s29, 5  ;;  %vm1091_vm0 = vcmask 130048   ;;  %vm443_vm1 = vcmask 392192  }
  0x18   : > { %p436_p10 = scmp.lt.s32.totalorder %s7653_s24, 63  ;;  %s13280_s1 = sld [smem:[#allocation136_spill]] }
  0x19   : > { %s13281_s0 = sld [smem:[#allocation135_spill]]  ;;  %s9033_s20 = smov 16  }
  0x1a   : > { %s13609_s24 = smov (!%p436_p10, %s7653_s24), 63  ;;  %s9034_s21 = smov 32  }
  0x1b   : > { %s7654_s16 = sshll.u32 %s13609_s24, 3  ;;  %s13110_s15 = smov 112  }
  0x1c   : > { %s9036_s23 = smov 104  }
  0x1d   : > { %v1230_v0 = vld [vmem:[%s13279_s2] sm:$0xff]  ;;  %v1231_v1 = vld [vmem:[%s13279_s2 + $0x8] sm:$0xff] }
  0x1e   : > { %v1232_v2 = vpack.c.bf16 %v1231_v1, %v1230_v0  ;;  %v9169_v3 = vld [vmem:[%s13280_s1] ss:$0 sm:$0xff]  ;;  %v9174_v4 = vld [vmem:[%s13280_s1 + $0x1] ss:$0 sm:$0xff] }
  0x1f   : > { %s9179_s2 = scalar_lea.vmem %s13281_s0, %s7654_s16 }
  0x20   : > { %8281 = vmatprep.subr.bf16.mxu0 %v1232_v2  ;;  %8827 = vmatprep.subr.bf16.mxu1 %v1232_v2  ;;  %v1059_v5 = vld [vmem:[%s9179_s2] sm:$0xff]  ;;  %v1060_v6 = vld [vmem:[%s9179_s2 + $0x8] sm:$0xff]  ;;  %v1061_v12 = vld [vmem:[%s9179_s2 + $0x10] sm:$0xff] }
  0x21   : > { %8282 = vmatpush3.bf16.msra.mxu0 %v1232_v2  ;;  %8828 = vmatpush3.bf16.msra.mxu1 %v1232_v2  ;;  %v1075_v7 = vld [vmem:[%s9179_s2 + $0x80] sm:$0xff]  ;;  %v1129_v8 = vmul.f32 %v9169_v3, %v1059_v5  ;;  %v1130_v9 = vmul.f32 %v9169_v3, %v1060_v6  ;;  %v1076_v10 = vld [vmem:[%s9179_s2 + $0x88] sm:$0xff]  ;;  %v1062_v13 = vld [vmem:[%s9179_s2 + $0x18] sm:$0xff]  ;;  %v1131_v15 = vmul.f32 %v9169_v3, %v1061_v12 }
  0x22   : > { %v1145_v11 = vmul.f32 %v9169_v3, %v1075_v7  ;;  %v1146_v14 = vmul.f32 %v9169_v3, %v1076_v10  ;;  %v1132_v16 = vmul.f32 %v9169_v3, %v1062_v13  ;;  %v1077_v23 = vld [vmem:[%s9179_s2 + $0x90] sm:$0xff]  ;;  %v1078_v24 = vld [vmem:[%s9179_s2 + $0x98] sm:$0xff]  ;;  %v1063_v28 = vld [vmem:[%s9179_s2 + $0x20] sm:$0xff] }
  0x23   : > { %v1166_v17 = vadd.f32 %v9174_v4, %v1129_v8  ;;  %v1167_v18 = vadd.f32 %v9174_v4, %v1130_v9  ;;  %v1168_v21 = vadd.f32 %v9174_v4, %v1131_v15  ;;  %v1064_v32 = vld [vmem:[%s9179_s2 + $0x28] sm:$0xff]  ;;  %v1147_v34 = vmul.f32 %v9169_v3, %v1077_v23  ;;  %v1065_v36 = vld [vmem:[%s9179_s2 + $0x30] sm:$0xff]  ;;  %v1066_v37 = vld [vmem:[%s9179_s2 + $0x38] sm:$0xff] }
  0x24   : > { %v1182_v19 = vadd.f32 %v9174_v4, %v1145_v11  ;;  %v1183_v20 = vadd.f32 %v9174_v4, %v1146_v14  ;;  %v1169_v22 = vadd.f32 %v9174_v4, %v1132_v16  ;;  %v1148_v35 = vmul.f32 %v9169_v3, %v1078_v24  ;;  %v1079_v41 = vld [vmem:[%s9179_s2 + $0xa0] sm:$0xff]  ;;  %v1080_v45 = vld [vmem:[%s9179_s2 + $0xa8] sm:$0xff]  ;;  %v1081_v46 = vld [vmem:[%s9179_s2 + $0xb0] sm:$0xff] }
  0x25   : > { %v1198_v25 = vmax.f32 %v1166_v17, 0.0  ;;  %v1199_v26 = vmax.f32 %v1167_v18, 0.0  ;;  %v1200_v30 = vmax.f32 %v1168_v21, 0.0  ;;  %v1133_v40 = vmul.f32 %v9169_v3, %v1063_v28  ;;  %v1082_v50 = vld [vmem:[%s9179_s2 + $0xb8] sm:$0xff]  ;;  %v1067_v51 = vld [vmem:[%s9179_s2 + $0x40] sm:$0xff]  ;;  %v1068_v56 = vld [vmem:[%s9179_s2 + $0x48] sm:$0xff] }
  0x26   : > { %v1214_v27 = vmax.f32 %v1182_v19, 0.0  ;;  %v1215_v29 = vmax.f32 %v1183_v20, 0.0  ;;  %v1201_v31 = vmax.f32 %v1169_v22, 0.0  ;;  %v1184_v42 = vadd.f32 %v9174_v4, %v1147_v34  ;;  %v1069_v61 = vld [vmem:[%s9179_s2 + $0x50] sm:$0xff]  ;;  %v1070_v62 = vld [vmem:[%s9179_s2 + $0x58] sm:$0xff]  ;;  %v1071_v5 = vld [vmem:[%s9179_s2 + $0x60] sm:$0xff] }
  0x27   : > { %v1233_v33 = vpack.c.bf16 %v1199_v26, %v1198_v25  ;;  %v1185_v43 = vadd.f32 %v9174_v4, %v1148_v35  ;;  %v1134_v44 = vmul.f32 %v9169_v3, %v1064_v32  ;;  %v1170_v47 = vadd.f32 %v9174_v4, %v1133_v40  ;;  %v1072_v10 = vld [vmem:[%s9179_s2 + $0x68] sm:$0xff]  ;;  %v1073_v15 = vld [vmem:[%s9179_s2 + $0x70] sm:$0xff]  ;;  %v1074_v20 = vld [vmem:[%s9179_s2 + $0x78] sm:$0xff] }
  0x28   : > { %v1241_v38 = vpack.c.bf16 %v1215_v29, %v1214_v27  ;;  %v1234_v39 = vpack.c.bf16 %v1201_v31, %v1200_v30  ;;  %v1135_v48 = vmul.f32 %v9169_v3, %v1065_v36  ;;  %v1136_v49 = vmul.f32 %v9169_v3, %v1066_v37  ;;  %v1083_v25 = vld [vmem:[%s9179_s2 + $0xc0] sm:$0xff]  ;;  %v1084_v30 = vld [vmem:[%s9179_s2 + $0xc8] sm:$0xff]  ;;  %v1085_v35 = vld [vmem:[%s9179_s2 + $0xd0] sm:$0xff] }
  0x29   : > { %8283 = vmatprep.mubr.msk.bf16.mxu0 %vm1091_vm0, %v1233_v33  ;;  %v1216_v52 = vmax.f32 %v1184_v42, 0.0  ;;  %v1217_v53 = vmax.f32 %v1185_v43, 0.0  ;;  %v1171_v54 = vadd.f32 %v9174_v4, %v1134_v44  ;;  %v1149_v55 = vmul.f32 %v9169_v3, %v1079_v41  ;;  %v1086_v40 = vld [vmem:[%s9179_s2 + $0xd8] sm:$0xff] }
  0x2a   : > { %8299 = vmatprep.mubr.msk.bf16.mxu1 %vm1091_vm0, %v1241_v38  ;;  %8284 = vmatmul.mubr.msk.bf16.vlgmr.msra.gmra.mxu0 %vm1091_vm0, %v1234_v39  ;;  %v1202_v57 = vmax.f32 %v1170_v47, 0.0  ;;  %v1172_v58 = vadd.f32 %v9174_v4, %v1135_v48  ;;  %v1173_v59 = vadd.f32 %v9174_v4, %v1136_v49  ;;  %v1150_v60 = vmul.f32 %v9169_v3, %v1080_v45  ;;  %v1087_v49 = vld [vmem:[%s9179_s2 + $0xe0] sm:$0xff] }
  0x2b   : > { %v1242_v63 = vpack.c.bf16 %v1217_v53, %v1216_v52  ;;  %v1203_v0 = vmax.f32 %v1171_v54, 0.0  ;;  %v1186_v1 = vadd.f32 %v9174_v4, %v1149_v55  ;;  %v1151_v2 = vmul.f32 %v9169_v3, %v1081_v46  ;;  %v1088_v54 = vld [vmem:[%s9179_s2 + $0xe8] sm:$0xff] }
  0x2c   : > { %v1204_v6 = vmax.f32 %v1172_v58, 0.0  ;;  %v1205_v7 = vmax.f32 %v1173_v59, 0.0  ;;  %v1187_v8 = vadd.f32 %v9174_v4, %v1150_v60  ;;  %v1152_v9 = vmul.f32 %v9169_v3, %v1082_v50  ;;  %v1089_v59 = vld [vmem:[%s9179_s2 + $0xf0] sm:$0xff] }
  0x2d   : > { %8300 = vmatmul.mubr.msk.bf16.vlgmr.msra.gmra.mxu1 %vm1091_vm0, %v1242_v63  ;;  %v1235_v11 = vpack.c.bf16 %v1203_v0, %v1202_v57  ;;  %v1218_v12 = vmax.f32 %v1186_v1, 0.0  ;;  %v1188_v13 = vadd.f32 %v9174_v4, %v1151_v2  ;;  %v1137_v14 = vmul.f32 %v9169_v3, %v1067_v51  ;;  %v1090_v0 = vld [vmem:[%s9179_s2 + $0xf8] sm:$0xff] }
  0x2e   : > { %v1236_v16 = vpack.c.bf16 %v1205_v7, %v1204_v6  ;;  %v1219_v17 = vmax.f32 %v1187_v8, 0.0  ;;  %v1189_v18 = vadd.f32 %v9174_v4, %v1152_v9  ;;  %v1138_v19 = vmul.f32 %v9169_v3, %v1068_v56 }
  0x2f   : > { %8287 = vmatprep.mubr.msk.bf16.mxu0 %vm1091_vm0, %v1235_v11  ;;  %v1220_v21 = vmax.f32 %v1188_v13, 0.0  ;;  %v1174_v22 = vadd.f32 %v9174_v4, %v1137_v14  ;;  %v1139_v23 = vmul.f32 %v9169_v3, %v1069_v61  ;;  %v1140_v24 = vmul.f32 %v9169_v3, %v1070_v62 }
  0x30   : > { %v1243_v26 = vpack.c.bf16 %v1219_v17, %v1218_v12  ;;  %v1221_v27 = vmax.f32 %v1189_v18, 0.0  ;;  %v1175_v28 = vadd.f32 %v9174_v4, %v1138_v19  ;;  %v1141_v29 = vmul.f32 %v9169_v3, %v1071_v5 }
  0x31   : > { %v1206_v31 = vmax.f32 %v1174_v22, 0.0  ;;  %v1176_v32 = vadd.f32 %v9174_v4, %v1139_v23  ;;  %v1177_v33 = vadd.f32 %v9174_v4, %v1140_v24  ;;  %v1142_v34 = vmul.f32 %v9169_v3, %v1072_v10 }
  0x32   : > { %8288 = vmatmul.mubr.msk.bf16.gmra.mxu0 %vm1091_vm0, %v1236_v16  ;;  %8303 = vmatprep.mubr.msk.bf16.mxu1 %vm1091_vm0, %v1243_v26  ;;  %v1244_v36 = vpack.c.bf16 %v1221_v27, %v1220_v21  ;;  %v1207_v37 = vmax.f32 %v1175_v28, 0.0  ;;  %v1178_v38 = vadd.f32 %v9174_v4, %v1141_v29  ;;  %v1143_v39 = vmul.f32 %v9169_v3, %v1073_v15 }
  0x33   : > { %v1208_v41 = vmax.f32 %v1176_v32, 0.0  ;;  %v1209_v42 = vmax.f32 %v1177_v33, 0.0  ;;  %v1179_v43 = vadd.f32 %v9174_v4, %v1142_v34  ;;  %v1144_v44 = vmul.f32 %v9169_v3, %v1074_v20 }
  0x34   : > { %v1237_v45 = vpack.c.bf16 %v1207_v37, %v1206_v31  ;;  %v1210_v46 = vmax.f32 %v1178_v38, 0.0  ;;  %v1180_v47 = vadd.f32 %v9174_v4, %v1143_v39  ;;  %v1153_v48 = vmul.f32 %v9169_v3, %v1083_v25 }
  0x35   : > { %8304 = vmatmul.mubr.msk.bf16.gmra.mxu1 %vm1091_vm0, %v1244_v36  ;;  %v1238_v50 = vpack.c.bf16 %v1209_v42, %v1208_v41  ;;  %v1211_v51 = vmax.f32 %v1179_v43, 0.0  ;;  %v1181_v52 = vadd.f32 %v9174_v4, %v1144_v44  ;;  %v1154_v53 = vmul.f32 %v9169_v3, %v1084_v30 }
  0x36   : > { %8291 = vmatprep.mubr.msk.bf16.mxu0 %vm1091_vm0, %v1237_v45  ;;  %v1212_v55 = vmax.f32 %v1180_v47, 0.0  ;;  %v1190_v56 = vadd.f32 %v9174_v4, %v1153_v48  ;;  %v1155_v57 = vmul.f32 %v9169_v3, %v1085_v35  ;;  %v1156_v58 = vmul.f32 %v9169_v3, %v1086_v40 }
  0x37   : > { %v1239_v60 = vpack.c.bf16 %v1211_v51, %v1210_v46  ;;  %v1213_v61 = vmax.f32 %v1181_v52, 0.0  ;;  %v1191_v62 = vadd.f32 %v9174_v4, %v1154_v53  ;;  %v1157_v63 = vmul.f32 %v9169_v3, %v1087_v49  ;;  %v9342_v53 = vld [vmem:[%s13099_s3] ss:$0 sm:$0xff] }
  0x38   : > { %v1222_v1 = vmax.f32 %v1190_v56, 0.0  ;;  %v1192_v2 = vadd.f32 %v9174_v4, %v1155_v57  ;;  %v1193_v5 = vadd.f32 %v9174_v4, %v1156_v58  ;;  %v1158_v6 = vmul.f32 %v9169_v3, %v1088_v54 }
  0x39   : > { %v1223_v7 = vmax.f32 %v1191_v62, 0.0  ;;  %v1194_v8 = vadd.f32 %v9174_v4, %v1157_v63  ;;  %v1159_v9 = vmul.f32 %v9169_v3, %v1089_v59  ;;  %v1160_v13 = vmul.f32 %v9169_v3, %v1090_v0  ;;  %v9356_v62 = vld [vmem:[%s13099_s3 + $0x1] ss:$0 sm:$0xff] }
  0x3a   : > { %8292 = vmatmul.mubr.msk.bf16.gmra.mxu0 %vm1091_vm0, %v1238_v50  ;;  %v1224_v10 = vmax.f32 %v1192_v2, 0.0  ;;  %v1225_v11 = vmax.f32 %v1193_v5, 0.0  ;;  %v1195_v12 = vadd.f32 %v9174_v4, %v1158_v6  ;;  %v1240_v17 = vpack.c.bf16 %v1213_v61, %v1212_v55 }
  0x3b   : > { %8295 = vmatprep.mubr.msk.bf16.mxu0 %vm1091_vm0, %v1239_v60  ;;  %v1245_v14 = vpack.c.bf16 %v1223_v7, %v1222_v1  ;;  %v1226_v15 = vmax.f32 %v1194_v8, 0.0  ;;  %v1196_v16 = vadd.f32 %v9174_v4, %v1159_v9  ;;  %v1197_v20 = vadd.f32 %v9174_v4, %v1160_v13 }
  0x3c   : > { %v1246_v18 = vpack.c.bf16 %v1225_v11, %v1224_v10  ;;  %v1227_v19 = vmax.f32 %v1195_v12, 0.0  ;;  %v9032_v24 = vmov 0.0   ;;  %v450_v4 = vlaneseq }
  0x3d   : > { %8307 = vmatprep.mubr.msk.bf16.mxu1 %vm1091_vm0, %v1245_v14  ;;  %v1228_v22 = vmax.f32 %v1196_v16, 0.0  ;;  %v1229_v23 = vmax.f32 %v1197_v20, 0.0  ;;  %446 = vst.msk [vmem:[#allocation2 + $0x10] sm:$0xff] %vm443_vm1, %v9032_v24  ;;  %444 = vst.msk [vmem:[#allocation2] sm:$0xff] %vm443_vm1, %v9032_v24 }
  0x3e   : > { %8308 = vmatmul.mubr.msk.bf16.gmra.mxu1 %vm1091_vm0, %v1246_v18  ;;  %v1247_v21 = vpack.c.bf16 %v1227_v19, %v1226_v15  ;;  %445 = vst.msk [vmem:[#allocation2 + $0x8] sm:$0xff] %vm443_vm1, %v9032_v24  ;;  %447 = vst.msk [vmem:[#allocation2 + $0x108] sm:$0xff] %vm443_vm1, %v9032_v24  ;;  %v9305_v25 = vshrl.u32 %v450_v4, 7 }
  0x3f   : > { %v1248_v3 = vpack.c.bf16 %v1229_v23, %v1228_v22  ;;  %448 = vst.msk [vmem:[#allocation2 + $0x110] sm:$0xff] %vm443_vm1, %v9032_v24  ;;  %449 = vst.msk [vmem:[#allocation2 + $0x118] sm:$0xff] %vm443_vm1, %v9032_v24 }
  0x40   : > { %8311 = vmatprep.mubr.msk.bf16.mxu1 %vm1091_vm0, %v1247_v21  ;;  %v453_v26 = vadd.s32 16, %v9305_v25  ;;  %v454_v27 = vadd.s32 24, %v9305_v25  ;;  %v470_v28 = vadd.s32 152, %v9305_v25  ;;  %v469_v30 = vadd.s32 144, %v9305_v25 }
  0x41   : > { %v452_v31 = vadd.s32 8, %v9305_v25  ;;  %v468_v32 = vadd.s32 136, %v9305_v25  ;;  %v467_v33 = vadd.s32 128, %v9305_v25  ;;  %v487_v36 = vand.u32 15, %v9305_v25 }
  0x42   : > { %8296 = vmatmul.mubr.msk.bf16.gmra.mxu0 %vm1091_vm0, %v1240_v17  ;;  %v501_v29 = vand.u32 15, %v453_v26  ;;  %v508_v34 = vand.u32 15, %v454_v27  ;;  %v620_v35 = vand.u32 15, %v470_v28  ;;  %v613_v37 = vand.u32 15, %v469_v30 }
  0x43   : > { %v494_v38 = vand.u32 15, %v452_v31  ;;  %v458_v39 = vadd.s32 56, %v9305_v25  ;;  %v474_v40 = vadd.s32 184, %v9305_v25  ;;  %v606_v41 = vand.u32 15, %v468_v32 }
  0x44   : > { %vm965_vm2 = vcmp.ne.s32.totalorder %v501_v29, 0  ;;  %v456_v42 = vadd.s32 40, %v9305_v25  ;;  %v472_v43 = vadd.s32 168, %v9305_v25  ;;  %v599_v44 = vand.u32 15, %v467_v33 }
  0x45   : > { %v462_v45 = vadd.s32 88, %v9305_v25  ;;  %vm870_vm3 = vcmp.ne.s32.totalorder %v508_v34, 15  ;;  %vm9320_vm4 = vcmp.ne.s32.totalorder %v620_v35, 15  ;;  %v9325_v47 = vsel %vm965_vm2, 1.0, %v9032_v24 }
  0x46   : > { %8312 = vmatmul.mubr.msk.bf16.gmra.mxu1 %vm1091_vm0, %v1248_v3  ;;  %vm9327_vm5 = vcmp.ne.s32.totalorder %v487_v36, 0  ;;  %vm9331_vm6 = vcmp.ne.s32.totalorder %v613_v37, 0  ;;  %vm9335_vm7 = vcmp.ne.s32.totalorder %v494_v38, 15  ;;  %v536_v51 = vand.u32 15, %v458_v39 }
  0x47   : > { %v648_v52 = vand.u32 15, %v474_v40  ;;  %vm9344_vm8 = vcmp.ne.s32.totalorder %v606_v41, 15  ;;  %v522_v55 = vand.u32 15, %v456_v42  ;;  %v634_v56 = vand.u32 15, %v472_v43 }
  0x48   : > { %v460_v57 = vadd.s32 72, %v9305_v25  ;;  %v9350_v58 = vsel %vm870_vm3, 1.0, %v9032_v24  ;;  %vm979_vm9 = vcmp.ne.s32.totalorder %v599_v44, 0  ;;  %v564_v59 = vand.u32 15, %v462_v45 }
  0x49   : > { %13292 = vst [vmem:[#allocation6_spill] sm:$0xff] %v9350_v58  ;;  %v466_v60 = vadd.s32 120, %v9305_v25  ;;  %v9361_v63 = vsel %vm9320_vm4, 1.0, %v9032_v24  ;;  %v9366_v0 = vsel %vm9331_vm6, 1.0, %v9032_v24  ;;  %v9371_v1 = vsel %vm9335_vm7, 1.0, %v9032_v24 }
  0x4a   : > { %13293 = vst [vmem:[#allocation7_spill] sm:$0xff] %v9361_v63  ;;  %13294 = vst [vmem:[#allocation8_spill] sm:$0xff] %v9366_v0  ;;  %v9376_v2 = vsel %vm9327_vm5, 1.0, %v9032_v24  ;;  %vm874_vm10 = vcmp.ne.s32.totalorder %v536_v51, 15  ;;  %v9382_v6 = vsel %vm9344_vm8, 1.0, %v9032_v24  ;;  %vm890_vm11 = vcmp.ne.s32.totalorder %v648_v52, 15 }
  0x4b   : > { %13295 = vst [vmem:[#allocation9_spill] sm:$0xff] %v9371_v1  ;;  %13296 = vst [vmem:[#allocation10_spill] sm:$0xff] %v9376_v2  ;;  %v9385_v8 = vsel %vm979_vm9, 1.0, %v9032_v24  ;;  %vm9387_vm12 = vcmp.ne.s32.totalorder %v522_v55, 15  ;;  %vm9391_vm13 = vcmp.ne.s32.totalorder %v634_v56, 15  ;;  %v550_v11 = vand.u32 15, %v460_v57 }
  0x4c   : > { %13297 = vst [vmem:[#allocation11_spill] sm:$0xff] %v9382_v6  ;;  %13298 = vst [vmem:[#allocation12_spill] sm:$0xff] %v9385_v8  ;;  %vm878_vm14 = vcmp.ne.s32.totalorder %v564_v59, 15  ;;  %v592_v14 = vand.u32 15, %v466_v60  ;;  %v9398_v16 = vsel %vm874_vm10, 1.0, %v9032_v24  ;;  %v9401_v17 = vsel %vm890_vm11, 1.0, %v9032_v24 }
  0x4d   : > { %13303 = vst [vmem:[#allocation13_spill] sm:$0xff] %v9398_v16  ;;  %13304 = vst [vmem:[#allocation14_spill] sm:$0xff] %v9401_v17  ;;  %v9404_v18 = vadd.s32 48, %v9305_v25  ;;  %v464_v19 = vadd.s32 104, %v9305_v25  ;;  %v9412_v3 = vsel %vm9387_vm12, 1.0, %v9032_v24  ;;  %v9416_v27 = vsel %vm878_vm14, 1.0, %v9032_v24 }
  0x4e   : > { %13305 = vst [vmem:[#allocation15_spill] sm:$0xff] %v9412_v3  ;;  %13306 = vst [vmem:[#allocation16_spill] sm:$0xff] %v9416_v27  ;;  %v9421_v28 = vsel %vm9391_vm13, 1.0, %v9032_v24  ;;  %vm9423_vm15 = vcmp.ne.s32.totalorder %v550_v11, 15  ;;  %vm9433_vm2 = vcmp.ne.s32.totalorder %v592_v14, 15  ;;  %v478_v38 = vadd.s32 216, %v9305_v25 }
  0x4f   : > { %13307 = vst [vmem:[#allocation17_spill] sm:$0xff] %v9421_v28  ;;  %v578_v39 = vand.u32 15, %v464_v19  ;;  %v9449_v44 = vsel %vm9423_vm15, 1.0, %v9032_v24  ;;  %v9460_v50 = vsel %vm9433_vm2, 1.0, %v9032_v24 }
  0x50   : > { %13312 = vst [vmem:[#allocation18_spill] sm:$0xff] %v9449_v44  ;;  %13313 = vst [vmem:[#allocation19_spill] sm:$0xff] %v9460_v50 }
  0x51   : > { %vm9476_vm3 = vcmp.ne.s32.totalorder %v578_v39, 15 }
  0xea   : > { %v8285_v61 = vpop.f32.mrf.mxu0 }
  0xeb   : > { %v1465_v5 = vmul.f32 %v8285_v61, %v9342_v53 }
  0xec   : > { %v1331_v7 = vpop.f32.mrf.mxu0 }
  0xed   : > { %v1502_v12 = vadd.f32 %v9356_v62, %v1465_v5  ;;  %v1463_v13 = vmul.f32 %v9342_v53, %v1331_v7  ;;  %v8301_v21 = vpop.f32.mrf.mxu1  ;;  %v676_v5 = vand.u32 15, %v478_v38  ;;  %v8881_v7 = vld [vmem:[%s13100_s4] sm:$0xff]  }
  0xee   : > { %v8286_v15 = vpop.f32.mrf.mxu0  ;;  %v1481_v4 = vmul.f32 %v8301_v21, %v9342_v53 }
  0xef   : > { %v1534_v20 = vmax.f32 %v1502_v12, 0.0  ;;  %v1500_v22 = vadd.f32 %v9356_v62, %v1463_v13  ;;  %v1466_v23 = vmul.f32 %v8286_v15, %v9342_v53  ;;  %v1395_v31 = vpop.f32.mrf.mxu1  ;;  %vm9520_vm4 = vcmp.ne.s32.totalorder %v676_v5, 15 }
  0xf0   : > { %v1334_v26 = vpop.f32.mrf.mxu0  ;;  %v1518_v35 = vadd.f32 %v9356_v62, %v1481_v4  ;;  %v1479_v36 = vmul.f32 %v9342_v53, %v1395_v31  ;;  %v9502_v31 = vadd.s32 200, %v9305_v25 }
  0xf1   : > { %1598 = vst.msk [vmem:[#allocation2 + $0x21] sm:$0xff] %vm1091_vm0, %v1534_v20  ;;  %v9428_v30 = vmax.f32 %v1500_v22, 0.0  ;;  %v1503_v32 = vadd.f32 %v9356_v62, %v1466_v23  ;;  %v1464_v33 = vmul.f32 %v9342_v53, %v1334_v26  ;;  %1664 = vrot.lane.b32.xlu1 %v1534_v20, %s9033_s20  ;;  %v8302_v41 = vpop.f32.mrf.mxu1  ;;  %v1791_v19 = vmul.f32 %v9325_v47, %v1534_v20 }
  0xf2   : > { %v8289_v37 = vpop.f32.mrf.mxu0  ;;  %v9453_v45 = vmax.f32 %v1518_v35, 0.0  ;;  %v1516_v46 = vadd.f32 %v9356_v62, %v1479_v36  ;;  %v1482_v48 = vmul.f32 %v8302_v41, %v9342_v53  ;;  %v8879_v36 = vld [vmem:[%s13100_s4 + $0x10] sm:$0xff]  }
  0xf3   : > { %v9440_v40 = vmax.f32 %v1503_v32, 0.0  ;;  %v1501_v42 = vadd.f32 %v9356_v62, %v1464_v33  ;;  %1660 = vrot.lane.b32.xlu0 %v9428_v30, %s9033_s20  ;;  %v1469_v43 = vmul.f32 %v8289_v37, %v9342_v53  ;;  %1596 = vst.msk [vmem:[#allocation2 + $0x11] sm:$0xff] %vm1091_vm0, %v9428_v30  ;;  %v1398_v52 = vpop.f32.mrf.mxu1  ;;  %8353 = vmatprep.subr.bf16.mxu0 %v8879_v36 }
  0xf4   : > { %v1347_v49 = vpop.f32.mrf.mxu0  ;;  %1614 = vst.msk [vmem:[#allocation2 + $0xa1] sm:$0xff] %vm1091_vm0, %v9453_v45  ;;  %v9470_v57 = vmax.f32 %v1516_v46, 0.0  ;;  %v1519_v59 = vadd.f32 %v9356_v62, %v1482_v48  ;;  %v1480_v60 = vmul.f32 %v9342_v53, %v1398_v52  ;;  %8354 = vmatpush3.bf16.msra.mxu0 %v8879_v36 }
  0xf5   : > { %v1567_v51 = vmul.f32 %v9350_v58, %v9440_v40  ;;  %v9464_v54 = vmax.f32 %v1501_v42, 0.0  ;;  %v1506_v55 = vadd.f32 %v9356_v62, %v1469_v43  ;;  %v1467_v56 = vmul.f32 %v9342_v53, %v1347_v49  ;;  %1696 = vrot.lane.b32.xlu1 %v9453_v45, %s9033_s20  ;;  %v8305_v13 = vpop.f32.mrf.mxu1 }
  0xf6   : > { %v8290_v61 = vpop.f32.mrf.mxu0  ;;  %1612 = vst.msk [vmem:[#allocation2 + $0x91] sm:$0xff] %vm1091_vm0, %v9470_v57  ;;  %v1551_v14 = vmax.f32 %v1519_v59, 0.0  ;;  %v1517_v15 = vadd.f32 %v9356_v62, %v1480_v60  ;;  %v1485_v22 = vmul.f32 %v8305_v13, %v9342_v53 }
  0xf7   : > { %1599 = vst.msk [vmem:[#allocation2 + $0x29] sm:$0xff] %vm1091_vm0, %v1567_v51  ;;  %1859 = vrot.lane.b32.xlu0 %v9440_v40, %s9034_s21  ;;  %v1565_v9 = vmul.f32 %v9371_v1, %v9464_v54  ;;  %v9485_v10 = vmax.f32 %v1506_v55, 0.0  ;;  %v1504_v11 = vadd.f32 %v9356_v62, %v1467_v56  ;;  %v1470_v12 = vmul.f32 %v8290_v61, %v9342_v53  ;;  %v1411_v29 = vpop.f32.mrf.mxu1 }
  0xf8   : > { %v1350_v21 = vpop.f32.mrf.mxu0  ;;  %v1583_v20 = vmul.f32 %v9361_v63, %v1551_v14  ;;  %v1522_v32 = vadd.f32 %v9356_v62, %v1485_v22  ;;  %v9507_v33 = vmax.f32 %v1517_v15, 0.0  ;;  %v1483_v34 = vmul.f32 %v9342_v53, %v1411_v29  ;;  %v8880_v22 = vld [vmem:[%s13100_s4 + $0x8] sm:$0xff]  }
  0xf9   : > { %1597 = vst.msk [vmem:[#allocation2 + $0x19] sm:$0xff] %vm1091_vm0, %v1565_v9  ;;  %1602 = vst.msk [vmem:[#allocation2 + $0x41] sm:$0xff] %vm1091_vm0, %v9485_v10  ;;  %v9497_v23 = vmax.f32 %v1504_v11, 0.0  ;;  %v1507_v4 = vadd.f32 %v9356_v62, %v1470_v12  ;;  %v1468_v26 = vmul.f32 %v9342_v53, %v1350_v21  ;;  %1857 = vrot.lane.b32.xlu1 %v1791_v19, %s9034_s21  ;;  %v8306_v39 = vpop.f32.mrf.mxu1  ;;  %v662_v12 = vand.u32 15, %v9502_v31 }
  0xfa   : > { %v8293_v35 = vpop.f32.mrf.mxu0  ;;  %1615 = vst.msk [vmem:[#allocation2 + $0xa9] sm:$0xff] %vm1091_vm0, %v1583_v20  ;;  %v9525_v43 = vmax.f32 %v1522_v32, 0.0  ;;  %v1581_v46 = vmul.f32 %v9382_v6, %v9507_v33  ;;  %v1520_v48 = vadd.f32 %v9356_v62, %v1483_v34  ;;  %v1486_v49 = vmul.f32 %v8306_v39, %v9342_v53  ;;  %8355 = vmatprep.subr.bf16.mxu0 %v8880_v22 }
  0xfb   : > { %1698 = vrot.lane.b32.xlu0 %v1551_v14, %s9033_s20  ;;  %1600 = vst.msk [vmem:[#allocation2 + $0x31] sm:$0xff] %vm1091_vm0, %v9497_v23  ;;  %v9516_v37 = vmax.f32 %v1507_v4, 0.0  ;;  %v1505_v38 = vadd.f32 %v9356_v62, %v1468_v26  ;;  %v1473_v41 = vmul.f32 %v8293_v35, %v9342_v53  ;;  %v1414_v55 = vpop.f32.mrf.mxu1  ;;  %v1807_v4 = vmul.f32 %v9366_v0, %v9453_v45 }
  0xfc   : > { %v1363_v51 = vpop.f32.mrf.mxu0  ;;  %1618 = vst.msk [vmem:[#allocation2 + $0xc1] sm:$0xff] %vm1091_vm0, %v9525_v43  ;;  %1613 = vst.msk [vmem:[#allocation2 + $0x99] sm:$0xff] %vm1091_vm0, %v1581_v46  ;;  %v9542_v61 = vmax.f32 %v1520_v48, 0.0  ;;  %v1523_v5 = vadd.f32 %v9356_v62, %v1486_v49  ;;  %v1484_v9 = vmul.f32 %v9342_v53, %v1414_v55  ;;  %v9566_v20 = vadd.s32 248, %v9305_v25  ;;  %8356 = vmatpush3.bf16.msra.mxu0 %v8880_v22 }
  0xfd   : > { %v1571_v52 = vmul.f32 %v9398_v16, %v9516_v37  ;;  %v1510_v56 = vadd.f32 %v9356_v62, %v1473_v41  ;;  %v1471_v59 = vmul.f32 %v9342_v53, %v1363_v51  ;;  %v9535_v60 = vmax.f32 %v1505_v38, 0.0  ;;  %1692 = vrot.lane.b32.xlu1 %v9470_v57, %s9033_s20  ;;  %8357 = vmatprep.subr.bf16.mxu0 %v8881_v7 }
  0xfe   : > { %v8294_v11 = vpop.f32.mrf.mxu0  ;;  %1616 = vst.msk [vmem:[#allocation2 + $0xb1] sm:$0xff] %vm1091_vm0, %v9542_v61  ;;  %v1521_v26 = vadd.f32 %v9356_v62, %v1484_v9  ;;  %v8309_v31 = vpop.f32.mrf.mxu1  ;;  %v9578_v35 = vsel %vm9476_vm3, 1.0, %v9032_v24  ;;  %v9589_v48 = vsel %vm9520_vm4, 1.0, %v9032_v24  ;;  %vm9602_vm5 = vcmp.ne.s32.totalorder %v662_v12, 15 }
  0xff   : > { %1891 = vrot.lane.b32.xlu0 %v1551_v14, %s9034_s21  ;;  %1603 = vst.msk [vmem:[#allocation2 + $0x49] sm:$0xff] %vm1091_vm0, %v1571_v52  ;;  %v9549_v13 = vmax.f32 %v1510_v56, 0.0  ;;  %v1508_v15 = vadd.f32 %v9356_v62, %v1471_v59  ;;  %v1474_v19 = vmul.f32 %v8294_v11, %v9342_v53  ;;  %v1569_v21 = vmul.f32 %v9412_v3, %v9535_v60 }
 0x100   : > { %v9562_v14 = vmax.f32 %v1523_v5, 0.0  ;;  %v1366_v29 = vpop.f32.mrf.mxu0  ;;  %13318 = vst [vmem:[#allocation20_spill] sm:$0xff] %v9578_v35  ;;  %v9583_v38 = vmax.f32 %v1521_v26, 0.0  ;;  %v1489_v41 = vmul.f32 %v8309_v31, %v9342_v53  ;;  %v1427_v46 = vpop.f32.mrf.mxu1  ;;  %13319 = vst [vmem:[#allocation21_spill] sm:$0xff] %v9589_v48  ;;  %v704_v11 = vand.u32 15, %v9566_v20  ;;  %8358 = vmatpush3.bf16.msra.mxu0 %v8881_v7 }
 0x101   : > { %1606 = vst.msk [vmem:[#allocation2 + $0x61] sm:$0xff] %vm1091_vm0, %v9549_v13  ;;  %v9570_v32 = vmax.f32 %v1508_v15, 0.0  ;;  %v1511_v34 = vadd.f32 %v9356_v62, %v1474_v19  ;;  %1601 = vst.msk [vmem:[#allocation2 + $0x39] sm:$0xff] %vm1091_vm0, %v1569_v21  ;;  %v1472_v45 = vmul.f32 %v9342_v53, %v1366_v29  ;;  %1889 = vrot.lane.b32.xlu1 %v1807_v4, %s9034_s21  ;;  %v480_v20 = vadd.s32 232, %v9305_v25 }
 0x102   : > { %v1587_v36 = vmul.f32 %v9401_v17, %v9562_v14  ;;  %v8297_v39 = vpop.f32.mrf.mxu0  ;;  %v1585_v55 = vmul.f32 %v9421_v28, %v9583_v38  ;;  %v1526_v59 = vadd.f32 %v9356_v62, %v1489_v41  ;;  %v1487_v5 = vmul.f32 %v9342_v53, %v1427_v46  ;;  %v8310_v9 = vpop.f32.mrf.mxu1 }
 0x103   : > { %1662 = vrot.lane.b32.xlu0 %v9464_v54, %s9033_s20  ;;  %1604 = vst.msk [vmem:[#allocation2 + $0x51] sm:$0xff] %vm1091_vm0, %v9570_v32  ;;  %v9598_v49 = vmax.f32 %v1511_v34, 0.0  ;;  %v1509_v51 = vadd.f32 %v9356_v62, %v1472_v45  ;;  %v1477_v52 = vmul.f32 %v8297_v39, %v9342_v53  ;;  %v1490_v29 = vmul.f32 %v8310_v9, %v9342_v53 }
 0x104   : > { %1619 = vst.msk [vmem:[#allocation2 + $0xc9] sm:$0xff] %vm1091_vm0, %v1587_v36  ;;  %v1379_v56 = vpop.f32.mrf.mxu0  ;;  %1617 = vst.msk [vmem:[#allocation2 + $0xb9] sm:$0xff] %vm1091_vm0, %v1585_v55  ;;  %v9621_v4 = vmax.f32 %v1526_v59, 0.0  ;;  %v1524_v26 = vadd.f32 %v9356_v62, %v1487_v5  ;;  %v1430_v31 = vpop.f32.mrf.mxu1  ;;  %v1789_v39 = vmul.f32 %v9376_v2, %v9428_v30  ;;  %vm9670_vm6 = vcmp.ne.s32.totalorder %v704_v11, 15 }
 0x105   : > { %v1575_v12 = vmul.f32 %v9416_v27, %v9598_v49  ;;  %v1514_v15 = vadd.f32 %v9356_v62, %v1477_v52  ;;  %v1475_v19 = vmul.f32 %v9342_v53, %v1379_v56  ;;  %v9616_v21 = vmax.f32 %v1509_v51, 0.0  ;;  %1666 = vrot.lane.b32.xlu1 %v9440_v40, %s9033_s20 }
 0x106   : > { %v8298_v22 = vpop.f32.mrf.mxu0  ;;  %1622 = vst.msk [vmem:[#allocation2 + $0xe1] sm:$0xff] %vm1091_vm0, %v9621_v4  ;;  %v9639_v46 = vmax.f32 %v1524_v26, 0.0  ;;  %v1488_v7 = vmul.f32 %v9342_v53, %v1430_v31  ;;  %v8313_v51 = vpop.f32.mrf.mxu1  ;;  %v9653_v56 = vsel %vm9602_vm5, 1.0, %v9032_v24  ;;  %vm1756_vm5 = vcmask 261248  }
 0x107   : > { %1855 = vrot.lane.b32.xlu0 %v9464_v54, %s9034_s21  ;;  %1607 = vst.msk [vmem:[#allocation2 + $0x69] sm:$0xff] %vm1091_vm0, %v1575_v12  ;;  %v9629_v34 = vmax.f32 %v1514_v15, 0.0  ;;  %v1512_v40 = vadd.f32 %v9356_v62, %v1475_v19  ;;  %v1478_v45 = vmul.f32 %v8298_v22, %v9342_v53  ;;  %v1573_v36 = vmul.f32 %v9449_v44, %v9616_v21 }
 0x108   : > { %v1382_v41 = vpop.f32.mrf.mxu0  ;;  %v1527_v54 = vadd.f32 %v9356_v62, %v1490_v29  ;;  %13322 = vst [vmem:[#allocation22_spill] sm:$0xff] %v9653_v56  ;;  %1620 = vst.msk [vmem:[#allocation2 + $0xd1] sm:$0xff] %vm1091_vm0, %v9639_v46  ;;  %v1525_v5 = vadd.f32 %v9356_v62, %v1488_v7  ;;  %v1493_v9 = vmul.f32 %v8313_v51, %v9342_v53  ;;  %v1443_v12 = vpop.f32.mrf.mxu1  ;;  %v690_v15 = vand.u32 15, %v480_v20 }
 0x109   : > { %1610 = vst.msk [vmem:[#allocation2 + $0x81] sm:$0xff] %vm1091_vm0, %v9629_v34  ;;  %v9645_v52 = vmax.f32 %v1512_v40, 0.0  ;;  %v1515_v55 = vadd.f32 %v9356_v62, %v1478_v45  ;;  %v1476_v30 = vmul.f32 %v9342_v53, %v1382_v41  ;;  %1605 = vst.msk [vmem:[#allocation2 + $0x59] sm:$0xff] %vm1091_vm0, %v1573_v36  ;;  %1853 = vrot.lane.b32.xlu1 %v1789_v39, %s9034_s21 }
 0x10a   : > { %v9658_v59 = vmax.f32 %v1527_v54, 0.0  ;;  %v1491_v22 = vmul.f32 %v9342_v53, %v1443_v12  ;;  %v1805_v29 = vmul.f32 %v9385_v8, %v9470_v57  ;;  %v1530_v20 = vadd.f32 %v9356_v62, %v1493_v9  ;;  %v8314_v40 = vpop.f32.mrf.mxu1 }
 0x10b   : > { %1694 = vrot.lane.b32.xlu0 %v9507_v33, %s9033_s20  ;;  %1608 = vst.msk [vmem:[#allocation2 + $0x71] sm:$0xff] %vm1091_vm0, %v9645_v52  ;;  %v9666_v42 = vmax.f32 %v1515_v55, 0.0  ;;  %v1513_v19 = vadd.f32 %v9356_v62, %v1476_v30  ;;  %v9679_v45 = vmax.f32 %v1525_v5, 0.0  ;;  %v1494_v41 = vmul.f32 %v8314_v40, %v9342_v53 }
 0x10c   : > { %v1591_v31 = vmul.f32 %v9589_v48, %v9658_v59  ;;  %v1528_v11 = vadd.f32 %v9356_v62, %v1491_v22  ;;  %v529_v57 = vand.u32 15, %v9404_v18  ;;  %v9690_v54 = vmax.f32 %v1530_v20, 0.0  ;;  %v1446_v7 = vpop.f32.mrf.mxu1  ;;  %v8882_v22 = vld [vmem:[%s13100_s4 + $0x28] sm:$0xff]  }
 0x10d   : > { %v1579_v36 = vmul.f32 %v9460_v50, %v9666_v42  ;;  %v9683_v39 = vmax.f32 %v1513_v19, 0.0  ;;  %1885 = vrot.lane.b32.xlu1 %v1805_v29, %s9034_s21  ;;  %v1589_v51 = vmul.f32 %v9653_v56, %v9679_v45  ;;  %vm9694_vm7 = vcmp.ne.s32.totalorder %v690_v15, 15  ;;  %8315 = vmatprep.subr.bf16.mxu1 %v8882_v22 }
 0x10e   : > { %1623 = vst.msk [vmem:[#allocation2 + $0xe9] sm:$0xff] %vm1091_vm0, %v1591_v31  ;;  %v9703_v30 = vmax.f32 %v1528_v11, 0.0  ;;  %v1531_v5 = vadd.f32 %v9356_v62, %v1494_v41  ;;  %v1492_v9 = vmul.f32 %v9342_v53, %v1446_v7  ;;  %v9710_v12 = vsel %vm9670_vm6, 1.0, %v9032_v24  ;;  %1626 = vst.msk [vmem:[#allocation2 + $0x101] sm:$0xff] %vm1091_vm0, %v9690_v54  ;;  %8316 = vmatpush3.bf16.msra.mxu1 %v8882_v22  ;;  %v9808_v22 = vld [vmem:[%s13100_s4 + $0x40] sm:$0xff]  }
 0x10f   : > { %1887 = vrot.lane.b32.xlu0 %v9507_v33, %s9034_s21  ;;  %1611 = vst.msk [vmem:[#allocation2 + $0x89] sm:$0xff] %vm1091_vm0, %v1579_v36  ;;  %v1577_v18 = vmul.f32 %v9578_v35, %v9683_v39  ;;  %13327 = vst [vmem:[#allocation23_spill] sm:$0xff] %v9710_v12  ;;  %vm969_vm8 = vcmp.ne.s32.totalorder %v529_v57, 0  ;;  %v455_v53 = vadd.s32 32, %v9305_v25  ;;  %v9727_v19 = vsel %vm9694_vm7, 1.0, %v9032_v24  ;;  %v8883_v36 = vld [vmem:[%s13100_s4 + $0x20] sm:$0xff]  }
 0x110   : > { %1621 = vst.msk [vmem:[#allocation2 + $0xd9] sm:$0xff] %vm1091_vm0, %v1589_v51  ;;  %1624 = vst.msk [vmem:[#allocation2 + $0xf1] sm:$0xff] %vm1091_vm0, %v9703_v30  ;;  %v9718_v33 = vmax.f32 %v1531_v5, 0.0  ;;  %v1529_v15 = vadd.f32 %v9356_v62, %v1492_v9  ;;  %v9739_v29 = vsel %vm969_vm8, 1.0, %v9032_v24  ;;  %v471_v40 = vadd.s32 160, %v9305_v25  ;;  %8317 = vmatprep.subr.bf16.mxu1 %v8883_v36  ;;  %v8884_v57 = vld [vmem:[%s13100_s4 + $0x18] sm:$0xff]  }
 0x111   : > { %1609 = vst.msk [vmem:[#allocation2 + $0x79] sm:$0xff] %vm1091_vm0, %v1577_v18  ;;  %1672 = vrot.lane.b32.xlu1 %v9485_v10, %s9033_s20  ;;  %13328 = vst [vmem:[#allocation24_spill] sm:$0xff] %v9727_v19  ;;  %v515_v20 = vand.u32 15, %v455_v53  ;;  %v1795_v11 = vmul.f32 %v9739_v29, %v9485_v10  ;;  %v459_v5 = vadd.s32 64, %v9305_v25  ;;  %vm1949_vm7 = vcmask 392448  }
 0x112   : > { %v1595_v62 = vmul.f32 %v9710_v12, %v9718_v33  ;;  %v9736_v26 = vmax.f32 %v1529_v15, 0.0  ;;  %13329 = vst [vmem:[#allocation25_spill] sm:$0xff] %v9739_v29  ;;  %v627_v41 = vand.u32 15, %v471_v40  ;;  %8318 = vmatpush3.bf16.msra.mxu1 %v8883_v36  ;;  %v465_v15 = vadd.s32 112, %v9305_v25 }
 0x113   : > { %1668 = vrot.lane.b32.xlu0 %v9497_v23, %s9033_s20  ;;  %vm967_vm9 = vcmp.ne.s32.totalorder %v515_v20, 0  ;;  %8319 = vmatprep.subr.bf16.mxu1 %v8884_v57  ;;  %v475_v36 = vadd.s32 192, %v9305_v25  ;;  %vm3226_vm8 = vcmask 1043456  }
 0x114   : > { %1627 = vst.msk [vmem:[#allocation2 + $0x109] sm:$0xff] %vm1091_vm0, %v1595_v62  ;;  %v1593_v31 = vmul.f32 %v9727_v19, %v9736_v26  ;;  %v9762_v7 = vsel %vm967_vm9, 1.0, %v9032_v24  ;;  %vm983_vm10 = vcmp.ne.s32.totalorder %v627_v41, 0  ;;  %v463_v62 = vadd.s32 96, %v9305_v25 }
 0x115   : > { %1704 = vrot.lane.b32.xlu1 %v9525_v43, %s9033_s20  ;;  %13330 = vst [vmem:[#allocation26_spill] sm:$0xff] %v9762_v7  ;;  %v1793_v10 = vmul.f32 %v9762_v7, %v9497_v23  ;;  %v9771_v51 = vsel %vm983_vm10, 1.0, %v9032_v24  ;;  %v543_v23 = vand.u32 15, %v459_v5  ;;  %vm3177_vm9 = vcmask 64512  }
 0x116   : > { %1625 = vst.msk [vmem:[#allocation2 + $0xf9] sm:$0xff] %vm1091_vm0, %v1593_v31  ;;  %8320 = vmatpush3.bf16.msra.mxu1 %v8884_v57  ;;  %13331 = vst [vmem:[#allocation27_spill] sm:$0xff] %v9771_v51  ;;  %v1809_v55 = vmul.f32 %v9771_v51, %v9542_v61  ;;  %v473_v31 = vadd.s32 176, %v9305_v25  ;;  %vm5037_vm10 = vcmask 261312  }
 0x117   : > { %1674 = vrot.lane.b32.xlu0 %v9516_v37, %s9033_s20  ;;  %vm971_vm12 = vcmp.ne.s32.totalorder %v543_v23, 0  ;;  %8391 = vmatprep.subr.bf16.mxu1 %v9808_v22 }
 0x119   : > { %1865 = vrot.lane.b32.xlu1 %v1795_v11, %s9034_s21 }
 0x11b   : > { %1867 = vrot.lane.b32.xlu0 %v9516_v37, %s9034_s21  ;;  %v461_v37 = vadd.s32 80, %v9305_v25 }
 0x11d   : > { %1700 = vrot.lane.b32.xlu1 %v9542_v61, %s9033_s20  ;;  %v557_v18 = vand.u32 15, %v461_v37  ;;  %v9797_v61 = vsel %vm971_vm12, 1.0, %v9032_v24  ;;  %v479_v37 = vadd.s32 224, %v9305_v25 }
 0x11e   : > { %13333 = vst [vmem:[#allocation29_spill] sm:$0xff] %v9797_v61  ;;  %v1797_v53 = vmul.f32 %v9797_v61, %v9570_v32 }
 0x11f   : > { %1706 = vrot.lane.b32.xlu0 %v9562_v14, %s9033_s20  ;;  %vm973_vm11 = vcmp.ne.s32.totalorder %v557_v18, 0 }
 0x120   : > { %v9788_v9 = vsel %vm973_vm11, 1.0, %v9032_v24 }
 0x121   : > { %1861 = vrot.lane.b32.xlu1 %v1793_v10, %s9034_s21  ;;  %13332 = vst [vmem:[#allocation28_spill] sm:$0xff] %v9788_v9 }
 0x123   : > { %1670 = vrot.lane.b32.xlu0 %v9535_v60, %s9033_s20 }
 0x125   : > { %1893 = vrot.lane.b32.xlu1 %v1809_v55, %s9034_s21  ;;  %v481_v55 = vadd.s32 240, %v9305_v25 }
 0x127   : > { %1863 = vrot.lane.b32.xlu0 %v9535_v60, %s9034_s21  ;;  %v1799_v60 = vmul.f32 %v9788_v9, %v9549_v13 }
 0x129   : > { %1680 = vrot.lane.b32.xlu1 %v9549_v13, %s9033_s20  ;;  %v585_v13 = vand.u32 15, %v465_v15 }
 0x12b   : > { %1702 = vrot.lane.b32.xlu0 %v9583_v38, %s9033_s20  ;;  %vm977_vm13 = vcmp.ne.s32.totalorder %v585_v13, 0 }
 0x12d   : > { %1676 = vrot.lane.b32.xlu1 %v9570_v32, %s9033_s20  ;;  %v571_v32 = vand.u32 15, %v463_v62 }
 0x12f   : > { %1682 = vrot.lane.b32.xlu0 %v9598_v49, %s9033_s20  ;;  %vm975_vm14 = vcmp.ne.s32.totalorder %v571_v32, 0 }
 0x130   : > { %v9830_v40 = vsel %vm975_vm14, 1.0, %v9032_v24 }
 0x131   : > { %1873 = vrot.lane.b32.xlu1 %v1799_v60, %s9034_s21  ;;  %13335 = vst [vmem:[#allocation31_spill] sm:$0xff] %v9830_v40  ;;  %v1801_v11 = vmul.f32 %v9830_v40, %v9645_v52 }
 0x133   : > { %1875 = vrot.lane.b32.xlu0 %v9598_v49, %s9034_s21  ;;  %v9820_v49 = vsel %vm977_vm13, 1.0, %v9032_v24 }
 0x134   : > { %13334 = vst [vmem:[#allocation30_spill] sm:$0xff] %v9820_v49  ;;  %v1803_v20 = vmul.f32 %v9820_v49, %v9629_v34 }
 0x135   : > { %1869 = vrot.lane.b32.xlu1 %v1797_v53, %s9034_s21 }
 0x137   : > { %1678 = vrot.lane.b32.xlu0 %v9616_v21, %s9033_s20 }
 0x139   : > { %1688 = vrot.lane.b32.xlu1 %v9629_v34, %s9033_s20 }
 0x13b   : > { %1871 = vrot.lane.b32.xlu0 %v9616_v21, %s9034_s21  ;;  %v641_v21 = vand.u32 15, %v473_v31 }
 0x13d   : > { %1684 = vrot.lane.b32.xlu1 %v9645_v52, %s9033_s20  ;;  %vm985_vm15 = vcmp.ne.s32.totalorder %v641_v21, 0  ;;  %v1982_v21 = vld [vmem:[#allocation2] sm:$0xff] }
 0x13e   : > { %v9842_v34 = vsel %vm985_vm15, 1.0, %v9032_v24 }
 0x13f   : > { %1895 = vrot.lane.b32.xlu0 %v9583_v38, %s9034_s21  ;;  %v655_v38 = vand.u32 15, %v475_v36  ;;  %13336 = vst [vmem:[#allocation32_spill] sm:$0xff] %v9842_v34  ;;  %v1811_v52 = vmul.f32 %v9842_v34, %v9525_v43  ;;  %v683_v43 = vand.u32 15, %v479_v37 }
 0x141   : > { %1881 = vrot.lane.b32.xlu1 %v1803_v20, %s9034_s21  ;;  %vm987_vm2 = vcmp.ne.s32.totalorder %v655_v38, 0  ;;  %vm991_vm4 = vcmp.ne.s32.totalorder %v683_v43, 0 }
 0x142   : > { %v9851_v41 = vsel %vm987_vm2, 1.0, %v9032_v24 }
 0x143   : > { %1690 = vrot.lane.b32.xlu0 %v9666_v42, %s9033_s20  ;;  %13337 = vst [vmem:[#allocation33_spill] sm:$0xff] %v9851_v41  ;;  %v1813_v57 = vmul.f32 %v9851_v41, %v9639_v46 }
 0x145   : > { %1877 = vrot.lane.b32.xlu1 %v1801_v11, %s9034_s21 }
 0x147   : > { %1883 = vrot.lane.b32.xlu0 %v9666_v42, %s9034_s21  ;;  %v477_v42 = vadd.s32 208, %v9305_v25 }
 0x149   : > { %1708 = vrot.lane.b32.xlu1 %v9639_v46, %s9033_s20  ;;  %v669_v10 = vand.u32 15, %v477_v42  ;;  %v9877_v46 = vsel %vm991_vm4, 1.0, %v9032_v24 }
 0x14a   : > { %13339 = vst [vmem:[#allocation35_spill] sm:$0xff] %v9877_v46  ;;  %v1817_v18 = vmul.f32 %v9877_v46, %v9703_v30 }
 0x14b   : > { %1686 = vrot.lane.b32.xlu0 %v9683_v39, %s9033_s20  ;;  %vm989_vm3 = vcmp.ne.s32.totalorder %v669_v10, 0 }
 0x14d   : > { %1897 = vrot.lane.b32.xlu1 %v1811_v52, %s9034_s21 }
 0x14f   : > { %1879 = vrot.lane.b32.xlu0 %v9683_v39, %s9034_s21  ;;  %v9868_v39 = vsel %vm989_vm3, 1.0, %v9032_v24 }
 0x150   : > { %13338 = vst [vmem:[#allocation34_spill] sm:$0xff] %v9868_v39 }
 0x151   : > { %1901 = vrot.lane.b32.xlu1 %v1813_v57, %s9034_s21 }
 0x153   : > { %1899 = vrot.lane.b32.xlu0 %v9562_v14, %s9034_s21  ;;  %v1815_v14 = vmul.f32 %v9868_v39, %v9621_v4 }
 0x155   : > { %1712 = vrot.lane.b32.xlu1 %v9621_v4, %s9033_s20  ;;  %v697_v4 = vand.u32 15, %v481_v55 }
 0x157   : > { %1710 = vrot.lane.b32.xlu0 %v9679_v45, %s9033_s20  ;;  %vm993_vm6 = vcmp.ne.s32.totalorder %v697_v4, 0 }
 0x159   : > { %1716 = vrot.lane.b32.xlu1 %v9703_v30, %s9033_s20 }
 0x15b   : > { %1714 = vrot.lane.b32.xlu0 %v9658_v59, %s9033_s20 }
 0x15d   : > { %1905 = vrot.lane.b32.xlu1 %v1815_v14, %s9034_s21 }
 0x15f   : > { %1903 = vrot.lane.b32.xlu0 %v9679_v45, %s9034_s21 }
 0x161   : > { %1909 = vrot.lane.b32.xlu1 %v1817_v18, %s9034_s21 }
 0x163   : > { %v1665_v5 = vpop.permute.xlu1 %1664  ;;  %1907 = vrot.lane.b32.xlu0 %v9658_v59, %s9034_s21  ;;  %v9898_v59 = vsel %vm993_vm6, 1.0, %v9032_v24 }
 0x164   : > { %1759 = vst.msk [vmem:[#allocation2 + $0x20] sm:$0xff] %vm1756_vm5, %v1665_v5  ;;  %13340 = vst [vmem:[#allocation36_spill] sm:$0xff] %v9898_v59  ;;  %v1819_v15 = vmul.f32 %v9898_v59, %v9690_v54 }
 0x165   : > { %v1661_v23 = vpop.permute.xlu0 %1660  ;;  %1720 = vrot.lane.b32.xlu1 %v9690_v54, %s9033_s20 }
 0x166   : > { %1757 = vst.msk [vmem:[#allocation2 + $0x10] sm:$0xff] %vm1756_vm5, %v1661_v23 }
 0x167   : > { %1722 = vrot.lane.b32.xlu0 %v9718_v33, %s9033_s20  ;;  %v1697_v25 = vpop.permute.xlu1 %1696 }
 0x168   : > { %1775 = vst.msk [vmem:[#allocation2 + $0xa0] sm:$0xff] %vm1756_vm5, %v1697_v25 }
 0x169   : > { %v1860_v45 = vpop.permute.xlu0 %1859  ;;  %1911 = vrot.lane.b32.xlu1 %v9736_v26, %s9034_s21 }
 0x16b   : > { %1718 = vrot.lane.b32.xlu0 %v9736_v26, %s9033_s20  ;;  %v1858_v30 = vpop.permute.xlu1 %1857 }
 0x16d   : > { %v1699_v60 = vpop.permute.xlu0 %1698  ;;  %1915 = vrot.lane.b32.xlu1 %v9718_v33, %s9034_s21 }
 0x16e   : > { %1776 = vst.msk [vmem:[#allocation2 + $0xa8] sm:$0xff] %vm1756_vm5, %v1699_v60 }
 0x16f   : > { %1913 = vrot.lane.b32.xlu0 %v1819_v15, %s9034_s21  ;;  %v1693_v53 = vpop.permute.xlu1 %1692 }
 0x170   : > { %1773 = vst.msk [vmem:[#allocation2 + $0x90] sm:$0xff] %vm1756_vm5, %v1693_v53 }
 0x171   : > { %v1892_v24 = vpop.permute.xlu0 %1891 }
 0x172   : > { %1969 = vst.msk [vmem:[#allocation2 + $0xa7] sm:$0xff] %vm1949_vm7, %v1892_v24 }
 0x173   : > { %v1890_v26 = vpop.permute.xlu1 %1889 }
 0x175   : > { %v1663_v13 = vpop.permute.xlu0 %1662 }
 0x176   : > { %1758 = vst.msk [vmem:[#allocation2 + $0x18] sm:$0xff] %vm1756_vm5, %v1663_v13 }
 0x177   : > { %1952 = vst.msk [vmem:[#allocation2 + $0x1f] sm:$0xff] %vm1949_vm7, %v1858_v30  ;;  %v1667_v54 = vpop.permute.xlu1 %1666 }
 0x178   : > { %1760 = vst.msk [vmem:[#allocation2 + $0x28] sm:$0xff] %vm1756_vm5, %v1667_v54 }
 0x179   : > { %v1856_v62 = vpop.permute.xlu0 %1855  ;;  %1953 = vst.msk [vmem:[#allocation2 + $0x27] sm:$0xff] %vm1949_vm7, %v1860_v45 }
 0x17a   : > { %1951 = vst.msk [vmem:[#allocation2 + $0x17] sm:$0xff] %vm1949_vm7, %v1856_v62 }
 0x17b   : > { %v1854_v33 = vpop.permute.xlu1 %1853 }
 0x17c   : > { %1950 = vst.msk [vmem:[#allocation2 + $0xf] sm:$0xff] %vm1949_vm7, %v1854_v33 }
 0x17d   : > { %v1695_v32 = vpop.permute.xlu0 %1694 }
 0x17e   : > { %1774 = vst.msk [vmem:[#allocation2 + $0x98] sm:$0xff] %vm1756_vm5, %v1695_v32 }
 0x17f   : > { %1968 = vst.msk [vmem:[#allocation2 + $0x9f] sm:$0xff] %vm1949_vm7, %v1890_v26  ;;  %v9918_v31 = vpop.permute.xlu1 %1885  ;;  %v8886_v26 = vld [vmem:[%s13100_s4 + $0x38] sm:$0xff]  }
 0x180   : > { %v1986_v60 = vld [vmem:[#allocation2 + $0x20] sm:$0xff] }
 0x181   : > { %v1888_v20 = vpop.permute.xlu0 %1887  ;;  %v1985_v38 = vld [vmem:[#allocation2 + $0x18] sm:$0xff] }
 0x182   : > { %1967 = vst.msk [vmem:[#allocation2 + $0x97] sm:$0xff] %vm1949_vm7, %v1888_v20  ;;  %v8887_v20 = vld [vmem:[%s13100_s4 + $0x30] sm:$0xff]  }
 0x183   : > { %v1673_v36 = vpop.permute.xlu1 %1672  ;;  %v1984_v11 = vld [vmem:[#allocation2 + $0x10] sm:$0xff]  ;;  %v1983_v52 = vld [vmem:[#allocation2 + $0x8] sm:$0xff] }
 0x184   : > { %1763 = vst.msk [vmem:[#allocation2 + $0x40] sm:$0xff] %vm1756_vm5, %v1673_v36  ;;  %v2015_v57 = vpack.c.bf16 %v1985_v38, %v1984_v11  ;;  %v2014_v10 = vpack.c.bf16 %v1983_v52, %v1982_v21  ;;  %v9965_v38 = vld [vmem:[%s13101_s5] ss:$0 sm:$0xff] }
 0x185   : > { %v1669_v42 = vpop.permute.xlu0 %1668  ;;  %3056 = vrot.lane.b32.xlu0 %v9965_v38, %s13110_s15 }
 0x186   : > { %1761 = vst.msk [vmem:[#allocation2 + $0x30] sm:$0xff] %vm1756_vm5, %v1669_v42  ;;  %8321 = vmatprep.mubr.msk.bf16.mxu1 %vm443_vm1, %v2015_v57  ;;  %8359 = vmatprep.mubr.msk.bf16.mxu0 %vm443_vm1, %v2014_v10 }
 0x187   : > { %8360 = vmatmul.mubr.msk.bf16.vlgmr.msra.gmra.mxu0 %vm443_vm1, %v2015_v57  ;;  %v1705_v37 = vpop.permute.xlu1 %1704  ;;  %v9972_v57 = vld [vmem:[%s13101_s5 + $0x1] ss:$0 sm:$0xff] }
 0x188   : > { %1779 = vst.msk [vmem:[#allocation2 + $0xc0] sm:$0xff] %vm1756_vm5, %v1705_v37  ;;  %3092 = vrot.lane.b32.xlu1 %v9972_v57, %s13110_s15  ;;  %s13404_s15 = smov 112  }
 0x189   : > { %v1675_v43 = vpop.permute.xlu0 %1674 }
 0x18a   : > { %1764 = vst.msk [vmem:[#allocation2 + $0x48] sm:$0xff] %vm1756_vm5, %v1675_v43 }
 0x18b   : > { %v1866_v14 = vpop.permute.xlu1 %1865 }
 0x18d   : > { %v1868_v55 = vpop.permute.xlu0 %1867 }
 0x18e   : > { %1957 = vst.msk [vmem:[#allocation2 + $0x47] sm:$0xff] %vm1949_vm7, %v1868_v55 }
 0x18f   : > { %v1701_v18 = vpop.permute.xlu1 %1700 }
 0x190   : > { %1777 = vst.msk [vmem:[#allocation2 + $0xb0] sm:$0xff] %vm1756_vm5, %v1701_v18 }
 0x191   : > { %v1707_v5 = vpop.permute.xlu0 %1706 }
 0x192   : > { %1780 = vst.msk [vmem:[#allocation2 + $0xc8] sm:$0xff] %vm1756_vm5, %v1707_v5 }
 0x193   : > { %v1862_v4 = vpop.permute.xlu1 %1861 }
 0x194   : > { %1954 = vst.msk [vmem:[#allocation2 + $0x2f] sm:$0xff] %vm1949_vm7, %v1862_v4 }
 0x195   : > { %v1671_v23 = vpop.permute.xlu0 %1670 }
 0x196   : > { %1762 = vst.msk [vmem:[#allocation2 + $0x38] sm:$0xff] %vm1756_vm5, %v1671_v23 }
 0x197   : > { %1956 = vst.msk [vmem:[#allocation2 + $0x3f] sm:$0xff] %vm1949_vm7, %v1866_v14  ;;  %v1894_v25 = vpop.permute.xlu1 %1893 }
 0x198   : > { %1970 = vst.msk [vmem:[#allocation2 + $0xaf] sm:$0xff] %vm1949_vm7, %v1894_v25 }
 0x199   : > { %v1864_v45 = vpop.permute.xlu0 %1863 }
 0x19a   : > { %1955 = vst.msk [vmem:[#allocation2 + $0x37] sm:$0xff] %vm1949_vm7, %v1864_v45 }
 0x19b   : > { %v1681_v30 = vpop.permute.xlu1 %1680  ;;  %v1987_v15 = vld [vmem:[#allocation2 + $0x28] sm:$0xff] }
 0x19c   : > { %1767 = vst.msk [vmem:[#allocation2 + $0x60] sm:$0xff] %vm1756_vm5, %v1681_v30  ;;  %v9937_v24 = vpack.c.bf16 %v1987_v15, %v1986_v60 }
 0x19d   : > { %v1703_v53 = vpop.permute.xlu0 %1702 }
 0x19e   : > { %1778 = vst.msk [vmem:[#allocation2 + $0xb8] sm:$0xff] %vm1756_vm5, %v1703_v53  ;;  %8322 = vmatmul.mubr.msk.bf16.vlgmr.msra.gmra.mxu1 %vm443_vm1, %v9937_v24  ;;  %8363 = vmatprep.mubr.msk.bf16.mxu0 %vm443_vm1, %v9937_v24  ;;  %v1990_v37 = vld [vmem:[#allocation2 + $0x40] sm:$0xff] }
 0x19f   : > { %v1677_v13 = vpop.permute.xlu1 %1676  ;;  %8392 = vmatpush3.bf16.msra.mxu1 %v9808_v22 }
 0x1a0   : > { %1765 = vst.msk [vmem:[#allocation2 + $0x50] sm:$0xff] %vm1756_vm5, %v1677_v13  ;;  %8393 = vmatprep.subr.bf16.mxu1 %v8886_v26 }
 0x1a1   : > { %v1683_v54 = vpop.permute.xlu0 %1682  ;;  %v1988_v62 = vld [vmem:[#allocation2 + $0x30] sm:$0xff]  ;;  %v1989_v33 = vld [vmem:[#allocation2 + $0x38] sm:$0xff] }
 0x1a2   : > { %1768 = vst.msk [vmem:[#allocation2 + $0x68] sm:$0xff] %vm1756_vm5, %v1683_v54  ;;  %v9950_v32 = vpack.c.bf16 %v1989_v33, %v1988_v62 }
 0x1a3   : > { %v1874_v21 = vpop.permute.xlu1 %1873  ;;  %8394 = vmatpush3.bf16.msra.mxu1 %v8886_v26 }
 0x1a4   : > { %8325 = vmatprep.mubr.msk.bf16.mxu1 %vm443_vm1, %v9950_v32  ;;  %8364 = vmatmul.mubr.msk.bf16.gmra.mxu0 %vm443_vm1, %v9950_v32 }
 0x1a5   : > { %v1876_v22 = vpop.permute.xlu0 %1875  ;;  %8395 = vmatprep.subr.bf16.mxu1 %v8887_v20 }
 0x1a6   : > { %1961 = vst.msk [vmem:[#allocation2 + $0x67] sm:$0xff] %vm1949_vm7, %v1876_v22 }
 0x1a7   : > { %v1870_v36 = vpop.permute.xlu1 %1869  ;;  %8396 = vmatpush3.bf16.msra.mxu1 %v8887_v20 }
 0x1a8   : > { %1958 = vst.msk [vmem:[#allocation2 + $0x4f] sm:$0xff] %vm1949_vm7, %v1870_v36 }
 0x1a9   : > { %v1679_v11 = vpop.permute.xlu0 %1678 }
 0x1aa   : > { %1766 = vst.msk [vmem:[#allocation2 + $0x58] sm:$0xff] %vm1756_vm5, %v1679_v11 }
 0x1ab   : > { %1960 = vst.msk [vmem:[#allocation2 + $0x5f] sm:$0xff] %vm1949_vm7, %v1874_v21  ;;  %v1689_v52 = vpop.permute.xlu1 %1688 }
 0x1ac   : > { %1771 = vst.msk [vmem:[#allocation2 + $0x80] sm:$0xff] %vm1756_vm5, %v1689_v52 }
 0x1ad   : > { %v1872_v42 = vpop.permute.xlu0 %1871 }
 0x1ae   : > { %1959 = vst.msk [vmem:[#allocation2 + $0x57] sm:$0xff] %vm1949_vm7, %v1872_v42 }
 0x1af   : > { %v1685_v10 = vpop.permute.xlu1 %1684  ;;  %v1991_v43 = vld [vmem:[#allocation2 + $0x48] sm:$0xff] }
 0x1b0   : > { %1769 = vst.msk [vmem:[#allocation2 + $0x70] sm:$0xff] %vm1756_vm5, %v1685_v10  ;;  %v9980_v55 = vpack.c.bf16 %v1991_v43, %v1990_v37  ;;  %v2001_v43 = vld [vmem:[#allocation2 + $0x98] sm:$0xff] }
 0x1b1   : > { %v1896_v14 = vpop.permute.xlu0 %1895 }
 0x1b2   : > { %1971 = vst.msk [vmem:[#allocation2 + $0xb7] sm:$0xff] %vm1949_vm7, %v1896_v14  ;;  %8326 = vmatmul.mubr.msk.bf16.gmra.mxu1 %vm443_vm1, %v9980_v55  ;;  %8367 = vmatprep.mubr.msk.bf16.mxu0 %vm443_vm1, %v9980_v55  ;;  %v1994_v53 = vld [vmem:[#allocation2 + $0x60] sm:$0xff] }
 0x1b3   : > { %v1882_v18 = vpop.permute.xlu1 %1881 }
 0x1b5   : > { %v1691_v5 = vpop.permute.xlu0 %1690  ;;  %v1992_v4 = vld [vmem:[#allocation2 + $0x50] sm:$0xff]  ;;  %v1993_v23 = vld [vmem:[#allocation2 + $0x58] sm:$0xff] }
 0x1b6   : > { %1772 = vst.msk [vmem:[#allocation2 + $0x88] sm:$0xff] %vm1756_vm5, %v1691_v5  ;;  %v9988_v25 = vpack.c.bf16 %v1993_v23, %v1992_v4  ;;  %v2003_v23 = vld [vmem:[#allocation2 + $0xa8] sm:$0xff] }
 0x1b7   : > { %1966 = vst.msk [vmem:[#allocation2 + $0x8f] sm:$0xff] %vm1949_vm7, %v9918_v31  ;;  %v1878_v45 = vpop.permute.xlu1 %1877 }
 0x1b8   : > { %8329 = vmatprep.mubr.msk.bf16.mxu1 %vm443_vm1, %v9988_v25  ;;  %8368 = vmatmul.mubr.msk.bf16.gmra.mxu0 %vm443_vm1, %v9988_v25  ;;  %1962 = vst.msk [vmem:[#allocation2 + $0x6f] sm:$0xff] %vm1949_vm7, %v1878_v45 }
 0x1b9   : > { %v1884_v30 = vpop.permute.xlu0 %1883 }
 0x1ba   : > { %1965 = vst.msk [vmem:[#allocation2 + $0x87] sm:$0xff] %vm1949_vm7, %v1884_v30 }
 0x1bb   : > { %v1709_v60 = vpop.permute.xlu1 %1708 }
 0x1bc   : > { %1781 = vst.msk [vmem:[#allocation2 + $0xd0] sm:$0xff] %vm1756_vm5, %v1709_v60  ;;  %v2002_v60 = vld [vmem:[#allocation2 + $0xa0] sm:$0xff] }
 0x1bd   : > { %v1687_v15 = vpop.permute.xlu0 %1686 }
 0x1be   : > { %1770 = vst.msk [vmem:[#allocation2 + $0x78] sm:$0xff] %vm1756_vm5, %v1687_v15  ;;  %v2000_v52 = vld [vmem:[#allocation2 + $0x90] sm:$0xff]  ;;  %v10033_v15 = vpack.c.bf16 %v2003_v23, %v2002_v60 }
 0x1bf   : > { %1964 = vst.msk [vmem:[#allocation2 + $0x7f] sm:$0xff] %vm1949_vm7, %v1882_v18  ;;  %v1898_v31 = vpop.permute.xlu1 %1897  ;;  %v1995_v26 = vld [vmem:[#allocation2 + $0x68] sm:$0xff]  ;;  %v10021_v18 = vpack.c.bf16 %v2001_v43, %v2000_v52 }
 0x1c0   : > { %1972 = vst.msk [vmem:[#allocation2 + $0xbf] sm:$0xff] %vm1949_vm7, %v1898_v31  ;;  %v10002_v54 = vpack.c.bf16 %v1995_v26, %v1994_v53  ;;  %v2004_v31 = vld [vmem:[#allocation2 + $0xb0] sm:$0xff] }
 0x1c1   : > { %v1880_v13 = vpop.permute.xlu0 %1879  ;;  %v1999_v10 = vld [vmem:[#allocation2 + $0x88] sm:$0xff] }
 0x1c2   : > { %1963 = vst.msk [vmem:[#allocation2 + $0x77] sm:$0xff] %vm1949_vm7, %v1880_v13  ;;  %8330 = vmatmul.mubr.msk.bf16.gmra.mxu1 %vm443_vm1, %v10002_v54  ;;  %8371 = vmatprep.mubr.msk.bf16.mxu0 %vm443_vm1, %v10002_v54 }
 0x1c3   : > { %v1902_v62 = vpop.permute.xlu1 %1901 }
 0x1c4   : > { %1974 = vst.msk [vmem:[#allocation2 + $0xcf] sm:$0xff] %vm1949_vm7, %v1902_v62 }
 0x1c5   : > { %v1900_v33 = vpop.permute.xlu0 %1899 }
 0x1c6   : > { %1973 = vst.msk [vmem:[#allocation2 + $0xc7] sm:$0xff] %vm1949_vm7, %v1900_v33  ;;  %v1998_v21 = vld [vmem:[#allocation2 + $0x80] sm:$0xff] }
 0x1c7   : > { %v1713_v20 = vpop.permute.xlu1 %1712  ;;  %v10015_v37 = vpack.c.bf16 %v1999_v10, %v1998_v21  ;;  %v2005_v30 = vld [vmem:[#allocation2 + $0xb8] sm:$0xff] }
 0x1c8   : > { %1783 = vst.msk [vmem:[#allocation2 + $0xe0] sm:$0xff] %vm1756_vm5, %v1713_v20  ;;  %v10037_v26 = vpack.c.bf16 %v2005_v30, %v2004_v31 }
 0x1c9   : > { %v1711_v22 = vpop.permute.xlu0 %1710  ;;  %v1996_v36 = vld [vmem:[#allocation2 + $0x70] sm:$0xff]  ;;  %v1997_v11 = vld [vmem:[#allocation2 + $0x78] sm:$0xff] }
 0x1ca   : > { %1782 = vst.msk [vmem:[#allocation2 + $0xd8] sm:$0xff] %vm1756_vm5, %v1711_v22  ;;  %v10013_v42 = vpack.c.bf16 %v1997_v11, %v1996_v36 }
 0x1cb   : > { %v1717_v14 = vpop.permute.xlu1 %1716 }
 0x1cc   : > { %8333 = vmatprep.mubr.msk.bf16.mxu1 %vm443_vm1, %v10013_v42  ;;  %8372 = vmatmul.mubr.msk.bf16.gmra.mxu0 %vm443_vm1, %v10013_v42  ;;  %1785 = vst.msk [vmem:[#allocation2 + $0xf0] sm:$0xff] %vm1756_vm5, %v1717_v14 }
 0x1cd   : > { %v1715_v5 = vpop.permute.xlu0 %1714  ;;  %8334 = vmatmul.mubr.msk.bf16.gmra.mxu1 %vm443_vm1, %v10015_v37  ;;  %8375 = vmatprep.mubr.msk.bf16.mxu0 %vm443_vm1, %v10015_v37  ;;  %v2006_v33 = vld [vmem:[#allocation2 + $0xc0] sm:$0xff]  ;;  %v2007_v20 = vld [vmem:[#allocation2 + $0xc8] sm:$0xff] }
 0x1ce   : > { %1784 = vst.msk [vmem:[#allocation2 + $0xe8] sm:$0xff] %vm1756_vm5, %v1715_v5  ;;  %8337 = vmatprep.mubr.msk.bf16.mxu1 %vm443_vm1, %v10021_v18  ;;  %v2026_v11 = vpack.c.bf16 %v2007_v20, %v2006_v33 }
 0x1cf   : > { %v1906_v4 = vpop.permute.xlu1 %1905 }
 0x1d0   : > { %1976 = vst.msk [vmem:[#allocation2 + $0xdf] sm:$0xff] %vm1949_vm7, %v1906_v4 }
 0x1d1   : > { %v1904_v45 = vpop.permute.xlu0 %1903 }
 0x1d2   : > { %1975 = vst.msk [vmem:[#allocation2 + $0xd7] sm:$0xff] %vm1949_vm7, %v1904_v45 }
 0x1d3   : > { %v1910_v53 = vpop.permute.xlu1 %1909 }
 0x1d4   : > { %8376 = vmatmul.mubr.msk.bf16.gmra.mxu0 %vm443_vm1, %v10021_v18  ;;  %1978 = vst.msk [vmem:[#allocation2 + $0xef] sm:$0xff] %vm1949_vm7, %v1910_v53 }
 0x1d5   : > { %v1908_v13 = vpop.permute.xlu0 %1907  ;;  %8338 = vmatmul.mubr.msk.bf16.gmra.mxu1 %vm443_vm1, %v10033_v15  ;;  %8379 = vmatprep.mubr.msk.bf16.mxu0 %vm443_vm1, %v10033_v15 }
 0x1d6   : > { %1977 = vst.msk [vmem:[#allocation2 + $0xe7] sm:$0xff] %vm1949_vm7, %v1908_v13  ;;  %8341 = vmatprep.mubr.msk.bf16.mxu1 %vm443_vm1, %v10037_v26 }
 0x1d7   : > { %v1721_v62 = vpop.permute.xlu1 %1720 }
 0x1d8   : > { %1787 = vst.msk [vmem:[#allocation2 + $0x100] sm:$0xff] %vm1756_vm5, %v1721_v62 }
 0x1d9   : > { %v1723_v21 = vpop.permute.xlu0 %1722  ;;  %v2008_v22 = vld [vmem:[#allocation2 + $0xd0] sm:$0xff]  ;;  %v2009_v36 = vld [vmem:[#allocation2 + $0xd8] sm:$0xff] }
 0x1da   : > { %1788 = vst.msk [vmem:[#allocation2 + $0x108] sm:$0xff] %vm1756_vm5, %v1723_v21  ;;  %v2027_v10 = vpack.c.bf16 %v2009_v36, %v2008_v22  ;;  %v8908_v22 = vld [vmem:[%s9179_s2] sm:$0xff] }
 0x1db   : > { %v1912_v52 = vpop.permute.xlu1 %1911  ;;  %v2935_v36 = vmul.f32 %v8908_v22, %v9965_v38 }
 0x1dc   : > { %8380 = vmatmul.mubr.msk.bf16.gmra.mxu0 %vm443_vm1, %v10037_v26 }
 0x1dd   : > { %v1719_v43 = vpop.permute.xlu0 %1718  ;;  %8342 = vmatmul.mubr.msk.bf16.gmra.mxu1 %vm443_vm1, %v2026_v11  ;;  %8383 = vmatprep.mubr.msk.bf16.mxu0 %vm443_vm1, %v2026_v11  ;;  %v2010_v5 = vld [vmem:[#allocation2 + $0xe0] sm:$0xff]  ;;  %v2011_v4 = vld [vmem:[#allocation2 + $0xe8] sm:$0xff] }
 0x1de   : > { %1786 = vst.msk [vmem:[#allocation2 + $0xf8] sm:$0xff] %vm1756_vm5, %v1719_v43  ;;  %8345 = vmatprep.mubr.msk.bf16.mxu1 %vm443_vm1, %v2027_v10  ;;  %v2028_v45 = vpack.c.bf16 %v2011_v4, %v2010_v5 }
 0x1df   : > { %1979 = vst.msk [vmem:[#allocation2 + $0xf7] sm:$0xff] %vm1949_vm7, %v1912_v52  ;;  %v1916_v14 = vpop.permute.xlu1 %1915 }
 0x1e0   : > { %1981 = vst.msk [vmem:[#allocation2 + $0x107] sm:$0xff] %vm1949_vm7, %v1916_v14 }
 0x1e1   : > { %v1914_v23 = vpop.permute.xlu0 %1913 }
 0x1e2   : > { %1980 = vst.msk [vmem:[#allocation2 + $0xff] sm:$0xff] %vm1949_vm7, %v1914_v23 }
 0x1e4   : > { %8384 = vmatmul.mubr.msk.bf16.gmra.mxu0 %vm443_vm1, %v2027_v10 }
 0x1e5   : > { %8346 = vmatmul.mubr.msk.bf16.gmra.mxu1 %vm443_vm1, %v2028_v45  ;;  %8387 = vmatprep.mubr.msk.bf16.mxu0 %vm443_vm1, %v2028_v45 }
 0x1e6   : > { %v2012_v30 = vld [vmem:[#allocation2 + $0xf0] sm:$0xff] }
 0x1e7   : > { %v2037_v53 = vld [vmem:[#allocation2 + $0x108] sm:$0xff] }
 0x1e9   : > { %v2013_v60 = vld [vmem:[#allocation2 + $0xf8] sm:$0xff]  ;;  %v2036_v31 = vld [vmem:[#allocation2 + $0x100] sm:$0xff] }
 0x1ea   : > { %v2029_v13 = vpack.c.bf16 %v2013_v60, %v2012_v30  ;;  %v2038_v62 = vpack.c.bf16 %v2037_v53, %v2036_v31  ;;  %v8910_v53 = vld [vmem:[%s9179_s2 + $0x20] sm:$0xff] }
 0x1ec   : > { %8349 = vmatprep.mubr.msk.bf16.mxu1 %vm443_vm1, %v2029_v13  ;;  %8388 = vmatmul.mubr.msk.bf16.gmra.mxu0 %vm443_vm1, %v2029_v13 }
 0x1ed   : > { %8350 = vmatmul.mubr.msk.bf16.gmra.mxu1 %vm443_vm1, %v2038_v62 }
 0x1ee   : > { %8397 = vmatprep.mubr.msk.bf16.mxu1 %vm443_vm1, %v9937_v24  ;;  %v3159_v24 = vld [vmem:[%s13102_s6 + $0x10] sm:$0xff] }
 0x1f5   : > { %8398 = vmatmul.mubr.msk.bf16.vlgmr.msra.gmra.mxu1 %vm443_vm1, %v9950_v32  ;;  %v3036_v32 = vld [vmem:[%s13102_s6] sm:$0xff] }
 0x1f6   : > { %8401 = vmatprep.mubr.msk.bf16.mxu1 %vm443_vm1, %v9980_v55  ;;  %v3037_v55 = vld [vmem:[%s13102_s6 + $0x8] sm:$0xff] }
 0x1f7   : > { %v10305_v27 = vpop.permute.xlu0 %3056 }
 0x1fd   : > { %8402 = vmatmul.mubr.msk.bf16.gmra.mxu1 %vm443_vm1, %v9988_v25  ;;  %v3160_v25 = vpack.c.bf16 %v3159_v24, %v3159_v24 }
 0x1fe   : > { %8405 = vmatprep.mubr.msk.bf16.mxu1 %vm443_vm1, %v10002_v54  ;;  %v3038_v54 = vpack.c.bf16 %v3037_v55, %v3036_v32  ;;  %v8912_v32 = vld [vmem:[%s9179_s2 + $0x30] sm:$0xff] }
 0x1ff   : > { %8829 = vmatprep.subr.msk.bf16.mxu0 %vm3226_vm8, %v3160_v25  ;;  %v2941_v55 = vmul.f32 %v8912_v32, %v9965_v38 }
 0x200   : > { %8463 = vmatprep.subr.bf16.mxu1 %v3038_v54 }
 0x201   : > { %8464 = vmatpush3.bf16.msra.mxu1 %v3038_v54 }
 0x205   : > { %8406 = vmatmul.mubr.msk.bf16.gmra.mxu1 %vm443_vm1, %v10013_v42  ;;  %v3228_v42 = vsel %vm3226_vm8, %v3160_v25, 0  ;;  %v8913_v25 = vld [vmem:[%s9179_s2 + $0x38] sm:$0xff] }
 0x206   : > { %8409 = vmatprep.mubr.msk.bf16.mxu1 %vm443_vm1, %v10015_v37  ;;  %8430 = vmatpush3.bf16.msra.mxu0 %v3228_v42  ;;  %v2485_v37 = vld [vmem:[#allocation2 + $0x110] sm:$0xff]  ;;  %v2942_v54 = vmul.f32 %v8913_v25, %v9965_v38  ;;  %v8918_v25 = vld [vmem:[%s9179_s2 + $0x60] sm:$0xff] }
 0x20d   : > { %8410 = vmatmul.mubr.msk.bf16.gmra.mxu1 %vm443_vm1, %v10021_v18  ;;  %v2486_v18 = vld [vmem:[#allocation2 + $0x118] sm:$0xff] }
 0x20e   : > { %8413 = vmatprep.mubr.msk.bf16.mxu1 %vm443_vm1, %v10033_v15  ;;  %v2502_v33 = vpack.c.bf16 %v2486_v18, %v2485_v37  ;;  %v8906_v15 = vld [vmem:[%s9179_s2 + $0x10] sm:$0xff]  ;;  %v2978_v18 = vadd.f32 %v9972_v57, %v2941_v55 }
 0x20f   : > { %v2937_v20 = vmul.f32 %v8906_v15, %v9965_v38 }
 0x211   : > { %v2974_v14 = vadd.f32 %v9972_v57, %v2937_v20 }
 0x215   : > { %8414 = vmatmul.mubr.msk.bf16.gmra.mxu1 %vm443_vm1, %v10037_v26  ;;  %v8907_v26 = vld [vmem:[%s9179_s2 + $0x18] sm:$0xff] }
 0x216   : > { %8417 = vmatprep.mubr.msk.bf16.mxu1 %vm443_vm1, %v2026_v11  ;;  %v2938_v21 = vmul.f32 %v8907_v26, %v9965_v38  ;;  %v8909_v11 = vld [vmem:[%s9179_s2 + $0x8] sm:$0xff]  ;;  %v3010_v26 = vmax.f32 %v2978_v18, 0.0  ;;  %v8920_v18 = vld [vmem:[%s9179_s2 + $0x70] sm:$0xff] }
 0x217   : > { %v2936_v52 = vmul.f32 %v8909_v11, %v9965_v38  ;;  %v8914_v11 = vld [vmem:[%s9179_s2 + $0x40] sm:$0xff] }
 0x218   : > { %v2975_v5 = vadd.f32 %v9972_v57, %v2938_v21 }
 0x219   : > { %v2973_v43 = vadd.f32 %v9972_v57, %v2936_v52  ;;  %v2943_v52 = vmul.f32 %v8914_v11, %v9965_v38 }
 0x21a   : > { %v3007_v30 = vmax.f32 %v2975_v5, 0.0 }
 0x21b   : > { %v3005_v23 = vmax.f32 %v2973_v43, 0.0 }
 0x21d   : > { %8418 = vmatmul.mubr.msk.bf16.gmra.mxu1 %vm443_vm1, %v2027_v10  ;;  %v2972_v10 = vadd.f32 %v9972_v57, %v2935_v36 }
 0x21e   : > { %8421 = vmatprep.mubr.msk.bf16.mxu1 %vm443_vm1, %v2028_v45  ;;  %v3006_v45 = vmax.f32 %v2974_v14, 0.0  ;;  %v8916_v14 = vld [vmem:[%s9179_s2 + $0x50] sm:$0xff] }
 0x21f   : > { %v3004_v4 = vmax.f32 %v2972_v10, 0.0  ;;  %v8915_v10 = vld [vmem:[%s9179_s2 + $0x48] sm:$0xff]  ;;  %v2945_v5 = vmul.f32 %v8916_v14, %v9965_v38 }
 0x220   : > { %v3040_v31 = vpack.c.bf16 %v3007_v30, %v3006_v45  ;;  %v2944_v43 = vmul.f32 %v8915_v10, %v9965_v38  ;;  %v2980_v45 = vadd.f32 %v9972_v57, %v2943_v52 }
 0x221   : > { %v3039_v60 = vpack.c.bf16 %v3005_v23, %v3004_v4  ;;  %v8917_v4 = vld [vmem:[%s9179_s2 + $0x58] sm:$0xff] }
 0x222   : > { %v2946_v23 = vmul.f32 %v8917_v4, %v9965_v38  ;;  %v2981_v30 = vadd.f32 %v9972_v57, %v2944_v43  ;;  %v8922_v4 = vld [vmem:[%s9179_s2 + $0x80] sm:$0xff] }
 0x225   : > { %8422 = vmatmul.mubr.msk.bf16.gmra.mxu1 %vm443_vm1, %v2029_v13  ;;  %v2939_v13 = vmul.f32 %v8910_v53, %v9965_v38  ;;  %v3012_v53 = vmax.f32 %v2980_v45, 0.0  ;;  %v8923_v45 = vld [vmem:[%s9179_s2 + $0x88] sm:$0xff] }
 0x226   : > { %8425 = vmatprep.mubr.msk.bf16.mxu1 %vm443_vm1, %v2038_v62  ;;  %v8911_v62 = vld [vmem:[%s9179_s2 + $0x28] sm:$0xff] }
 0x227   : > { %v2940_v24 = vmul.f32 %v8911_v62, %v9965_v38  ;;  %v2976_v42 = vadd.f32 %v9972_v57, %v2939_v13  ;;  %v3013_v13 = vmax.f32 %v2981_v30, 0.0  ;;  %v2952_v30 = vmul.f32 %v8923_v45, %v9965_v38 }
 0x229   : > { %v2977_v37 = vadd.f32 %v9972_v57, %v2940_v24  ;;  %v3008_v15 = vmax.f32 %v2976_v42, 0.0  ;;  %v3043_v32 = vpack.c.bf16 %v3013_v13, %v3012_v53  ;;  %v8919_v42 = vld [vmem:[%s9179_s2 + $0x68] sm:$0xff]  ;;  %v8925_v53 = vld [vmem:[%s9179_s2 + $0x98] sm:$0xff] }
 0x22a   : > { %v2954_v13 = vmul.f32 %v8925_v53, %v9965_v38 }
 0x22b   : > { %v3009_v20 = vmax.f32 %v2977_v37, 0.0  ;;  %v2948_v37 = vmul.f32 %v8919_v42, %v9965_v38 }
 0x22d   : > { %8426 = vmatmul.mubr.msk.bf16.gmra.mxu1 %vm443_vm1, %v2502_v33  ;;  %v2979_v33 = vadd.f32 %v9972_v57, %v2942_v54  ;;  %v3041_v22 = vpack.c.bf16 %v3009_v20, %v3008_v15  ;;  %v2947_v54 = vmul.f32 %v8918_v25, %v9965_v38  ;;  %v8921_v15 = vld [vmem:[%s9179_s2 + $0x78] sm:$0xff] }
 0x22e   : > { %8465 = vmatprep.mubr.msk.bf16.mxu1 %vm1091_vm0, %v3039_v60  ;;  %v2982_v60 = vadd.f32 %v9972_v57, %v2945_v5  ;;  %v2950_v20 = vmul.f32 %v8921_v15, %v9965_v38 }
 0x22f   : > { %v3011_v21 = vmax.f32 %v2979_v33, 0.0  ;;  %v2949_v33 = vmul.f32 %v8920_v18, %v9965_v38 }
 0x230   : > { %v3014_v62 = vmax.f32 %v2982_v60, 0.0  ;;  %v8924_v60 = vld [vmem:[%s9179_s2 + $0x90] sm:$0xff] }
 0x231   : > { %v3042_v36 = vpack.c.bf16 %v3011_v21, %v3010_v26  ;;  %v2984_v26 = vadd.f32 %v9972_v57, %v2947_v54  ;;  %v2985_v21 = vadd.f32 %v9972_v57, %v2948_v37 }
 0x233   : > { %v3016_v11 = vmax.f32 %v2984_v26, 0.0  ;;  %v3017_v52 = vmax.f32 %v2985_v21, 0.0  ;;  %v8926_v26 = vld [vmem:[%s9179_s2 + $0xa0] sm:$0xff] }
 0x234   : > { %v2955_v21 = vmul.f32 %v8926_v26, %v9965_v38 }
 0x235   : > { %8466 = vmatmul.mubr.msk.bf16.vlgmr.msra.gmra.mxu1 %vm1091_vm0, %v3040_v31  ;;  %v2983_v31 = vadd.f32 %v9972_v57, %v2946_v23  ;;  %v3045_v14 = vpack.c.bf16 %v3017_v52, %v3016_v11  ;;  %v2951_v23 = vmul.f32 %v8922_v4, %v9965_v38  ;;  %v8928_v11 = vld [vmem:[%s9179_s2 + $0xb0] sm:$0xff] }
 0x236   : > { %8469 = vmatprep.mubr.msk.bf16.mxu1 %vm1091_vm0, %v3041_v22  ;;  %v2986_v22 = vadd.f32 %v9972_v57, %v2949_v33  ;;  %v2957_v52 = vmul.f32 %v8928_v11, %v9965_v38 }
 0x237   : > { %v3015_v24 = vmax.f32 %v2983_v31, 0.0  ;;  %v2953_v31 = vmul.f32 %v8924_v60, %v9965_v38 }
 0x238   : > { %v3018_v10 = vmax.f32 %v2986_v22, 0.0  ;;  %v8927_v22 = vld [vmem:[%s9179_s2 + $0xa8] sm:$0xff]  ;;  %v2994_v4 = vadd.f32 %v9972_v57, %v2957_v52 }
 0x239   : > { %v3044_v55 = vpack.c.bf16 %v3015_v24, %v3014_v62  ;;  %v2988_v62 = vadd.f32 %v9972_v57, %v2951_v23  ;;  %v2989_v24 = vadd.f32 %v9972_v57, %v2952_v30 }
 0x23b   : > { %v3020_v54 = vmax.f32 %v2988_v62, 0.0  ;;  %v3021_v42 = vmax.f32 %v2989_v24, 0.0 }
 0x23d   : > { %8470 = vmatmul.mubr.msk.bf16.gmra.mxu1 %vm1091_vm0, %v3042_v36  ;;  %v2987_v36 = vadd.f32 %v9972_v57, %v2950_v20  ;;  %v3047_v33 = vpack.c.bf16 %v3021_v42, %v3020_v54  ;;  %v8931_v54 = vld [vmem:[%s9179_s2 + $0xc8] sm:$0xff] }
 0x23e   : > { %8473 = vmatprep.mubr.msk.bf16.mxu1 %vm1091_vm0, %v3043_v32  ;;  %v2990_v32 = vadd.f32 %v9972_v57, %v2953_v31  ;;  %v3026_v31 = vmax.f32 %v2994_v4, 0.0  ;;  %v2960_v42 = vmul.f32 %v8931_v54, %v9965_v38  ;;  %v8937_v54 = vld [vmem:[%s9179_s2 + $0xf8] sm:$0xff] }
 0x23f   : > { %v3019_v43 = vmax.f32 %v2987_v36, 0.0  ;;  %v2956_v36 = vmul.f32 %v8927_v22, %v9965_v38 }
 0x240   : > { %v3022_v37 = vmax.f32 %v2990_v32, 0.0  ;;  %v8930_v32 = vld [vmem:[%s9179_s2 + $0xc0] sm:$0xff]  ;;  %v2997_v22 = vadd.f32 %v9972_v57, %v2960_v42  ;;  %v2966_v42 = vmul.f32 %v8937_v54, %v9965_v38 }
 0x241   : > { %v3046_v5 = vpack.c.bf16 %v3019_v43, %v3018_v10  ;;  %v8929_v10 = vld [vmem:[%s9179_s2 + $0xb8] sm:$0xff] }
 0x242   : > { %v2958_v43 = vmul.f32 %v8929_v10, %v9965_v38  ;;  %v3029_v10 = vmax.f32 %v2997_v22, 0.0 }
 0x244   : > { %v2995_v23 = vadd.f32 %v9972_v57, %v2958_v43 }
 0x245   : > { %8474 = vmatmul.mubr.msk.bf16.gmra.mxu1 %vm1091_vm0, %v3044_v55  ;;  %v2991_v55 = vadd.f32 %v9972_v57, %v2954_v13 }
 0x246   : > { %8477 = vmatprep.mubr.msk.bf16.mxu1 %vm1091_vm0, %v3045_v14  ;;  %v2992_v14 = vadd.f32 %v9972_v57, %v2955_v21  ;;  %v3027_v53 = vmax.f32 %v2995_v23, 0.0 }
 0x247   : > { %v3023_v18 = vmax.f32 %v2991_v55, 0.0  ;;  %v2959_v55 = vmul.f32 %v8930_v32, %v9965_v38  ;;  %v10207_v43 = vpop.f32.mrf.mxu0  ;;  %v8936_v32 = vld [vmem:[%s9179_s2 + $0xf0] sm:$0xff] }
 0x248   : > { %v3024_v30 = vmax.f32 %v2992_v14, 0.0  ;;  %v3050_v62 = vpack.c.bf16 %v3027_v53, %v3026_v31  ;;  %v8935_v53 = vld [vmem:[%s9179_s2 + $0xe8] sm:$0xff] }
 0x249   : > { %v3048_v15 = vpack.c.bf16 %v3023_v18, %v3022_v37  ;;  %v8932_v37 = vld [vmem:[%s9179_s2 + $0xd0] sm:$0xff]  ;;  %v2996_v21 = vadd.f32 %v9972_v57, %v2959_v55  ;;  %v2965_v55 = vmul.f32 %v8936_v32, %v9965_v38 }
 0x24a   : > { %v2961_v18 = vmul.f32 %v8932_v37, %v9965_v38 }
 0x24b   : > { %v3028_v52 = vmax.f32 %v2996_v21, 0.0  ;;  %v3003_v21 = vadd.f32 %v9972_v57, %v2966_v42 }
 0x24d   : > { %8478 = vmatmul.mubr.msk.bf16.gmra.mxu1 %vm1091_vm0, %v3046_v5  ;;  %v2993_v5 = vadd.f32 %v9972_v57, %v2956_v36  ;;  %v2998_v36 = vadd.f32 %v9972_v57, %v2961_v18  ;;  %v3051_v23 = vpack.c.bf16 %v3029_v10, %v3028_v52  ;;  %v3035_v10 = vmax.f32 %v3003_v21, 0.0 }
 0x24e   : > { %8481 = vmatprep.mubr.msk.bf16.mxu1 %vm1091_vm0, %v3047_v33  ;;  %v8933_v33 = vld [vmem:[%s9179_s2 + $0xd8] sm:$0xff] }
 0x24f   : > { %v3025_v60 = vmax.f32 %v2993_v5, 0.0  ;;  %v3030_v14 = vmax.f32 %v2998_v36, 0.0 }
 0x251   : > { %v3049_v13 = vpack.c.bf16 %v3025_v60, %v3024_v30  ;;  %v8934_v60 = vld [vmem:[%s9179_s2 + $0xe0] sm:$0xff] }
 0x252   : > { %v2963_v31 = vmul.f32 %v8934_v60, %v9965_v38 }
 0x254   : > { %v3000_v18 = vadd.f32 %v9972_v57, %v2963_v31 }
 0x255   : > { %8482 = vmatmul.mubr.msk.bf16.gmra.mxu1 %vm1091_vm0, %v3048_v15  ;;  %v2962_v15 = vmul.f32 %v8933_v33, %v9965_v38 }
 0x256   : > { %8485 = vmatprep.mubr.msk.bf16.mxu1 %vm1091_vm0, %v3049_v13  ;;  %v2964_v13 = vmul.f32 %v8935_v53, %v9965_v38  ;;  %v3032_v22 = vmax.f32 %v3000_v18, 0.0 }
 0x257   : > { %v2999_v11 = vadd.f32 %v9972_v57, %v2962_v15  ;;  %v3002_v15 = vadd.f32 %v9972_v57, %v2965_v55 }
 0x258   : > { %v3001_v33 = vadd.f32 %v9972_v57, %v2964_v13 }
 0x259   : > { %v3031_v5 = vmax.f32 %v2999_v11, 0.0  ;;  %v3034_v52 = vmax.f32 %v3002_v15, 0.0 }
 0x25a   : > { %v3033_v36 = vmax.f32 %v3001_v33, 0.0 }
 0x25b   : > { %v3052_v30 = vpack.c.bf16 %v3031_v5, %v3030_v14 }
 0x25c   : > { %v3053_v5 = vpack.c.bf16 %v3033_v36, %v3032_v22 }
 0x25d   : > { %8486 = vmatmul.mubr.msk.bf16.gmra.mxu1 %vm1091_vm0, %v3050_v62  ;;  %v2328_v62 = vpop.f32.mrf.mxu0 }
 0x25e   : > { %v10169_v25 = vpop.f32.mrf.mxu1  ;;  %8489 = vmatprep.mubr.msk.bf16.mxu1 %vm1091_vm0, %v3051_v23  ;;  %v3054_v23 = vpack.c.bf16 %v3035_v10, %v3034_v52 }
 0x25f   : > { %v8362_v11 = vpop.f32.mrf.mxu0  ;;  %v2337_v6 = vadd.f32 %v10207_v43, %v10169_v25  ;;  %v10318_v43 = vpop.permute.xlu1 %3092 }
 0x260   : > { %v10171_v20 = vpop.f32.mrf.mxu1 }
 0x261   : > { %v2329_v9 = vadd.f32 %v2328_v62, %v10171_v20 }
 0x262   : > { %v10187_v45 = vpop.f32.mrf.mxu1 }
 0x263   : > { %v2340_v7 = vadd.f32 %v8362_v11, %v10187_v45 }
 0x264   : > { %v10189_v24 = vpop.f32.mrf.mxu1 }
 0x265   : > { %8490 = vmatmul.mubr.msk.bf16.gmra.mxu1 %vm1091_vm0, %v3052_v30  ;;  %v2331_v30 = vpop.f32.mrf.mxu0 }
 0x266   : > { %8493 = vmatprep.mubr.msk.bf16.mxu1 %vm1091_vm0, %v3053_v5  ;;  %v2332_v16 = vadd.f32 %v2331_v30, %v10189_v24 }
 0x267   : > { %v8365_v31 = vpop.f32.mrf.mxu0 }
 0x269   : > { %v2344_v53 = vpop.f32.mrf.mxu0 }
 0x26b   : > { %v8366_v55 = vpop.f32.mrf.mxu0 }
 0x26d   : > { %8494 = vmatmul.mubr.msk.bf16.gmra.mxu1 %vm1091_vm0, %v3054_v23  ;;  %v2347_v18 = vpop.f32.mrf.mxu0 }
 0x272   : > { %v10201_v26 = vpop.f32.mrf.mxu1 }
 0x273   : > { %v2353_v45 = vadd.f32 %v8365_v31, %v10201_v26 }
 0x274   : > { %v10209_v4 = vpop.f32.mrf.mxu1 }
 0x275   : > { %v2345_v62 = vadd.f32 %v2344_v53, %v10209_v4 }
 0x276   : > { %v10221_v37 = vpop.f32.mrf.mxu1 }
 0x277   : > { %v2356_v4 = vadd.f32 %v8366_v55, %v10221_v37 }
 0x278   : > { %v10227_v14 = vpop.f32.mrf.mxu1  ;;  %v10247_v15 = vpop.f32.mrf.mxu0 }
 0x27a   : > { %v10253_v36 = vpop.f32.mrf.mxu0 }
 0x27c   : > { %v10259_v5 = vpop.f32.mrf.mxu0 }
 0x27e   : > { %v10265_v46 = vpop.f32.mrf.mxu0 }
 0x282   : > { %v10229_v38 = vpop.f32.mrf.mxu1 }
 0x284   : > { %v10233_v60 = vpop.f32.mrf.mxu1 }
 0x286   : > { %v10235_v57 = vpop.f32.mrf.mxu1 }
 0x288   : > { %v10237_v13 = vpop.f32.mrf.mxu1 }
 0x28c   : > { %v10269_v39 = vpop.f32.mrf.mxu0 }
 0x28d   : > { %v10239_v32 = vpop.f32.mrf.mxu1 }
 0x28e   : > { %v10275_v8 = vpop.f32.mrf.mxu0 }
 0x28f   : > { %v10241_v54 = vpop.f32.mrf.mxu1 }
 0x290   : > { %v10281_v12 = vpop.f32.mrf.mxu0 }
 0x291   : > { %v10243_v42 = vpop.f32.mrf.mxu1 }
 0x292   : > { %v10287_v48 = vpop.f32.mrf.mxu0 }
 0x293   : > { %v10245_v33 = vpop.f32.mrf.mxu1 }
 0x294   : > { %v10293_v17 = vpop.f32.mrf.mxu0 }
 0x295   : > { %v10249_v21 = vpop.f32.mrf.mxu1 }
 0x296   : > { %v10300_v35 = vpop.f32.mrf.mxu0 }
 0x297   : > { %v10251_v22 = vpop.f32.mrf.mxu1 }
 0x298   : > { %v10310_v2 = vpop.f32.mrf.mxu0 }
 0x299   : > { %v10255_v52 = vpop.f32.mrf.mxu1 }
 0x29a   : > { %v10326_v11 = vpop.f32.mrf.mxu0 }
 0x29b   : > { %v10257_v10 = vpop.f32.mrf.mxu1 }
 0x29d   : > { %v10261_v23 = vpop.f32.mrf.mxu1 }
 0x29f   : > { %v10263_v59 = vpop.f32.mrf.mxu1 }
 0x2a1   : > { %v10267_v41 = vpop.f32.mrf.mxu1 }
 0x2a3   : > { %v10271_v51 = vpop.f32.mrf.mxu1 }
 0x2a5   : > { %v10273_v34 = vpop.f32.mrf.mxu1 }
 0x2a7   : > { %v10277_v0 = vpop.f32.mrf.mxu1 }
 0x2a9   : > { %v10279_v19 = vpop.f32.mrf.mxu1 }
 0x2ab   : > { %v10283_v40 = vpop.f32.mrf.mxu1 }
 0x2ad   : > { %v10285_v56 = vpop.f32.mrf.mxu1 }
 0x2af   : > { %v10289_v49 = vpop.f32.mrf.mxu1 }
 0x2b1   : > { %v10291_v28 = vpop.f32.mrf.mxu1 }
 0x2b3   : > { %v10295_v61 = vpop.f32.mrf.mxu1 }
 0x2b5   : > { %v8399_v63 = vpop.f32.mrf.mxu1 }
 0x2b6   : > { %v10302_v50 = vadd.f32 %v8399_v63, %v2337_v6 }
 0x2b7   : > { %v2610_v44 = vpop.f32.mrf.mxu1 }
 0x2b8   : > { %13341 = vst [vmem:[#allocation37_spill] sm:$0xff] %v10302_v50  ;;  %v10307_v29 = vadd.f32 %v2610_v44, %v2329_v9  ;;  %v3061_v63 = vmul.f32 %v10305_v27, %v10302_v50 }
 0x2b9   : > { %v8400_v3 = vpop.f32.mrf.mxu1 }
 0x2ba   : > { %13342 = vst [vmem:[#allocation38_spill] sm:$0xff] %v10307_v29  ;;  %v3059_v25 = vmul.f32 %v10305_v27, %v10307_v29  ;;  %v10314_v20 = vadd.f32 %v8400_v3, %v2340_v7  ;;  %v3097_v50 = vadd.f32 %v10318_v43, %v3061_v63 }
 0x2bb   : > { %v2613_v6 = vpop.f32.mrf.mxu1 }
 0x2bc   : > { %13343 = vst [vmem:[#allocation39_spill] sm:$0xff] %v10314_v20  ;;  %v3062_v44 = vmul.f32 %v10305_v27, %v10314_v20  ;;  %v10322_v9 = vadd.f32 %v2613_v6, %v2332_v16  ;;  %v3095_v30 = vadd.f32 %v10318_v43, %v3059_v25  ;;  %v10340_v20 = vpop.f32.mrf.mxu0  ;;  %v3129_v25 = vmax.f32 %v3097_v50, 0.0 }
 0x2bd   : > { %v8403_v24 = vpop.f32.mrf.mxu1  ;;  %v2369_v50 = vadd.f32 %v10247_v15, %v10229_v38 }
 0x2be   : > { %13344 = vst [vmem:[#allocation40_spill] sm:$0xff] %v10322_v9  ;;  %v3098_v3 = vadd.f32 %v10318_v43, %v3062_v44  ;;  %v3060_v7 = vmul.f32 %v10305_v27, %v10322_v9  ;;  %v10334_v6 = vadd.f32 %v8403_v24, %v2353_v45  ;;  %v2348_v44 = vadd.f32 %v2347_v18, %v10227_v14 }
 0x2bf   : > { %v2626_v29 = vpop.f32.mrf.mxu1  ;;  %v3127_v1 = vmax.f32 %v3095_v30, 0.0 }
 0x2c0   : > { %v3096_v16 = vadd.f32 %v10318_v43, %v3060_v7  ;;  %13345 = vst [vmem:[#allocation41_spill] sm:$0xff] %v10334_v6  ;;  %v10336_v26 = vadd.f32 %v2626_v29, %v2345_v62  ;;  %v3130_v31 = vmax.f32 %v3098_v3, 0.0  ;;  %v3065_v29 = vmul.f32 %v10305_v27, %v10334_v6  ;;  %v10356_v3 = vpop.f32.mrf.mxu0 }
 0x2c1   : > { %v8404_v53 = vpop.f32.mrf.mxu1  ;;  %v2361_v62 = vadd.f32 %v10253_v36, %v10233_v60 }
 0x2c2   : > { %13346 = vst [vmem:[#allocation42_spill] sm:$0xff] %v10336_v26  ;;  %v3128_v9 = vmax.f32 %v3096_v16, 0.0  ;;  %v3063_v63 = vmul.f32 %v10305_v27, %v10336_v26  ;;  %v10344_v58 = vadd.f32 %v8404_v53, %v2356_v4  ;;  %v3162_v24 = vpack.c.bf16 %v3130_v31, %v3129_v25 }
 0x2c3   : > { %v2629_v45 = vpop.f32.mrf.mxu1  ;;  %v3101_v38 = vadd.f32 %v10318_v43, %v3065_v29  ;;  %v2364_v31 = vadd.f32 %v10265_v46, %v10237_v13  ;;  %v2385_v46 = vadd.f32 %v10269_v39, %v10239_v32 }
 0x2c4   : > { %13347 = vst [vmem:[#allocation43_spill] sm:$0xff] %v10344_v58  ;;  %v10348_v37 = vadd.f32 %v2629_v45, %v2348_v44  ;;  %v3161_v55 = vpack.c.bf16 %v3128_v9, %v3127_v1  ;;  %v3066_v14 = vmul.f32 %v10305_v27, %v10344_v58  ;;  %v2372_v1 = vadd.f32 %v10259_v5, %v10235_v57  ;;  %v10374_v57 = vpop.f32.mrf.mxu0 }
 0x2c5   : > { %v8407_v18 = vpop.f32.mrf.mxu1  ;;  %v3099_v9 = vadd.f32 %v10318_v43, %v3063_v63  ;;  %v3133_v29 = vmax.f32 %v3101_v38, 0.0 }
 0x2c6   : > { %13348 = vst [vmem:[#allocation44_spill] sm:$0xff] %v10348_v37  ;;  %v3064_v7 = vmul.f32 %v10305_v27, %v10348_v37  ;;  %8431 = vmatprep.mubr.msk.bf16.mxu0 %vm3177_vm9, %v3161_v55  ;;  %v3102_v30 = vadd.f32 %v10318_v43, %v3066_v14  ;;  %v10368_v15 = vadd.f32 %v8407_v18, %v2369_v50 }
 0x2c7   : > { %v2642_v16 = vpop.f32.mrf.mxu1  ;;  %8432 = vmatmul.mubr.msk.bf16.vlgmr.msra.gmra.mxu0 %vm3177_vm9, %v3162_v24  ;;  %v3131_v25 = vmax.f32 %v3099_v9, 0.0  ;;  %v2377_v50 = vadd.f32 %v10275_v8, %v10241_v54 }
 0x2c8   : > { %v3100_v60 = vadd.f32 %v10318_v43, %v3064_v7  ;;  %13349 = vst [vmem:[#allocation45_spill] sm:$0xff] %v10368_v15  ;;  %v10370_v36 = vadd.f32 %v2642_v16, %v2361_v62  ;;  %v3134_v5 = vmax.f32 %v3102_v30, 0.0  ;;  %v3069_v55 = vmul.f32 %v10305_v27, %v10368_v15  ;;  %v10390_v62 = vpop.f32.mrf.mxu0 }
 0x2c9   : > { %v8408_v4 = vpop.f32.mrf.mxu1  ;;  %v2388_v30 = vadd.f32 %v10281_v12, %v10243_v42 }
 0x2ca   : > { %13350 = vst [vmem:[#allocation46_spill] sm:$0xff] %v10370_v36  ;;  %v3132_v53 = vmax.f32 %v3100_v60, 0.0  ;;  %v10376_v44 = vadd.f32 %v8408_v4, %v2372_v1  ;;  %v3067_v63 = vmul.f32 %v10305_v27, %v10370_v36  ;;  %v3164_v9 = vpack.c.bf16 %v3134_v5, %v3133_v29  ;;  %v10408_v12 = vpop.f32.mrf.mxu0 }
 0x2cb   : > { %v2645_v45 = vpop.f32.mrf.mxu1  ;;  %v3105_v32 = vadd.f32 %v10318_v43, %v3069_v55  ;;  %v2380_v4 = vadd.f32 %v10287_v48, %v10245_v33  ;;  %v2401_v48 = vadd.f32 %v10293_v17, %v10249_v21 }
 0x2cc   : > { %13351 = vst [vmem:[#allocation47_spill] sm:$0xff] %v10376_v44  ;;  %v3070_v24 = vmul.f32 %v10305_v27, %v10376_v44  ;;  %v10384_v14 = vadd.f32 %v2645_v45, %v2364_v31  ;;  %v3163_v18 = vpack.c.bf16 %v3132_v53, %v3131_v25  ;;  %v3103_v16 = vadd.f32 %v10318_v43, %v3067_v63 }
 0x2cd   : > { %v8411_v13 = vpop.f32.mrf.mxu1  ;;  %v3137_v45 = vmax.f32 %v3105_v32, 0.0  ;;  %v2396_v32 = vadd.f32 %v10326_v11, %v10257_v10  ;;  %v2417_v10 = vadd.f32 %v10340_v20, %v10261_v23 }
 0x2ce   : > { %13352 = vst [vmem:[#allocation48_spill] sm:$0xff] %v10384_v14  ;;  %v3106_v7 = vadd.f32 %v10318_v43, %v3070_v24  ;;  %v3068_v1 = vmul.f32 %v10305_v27, %v10384_v14  ;;  %8435 = vmatprep.mubr.msk.bf16.mxu0 %vm3177_vm9, %v3163_v18  ;;  %v10401_v54 = vadd.f32 %v8411_v13, %v2385_v46  ;;  %v3135_v53 = vmax.f32 %v3103_v16, 0.0  ;;  %v2424_v18 = vpop.f32.mrf.mxu0 }
 0x2cf   : > { %v2658_v39 = vpop.f32.mrf.mxu1  ;;  %8436 = vmatmul.mubr.msk.bf16.gmra.mxu0 %vm3177_vm9, %v3164_v9  ;;  %v2393_v13 = vadd.f32 %v10300_v35, %v10251_v22  ;;  %v2404_v9 = vadd.f32 %v10310_v2, %v10255_v52 }
 0x2d0   : > { %v3104_v8 = vadd.f32 %v10318_v43, %v3068_v1  ;;  %13353 = vst [vmem:[#allocation49_spill] sm:$0xff] %v10401_v54  ;;  %v10403_v38 = vadd.f32 %v2658_v39, %v2377_v50  ;;  %v3138_v42 = vmax.f32 %v3106_v7, 0.0  ;;  %v3073_v29 = vmul.f32 %v10305_v27, %v10401_v54  ;;  %v8386_v2 = vpop.f32.mrf.mxu0 }
 0x2d1   : > { %v8412_v60 = vpop.f32.mrf.mxu1 }
 0x2d2   : > { %13354 = vst [vmem:[#allocation50_spill] sm:$0xff] %v10403_v38  ;;  %v3136_v31 = vmax.f32 %v3104_v8, 0.0  ;;  %v10410_v5 = vadd.f32 %v8412_v60, %v2388_v30  ;;  %v3071_v25 = vmul.f32 %v10305_v27, %v10403_v38  ;;  %v3166_v1 = vpack.c.bf16 %v3138_v42, %v3137_v45 }
 0x2d3   : > { %v2661_v63 = vpop.f32.mrf.mxu1  ;;  %v3109_v21 = vadd.f32 %v10318_v43, %v3073_v29 }
 0x2d4   : > { %13355 = vst [vmem:[#allocation51_spill] sm:$0xff] %v10410_v5  ;;  %v3074_v55 = vmul.f32 %v10305_v27, %v10410_v5  ;;  %v10418_v24 = vadd.f32 %v2661_v63, %v2380_v4  ;;  %v3165_v46 = vpack.c.bf16 %v3136_v31, %v3135_v53  ;;  %v3107_v30 = vadd.f32 %v10318_v43, %v3071_v25 }
 0x2d5   : > { %v8415_v33 = vpop.f32.mrf.mxu1  ;;  %v3141_v53 = vmax.f32 %v3109_v21, 0.0 }
 0x2d6   : > { %13356 = vst [vmem:[#allocation52_spill] sm:$0xff] %v10418_v24  ;;  %v3110_v50 = vadd.f32 %v10318_v43, %v3074_v55  ;;  %v3072_v7 = vmul.f32 %v10305_v27, %v10418_v24  ;;  %8439 = vmatprep.mubr.msk.bf16.mxu0 %vm3177_vm9, %v3165_v46  ;;  %v10433_v35 = vadd.f32 %v8415_v33, %v2401_v48  ;;  %v3139_v4 = vmax.f32 %v3107_v30, 0.0  ;;  %v2427_v48 = vpop.f32.mrf.mxu0 }
 0x2d7   : > { %v2674_v17 = vpop.f32.mrf.mxu1  ;;  %8440 = vmatmul.mubr.msk.bf16.gmra.mxu0 %vm3177_vm9, %v3166_v1  ;;  %v2409_v55 = vadd.f32 %v10356_v3, %v10263_v59  ;;  %v2412_v30 = vadd.f32 %v10390_v62, %v10271_v51  ;;  %v2433_v51 = vadd.f32 %v10408_v12, %v10273_v34 }
 0x2d8   : > { %v3108_v16 = vadd.f32 %v10318_v43, %v3072_v7  ;;  %13357 = vst [vmem:[#allocation53_spill] sm:$0xff] %v10433_v35  ;;  %v10435_v22 = vadd.f32 %v2674_v17, %v2393_v13  ;;  %v3142_v52 = vmax.f32 %v3110_v50, 0.0  ;;  %v3077_v25 = vmul.f32 %v10305_v27, %v10433_v35 }
 0x2d9   : > { %v8416_v39 = vpop.f32.mrf.mxu1  ;;  %v2420_v50 = vadd.f32 %v10374_v57, %v10267_v41  ;;  %v8389_v41 = vpop.f32.mrf.mxu0 }
 0x2da   : > { %13358 = vst [vmem:[#allocation54_spill] sm:$0xff] %v10435_v22  ;;  %v3140_v8 = vmax.f32 %v3108_v16, 0.0  ;;  %v10440_v60 = vadd.f32 %v8416_v39, %v2404_v9  ;;  %v3075_v42 = vmul.f32 %v10305_v27, %v10435_v22  ;;  %v3168_v13 = vpack.c.bf16 %v3142_v52, %v3141_v53 }
 0x2db   : > { %v2677_v31 = vpop.f32.mrf.mxu1  ;;  %v3113_v20 = vadd.f32 %v10318_v43, %v3077_v25  ;;  %v2425_v53 = vadd.f32 %v2424_v18, %v10277_v0  ;;  %v2440_v25 = vpop.f32.mrf.mxu0 }
 0x2dc   : > { %13359 = vst [vmem:[#allocation55_spill] sm:$0xff] %v10440_v60  ;;  %v3078_v63 = vmul.f32 %v10305_v27, %v10440_v60  ;;  %v10448_v45 = vadd.f32 %v2677_v31, %v2396_v32  ;;  %v3167_v29 = vpack.c.bf16 %v3140_v8, %v3139_v4  ;;  %v3111_v7 = vadd.f32 %v10318_v43, %v3075_v42 }
 0x2dd   : > { %v8419_v11 = vpop.f32.mrf.mxu1  ;;  %v3145_v52 = vmax.f32 %v3113_v20, 0.0 }
 0x2de   : > { %13360 = vst [vmem:[#allocation56_spill] sm:$0xff] %v10448_v45  ;;  %v3114_v33 = vadd.f32 %v10318_v43, %v3078_v63  ;;  %v3076_v46 = vmul.f32 %v10305_v27, %v10448_v45  ;;  %8443 = vmatprep.mubr.msk.bf16.mxu0 %vm3177_vm9, %v3167_v29  ;;  %v10463_v59 = vadd.f32 %v8419_v11, %v2417_v10  ;;  %v3143_v16 = vmax.f32 %v3111_v7, 0.0 }
 0x2df   : > { %v2690_v23 = vpop.f32.mrf.mxu1  ;;  %8444 = vmatmul.mubr.msk.bf16.gmra.mxu0 %vm3177_vm9, %v3168_v13  ;;  %v2436_v29 = vadd.f32 %v8386_v2, %v10279_v19  ;;  %v2428_v13 = vadd.f32 %v2427_v48, %v10283_v40  ;;  %v2449_v40 = vadd.f32 %v8389_v41, %v10285_v56 }
 0x2e0   : > { %v3112_v1 = vadd.f32 %v10318_v43, %v3076_v46  ;;  %13361 = vst [vmem:[#allocation57_spill] sm:$0xff] %v10463_v59  ;;  %v10465_v3 = vadd.f32 %v2690_v23, %v2409_v55  ;;  %v3146_v57 = vmax.f32 %v3114_v33, 0.0  ;;  %v3081_v8 = vmul.f32 %v10305_v27, %v10463_v59 }
 0x2e1   : > { %v8420_v9 = vpop.f32.mrf.mxu1 }
 0x2e2   : > { %13362 = vst [vmem:[#allocation58_spill] sm:$0xff] %v10465_v3  ;;  %v3144_v17 = vmax.f32 %v3112_v1, 0.0  ;;  %v10470_v21 = vadd.f32 %v8420_v9, %v2420_v50  ;;  %v3079_v39 = vmul.f32 %v10305_v27, %v10465_v3  ;;  %v3170_v11 = vpack.c.bf16 %v3146_v57, %v3145_v52  ;;  %v8390_v50 = vpop.f32.mrf.mxu0 }
 0x2e3   : > { %v2693_v32 = vpop.f32.mrf.mxu1  ;;  %v3117_v34 = vadd.f32 %v10318_v43, %v3081_v8 }
 0x2e4   : > { %13363 = vst [vmem:[#allocation59_spill] sm:$0xff] %v10470_v21  ;;  %v3082_v4 = vmul.f32 %v10305_v27, %v10470_v21  ;;  %v10478_v42 = vadd.f32 %v2693_v32, %v2412_v30  ;;  %v3169_v31 = vpack.c.bf16 %v3144_v17, %v3143_v16  ;;  %v3115_v55 = vadd.f32 %v10318_v43, %v3079_v39  ;;  %v2443_v32 = vpop.f32.mrf.mxu0 }
 0x2e5   : > { %v8423_v62 = vpop.f32.mrf.mxu1  ;;  %v3149_v9 = vmax.f32 %v3117_v34, 0.0  ;;  %v2441_v39 = vadd.f32 %v2440_v25, %v10289_v49  ;;  %v2444_v25 = vadd.f32 %v2443_v32, %v10295_v61 }
 0x2e6   : > { %13364 = vst [vmem:[#allocation60_spill] sm:$0xff] %v10478_v42  ;;  %v3118_v63 = vadd.f32 %v10318_v43, %v3082_v4  ;;  %v3080_v10 = vmul.f32 %v10305_v27, %v10478_v42  ;;  %8447 = vmatprep.mubr.msk.bf16.mxu0 %vm3177_vm9, %v3169_v31  ;;  %v10491_v46 = vadd.f32 %v8423_v62, %v2433_v51  ;;  %v3147_v23 = vmax.f32 %v3115_v55, 0.0 }
 0x2e7   : > { %v2706_v33 = vpop.f32.mrf.mxu1  ;;  %8448 = vmatmul.mubr.msk.bf16.gmra.mxu0 %vm3177_vm9, %v3170_v11  ;;  %v2452_v51 = vadd.f32 %v8390_v50, %v10291_v28 }
 0x2e8   : > { %v3116_v12 = vadd.f32 %v10318_v43, %v3080_v10  ;;  %13365 = vst [vmem:[#allocation61_spill] sm:$0xff] %v10491_v46  ;;  %v10493_v0 = vadd.f32 %v2706_v33, %v2425_v53  ;;  %v3150_v19 = vmax.f32 %v3118_v63, 0.0  ;;  %v3085_v30 = vmul.f32 %v10305_v27, %v10491_v46 }
 0x2e9   : > { %v8424_v18 = vpop.f32.mrf.mxu1 }
 0x2ea   : > { %13366 = vst [vmem:[#allocation62_spill] sm:$0xff] %v10493_v0  ;;  %v3148_v2 = vmax.f32 %v3116_v12, 0.0  ;;  %v10497_v7 = vadd.f32 %v8424_v18, %v2436_v29  ;;  %v3083_v20 = vmul.f32 %v10305_v27, %v10493_v0  ;;  %v3172_v4 = vpack.c.bf16 %v3150_v19, %v3149_v9 }
 0x2eb   : > { %v2709_v1 = vpop.f32.mrf.mxu1  ;;  %v3121_v56 = vadd.f32 %v10318_v43, %v3085_v30 }
 0x2ec   : > { %13367 = vst [vmem:[#allocation63_spill] sm:$0xff] %v10497_v7  ;;  %v3086_v57 = vmul.f32 %v10305_v27, %v10497_v7  ;;  %v10505_v17 = vadd.f32 %v2709_v1, %v2428_v13  ;;  %v3171_v16 = vpack.c.bf16 %v3148_v2, %v3147_v23  ;;  %v3119_v62 = vadd.f32 %v10318_v43, %v3083_v20 }
 0x2ed   : > { %v8427_v48 = vpop.f32.mrf.mxu1  ;;  %v3153_v34 = vmax.f32 %v3121_v56, 0.0 }
 0x2ee   : > { %13368 = vst [vmem:[#allocation64_spill] sm:$0xff] %v10505_v17  ;;  %v3122_v52 = vadd.f32 %v10318_v43, %v3086_v57  ;;  %v3084_v8 = vmul.f32 %v10305_v27, %v10505_v17  ;;  %8451 = vmatprep.mubr.msk.bf16.mxu0 %vm3177_vm9, %v3171_v16  ;;  %v10517_v53 = vadd.f32 %v8427_v48, %v2449_v40  ;;  %v3151_v55 = vmax.f32 %v3119_v62, 0.0 }
 0x2ef   : > { %v2722_v31 = vpop.f32.mrf.mxu1  ;;  %8452 = vmatmul.mubr.msk.bf16.gmra.mxu0 %vm3177_vm9, %v3172_v4 }
 0x2f0   : > { %v3120_v41 = vadd.f32 %v10318_v43, %v3084_v8  ;;  %13369 = vst [vmem:[#allocation65_spill] sm:$0xff] %v10517_v53  ;;  %v10519_v49 = vadd.f32 %v2722_v31, %v2441_v39  ;;  %v3154_v10 = vmax.f32 %v3122_v52, 0.0  ;;  %v3089_v12 = vmul.f32 %v10305_v27, %v10517_v53 }
 0x2f1   : > { %v8428_v63 = vpop.f32.mrf.mxu1 }
 0x2f2   : > { %13370 = vst [vmem:[#allocation66_spill] sm:$0xff] %v10519_v49  ;;  %v3152_v28 = vmax.f32 %v3120_v41, 0.0  ;;  %v3087_v11 = vmul.f32 %v10305_v27, %v10519_v49  ;;  %v10525_v29 = vadd.f32 %v8428_v63, %v2452_v51  ;;  %v3174_v23 = vpack.c.bf16 %v3154_v10, %v3153_v34 }
 0x2f3   : > { %v2725_v33 = vpop.f32.mrf.mxu1  ;;  %v3125_v20 = vadd.f32 %v10318_v43, %v3089_v12 }
 0x2f4   : > { %13371 = vst [vmem:[#allocation67_spill] sm:$0xff] %v10525_v29  ;;  %v3090_v18 = vmul.f32 %v10305_v27, %v10525_v29  ;;  %v10531_v13 = vadd.f32 %v2725_v33, %v2444_v25  ;;  %v3173_v61 = vpack.c.bf16 %v3152_v28, %v3151_v55  ;;  %v3123_v50 = vadd.f32 %v10318_v43, %v3087_v11  ;;  %v10564_v55 = vld [vmem:[%s13103_s7] ss:$0 sm:$0xff] }
 0x2f5   : > { %v3157_v40 = vmax.f32 %v3125_v20, 0.0 }
 0x2f6   : > { %13372 = vst [vmem:[#allocation68_spill] sm:$0xff] %v10531_v13  ;;  %v3126_v19 = vadd.f32 %v10318_v43, %v3090_v18  ;;  %v3088_v2 = vmul.f32 %v10305_v27, %v10531_v13  ;;  %8455 = vmatprep.mubr.msk.bf16.mxu0 %vm3177_vm9, %v3173_v61  ;;  %v3155_v9 = vmax.f32 %v3123_v50, 0.0  ;;  %v8467_v27 = vpop.f32.mrf.mxu1  ;;  %v10571_v18 = vld [vmem:[%s13103_s7 + $0x1] ss:$0 sm:$0xff] }
 0x2f7   : > { %8456 = vmatmul.mubr.msk.bf16.gmra.mxu0 %vm3177_vm9, %v3174_v23 }
 0x2f8   : > { %v3124_v1 = vadd.f32 %v10318_v43, %v3088_v2  ;;  %v3158_v30 = vmax.f32 %v3126_v19, 0.0  ;;  %v3473_v39 = vpop.f32.mrf.mxu1 }
 0x2fa   : > { %v3156_v57 = vmax.f32 %v3124_v1, 0.0  ;;  %v3176_v16 = vpack.c.bf16 %v3158_v30, %v3157_v40  ;;  %v8468_v32 = vpop.f32.mrf.mxu1 }
 0x2fc   : > { %v3175_v48 = vpack.c.bf16 %v3156_v57, %v3155_v9  ;;  %v3476_v52 = vpop.f32.mrf.mxu1 }
 0x2fe   : > { %8459 = vmatprep.mubr.msk.bf16.mxu0 %vm3177_vm9, %v3175_v48  ;;  %v8471_v8 = vpop.f32.mrf.mxu1 }
 0x2ff   : > { %8460 = vmatmul.mubr.msk.bf16.gmra.mxu0 %vm3177_vm9, %v3176_v16  ;;  %v8888_v16 = vld [vmem:[%s13104_s8 + $0x10] sm:$0xff]  }
 0x300   : > { %v3489_v4 = vpop.f32.mrf.mxu1  ;;  %8535 = vmatprep.subr.bf16.mxu1 %v8888_v16 }
 0x301   : > { %8536 = vmatpush3.bf16.msra.mxu1 %v8888_v16 }
 0x302   : > { %v8472_v51 = vpop.f32.mrf.mxu1 }
 0x304   : > { %v10543_v43 = vpop.f32.mrf.mxu1 }
 0x306   : > { %v10545_v62 = vpop.f32.mrf.mxu1 }
 0x308   : > { %v10547_v31 = vpop.f32.mrf.mxu1 }
 0x30a   : > { %v10549_v56 = vpop.f32.mrf.mxu1 }
 0x30c   : > { %v10551_v41 = vpop.f32.mrf.mxu1 }
 0x30e   : > { %v10553_v25 = vpop.f32.mrf.mxu1 }
 0x310   : > { %v10555_v63 = vpop.f32.mrf.mxu1 }
 0x312   : > { %v10557_v10 = vpop.f32.mrf.mxu1 }
 0x314   : > { %v10559_v28 = vpop.f32.mrf.mxu1 }
 0x316   : > { %v10566_v34 = vpop.f32.mrf.mxu1 }
 0x318   : > { %v10576_v1 = vpop.f32.mrf.mxu1 }
 0x387   : > { %v8433_v11 = vpop.f32.mrf.mxu0 }
 0x388   : > { %v3482_v33 = vadd.f32 %v8467_v27, %v8433_v11 }
 0x389   : > { %v3264_v12 = vpop.f32.mrf.mxu0 }
 0x38a   : > { %v3607_v61 = vmul.f32 %v10564_v55, %v3482_v33  ;;  %v3474_v50 = vadd.f32 %v3473_v39, %v3264_v12 }
 0x38b   : > { %v8434_v19 = vpop.f32.mrf.mxu0 }
 0x38c   : > { %v3605_v2 = vmul.f32 %v10564_v55, %v3474_v50  ;;  %v3485_v23 = vadd.f32 %v8468_v32, %v8434_v19  ;;  %v3644_v20 = vadd.f32 %v10571_v18, %v3607_v61 }
 0x38d   : > { %v3267_v9 = vpop.f32.mrf.mxu0 }
 0x38e   : > { %v3608_v30 = vmul.f32 %v10564_v55, %v3485_v23  ;;  %v3477_v57 = vadd.f32 %v3476_v52, %v3267_v9  ;;  %v3676_v40 = vmax.f32 %v3644_v20, 0.0  ;;  %v3642_v48 = vadd.f32 %v10571_v18, %v3605_v2  ;;  %v10588_v52 = vpop.f32.mrf.mxu1  ;;  %v8889_v2 = vld [vmem:[%s13104_s8 + $0x28] sm:$0xff]  }
 0x38f   : > { %v8437_v39 = vpop.f32.mrf.mxu0  ;;  %8497 = vmatprep.subr.bf16.mxu0 %v8889_v2 }
 0x390   : > { %v3606_v27 = vmul.f32 %v10564_v55, %v3477_v57  ;;  %3806 = vrot.lane.b32.xlu0 %v3676_v40, %s9033_s20  ;;  %3740 = vst.msk [vmem:[#allocation2 + $0x21] sm:$0xff] %vm1091_vm0, %v3676_v40  ;;  %v3932_v32 = vmul.f32 %v9325_v47, %v3676_v40  ;;  %v3674_v11 = vmax.f32 %v3642_v48, 0.0  ;;  %v3645_v33 = vadd.f32 %v10571_v18, %v3608_v30  ;;  %v13373_v30 = vld [vmem:[#allocation6_spill] sm:$0xff]  ;;  %v10602_v48 = vpop.f32.mrf.mxu1 }
 0x391   : > { %v3498_v12 = vadd.f32 %v8471_v8, %v8437_v39  ;;  %v3280_v61 = vpop.f32.mrf.mxu0  ;;  %v8890_v8 = vld [vmem:[%s13104_s8 + $0x8] sm:$0xff]   ;;  %8498 = vmatpush3.bf16.msra.mxu0 %v8889_v2 }
 0x392   : > { %3998 = vrot.lane.b32.xlu1 %v3932_v32, %s9034_s21  ;;  %3738 = vst.msk [vmem:[#allocation2 + $0x11] sm:$0xff] %vm1091_vm0, %v3674_v11  ;;  %v3677_v50 = vmax.f32 %v3645_v33, 0.0  ;;  %v3643_v19 = vadd.f32 %v10571_v18, %v3606_v27  ;;  %v3490_v20 = vadd.f32 %v3489_v4, %v3280_v61  ;;  %8537 = vmatprep.subr.bf16.mxu1 %v8890_v8  ;;  %v13374_v32 = vld [vmem:[#allocation9_spill] sm:$0xff] }
 0x393   : > { %v3611_v23 = vmul.f32 %v10564_v55, %v3498_v12  ;;  %v8438_v9 = vpop.f32.mrf.mxu0  ;;  %8538 = vmatpush3.bf16.msra.mxu1 %v8890_v8 }
 0x394   : > { %3802 = vrot.lane.b32.xlu0 %v3674_v11, %s9033_s20  ;;  %v3709_v57 = vmul.f32 %v13373_v30, %v3677_v50  ;;  %v3675_v40 = vmax.f32 %v3643_v19, 0.0  ;;  %v3609_v16 = vmul.f32 %v10564_v55, %v3490_v20  ;;  %v3501_v27 = vadd.f32 %v8472_v51, %v8438_v9  ;;  %v8891_v51 = vld [vmem:[%s13104_s8] sm:$0xff]  }
 0x395   : > { %v3648_v39 = vadd.f32 %v10571_v18, %v3611_v23  ;;  %v3283_v4 = vpop.f32.mrf.mxu0  ;;  %v13375_v23 = vld [vmem:[#allocation10_spill] sm:$0xff]  ;;  %8539 = vmatprep.subr.bf16.mxu1 %v8891_v51 }
 0x396   : > { %3808 = vrot.lane.b32.xlu1 %v3677_v50, %s9033_s20  ;;  %3741 = vst.msk [vmem:[#allocation2 + $0x29] sm:$0xff] %vm1091_vm0, %v3709_v57  ;;  %v3707_v33 = vmul.f32 %v13374_v32, %v3675_v40  ;;  %v3612_v12 = vmul.f32 %v10564_v55, %v3501_v27  ;;  %v3493_v61 = vadd.f32 %v10543_v43, %v3283_v4  ;;  %v10618_v57 = vpop.f32.mrf.mxu1  ;;  %v13392_v30 = vld [vmem:[#allocation22_spill] sm:$0xff] }
 0x397   : > { %v3646_v19 = vadd.f32 %v10571_v18, %v3609_v16  ;;  %v3680_v20 = vmax.f32 %v3648_v39, 0.0  ;;  %v8441_v2 = vpop.f32.mrf.mxu0  ;;  %v3930_v9 = vmul.f32 %v13375_v23, %v3674_v11  ;;  %8540 = vmatpush3.bf16.msra.mxu1 %v8891_v51  ;;  %v13376_v51 = vld [vmem:[#allocation13_spill] sm:$0xff] }
 0x398   : > { %4000 = vrot.lane.b32.xlu0 %v3677_v50, %s9034_s21  ;;  %3739 = vst.msk [vmem:[#allocation2 + $0x19] sm:$0xff] %vm1091_vm0, %v3707_v33  ;;  %v3610_v8 = vmul.f32 %v10564_v55, %v3493_v61  ;;  %v3514_v43 = vadd.f32 %v10545_v62, %v8441_v2  ;;  %v3649_v16 = vadd.f32 %v10571_v18, %v3612_v12  ;;  %v10633_v61 = vpop.f32.mrf.mxu1 }
 0x399   : > { %v10622_v27 = vmax.f32 %v3646_v19, 0.0  ;;  %3744 = vst.msk [vmem:[#allocation2 + $0x41] sm:$0xff] %vm1091_vm0, %v3680_v20  ;;  %v3296_v39 = vpop.f32.mrf.mxu0 }
 0x39a   : > { %3994 = vrot.lane.b32.xlu1 %v3930_v9, %s9034_s21  ;;  %v3615_v11 = vmul.f32 %v10564_v55, %v3514_v43  ;;  %v3506_v50 = vadd.f32 %v10547_v31, %v3296_v39  ;;  %v3681_v4 = vmax.f32 %v3649_v16, 0.0  ;;  %v3647_v33 = vadd.f32 %v10571_v18, %v3610_v8 }
 0x39b   : > { %3742 = vst.msk [vmem:[#allocation2 + $0x31] sm:$0xff] %vm1091_vm0, %v10622_v27  ;;  %v8442_v62 = vpop.f32.mrf.mxu0 }
 0x39c   : > { %3996 = vrot.lane.b32.xlu0 %v3675_v40, %s9034_s21  ;;  %v3613_v12 = vmul.f32 %v10564_v55, %v3506_v50  ;;  %v3517_v19 = vadd.f32 %v10549_v56, %v8442_v62  ;;  %v3713_v2 = vmul.f32 %v13376_v51, %v3681_v4  ;;  %v3652_v9 = vadd.f32 %v10571_v18, %v3615_v11  ;;  %v8892_v56 = vld [vmem:[%s13104_s8 + $0x20] sm:$0xff]  }
 0x39d   : > { %v3299_v31 = vpop.f32.mrf.mxu0  ;;  %v10640_v43 = vmax.f32 %v3647_v33, 0.0  ;;  %v10655_v33 = vpop.f32.mrf.mxu1  ;;  %8499 = vmatprep.subr.bf16.mxu0 %v8892_v56 }
 0x39e   : > { %3804 = vrot.lane.b32.xlu1 %v3675_v40, %s9033_s20  ;;  %v3616_v16 = vmul.f32 %v10564_v55, %v3517_v19  ;;  %v3509_v39 = vadd.f32 %v10551_v41, %v3299_v31  ;;  %3745 = vst.msk [vmem:[#allocation2 + $0x49] sm:$0xff] %vm1091_vm0, %v3713_v2  ;;  %v10645_v8 = vmax.f32 %v3652_v9, 0.0  ;;  %v3650_v50 = vadd.f32 %v10571_v18, %v3613_v12  ;;  %v13377_v40 = vld [vmem:[#allocation15_spill] sm:$0xff] }
 0x39f   : > { %v8445_v11 = vpop.f32.mrf.mxu0  ;;  %v3711_v62 = vmul.f32 %v13377_v40, %v10640_v43  ;;  %8500 = vmatpush3.bf16.msra.mxu0 %v8892_v56 }
 0x3a0   : > { %3810 = vrot.lane.b32.xlu0 %v10622_v27, %s9033_s20  ;;  %v3614_v41 = vmul.f32 %v10564_v55, %v3509_v39  ;;  %v3530_v19 = vadd.f32 %v10553_v25, %v8445_v11  ;;  %3748 = vst.msk [vmem:[#allocation2 + $0x61] sm:$0xff] %vm1091_vm0, %v10645_v8  ;;  %v10661_v12 = vmax.f32 %v3650_v50, 0.0  ;;  %v3653_v2 = vadd.f32 %v10571_v18, %v3616_v16  ;;  %v8893_v16 = vld [vmem:[%s13104_s8 + $0x18] sm:$0xff]  }
 0x3a1   : > { %v3312_v9 = vpop.f32.mrf.mxu0  ;;  %3743 = vst.msk [vmem:[#allocation2 + $0x39] sm:$0xff] %vm1091_vm0, %v3711_v62  ;;  %v13378_v11 = vld [vmem:[#allocation25_spill] sm:$0xff]  ;;  %v10677_v62 = vpop.f32.mrf.mxu1  ;;  %8501 = vmatprep.subr.bf16.mxu0 %v8893_v16 }
 0x3a2   : > { %3814 = vrot.lane.b32.xlu1 %v3680_v20, %s9033_s20  ;;  %v3619_v31 = vmul.f32 %v10564_v55, %v3530_v19  ;;  %v3522_v39 = vadd.f32 %v10555_v63, %v3312_v9  ;;  %3746 = vst.msk [vmem:[#allocation2 + $0x51] sm:$0xff] %vm1091_vm0, %v10661_v12  ;;  %v10670_v25 = vmax.f32 %v3653_v2, 0.0  ;;  %v3936_v40 = vmul.f32 %v13378_v11, %v3680_v20  ;;  %v13379_v2 = vld [vmem:[#allocation16_spill] sm:$0xff] }
 0x3a3   : > { %v8446_v50 = vpop.f32.mrf.mxu0  ;;  %v3651_v56 = vadd.f32 %v10571_v18, %v3614_v41  ;;  %8502 = vmatpush3.bf16.msra.mxu0 %v8893_v16  ;;  %v13381_v16 = vld [vmem:[#allocation18_spill] sm:$0xff] }
 0x3a4   : > { %3816 = vrot.lane.b32.xlu0 %v3681_v4, %s9033_s20  ;;  %v3617_v63 = vmul.f32 %v10564_v55, %v3522_v39  ;;  %v3533_v19 = vadd.f32 %v10557_v10, %v8446_v50  ;;  %v3717_v9 = vmul.f32 %v13379_v2, %v10670_v25  ;;  %v3656_v51 = vadd.f32 %v10571_v18, %v3619_v31  ;;  %v13380_v31 = vld [vmem:[#allocation26_spill] sm:$0xff] }
 0x3a5   : > { %v3315_v23 = vpop.f32.mrf.mxu0  ;;  %v10686_v32 = vmax.f32 %v3651_v56, 0.0  ;;  %v3934_v2 = vmul.f32 %v13380_v31, %v10622_v27 }
 0x3a6   : > { %4006 = vrot.lane.b32.xlu1 %v3936_v40, %s9034_s21  ;;  %v3620_v20 = vmul.f32 %v10564_v55, %v3533_v19  ;;  %v3525_v41 = vadd.f32 %v10559_v28, %v3315_v23  ;;  %3749 = vst.msk [vmem:[#allocation2 + $0x69] sm:$0xff] %vm1091_vm0, %v3717_v9  ;;  %v10691_v39 = vmax.f32 %v3656_v51, 0.0  ;;  %v3654_v10 = vadd.f32 %v10571_v18, %v3617_v63  ;;  %v10697_v40 = vpop.f32.mrf.mxu1 }
 0x3a7   : > { %v8449_v50 = vpop.f32.mrf.mxu0  ;;  %v3715_v56 = vmul.f32 %v13381_v16, %v10686_v32 }
 0x3a8   : > { %4008 = vrot.lane.b32.xlu0 %v3681_v4, %s9034_s21  ;;  %v3618_v19 = vmul.f32 %v10564_v55, %v3525_v41  ;;  %v3546_v28 = vadd.f32 %v10566_v34, %v8449_v50  ;;  %3752 = vst.msk [vmem:[#allocation2 + $0x81] sm:$0xff] %vm1091_vm0, %v10691_v39  ;;  %v10705_v23 = vmax.f32 %v3654_v10, 0.0  ;;  %v3657_v51 = vadd.f32 %v10571_v18, %v3620_v20  ;;  %v10718_v41 = vpop.f32.mrf.mxu1  ;;  %v13382_v50 = vld [vmem:[#allocation19_spill] sm:$0xff] }
 0x3a9   : > { %v3328_v4 = vpop.f32.mrf.mxu0  ;;  %3747 = vst.msk [vmem:[#allocation2 + $0x59] sm:$0xff] %vm1091_vm0, %v3715_v56 }
 0x3aa   : > { %4002 = vrot.lane.b32.xlu1 %v3934_v2, %s9034_s21  ;;  %v3623_v27 = vmul.f32 %v10564_v55, %v3546_v28  ;;  %v3538_v63 = vadd.f32 %v10576_v1, %v3328_v4  ;;  %3750 = vst.msk [vmem:[#allocation2 + $0x71] sm:$0xff] %vm1091_vm0, %v10705_v23  ;;  %v10714_v34 = vmax.f32 %v3657_v51, 0.0  ;;  %v3655_v20 = vadd.f32 %v10571_v18, %v3618_v19 }
 0x3ab   : > { %v8450_v9 = vpop.f32.mrf.mxu0 }
 0x3ac   : > { %3812 = vrot.lane.b32.xlu0 %v10640_v43, %s9033_s20  ;;  %v3621_v2 = vmul.f32 %v10564_v55, %v3538_v63  ;;  %v3549_v10 = vadd.f32 %v10588_v52, %v8450_v9  ;;  %v3721_v1 = vmul.f32 %v13382_v50, %v10714_v34  ;;  %v3660_v56 = vadd.f32 %v10571_v18, %v3623_v27  ;;  %v8492_v27 = vpop.f32.mrf.mxu1  ;;  %v13383_v9 = vld [vmem:[#allocation20_spill] sm:$0xff] }
 0x3ad   : > { %v3331_v28 = vpop.f32.mrf.mxu0  ;;  %v10728_v51 = vmax.f32 %v3655_v20, 0.0 }
 0x3ae   : > { %3822 = vrot.lane.b32.xlu1 %v10645_v8, %s9033_s20  ;;  %v3658_v4 = vadd.f32 %v10571_v18, %v3621_v2  ;;  %v3624_v31 = vmul.f32 %v10564_v55, %v3549_v10  ;;  %v3541_v19 = vadd.f32 %v10602_v48, %v3331_v28  ;;  %3753 = vst.msk [vmem:[#allocation2 + $0x89] sm:$0xff] %vm1091_vm0, %v3721_v1  ;;  %v10734_v52 = vmax.f32 %v3660_v56, 0.0 }
 0x3af   : > { %v8453_v63 = vpop.f32.mrf.mxu0  ;;  %v3719_v50 = vmul.f32 %v13383_v9, %v10728_v51 }
 0x3b0   : > { %4004 = vrot.lane.b32.xlu0 %v10640_v43, %s9034_s21  ;;  %v10740_v20 = vmax.f32 %v3658_v4, 0.0  ;;  %v3661_v2 = vadd.f32 %v10571_v18, %v3624_v31  ;;  %v3622_v10 = vmul.f32 %v10564_v55, %v3541_v19  ;;  %v3562_v48 = vadd.f32 %v10618_v57, %v8453_v63  ;;  %3756 = vst.msk [vmem:[#allocation2 + $0xa1] sm:$0xff] %vm1091_vm0, %v10734_v52  ;;  %v13384_v4 = vld [vmem:[#allocation28_spill] sm:$0xff]  ;;  %v3572_v63 = vpop.f32.mrf.mxu1 }
 0x3b1   : > { %v3344_v1 = vpop.f32.mrf.mxu0  ;;  %3751 = vst.msk [vmem:[#allocation2 + $0x79] sm:$0xff] %vm1091_vm0, %v3719_v50  ;;  %v3940_v19 = vmul.f32 %v13384_v4, %v10645_v8  ;;  %v13385_v50 = vld [vmem:[#allocation7_spill] sm:$0xff] }
 0x3b2   : > { %3818 = vrot.lane.b32.xlu1 %v10661_v12, %s9033_s20  ;;  %3754 = vst.msk [vmem:[#allocation2 + $0x91] sm:$0xff] %vm1091_vm0, %v10740_v20  ;;  %v10752_v43 = vmax.f32 %v3661_v2, 0.0  ;;  %v3659_v31 = vadd.f32 %v10571_v18, %v3622_v10  ;;  %v3627_v56 = vmul.f32 %v10564_v55, %v3562_v48  ;;  %v3554_v57 = vadd.f32 %v10633_v61, %v3344_v1  ;;  %v13386_v1 = vld [vmem:[#allocation11_spill] sm:$0xff] }
 0x3b3   : > { %v8454_v28 = vpop.f32.mrf.mxu0 }
 0x3b4   : > { %3824 = vrot.lane.b32.xlu0 %v10670_v25, %s9033_s20  ;;  %v3725_v9 = vmul.f32 %v13385_v50, %v10752_v43  ;;  %v10763_v16 = vmax.f32 %v3659_v31, 0.0  ;;  %v3664_v2 = vadd.f32 %v10571_v18, %v3627_v56  ;;  %v3625_v10 = vmul.f32 %v10564_v55, %v3554_v57 }
 0x3b5   : > { %v3565_v48 = vadd.f32 %v10655_v33, %v8454_v28  ;;  %v3347_v61 = vpop.f32.mrf.mxu0  ;;  %v13387_v33 = vld [vmem:[#allocation29_spill] sm:$0xff]  ;;  %v8495_v28 = vpop.f32.mrf.mxu1 }
 0x3b6   : > { %4014 = vrot.lane.b32.xlu1 %v3940_v19, %s9034_s21  ;;  %3757 = vst.msk [vmem:[#allocation2 + $0xa9] sm:$0xff] %vm1091_vm0, %v3725_v9  ;;  %v3723_v8 = vmul.f32 %v13386_v1, %v10763_v16  ;;  %v10772_v4 = vmax.f32 %v3664_v2, 0.0  ;;  %v3662_v50 = vadd.f32 %v10571_v18, %v3625_v10  ;;  %v3557_v31 = vadd.f32 %v10677_v62, %v3347_v61 }
 0x3b7   : > { %v3628_v56 = vmul.f32 %v10564_v55, %v3565_v48  ;;  %v8457_v11 = vpop.f32.mrf.mxu0  ;;  %v3938_v57 = vmul.f32 %v13387_v33, %v10661_v12 }
 0x3b8   : > { %4016 = vrot.lane.b32.xlu0 %v10670_v25, %s9034_s21  ;;  %3755 = vst.msk [vmem:[#allocation2 + $0x99] sm:$0xff] %vm1091_vm0, %v3723_v8  ;;  %3760 = vst.msk [vmem:[#allocation2 + $0xc1] sm:$0xff] %vm1091_vm0, %v10772_v4  ;;  %v10784_v9 = vmax.f32 %v3662_v50, 0.0  ;;  %v3626_v19 = vmul.f32 %v10564_v55, %v3557_v31  ;;  %v3578_v62 = vadd.f32 %v10697_v40, %v8457_v11  ;;  %v3585_v11 = vpop.f32.mrf.mxu1 }
 0x3b9   : > { %v3665_v2 = vadd.f32 %v10571_v18, %v3628_v56  ;;  %v3360_v10 = vpop.f32.mrf.mxu0 }
 0x3ba   : > { %4010 = vrot.lane.b32.xlu1 %v3938_v57, %s9034_s21  ;;  %3758 = vst.msk [vmem:[#allocation2 + $0xb1] sm:$0xff] %vm1091_vm0, %v10784_v9  ;;  %v3663_v12 = vadd.f32 %v10571_v18, %v3626_v19  ;;  %v3631_v25 = vmul.f32 %v10564_v55, %v3578_v62  ;;  %v3570_v48 = vadd.f32 %v10718_v41, %v3360_v10  ;;  %v13388_v57 = vld [vmem:[#allocation14_spill] sm:$0xff]  ;;  %v13389_v41 = vld [vmem:[#allocation17_spill] sm:$0xff] }
 0x3bb   : > { %v10795_v50 = vmax.f32 %v3665_v2, 0.0  ;;  %v8458_v61 = vpop.f32.mrf.mxu0 }
 0x3bc   : > { %3820 = vrot.lane.b32.xlu0 %v10686_v32, %s9033_s20  ;;  %v10799_v40 = vmax.f32 %v3663_v12, 0.0  ;;  %v3668_v8 = vadd.f32 %v10571_v18, %v3631_v25  ;;  %v3629_v31 = vmul.f32 %v10564_v55, %v3570_v48  ;;  %v3581_v56 = vadd.f32 %v8492_v27, %v8458_v61  ;;  %v8496_v48 = vpop.f32.mrf.mxu1 }
 0x3bd   : > { %v3729_v19 = vmul.f32 %v13388_v57, %v10795_v50  ;;  %v3363_v62 = vpop.f32.mrf.mxu0 }
 0x3be   : > { %3830 = vrot.lane.b32.xlu1 %v10691_v39, %s9033_s20  ;;  %v3727_v2 = vmul.f32 %v13389_v41, %v10799_v40  ;;  %v10809_v10 = vmax.f32 %v3668_v8, 0.0  ;;  %v3666_v12 = vadd.f32 %v10571_v18, %v3629_v31  ;;  %v3632_v33 = vmul.f32 %v10564_v55, %v3581_v56 }
 0x3bf   : > { %3761 = vst.msk [vmem:[#allocation2 + $0xc9] sm:$0xff] %vm1091_vm0, %v3729_v19  ;;  %v3573_v25 = vadd.f32 %v3572_v63, %v3363_v62  ;;  %v8461_v27 = vpop.f32.mrf.mxu0 }
 0x3c0   : > { %4012 = vrot.lane.b32.xlu0 %v10686_v32, %s9034_s21  ;;  %3759 = vst.msk [vmem:[#allocation2 + $0xb9] sm:$0xff] %vm1091_vm0, %v3727_v2  ;;  %3764 = vst.msk [vmem:[#allocation2 + $0xe1] sm:$0xff] %vm1091_vm0, %v10809_v10  ;;  %v10819_v61 = vmax.f32 %v3666_v12, 0.0  ;;  %v3669_v8 = vadd.f32 %v10571_v18, %v3632_v33  ;;  %v3594_v31 = vadd.f32 %v8495_v28, %v8461_v27  ;;  %v3588_v33 = vpop.f32.mrf.mxu1  ;;  %v13390_v28 = vld [vmem:[#allocation30_spill] sm:$0xff] }
 0x3c1   : > { %v3630_v56 = vmul.f32 %v10564_v55, %v3573_v25  ;;  %v3376_v41 = vpop.f32.mrf.mxu0  ;;  %v3944_v12 = vmul.f32 %v13390_v28, %v10691_v39  ;;  %v13391_v25 = vld [vmem:[#allocation21_spill] sm:$0xff] }
 0x3c2   : > { %3826 = vrot.lane.b32.xlu1 %v10705_v23, %s9033_s20  ;;  %3762 = vst.msk [vmem:[#allocation2 + $0xd1] sm:$0xff] %vm1091_vm0, %v10819_v61  ;;  %v10827_v32 = vmax.f32 %v3669_v8, 0.0  ;;  %v3635_v63 = vmul.f32 %v10564_v55, %v3594_v31  ;;  %v3586_v19 = vadd.f32 %v3585_v11, %v3376_v41 }
 0x3c3   : > { %v3667_v62 = vadd.f32 %v10571_v18, %v3630_v56  ;;  %v8462_v2 = vpop.f32.mrf.mxu0 }
 0x3c4   : > { %3832 = vrot.lane.b32.xlu0 %v10714_v34, %s9033_s20  ;;  %v3733_v27 = vmul.f32 %v13391_v25, %v10827_v32  ;;  %v3672_v57 = vadd.f32 %v10571_v18, %v3635_v63  ;;  %v3633_v8 = vmul.f32 %v10564_v55, %v3586_v19  ;;  %v3597_v1 = vadd.f32 %v8496_v48, %v8462_v2  ;;  %v13393_v48 = vld [vmem:[#allocation31_spill] sm:$0xff] }
 0x3c5   : > { %v3699_v31 = vmax.f32 %v3667_v62, 0.0  ;;  %v3379_v11 = vpop.f32.mrf.mxu0  ;;  %v3942_v63 = vmul.f32 %v13393_v48, %v10705_v23  ;;  %v13394_v23 = vld [vmem:[#allocation23_spill] sm:$0xff] }
 0x3c6   : > { %4022 = vrot.lane.b32.xlu1 %v3944_v12, %s9034_s21  ;;  %3765 = vst.msk [vmem:[#allocation2 + $0xe9] sm:$0xff] %vm1091_vm0, %v3733_v27  ;;  %v10841_v41 = vmax.f32 %v3672_v57, 0.0  ;;  %v3670_v56 = vadd.f32 %v10571_v18, %v3633_v8  ;;  %v3636_v39 = vmul.f32 %v10564_v55, %v3597_v1  ;;  %v3589_v28 = vadd.f32 %v3588_v33, %v3379_v11  ;;  %v13396_v12 = vld [vmem:[#allocation8_spill] sm:$0xff] }
 0x3c7   : > { %v3731_v25 = vmul.f32 %v13392_v30, %v3699_v31 }
 0x3c8   : > { %4024 = vrot.lane.b32.xlu0 %v10714_v34, %s9034_s21  ;;  %3768 = vst.msk [vmem:[#allocation2 + $0x101] sm:$0xff] %vm1091_vm0, %v10841_v41  ;;  %v3702_v19 = vmax.f32 %v3670_v56, 0.0  ;;  %v3673_v57 = vadd.f32 %v10571_v18, %v3636_v39  ;;  %v3634_v62 = vmul.f32 %v10564_v55, %v3589_v28  ;;  %v13395_v55 = vld [vmem:[#allocation24_spill] sm:$0xff] }
 0x3c9   : > { %3763 = vst.msk [vmem:[#allocation2 + $0xd9] sm:$0xff] %vm1091_vm0, %v3731_v25  ;;  %v3948_v25 = vmul.f32 %v13396_v12, %v10734_v52  ;;  %v13403_v39 = vld [vmem:[#allocation36_spill] sm:$0xff] }
 0x3ca   : > { %4018 = vrot.lane.b32.xlu1 %v3942_v63, %s9034_s21  ;;  %3766 = vst.msk [vmem:[#allocation2 + $0xf1] sm:$0xff] %vm1091_vm0, %v3702_v19  ;;  %v10857_v1 = vmax.f32 %v3673_v57, 0.0  ;;  %v3671_v34 = vadd.f32 %v10571_v18, %v3634_v62  ;;  %v10874_v18 = vld [vmem:[%s13104_s8 + $0x40] sm:$0xff]   ;;  %v3960_v63 = vmul.f32 %v13403_v39, %v10841_v41  ;;  %v13406_v39 = vld [vmem:[#allocation40_spill] sm:$0xff] }
 0x3cb   : > { %8573 = vmatprep.subr.bf16.mxu0 %v10874_v18  ;;  %v10949_v62 = vld [vmem:[%s13105_s9] ss:$0 sm:$0xff] }
 0x3cc   : > { %3828 = vrot.lane.b32.xlu0 %v10728_v51, %s9033_s20  ;;  %v3737_v2 = vmul.f32 %v13394_v23, %v10857_v1  ;;  %v3703_v33 = vmax.f32 %v3671_v34, 0.0 }
 0x3ce   : > { %3838 = vrot.lane.b32.xlu1 %v10734_v52, %s9033_s20  ;;  %3769 = vst.msk [vmem:[#allocation2 + $0x109] sm:$0xff] %vm1091_vm0, %v3737_v2  ;;  %v3735_v28 = vmul.f32 %v13395_v55, %v3703_v33  ;;  %v13398_v52 = vld [vmem:[#allocation32_spill] sm:$0xff] }
 0x3d0   : > { %4020 = vrot.lane.b32.xlu0 %v10728_v51, %s9034_s21  ;;  %3767 = vst.msk [vmem:[#allocation2 + $0xf9] sm:$0xff] %vm1091_vm0, %v3735_v28  ;;  %v13397_v51 = vld [vmem:[#allocation12_spill] sm:$0xff] }
 0x3d1   : > { %v3946_v27 = vmul.f32 %v13397_v51, %v10740_v20 }
 0x3d2   : > { %3834 = vrot.lane.b32.xlu1 %v10740_v20, %s9033_s20  ;;  %v3952_v20 = vmul.f32 %v13398_v52, %v10772_v4 }
 0x3d4   : > { %3840 = vrot.lane.b32.xlu0 %v10752_v43, %s9033_s20 }
 0x3d6   : > { %4030 = vrot.lane.b32.xlu1 %v3948_v25, %s9034_s21 }
 0x3d8   : > { %4032 = vrot.lane.b32.xlu0 %v10752_v43, %s9034_s21  ;;  %v13399_v43 = vld [vmem:[#allocation27_spill] sm:$0xff] }
 0x3d9   : > { %v3950_v8 = vmul.f32 %v13399_v43, %v10784_v9 }
 0x3da   : > { %4026 = vrot.lane.b32.xlu1 %v3946_v27, %s9034_s21 }
 0x3dc   : > { %3836 = vrot.lane.b32.xlu0 %v10763_v16, %s9033_s20 }
 0x3de   : > { %3846 = vrot.lane.b32.xlu1 %v10772_v4, %s9033_s20 }
 0x3e0   : > { %4028 = vrot.lane.b32.xlu0 %v10763_v16, %s9034_s21  ;;  %v13400_v16 = vld [vmem:[#allocation34_spill] sm:$0xff] }
 0x3e1   : > { %v3956_v4 = vmul.f32 %v13400_v16, %v10809_v10 }
 0x3e2   : > { %3842 = vrot.lane.b32.xlu1 %v10784_v9, %s9033_s20  ;;  %v13401_v9 = vld [vmem:[#allocation33_spill] sm:$0xff] }
 0x3e4   : > { %3848 = vrot.lane.b32.xlu0 %v10795_v50, %s9033_s20 }
 0x3e6   : > { %4038 = vrot.lane.b32.xlu1 %v3952_v20, %s9034_s21 }
 0x3e8   : > { %4040 = vrot.lane.b32.xlu0 %v10795_v50, %s9034_s21  ;;  %v3954_v50 = vmul.f32 %v13401_v9, %v10819_v61 }
 0x3ea   : > { %4034 = vrot.lane.b32.xlu1 %v3950_v8, %s9034_s21 }
 0x3ec   : > { %3844 = vrot.lane.b32.xlu0 %v10799_v40, %s9033_s20 }
 0x3ee   : > { %3854 = vrot.lane.b32.xlu1 %v10809_v10, %s9033_s20 }
 0x3f0   : > { %4036 = vrot.lane.b32.xlu0 %v10799_v40, %s9034_s21 }
 0x3f2   : > { %3850 = vrot.lane.b32.xlu1 %v10819_v61, %s9033_s20 }
 0x3f4   : > { %3856 = vrot.lane.b32.xlu0 %v10827_v32, %s9033_s20 }
 0x3f6   : > { %4046 = vrot.lane.b32.xlu1 %v3956_v4, %s9034_s21 }
 0x3f8   : > { %4048 = vrot.lane.b32.xlu0 %v10827_v32, %s9034_s21  ;;  %v13402_v32 = vld [vmem:[#allocation35_spill] sm:$0xff] }
 0x3f9   : > { %v3958_v61 = vmul.f32 %v13402_v32, %v3702_v19  ;;  %v13407_v32 = vld [vmem:[#allocation37_spill] sm:$0xff] }
 0x3fa   : > { %4042 = vrot.lane.b32.xlu1 %v3954_v50, %s9034_s21 }
 0x3fc   : > { %3852 = vrot.lane.b32.xlu0 %v3699_v31, %s9033_s20 }
 0x3fe   : > { %3862 = vrot.lane.b32.xlu1 %v10841_v41, %s9033_s20  ;;  %v10957_v41 = vld [vmem:[%s13105_s9 + $0x1] ss:$0 sm:$0xff] }
 0x400   : > { %4044 = vrot.lane.b32.xlu0 %v3699_v31, %s9034_s21 }
 0x402   : > { %v3807_v40 = vpop.permute.xlu0 %3806  ;;  %3858 = vrot.lane.b32.xlu1 %v3702_v19, %s9033_s20  ;;  %v5299_v19 = vld [vmem:[%s13106_s10 + $0x10] sm:$0xff] }
 0x403   : > { %3900 = vst.msk [vmem:[#allocation2 + $0x20] sm:$0xff] %vm1756_vm5, %v3807_v40  ;;  %v5300_v34 = vpack.c.bf16 %v5299_v19, %v5299_v19 }
 0x404   : > { %v3999_v10 = vpop.permute.xlu1 %3998  ;;  %3864 = vrot.lane.b32.xlu0 %v10857_v1, %s9033_s20 }
 0x405   : > { %8830 = vmatprep.subr.msk.bf16.mxu1 %vm3226_vm8, %v5300_v34 }
 0x406   : > { %v3803_v11 = vpop.permute.xlu0 %3802  ;;  %4050 = vrot.lane.b32.xlu1 %v3958_v61, %s9034_s21 }
 0x407   : > { %3898 = vst.msk [vmem:[#allocation2 + $0x10] sm:$0xff] %vm1756_vm5, %v3803_v11  ;;  %v5366_v11 = vsel %vm3226_vm8, %v5300_v34, 0 }
 0x408   : > { %v3809_v56 = vpop.permute.xlu1 %3808  ;;  %3860 = vrot.lane.b32.xlu0 %v3703_v33, %s9033_s20 }
 0x409   : > { %3901 = vst.msk [vmem:[#allocation2 + $0x28] sm:$0xff] %vm1756_vm5, %v3809_v56 }
 0x40a   : > { %v4001_v31 = vpop.permute.xlu0 %4000  ;;  %4052 = vrot.lane.b32.xlu1 %v3703_v33, %s9034_s21 }
 0x40b   : > { %4093 = vst.msk [vmem:[#allocation2 + $0x27] sm:$0xff] %vm1949_vm7, %v4001_v31 }
 0x40c   : > { %v3995_v57 = vpop.permute.xlu1 %3994  ;;  %4054 = vrot.lane.b32.xlu0 %v3960_v63, %s9034_s21 }
 0x40d   : > { %4090 = vst.msk [vmem:[#allocation2 + $0xf] sm:$0xff] %vm1949_vm7, %v3995_v57 }
 0x40e   : > { %v3997_v2 = vpop.permute.xlu0 %3996  ;;  %4056 = vrot.lane.b32.xlu1 %v10857_v1, %s9034_s21  ;;  %v4122_v1 = vld [vmem:[#allocation2] sm:$0xff] }
 0x410   : > { %v3805_v33 = vpop.permute.xlu1 %3804  ;;  %5196 = vrot.lane.b32.xlu0 %v10949_v62, %s13404_s15 }
 0x411   : > { %3899 = vst.msk [vmem:[#allocation2 + $0x18] sm:$0xff] %vm1756_vm5, %v3805_v33 }
 0x412   : > { %4091 = vst.msk [vmem:[#allocation2 + $0x17] sm:$0xff] %vm1949_vm7, %v3997_v2  ;;  %4092 = vst.msk [vmem:[#allocation2 + $0x1f] sm:$0xff] %vm1949_vm7, %v3999_v10  ;;  %v3811_v28 = vpop.permute.xlu0 %3810  ;;  %5232 = vrot.lane.b32.xlu1 %v10957_v41, %s13404_s15 }
 0x413   : > { %3902 = vst.msk [vmem:[#allocation2 + $0x30] sm:$0xff] %vm1756_vm5, %v3811_v28  ;;  %v8895_v28 = vld [vmem:[%s13104_s8 + $0x38] sm:$0xff]  }
 0x414   : > { %v3815_v25 = vpop.permute.xlu1 %3814  ;;  %v4123_v27 = vld [vmem:[#allocation2 + $0x8] sm:$0xff]  ;;  %5738 = vrot.lane.b32.xlu0 %v10949_v62, %s9036_s23 }
 0x415   : > { %3904 = vst.msk [vmem:[#allocation2 + $0x40] sm:$0xff] %vm1756_vm5, %v3815_v25  ;;  %v4154_v20 = vpack.c.bf16 %v4123_v27, %v4122_v1 }
 0x416   : > { %v3817_v8 = vpop.permute.xlu0 %3816  ;;  %5773 = vrot.lane.b32.xlu1 %v10957_v41, %s9036_s23  ;;  %s432_s23 = sand.u32 1, %s9022_s26  }
 0x417   : > { %3905 = vst.msk [vmem:[#allocation2 + $0x48] sm:$0xff] %vm1756_vm5, %v3817_v8  ;;  %8541 = vmatprep.mubr.msk.bf16.mxu1 %vm443_vm1, %v4154_v20  ;;  %s7652_s24 = sshll.u32 %s432_s23, 8 }
 0x418   : > { %v4007_v4 = vpop.permute.xlu1 %4006  ;;  %s12306_s30 = scalar_lea.vmem [#allocation3], %s7652_s24  ;;  %s9037_s24 = smov 24  }
 0x419   : > { %v4124_v50 = vld [vmem:[#allocation2 + $0x10] sm:$0xff]  ;;  %v4125_v40 = vld [vmem:[#allocation2 + $0x18] sm:$0xff]  ;;  %v4126_v34 = vld [vmem:[#allocation2 + $0x20] sm:$0xff] }
 0x41a   : > { %v4009_v10 = vpop.permute.xlu0 %4008  ;;  %v4155_v61 = vpack.c.bf16 %v4125_v40, %v4124_v50 }
 0x41b   : > { %4097 = vst.msk [vmem:[#allocation2 + $0x47] sm:$0xff] %vm1949_vm7, %v4009_v10 }
 0x41c   : > { %v4003_v56 = vpop.permute.xlu1 %4002  ;;  %8503 = vmatprep.mubr.msk.bf16.mxu0 %vm443_vm1, %v4155_v61  ;;  %8542 = vmatmul.mubr.msk.bf16.vlgmr.msra.gmra.mxu1 %vm443_vm1, %v4155_v61 }
 0x41d   : > { %4094 = vst.msk [vmem:[#allocation2 + $0x2f] sm:$0xff] %vm1949_vm7, %v4003_v56  ;;  %8612 = vmatpush3.bf16.msra.mxu1 %v5366_v11 }
 0x41e   : > { %v3813_v31 = vpop.permute.xlu0 %3812 }
 0x41f   : > { %3903 = vst.msk [vmem:[#allocation2 + $0x38] sm:$0xff] %vm1756_vm5, %v3813_v31 }
 0x420   : > { %4096 = vst.msk [vmem:[#allocation2 + $0x3f] sm:$0xff] %vm1949_vm7, %v4007_v4  ;;  %v3823_v63 = vpop.permute.xlu1 %3822  ;;  %v8896_v4 = vld [vmem:[%s13104_s8 + $0x30] sm:$0xff]  }
 0x421   : > { %3908 = vst.msk [vmem:[#allocation2 + $0x60] sm:$0xff] %vm1756_vm5, %v3823_v63 }
 0x422   : > { %v4005_v57 = vpop.permute.xlu0 %4004 }
 0x423   : > { %4095 = vst.msk [vmem:[#allocation2 + $0x37] sm:$0xff] %vm1949_vm7, %v4005_v57 }
 0x424   : > { %v3819_v19 = vpop.permute.xlu1 %3818  ;;  %v4127_v2 = vld [vmem:[#allocation2 + $0x28] sm:$0xff] }
 0x425   : > { %3906 = vst.msk [vmem:[#allocation2 + $0x50] sm:$0xff] %vm1756_vm5, %v3819_v19  ;;  %v10981_v33 = vpack.c.bf16 %v4127_v2, %v4126_v34 }
 0x426   : > { %v3825_v1 = vpop.permute.xlu0 %3824 }
 0x427   : > { %3909 = vst.msk [vmem:[#allocation2 + $0x68] sm:$0xff] %vm1756_vm5, %v3825_v1  ;;  %8504 = vmatmul.mubr.msk.bf16.vlgmr.msra.gmra.mxu0 %vm443_vm1, %v10981_v33  ;;  %8545 = vmatprep.mubr.msk.bf16.mxu1 %vm443_vm1, %v10981_v33  ;;  %v4130_v56 = vld [vmem:[#allocation2 + $0x40] sm:$0xff] }
 0x428   : > { %v4015_v25 = vpop.permute.xlu1 %4014  ;;  %8574 = vmatpush3.bf16.msra.mxu0 %v10874_v18 }
 0x429   : > { %8575 = vmatprep.subr.bf16.mxu0 %v8895_v28 }
 0x42a   : > { %v4017_v27 = vpop.permute.xlu0 %4016  ;;  %v4128_v20 = vld [vmem:[#allocation2 + $0x30] sm:$0xff]  ;;  %v4129_v8 = vld [vmem:[#allocation2 + $0x38] sm:$0xff] }
 0x42b   : > { %4101 = vst.msk [vmem:[#allocation2 + $0x67] sm:$0xff] %vm1949_vm7, %v4017_v27  ;;  %v10996_v50 = vpack.c.bf16 %v4129_v8, %v4128_v20 }
 0x42c   : > { %v4011_v40 = vpop.permute.xlu1 %4010  ;;  %8576 = vmatpush3.bf16.msra.mxu0 %v8895_v28 }
 0x42d   : > { %4098 = vst.msk [vmem:[#allocation2 + $0x4f] sm:$0xff] %vm1949_vm7, %v4011_v40  ;;  %8507 = vmatprep.mubr.msk.bf16.mxu0 %vm443_vm1, %v10996_v50  ;;  %8546 = vmatmul.mubr.msk.bf16.gmra.mxu1 %vm443_vm1, %v10996_v50 }
 0x42e   : > { %v3821_v18 = vpop.permute.xlu0 %3820  ;;  %8577 = vmatprep.subr.bf16.mxu0 %v8896_v4 }
 0x42f   : > { %3907 = vst.msk [vmem:[#allocation2 + $0x58] sm:$0xff] %vm1756_vm5, %v3821_v18 }
 0x430   : > { %v3831_v10 = vpop.permute.xlu1 %3830  ;;  %4100 = vst.msk [vmem:[#allocation2 + $0x5f] sm:$0xff] %vm1949_vm7, %v4015_v25  ;;  %8578 = vmatpush3.bf16.msra.mxu0 %v8896_v4 }
 0x431   : > { %3912 = vst.msk [vmem:[#allocation2 + $0x80] sm:$0xff] %vm1756_vm5, %v3831_v10 }
 0x432   : > { %v4013_v61 = vpop.permute.xlu0 %4012 }
 0x433   : > { %4099 = vst.msk [vmem:[#allocation2 + $0x57] sm:$0xff] %vm1949_vm7, %v4013_v61 }
 0x434   : > { %v3827_v11 = vpop.permute.xlu1 %3826  ;;  %v4131_v31 = vld [vmem:[#allocation2 + $0x48] sm:$0xff] }
 0x435   : > { %3910 = vst.msk [vmem:[#allocation2 + $0x70] sm:$0xff] %vm1756_vm5, %v3827_v11  ;;  %v11008_v63 = vpack.c.bf16 %v4131_v31, %v4130_v56 }
 0x436   : > { %v3833_v57 = vpop.permute.xlu0 %3832 }
 0x437   : > { %3913 = vst.msk [vmem:[#allocation2 + $0x88] sm:$0xff] %vm1756_vm5, %v3833_v57  ;;  %8508 = vmatmul.mubr.msk.bf16.gmra.mxu0 %vm443_vm1, %v11008_v63  ;;  %8549 = vmatprep.mubr.msk.bf16.mxu1 %vm443_vm1, %v11008_v63  ;;  %v4134_v40 = vld [vmem:[#allocation2 + $0x60] sm:$0xff] }
 0x438   : > { %v4023_v19 = vpop.permute.xlu1 %4022 }
 0x43a   : > { %v4025_v34 = vpop.permute.xlu0 %4024  ;;  %v4132_v2 = vld [vmem:[#allocation2 + $0x50] sm:$0xff]  ;;  %v4133_v28 = vld [vmem:[#allocation2 + $0x58] sm:$0xff] }
 0x43b   : > { %4105 = vst.msk [vmem:[#allocation2 + $0x87] sm:$0xff] %vm1949_vm7, %v4025_v34  ;;  %v11016_v1 = vpack.c.bf16 %v4133_v28, %v4132_v2  ;;  %v5176_v34 = vld [vmem:[%s13106_s10] sm:$0xff]  ;;  %v5177_v2 = vld [vmem:[%s13106_s10 + $0x8] sm:$0xff] }
 0x43c   : > { %v4019_v25 = vpop.permute.xlu1 %4018 }
 0x43d   : > { %4102 = vst.msk [vmem:[#allocation2 + $0x6f] sm:$0xff] %vm1949_vm7, %v4019_v25  ;;  %8511 = vmatprep.mubr.msk.bf16.mxu0 %vm443_vm1, %v11016_v1  ;;  %8550 = vmatmul.mubr.msk.bf16.gmra.mxu1 %vm443_vm1, %v11016_v1  ;;  %v11044_v25 = vpack.c.bf16 %v5177_v2, %v5176_v34 }
 0x43e   : > { %v3829_v27 = vpop.permute.xlu0 %3828 }
 0x43f   : > { %3911 = vst.msk [vmem:[#allocation2 + $0x78] sm:$0xff] %vm1756_vm5, %v3829_v27  ;;  %8645 = vmatprep.subr.bf16.mxu0 %v11044_v25 }
 0x440   : > { %v3839_v20 = vpop.permute.xlu1 %3838  ;;  %4104 = vst.msk [vmem:[#allocation2 + $0x7f] sm:$0xff] %vm1949_vm7, %v4023_v19 }
 0x441   : > { %3916 = vst.msk [vmem:[#allocation2 + $0xa0] sm:$0xff] %vm1756_vm5, %v3839_v20 }
 0x442   : > { %v4021_v8 = vpop.permute.xlu0 %4020 }
 0x443   : > { %4103 = vst.msk [vmem:[#allocation2 + $0x77] sm:$0xff] %vm1949_vm7, %v4021_v8 }
 0x444   : > { %v3835_v4 = vpop.permute.xlu1 %3834  ;;  %v4135_v18 = vld [vmem:[#allocation2 + $0x68] sm:$0xff] }
 0x445   : > { %3914 = vst.msk [vmem:[#allocation2 + $0x90] sm:$0xff] %vm1756_vm5, %v3835_v4  ;;  %v11028_v10 = vpack.c.bf16 %v4135_v18, %v4134_v40 }
 0x446   : > { %v3841_v61 = vpop.permute.xlu0 %3840 }
 0x447   : > { %3917 = vst.msk [vmem:[#allocation2 + $0xa8] sm:$0xff] %vm1756_vm5, %v3841_v61  ;;  %8512 = vmatmul.mubr.msk.bf16.gmra.mxu0 %vm443_vm1, %v11028_v10  ;;  %8553 = vmatprep.mubr.msk.bf16.mxu1 %vm443_vm1, %v11028_v10  ;;  %v4138_v40 = vld [vmem:[#allocation2 + $0x80] sm:$0xff] }
 0x448   : > { %v4031_v11 = vpop.permute.xlu1 %4030 }
 0x44a   : > { %v4033_v56 = vpop.permute.xlu0 %4032  ;;  %v4136_v31 = vld [vmem:[#allocation2 + $0x70] sm:$0xff]  ;;  %v4137_v57 = vld [vmem:[#allocation2 + $0x78] sm:$0xff] }
 0x44b   : > { %4109 = vst.msk [vmem:[#allocation2 + $0xa7] sm:$0xff] %vm1949_vm7, %v4033_v56  ;;  %v11036_v19 = vpack.c.bf16 %v4137_v57, %v4136_v31 }
 0x44c   : > { %v4027_v28 = vpop.permute.xlu1 %4026 }
 0x44d   : > { %4106 = vst.msk [vmem:[#allocation2 + $0x8f] sm:$0xff] %vm1949_vm7, %v4027_v28  ;;  %8515 = vmatprep.mubr.msk.bf16.mxu0 %vm443_vm1, %v11036_v19  ;;  %8554 = vmatmul.mubr.msk.bf16.gmra.mxu1 %vm443_vm1, %v11036_v19 }
 0x44e   : > { %v3837_v27 = vpop.permute.xlu0 %3836 }
 0x44f   : > { %3915 = vst.msk [vmem:[#allocation2 + $0x98] sm:$0xff] %vm1756_vm5, %v3837_v27 }
 0x450   : > { %v3847_v20 = vpop.permute.xlu1 %3846  ;;  %4108 = vst.msk [vmem:[#allocation2 + $0x9f] sm:$0xff] %vm1949_vm7, %v4031_v11 }
 0x451   : > { %3920 = vst.msk [vmem:[#allocation2 + $0xc0] sm:$0xff] %vm1756_vm5, %v3847_v20 }
 0x452   : > { %v4029_v8 = vpop.permute.xlu0 %4028 }
 0x453   : > { %4107 = vst.msk [vmem:[#allocation2 + $0x97] sm:$0xff] %vm1949_vm7, %v4029_v8 }
 0x454   : > { %v3843_v4 = vpop.permute.xlu1 %3842  ;;  %v4139_v18 = vld [vmem:[#allocation2 + $0x88] sm:$0xff] }
 0x455   : > { %3918 = vst.msk [vmem:[#allocation2 + $0xb0] sm:$0xff] %vm1756_vm5, %v3843_v4  ;;  %v11057_v61 = vpack.c.bf16 %v4139_v18, %v4138_v40 }
 0x456   : > { %v3849_v56 = vpop.permute.xlu0 %3848 }
 0x457   : > { %3921 = vst.msk [vmem:[#allocation2 + $0xc8] sm:$0xff] %vm1756_vm5, %v3849_v56  ;;  %8516 = vmatmul.mubr.msk.bf16.gmra.mxu0 %vm443_vm1, %v11057_v61  ;;  %8557 = vmatprep.mubr.msk.bf16.mxu1 %vm443_vm1, %v11057_v61  ;;  %v4142_v40 = vld [vmem:[#allocation2 + $0xa0] sm:$0xff] }
 0x458   : > { %v4039_v11 = vpop.permute.xlu1 %4038 }
 0x45a   : > { %v4041_v31 = vpop.permute.xlu0 %4040  ;;  %v4140_v57 = vld [vmem:[#allocation2 + $0x90] sm:$0xff]  ;;  %v4141_v34 = vld [vmem:[#allocation2 + $0x98] sm:$0xff] }
 0x45b   : > { %4113 = vst.msk [vmem:[#allocation2 + $0xc7] sm:$0xff] %vm1949_vm7, %v4041_v31  ;;  %v11065_v2 = vpack.c.bf16 %v4141_v34, %v4140_v57 }
 0x45c   : > { %v4035_v28 = vpop.permute.xlu1 %4034 }
 0x45d   : > { %4110 = vst.msk [vmem:[#allocation2 + $0xaf] sm:$0xff] %vm1949_vm7, %v4035_v28  ;;  %8519 = vmatprep.mubr.msk.bf16.mxu0 %vm443_vm1, %v11065_v2  ;;  %8558 = vmatmul.mubr.msk.bf16.gmra.mxu1 %vm443_vm1, %v11065_v2 }
 0x45e   : > { %v3845_v27 = vpop.permute.xlu0 %3844 }
 0x45f   : > { %3919 = vst.msk [vmem:[#allocation2 + $0xb8] sm:$0xff] %vm1756_vm5, %v3845_v27 }
 0x460   : > { %v3855_v20 = vpop.permute.xlu1 %3854  ;;  %4112 = vst.msk [vmem:[#allocation2 + $0xbf] sm:$0xff] %vm1949_vm7, %v4039_v11 }
 0x461   : > { %3924 = vst.msk [vmem:[#allocation2 + $0xe0] sm:$0xff] %vm1756_vm5, %v3855_v20 }
 0x462   : > { %v4037_v8 = vpop.permute.xlu0 %4036 }
 0x463   : > { %4111 = vst.msk [vmem:[#allocation2 + $0xb7] sm:$0xff] %vm1949_vm7, %v4037_v8 }
 0x464   : > { %v3851_v4 = vpop.permute.xlu1 %3850  ;;  %v4143_v18 = vld [vmem:[#allocation2 + $0xa8] sm:$0xff] }
 0x465   : > { %3922 = vst.msk [vmem:[#allocation2 + $0xd0] sm:$0xff] %vm1756_vm5, %v3851_v4  ;;  %v11079_v56 = vpack.c.bf16 %v4143_v18, %v4142_v40 }
 0x466   : > { %v3857_v31 = vpop.permute.xlu0 %3856 }
 0x467   : > { %3925 = vst.msk [vmem:[#allocation2 + $0xe8] sm:$0xff] %vm1756_vm5, %v3857_v31  ;;  %8520 = vmatmul.mubr.msk.bf16.gmra.mxu0 %vm443_vm1, %v11079_v56  ;;  %8561 = vmatprep.mubr.msk.bf16.mxu1 %vm443_vm1, %v11079_v56  ;;  %v4146_v31 = vld [vmem:[#allocation2 + $0xc0] sm:$0xff] }
 0x468   : > { %v4047_v11 = vpop.permute.xlu1 %4046 }
 0x46a   : > { %v4049_v57 = vpop.permute.xlu0 %4048  ;;  %v4144_v34 = vld [vmem:[#allocation2 + $0xb0] sm:$0xff]  ;;  %v4145_v28 = vld [vmem:[#allocation2 + $0xb8] sm:$0xff] }
 0x46b   : > { %4117 = vst.msk [vmem:[#allocation2 + $0xe7] sm:$0xff] %vm1949_vm7, %v4049_v57  ;;  %v11087_v27 = vpack.c.bf16 %v4145_v28, %v4144_v34 }
 0x46c   : > { %v4043_v20 = vpop.permute.xlu1 %4042 }
 0x46d   : > { %4114 = vst.msk [vmem:[#allocation2 + $0xcf] sm:$0xff] %vm1949_vm7, %v4043_v20  ;;  %8523 = vmatprep.mubr.msk.bf16.mxu0 %vm443_vm1, %v11087_v27  ;;  %8562 = vmatmul.mubr.msk.bf16.gmra.mxu1 %vm443_vm1, %v11087_v27 }
 0x46e   : > { %v3853_v8 = vpop.permute.xlu0 %3852 }
 0x46f   : > { %3923 = vst.msk [vmem:[#allocation2 + $0xd8] sm:$0xff] %vm1756_vm5, %v3853_v8 }
 0x470   : > { %v3863_v4 = vpop.permute.xlu1 %3862  ;;  %4116 = vst.msk [vmem:[#allocation2 + $0xdf] sm:$0xff] %vm1949_vm7, %v4047_v11 }
 0x471   : > { %3928 = vst.msk [vmem:[#allocation2 + $0x100] sm:$0xff] %vm1756_vm5, %v3863_v4 }
 0x472   : > { %v4045_v40 = vpop.permute.xlu0 %4044 }
 0x473   : > { %4115 = vst.msk [vmem:[#allocation2 + $0xd7] sm:$0xff] %vm1949_vm7, %v4045_v40 }
 0x474   : > { %v3859_v18 = vpop.permute.xlu1 %3858  ;;  %v4147_v57 = vld [vmem:[#allocation2 + $0xc8] sm:$0xff] }
 0x475   : > { %3926 = vst.msk [vmem:[#allocation2 + $0xf0] sm:$0xff] %vm1756_vm5, %v3859_v18  ;;  %v11099_v34 = vpack.c.bf16 %v4147_v57, %v4146_v31 }
 0x476   : > { %v3865_v28 = vpop.permute.xlu0 %3864 }
 0x477   : > { %3929 = vst.msk [vmem:[#allocation2 + $0x108] sm:$0xff] %vm1756_vm5, %v3865_v28  ;;  %8524 = vmatmul.mubr.msk.bf16.gmra.mxu0 %vm443_vm1, %v11099_v34  ;;  %8565 = vmatprep.mubr.msk.bf16.mxu1 %vm443_vm1, %v11099_v34  ;;  %v4150_v28 = vld [vmem:[#allocation2 + $0xe0] sm:$0xff] }
 0x478   : > { %v4051_v11 = vpop.permute.xlu1 %4050 }
 0x479   : > { %4118 = vst.msk [vmem:[#allocation2 + $0xef] sm:$0xff] %vm1949_vm7, %v4051_v11 }
 0x47a   : > { %v3861_v20 = vpop.permute.xlu0 %3860  ;;  %v4148_v8 = vld [vmem:[#allocation2 + $0xd0] sm:$0xff]  ;;  %v4149_v4 = vld [vmem:[#allocation2 + $0xd8] sm:$0xff] }
 0x47b   : > { %3927 = vst.msk [vmem:[#allocation2 + $0xf8] sm:$0xff] %vm1756_vm5, %v3861_v20  ;;  %v11108_v40 = vpack.c.bf16 %v4149_v4, %v4148_v8  ;;  %v13405_v4 = vld [vmem:[#allocation38_spill] sm:$0xff] }
 0x47c   : > { %v4053_v18 = vpop.permute.xlu1 %4052 }
 0x47d   : > { %4119 = vst.msk [vmem:[#allocation2 + $0xf7] sm:$0xff] %vm1949_vm7, %v4053_v18  ;;  %8527 = vmatprep.mubr.msk.bf16.mxu0 %vm443_vm1, %v11108_v40  ;;  %8566 = vmatmul.mubr.msk.bf16.gmra.mxu1 %vm443_vm1, %v11108_v40 }
 0x47e   : > { %v4055_v31 = vpop.permute.xlu0 %4054 }
 0x47f   : > { %4120 = vst.msk [vmem:[#allocation2 + $0xff] sm:$0xff] %vm1949_vm7, %v4055_v31 }
 0x480   : > { %v4057_v57 = vpop.permute.xlu1 %4056  ;;  %v4151_v11 = vld [vmem:[#allocation2 + $0xe8] sm:$0xff] }
 0x481   : > { %4121 = vst.msk [vmem:[#allocation2 + $0x107] sm:$0xff] %vm1949_vm7, %v4057_v57  ;;  %v11117_v20 = vpack.c.bf16 %v4151_v11, %v4150_v28  ;;  %v13408_v28 = vld [vmem:[#allocation39_spill] sm:$0xff] }
 0x482   : > { %v11119_v8 = vpop.permute.xlu0 %5196 }
 0x483   : > { %8528 = vmatmul.mubr.msk.bf16.gmra.mxu0 %vm443_vm1, %v11117_v20  ;;  %8569 = vmatprep.mubr.msk.bf16.mxu1 %vm443_vm1, %v11117_v20  ;;  %v5199_v18 = vmul.f32 %v11119_v8, %v13405_v4  ;;  %v5200_v31 = vmul.f32 %v11119_v8, %v13406_v39  ;;  %v5201_v9 = vmul.f32 %v11119_v8, %v13407_v32 }
 0x484   : > { %v11131_v57 = vpop.permute.xlu1 %5232  ;;  %v5202_v11 = vmul.f32 %v11119_v8, %v13408_v28  ;;  %v5203_v16 = vmul.f32 %v11119_v8, %v10336_v26  ;;  %v5204_v43 = vmul.f32 %v11119_v8, %v10348_v37  ;;  %v4152_v51 = vld [vmem:[#allocation2 + $0xf0] sm:$0xff] }
 0x485   : > { %v5235_v52 = vadd.f32 %v11131_v57, %v5199_v18  ;;  %v5236_v4 = vadd.f32 %v11131_v57, %v5200_v31  ;;  %v5237_v12 = vadd.f32 %v11131_v57, %v5201_v9 }
 0x486   : > { %v4153_v39 = vld [vmem:[#allocation2 + $0xf8] sm:$0xff]  ;;  %v5238_v28 = vadd.f32 %v11131_v57, %v5202_v11  ;;  %v5239_v26 = vadd.f32 %v11131_v57, %v5203_v16  ;;  %v5240_v37 = vadd.f32 %v11131_v57, %v5204_v43  ;;  %v5205_v16 = vmul.f32 %v11119_v8, %v10334_v6 }
 0x487   : > { %v11142_v32 = vpack.c.bf16 %v4153_v39, %v4152_v51  ;;  %v5267_v55 = vmax.f32 %v5235_v52, 0.0  ;;  %v5268_v23 = vmax.f32 %v5236_v4, 0.0  ;;  %v5269_v52 = vmax.f32 %v5237_v12, 0.0 }
 0x488   : > { %v4176_v48 = vld [vmem:[#allocation2 + $0x100] sm:$0xff]  ;;  %v4177_v30 = vld [vmem:[#allocation2 + $0x108] sm:$0xff]  ;;  %v5270_v9 = vmax.f32 %v5238_v28, 0.0  ;;  %v5206_v43 = vmul.f32 %v11119_v8, %v10344_v58  ;;  %v5271_v39 = vmax.f32 %v5239_v26, 0.0  ;;  %v5241_v12 = vadd.f32 %v11131_v57, %v5205_v16 }
 0x489   : > { %8531 = vmatprep.mubr.msk.bf16.mxu0 %vm443_vm1, %v11142_v32  ;;  %8570 = vmatmul.mubr.msk.bf16.gmra.mxu1 %vm443_vm1, %v11142_v32  ;;  %v11151_v18 = vpack.c.bf16 %v4177_v30, %v4176_v48  ;;  %v5301_v51 = vpack.c.bf16 %v5268_v23, %v5267_v55  ;;  %v5272_v30 = vmax.f32 %v5240_v37, 0.0  ;;  %v5207_v48 = vmul.f32 %v11119_v8, %v10370_v36 }
 0x48a   : > { %v5208_v23 = vmul.f32 %v11119_v8, %v10384_v14  ;;  %v5302_v55 = vpack.c.bf16 %v5270_v9, %v5269_v52  ;;  %v5242_v4 = vadd.f32 %v11131_v57, %v5206_v43  ;;  %v5273_v26 = vmax.f32 %v5241_v12, 0.0 }
 0x48b   : > { %8532 = vmatmul.mubr.msk.bf16.gmra.mxu0 %vm443_vm1, %v11151_v18  ;;  %8613 = vmatprep.mubr.msk.bf16.mxu1 %vm3177_vm9, %v5301_v51  ;;  %v5303_v31 = vpack.c.bf16 %v5272_v30, %v5271_v39  ;;  %v5243_v28 = vadd.f32 %v11131_v57, %v5207_v48  ;;  %v5210_v51 = vmul.f32 %v11119_v8, %v10376_v44 }
 0x48c   : > { %8579 = vmatprep.mubr.msk.bf16.mxu0 %vm443_vm1, %v10981_v33  ;;  %v5244_v11 = vadd.f32 %v11131_v57, %v5208_v23  ;;  %v5274_v37 = vmax.f32 %v5242_v4, 0.0  ;;  %v5209_v33 = vmul.f32 %v11119_v8, %v10368_v15  ;;  %v5211_v16 = vmul.f32 %v11119_v8, %v10403_v38 }
 0x48d   : > { %v5275_v52 = vmax.f32 %v5243_v28, 0.0  ;;  %v5212_v43 = vmul.f32 %v11119_v8, %v10418_v24  ;;  %v5246_v30 = vadd.f32 %v11131_v57, %v5210_v51  ;;  %v5214_v4 = vmul.f32 %v11119_v8, %v10410_v5 }
 0x48e   : > { %v5276_v9 = vmax.f32 %v5244_v11, 0.0  ;;  %v5245_v39 = vadd.f32 %v11131_v57, %v5209_v33  ;;  %v5247_v23 = vadd.f32 %v11131_v57, %v5211_v16 }
 0x48f   : > { %v5278_v12 = vmax.f32 %v5246_v30, 0.0  ;;  %v5840_v30 = vld [vmem:[%s13106_s10 + $0x18] sm:$0xff] }
 0x490   : > { %v5305_v48 = vpack.c.bf16 %v5276_v9, %v5275_v52  ;;  %v5279_v28 = vmax.f32 %v5247_v23, 0.0  ;;  %v5219_v23 = vmul.f32 %v11119_v8, %v10465_v3 }
 0x491   : > { %8614 = vmatmul.mubr.msk.bf16.vlgmr.msra.gmra.mxu1 %vm3177_vm9, %v5302_v55  ;;  %v5213_v55 = vmul.f32 %v11119_v8, %v10401_v54 }
 0x492   : > { %8617 = vmatprep.mubr.msk.bf16.mxu1 %vm3177_vm9, %v5303_v31  ;;  %v5215_v31 = vmul.f32 %v11119_v8, %v10435_v22 }
 0x493   : > { %8580 = vmatmul.mubr.msk.bf16.vlgmr.msra.gmra.mxu0 %vm443_vm1, %v10996_v50  ;;  %v5304_v50 = vpack.c.bf16 %v5274_v37, %v5273_v26  ;;  %v5216_v26 = vmul.f32 %v11119_v8, %v10448_v45  ;;  %v5249_v37 = vadd.f32 %v11131_v57, %v5213_v55  ;;  %v11485_v45 = vld [vmem:[%s9179_s2 + $0xf0] sm:$0xff] }
 0x494   : > { %8583 = vmatprep.mubr.msk.bf16.mxu0 %vm443_vm1, %v11008_v63  ;;  %8646 = vmatpush3.bf16.msra.mxu0 %v11044_v25  ;;  %v5248_v63 = vadd.f32 %v11131_v57, %v5212_v43  ;;  %v5277_v25 = vmax.f32 %v5245_v39, 0.0  ;;  %v5251_v51 = vadd.f32 %v11131_v57, %v5215_v31  ;;  %v5218_v39 = vmul.f32 %v11119_v8, %v10440_v60 }
 0x495   : > { %v5252_v9 = vadd.f32 %v11131_v57, %v5216_v26  ;;  %13439 = vst [vmem:[#allocation99_spill] sm:$0xff] %v11485_v45 }
 0x496   : > { %v5280_v11 = vmax.f32 %v5248_v63, 0.0  ;;  %v5306_v33 = vpack.c.bf16 %v5278_v12, %v5277_v25  ;;  %v5283_v43 = vmax.f32 %v5251_v51, 0.0  ;;  %v5841_v63 = vpack.c.bf16 %v5840_v30, %v5840_v30 }
 0x498   : > { %v5307_v52 = vpack.c.bf16 %v5280_v11, %v5279_v28  ;;  %8831 = vmatprep.subr.msk.bf16.mxu1 %vm3226_vm8, %v5841_v63  ;;  %v5907_v55 = vsel %vm3226_vm8, %v5841_v63, 0 }
 0x499   : > { %8618 = vmatmul.mubr.msk.bf16.gmra.mxu1 %vm3177_vm9, %v5304_v50  ;;  %v5217_v50 = vmul.f32 %v11119_v8, %v10433_v35 }
 0x49a   : > { %8621 = vmatprep.mubr.msk.bf16.mxu1 %vm3177_vm9, %v5305_v48  ;;  %v5284_v48 = vmax.f32 %v5252_v9, 0.0  ;;  %8680 = vmatpush3.bf16.msra.mxu1 %v5907_v55  ;;  %v5224_v9 = vmul.f32 %v11119_v8, %v10505_v17  ;;  %v5227_v55 = vmul.f32 %v11119_v8, %v10519_v49  ;;  %v11427_v49 = vld [vmem:[%s9179_s2 + $0xb0] sm:$0xff] }
 0x49b   : > { %8584 = vmatmul.mubr.msk.bf16.gmra.mxu0 %vm443_vm1, %v11016_v1  ;;  %v5250_v1 = vadd.f32 %v11131_v57, %v5214_v4  ;;  %v5253_v12 = vadd.f32 %v11131_v57, %v5217_v50  ;;  %v5254_v4 = vadd.f32 %v11131_v57, %v5218_v39  ;;  %13431 = vst [vmem:[#allocation91_spill] sm:$0xff] %v11427_v49 }
 0x49c   : > { %8587 = vmatprep.mubr.msk.bf16.mxu0 %vm443_vm1, %v11028_v10  ;;  %v5281_v10 = vmax.f32 %v5249_v37, 0.0  ;;  %v5309_v31 = vpack.c.bf16 %v5284_v48, %v5283_v43  ;;  %v5221_v37 = vmul.f32 %v11119_v8, %v10463_v59  ;;  %v5260_v39 = vadd.f32 %v11131_v57, %v5224_v9 }
 0x49d   : > { %v5282_v16 = vmax.f32 %v5250_v1, 0.0  ;;  %v5285_v11 = vmax.f32 %v5253_v12, 0.0  ;;  %v5286_v26 = vmax.f32 %v5254_v4, 0.0  ;;  %v5225_v48 = vmul.f32 %v11119_v8, %v10491_v46 }
 0x49e   : > { %v5292_v63 = vmax.f32 %v5260_v39, 0.0 }
 0x49f   : > { %v5308_v25 = vpack.c.bf16 %v5282_v16, %v5281_v10  ;;  %v5257_v10 = vadd.f32 %v11131_v57, %v5221_v37  ;;  %v5261_v12 = vadd.f32 %v11131_v57, %v5225_v48  ;;  %v5230_v37 = vmul.f32 %v11119_v8, %v10525_v29 }
 0x4a1   : > { %8622 = vmatmul.mubr.msk.bf16.gmra.mxu1 %vm3177_vm9, %v5306_v33  ;;  %v5222_v33 = vmul.f32 %v11119_v8, %v10470_v21  ;;  %v11455_v21 = vld [vmem:[%s9179_s2 + $0xd0] sm:$0xff] }
 0x4a2   : > { %8625 = vmatprep.mubr.msk.bf16.mxu1 %vm3177_vm9, %v5307_v52  ;;  %v5223_v52 = vmul.f32 %v11119_v8, %v10493_v0  ;;  %13435 = vst [vmem:[#allocation95_spill] sm:$0xff] %v11455_v21 }
 0x4a3   : > { %8588 = vmatmul.mubr.msk.bf16.gmra.mxu0 %vm443_vm1, %v11036_v19  ;;  %v5220_v19 = vmul.f32 %v11119_v8, %v10478_v42  ;;  %v5258_v16 = vadd.f32 %v11131_v57, %v5222_v33 }
 0x4a4   : > { %8591 = vmatprep.mubr.msk.bf16.mxu0 %vm443_vm1, %v11057_v61  ;;  %v5255_v61 = vadd.f32 %v11131_v57, %v5219_v23  ;;  %v5259_v50 = vadd.f32 %v11131_v57, %v5223_v52  ;;  %v5226_v23 = vmul.f32 %v11119_v8, %v10497_v7  ;;  %v11282_v52 = vld [vmem:[%s9179_s2 + $0x8] sm:$0xff] }
 0x4a5   : > { %v5256_v28 = vadd.f32 %v11131_v57, %v5220_v19  ;;  %v5290_v30 = vmax.f32 %v5258_v16, 0.0  ;;  %13410 = vst [vmem:[#allocation70_spill] sm:$0xff] %v11282_v52  ;;  %v5076_v9 = vmul.f32 %v11282_v52, %v10949_v62 }
 0x4a6   : > { %v5287_v1 = vmax.f32 %v5255_v61, 0.0  ;;  %v5291_v19 = vmax.f32 %v5259_v50, 0.0  ;;  %v5262_v4 = vadd.f32 %v11131_v57, %v5226_v23  ;;  %v5263_v61 = vadd.f32 %v11131_v57, %v5227_v55  ;;  %v11293_v50 = vld [vmem:[%s9179_s2 + $0x10] sm:$0xff] }
 0x4a7   : > { %v5288_v51 = vmax.f32 %v5256_v28, 0.0  ;;  %v5293_v28 = vmax.f32 %v5261_v12, 0.0  ;;  %13411 = vst [vmem:[#allocation71_spill] sm:$0xff] %v11293_v50  ;;  %v5077_v39 = vmul.f32 %v11293_v50, %v10949_v62  ;;  %v4626_v12 = vld [vmem:[#allocation2 + $0x118] sm:$0xff] }
 0x4a8   : > { %v5295_v33 = vmax.f32 %v5263_v61, 0.0 }
 0x4a9   : > { %8626 = vmatmul.mubr.msk.bf16.gmra.mxu1 %vm3177_vm9, %v5308_v25  ;;  %v5311_v43 = vpack.c.bf16 %v5288_v51, %v5287_v1  ;;  %v5228_v25 = vmul.f32 %v11119_v8, %v10531_v13  ;;  %v11277_v51 = vld [vmem:[%s9179_s2] sm:$0xff] }
 0x4aa   : > { %8629 = vmatprep.mubr.msk.bf16.mxu1 %vm3177_vm9, %v5309_v31  ;;  %v5313_v31 = vpack.c.bf16 %v5292_v63, %v5291_v19  ;;  %13409 = vst [vmem:[#allocation69_spill] sm:$0xff] %v11277_v51  ;;  %v11307_v63 = vld [vmem:[%s9179_s2 + $0x20] sm:$0xff] }
 0x4ab   : > { %8592 = vmatmul.mubr.msk.bf16.gmra.mxu0 %vm443_vm1, %v11065_v2  ;;  %v5310_v2 = vpack.c.bf16 %v5286_v26, %v5285_v11  ;;  %v5294_v11 = vmax.f32 %v5262_v4, 0.0  ;;  %v5229_v26 = vmul.f32 %v11119_v8, %v10517_v53  ;;  %13413 = vst [vmem:[#allocation73_spill] sm:$0xff] %v11307_v63  ;;  %v5079_v55 = vmul.f32 %v11307_v63, %v10949_v62 }
 0x4ac   : > { %8595 = vmatprep.mubr.msk.bf16.mxu0 %vm443_vm1, %v11079_v56  ;;  %v5289_v56 = vmax.f32 %v5257_v10, 0.0  ;;  %v5266_v10 = vadd.f32 %v11131_v57, %v5230_v37  ;;  %v5114_v4 = vadd.f32 %v10957_v41, %v5077_v39 }
 0x4ad   : > { %v5265_v8 = vadd.f32 %v11131_v57, %v5229_v26 }
 0x4ae   : > { %v5298_v48 = vmax.f32 %v5266_v10, 0.0  ;;  %v5146_v26 = vmax.f32 %v5114_v4, 0.0  ;;  %v11334_v10 = vld [vmem:[%s9179_s2 + $0x40] sm:$0xff]  ;;  %v11354_v4 = vld [vmem:[%s9179_s2 + $0x58] sm:$0xff] }
 0x4af   : > { %13417 = vst [vmem:[#allocation77_spill] sm:$0xff] %v11334_v10  ;;  %13420 = vst [vmem:[#allocation80_spill] sm:$0xff] %v11354_v4 }
 0x4b1   : > { %8630 = vmatmul.mubr.msk.bf16.gmra.mxu1 %vm3177_vm9, %v5310_v2  ;;  %v5314_v2 = vpack.c.bf16 %v5294_v11, %v5293_v28 }
 0x4b2   : > { %8633 = vmatprep.mubr.msk.bf16.mxu1 %vm3177_vm9, %v5311_v43  ;;  %v5113_v43 = vadd.f32 %v10957_v41, %v5076_v9 }
 0x4b3   : > { %8596 = vmatmul.mubr.msk.bf16.gmra.mxu0 %vm443_vm1, %v11087_v27  ;;  %v5312_v27 = vpack.c.bf16 %v5290_v30, %v5289_v56  ;;  %v11298_v56 = vld [vmem:[%s9179_s2 + $0x18] sm:$0xff]  ;;  %v5297_v30 = vmax.f32 %v5265_v8, 0.0 }
 0x4b4   : > { %8599 = vmatprep.mubr.msk.bf16.mxu0 %vm443_vm1, %v11099_v34  ;;  %v5264_v34 = vadd.f32 %v11131_v57, %v5228_v25  ;;  %13412 = vst [vmem:[#allocation72_spill] sm:$0xff] %v11298_v56  ;;  %v5078_v57 = vmul.f32 %v11298_v56, %v10949_v62  ;;  %v5145_v19 = vmax.f32 %v5113_v43, 0.0  ;;  %v11312_v25 = vld [vmem:[%s9179_s2 + $0x28] sm:$0xff] }
 0x4b5   : > { %13414 = vst [vmem:[#allocation74_spill] sm:$0xff] %v11312_v25 }
 0x4b6   : > { %v5296_v1 = vmax.f32 %v5264_v34, 0.0  ;;  %v5116_v34 = vadd.f32 %v10957_v41, %v5079_v55 }
 0x4b9   : > { %8634 = vmatmul.mubr.msk.bf16.gmra.mxu1 %vm3177_vm9, %v5312_v27  ;;  %v5080_v27 = vmul.f32 %v11312_v25, %v10949_v62 }
 0x4ba   : > { %8637 = vmatprep.mubr.msk.bf16.mxu1 %vm3177_vm9, %v5313_v31  ;;  %v5316_v31 = vpack.c.bf16 %v5298_v48, %v5297_v30 }
 0x4bb   : > { %8600 = vmatmul.mubr.msk.bf16.gmra.mxu0 %vm443_vm1, %v11108_v40  ;;  %v5075_v40 = vmul.f32 %v11277_v51, %v10949_v62  ;;  %v5117_v28 = vadd.f32 %v10957_v41, %v5080_v27 }
 0x4bc   : > { %8603 = vmatprep.mubr.msk.bf16.mxu0 %vm443_vm1, %v11117_v20  ;;  %v5315_v20 = vpack.c.bf16 %v5296_v1, %v5295_v33  ;;  %v11323_v33 = vld [vmem:[%s9179_s2 + $0x30] sm:$0xff] }
 0x4bd   : > { %v5112_v16 = vadd.f32 %v10957_v41, %v5075_v40  ;;  %13415 = vst [vmem:[#allocation75_spill] sm:$0xff] %v11323_v33  ;;  %v5081_v1 = vmul.f32 %v11323_v33, %v10949_v62  ;;  %v11328_v40 = vld [vmem:[%s9179_s2 + $0x38] sm:$0xff]  ;;  %v5149_v8 = vmax.f32 %v5117_v28, 0.0 }
 0x4be   : > { %13416 = vst [vmem:[#allocation76_spill] sm:$0xff] %v11328_v40  ;;  %v5082_v9 = vmul.f32 %v11328_v40, %v10949_v62 }
 0x4bf   : > { %v5144_v23 = vmax.f32 %v5112_v16, 0.0  ;;  %v11339_v16 = vld [vmem:[%s9179_s2 + $0x48] sm:$0xff] }
 0x4c0   : > { %13418 = vst [vmem:[#allocation78_spill] sm:$0xff] %v11339_v16  ;;  %v5084_v43 = vmul.f32 %v11339_v16, %v10949_v62  ;;  %v5119_v30 = vadd.f32 %v10957_v41, %v5082_v9  ;;  %v11577_v16 = vpop.permute.xlu0 %5738 }
 0x4c1   : > { %8638 = vmatmul.mubr.msk.bf16.gmra.mxu1 %vm3177_vm9, %v5314_v2  ;;  %v5179_v61 = vpack.c.bf16 %v5145_v19, %v5144_v23  ;;  %v5148_v2 = vmax.f32 %v5116_v34, 0.0  ;;  %v11360_v34 = vld [vmem:[%s9179_s2 + $0x60] sm:$0xff] }
 0x4c2   : > { %8641 = vmatprep.mubr.msk.bf16.mxu1 %vm3177_vm9, %v5315_v20  ;;  %v5083_v20 = vmul.f32 %v11334_v10, %v10949_v62  ;;  %v5121_v19 = vadd.f32 %v10957_v41, %v5084_v43  ;;  %v5151_v27 = vmax.f32 %v5119_v30, 0.0  ;;  %13421 = vst [vmem:[#allocation81_spill] sm:$0xff] %v11360_v34  ;;  %v5087_v28 = vmul.f32 %v11360_v34, %v10949_v62 }
 0x4c3   : > { %8604 = vmatmul.mubr.msk.bf16.gmra.mxu0 %vm443_vm1, %v11142_v32  ;;  %v4625_v32 = vld [vmem:[#allocation2 + $0x110] sm:$0xff]  ;;  %v5181_v48 = vpack.c.bf16 %v5149_v8, %v5148_v2 }
 0x4c4   : > { %8607 = vmatprep.mubr.msk.bf16.mxu0 %vm443_vm1, %v11151_v18  ;;  %v5115_v18 = vadd.f32 %v10957_v41, %v5078_v57  ;;  %v4642_v11 = vpack.c.bf16 %v4626_v12, %v4625_v32  ;;  %v5118_v57 = vadd.f32 %v10957_v41, %v5081_v1  ;;  %v5120_v23 = vadd.f32 %v10957_v41, %v5083_v20  ;;  %v11349_v32 = vld [vmem:[%s9179_s2 + $0x50] sm:$0xff] }
 0x4c5   : > { %13419 = vst [vmem:[#allocation79_spill] sm:$0xff] %v11349_v32  ;;  %v5085_v12 = vmul.f32 %v11349_v32, %v10949_v62  ;;  %v5124_v8 = vadd.f32 %v10957_v41, %v5087_v28 }
 0x4c6   : > { %v5147_v37 = vmax.f32 %v5115_v18, 0.0  ;;  %v5150_v55 = vmax.f32 %v5118_v57, 0.0  ;;  %v5086_v18 = vmul.f32 %v11354_v4, %v10949_v62  ;;  %v11375_v57 = vld [vmem:[%s9179_s2 + $0x70] sm:$0xff] }
 0x4c7   : > { %v5122_v1 = vadd.f32 %v10957_v41, %v5085_v12  ;;  %13423 = vst [vmem:[#allocation83_spill] sm:$0xff] %v11375_v57  ;;  %v5089_v30 = vmul.f32 %v11375_v57, %v10949_v62 }
 0x4c8   : > { %v5180_v39 = vpack.c.bf16 %v5147_v37, %v5146_v26  ;;  %v5182_v37 = vpack.c.bf16 %v5151_v27, %v5150_v55  ;;  %v5123_v9 = vadd.f32 %v10957_v41, %v5086_v18  ;;  %v11386_v27 = vld [vmem:[%s9179_s2 + $0x80] sm:$0xff]  ;;  %v11391_v18 = vld [vmem:[%s9179_s2 + $0x88] sm:$0xff] }
 0x4c9   : > { %8642 = vmatmul.mubr.msk.bf16.gmra.mxu1 %vm3177_vm9, %v5316_v31  ;;  %v5152_v31 = vmax.f32 %v5120_v23, 0.0  ;;  %v5154_v43 = vmax.f32 %v5122_v1, 0.0  ;;  %13425 = vst [vmem:[#allocation85_spill] sm:$0xff] %v11386_v27  ;;  %v5091_v12 = vmul.f32 %v11386_v27, %v10949_v62  ;;  %13426 = vst [vmem:[#allocation86_spill] sm:$0xff] %v11391_v18  ;;  %v5126_v28 = vadd.f32 %v10957_v41, %v5089_v30 }
 0x4cb   : > { %8608 = vmatmul.mubr.msk.bf16.gmra.mxu0 %vm443_vm1, %v4642_v11  ;;  %v11365_v11 = vld [vmem:[%s9179_s2 + $0x68] sm:$0xff]  ;;  %v5128_v1 = vadd.f32 %v10957_v41, %v5091_v12 }
 0x4cc   : > { %8647 = vmatprep.mubr.msk.bf16.mxu0 %vm1091_vm0, %v5179_v61  ;;  %v5153_v61 = vmax.f32 %v5121_v19, 0.0  ;;  %13422 = vst [vmem:[#allocation82_spill] sm:$0xff] %v11365_v11  ;;  %v5088_v26 = vmul.f32 %v11365_v11, %v10949_v62  ;;  %v5156_v19 = vmax.f32 %v5124_v8, 0.0 }
 0x4ce   : > { %v5183_v2 = vpack.c.bf16 %v5153_v61, %v5152_v31  ;;  %v5125_v20 = vadd.f32 %v10957_v41, %v5088_v26  ;;  %v5092_v31 = vmul.f32 %v11391_v18, %v10949_v62 }
 0x4d0   : > { %v5157_v55 = vmax.f32 %v5125_v20, 0.0  ;;  %v11401_v20 = vld [vmem:[%s9179_s2 + $0x90] sm:$0xff] }
 0x4d1   : > { %13427 = vst [vmem:[#allocation87_spill] sm:$0xff] %v11401_v20 }
 0x4d3   : > { %8648 = vmatmul.mubr.msk.bf16.vlgmr.msra.gmra.mxu0 %vm1091_vm0, %v5180_v39  ;;  %v5155_v39 = vmax.f32 %v5123_v9, 0.0  ;;  %v5129_v9 = vadd.f32 %v10957_v41, %v5092_v31  ;;  %v11417_v31 = vld [vmem:[%s9179_s2 + $0xa8] sm:$0xff] }
 0x4d4   : > { %8651 = vmatprep.mubr.msk.bf16.mxu0 %vm1091_vm0, %v5181_v48  ;;  %v11380_v48 = vld [vmem:[%s9179_s2 + $0x78] sm:$0xff]  ;;  %13430 = vst [vmem:[#allocation90_spill] sm:$0xff] %v11417_v31 }
 0x4d5   : > { %13424 = vst [vmem:[#allocation84_spill] sm:$0xff] %v11380_v48  ;;  %v5090_v23 = vmul.f32 %v11380_v48, %v10949_v62  ;;  %v5184_v61 = vpack.c.bf16 %v5155_v39, %v5154_v43  ;;  %v5093_v43 = vmul.f32 %v11401_v20, %v10949_v62  ;;  %v11406_v39 = vld [vmem:[%s9179_s2 + $0x98] sm:$0xff] }
 0x4d6   : > { %13428 = vst [vmem:[#allocation88_spill] sm:$0xff] %v11406_v39  ;;  %v5094_v30 = vmul.f32 %v11406_v39, %v10949_v62 }
 0x4d7   : > { %v5127_v26 = vadd.f32 %v10957_v41, %v5090_v23  ;;  %v5160_v23 = vmax.f32 %v5128_v1, 0.0 }
 0x4d9   : > { %v5159_v8 = vmax.f32 %v5127_v26, 0.0  ;;  %v5130_v26 = vadd.f32 %v10957_v41, %v5093_v43 }
 0x4db   : > { %8652 = vmatmul.mubr.msk.bf16.gmra.mxu0 %vm1091_vm0, %v5182_v37  ;;  %v5185_v37 = vpack.c.bf16 %v5157_v55, %v5156_v19  ;;  %v5161_v19 = vmax.f32 %v5129_v9, 0.0  ;;  %v11412_v55 = vld [vmem:[%s9179_s2 + $0xa0] sm:$0xff]  ;;  %v5162_v53 = vmax.f32 %v5130_v26, 0.0 }
 0x4dc   : > { %8655 = vmatprep.mubr.msk.bf16.mxu0 %vm1091_vm0, %v5183_v2  ;;  %v5158_v2 = vmax.f32 %v5126_v28, 0.0  ;;  %13429 = vst [vmem:[#allocation89_spill] sm:$0xff] %v11412_v55  ;;  %v5095_v12 = vmul.f32 %v11412_v55, %v10949_v62 }
 0x4dd   : > { %v5187_v1 = vpack.c.bf16 %v5161_v19, %v5160_v23  ;;  %v11438_v19 = vld [vmem:[%s9179_s2 + $0xc0] sm:$0xff] }
 0x4de   : > { %v5186_v28 = vpack.c.bf16 %v5159_v8, %v5158_v2  ;;  %v5132_v9 = vadd.f32 %v10957_v41, %v5095_v12  ;;  %v5097_v2 = vmul.f32 %v11427_v49, %v10949_v62  ;;  %v11432_v8 = vld [vmem:[%s9179_s2 + $0xb8] sm:$0xff]  ;;  %13433 = vst [vmem:[#allocation93_spill] sm:$0xff] %v11438_v19  ;;  %v5099_v12 = vmul.f32 %v11438_v19, %v10949_v62 }
 0x4df   : > { %13432 = vst [vmem:[#allocation92_spill] sm:$0xff] %v11432_v8  ;;  %v5098_v43 = vmul.f32 %v11432_v8, %v10949_v62 }
 0x4e3   : > { %8656 = vmatmul.mubr.msk.bf16.gmra.mxu0 %vm1091_vm0, %v5184_v61  ;;  %v5096_v61 = vmul.f32 %v11417_v31, %v10949_v62 }
 0x4e4   : > { %8659 = vmatprep.mubr.msk.bf16.mxu0 %vm1091_vm0, %v5185_v37  ;;  %v5131_v37 = vadd.f32 %v10957_v41, %v5094_v30  ;;  %v5164_v30 = vmax.f32 %v5132_v9, 0.0 }
 0x4e5   : > { %v5133_v29 = vadd.f32 %v10957_v41, %v5096_v61  ;;  %v11443_v61 = vld [vmem:[%s9179_s2 + $0xc8] sm:$0xff] }
 0x4e6   : > { %v5163_v13 = vmax.f32 %v5131_v37, 0.0  ;;  %13434 = vst [vmem:[#allocation94_spill] sm:$0xff] %v11443_v61  ;;  %v5134_v37 = vadd.f32 %v10957_v41, %v5097_v2 }
 0x4e7   : > { %v5165_v23 = vmax.f32 %v5133_v29, 0.0  ;;  %v5136_v29 = vadd.f32 %v10957_v41, %v5099_v12  ;;  %v11451_v46 = vpop.f32.mrf.mxu0 }
 0x4e8   : > { %v5188_v26 = vpack.c.bf16 %v5163_v13, %v5162_v53  ;;  %v5166_v17 = vmax.f32 %v5134_v37, 0.0  ;;  %v5101_v53 = vmul.f32 %v11455_v21, %v10949_v62  ;;  %v11460_v13 = vld [vmem:[%s9179_s2 + $0xd8] sm:$0xff] }
 0x4e9   : > { %v5189_v9 = vpack.c.bf16 %v5165_v23, %v5164_v30  ;;  %13436 = vst [vmem:[#allocation96_spill] sm:$0xff] %v11460_v13  ;;  %v5102_v2 = vmul.f32 %v11460_v13, %v10949_v62  ;;  %v11466_v23 = vld [vmem:[%s9179_s2 + $0xe0] sm:$0xff]  ;;  %v11475_v37 = vpop.f32.mrf.mxu0 }
 0x4ea   : > { %13437 = vst [vmem:[#allocation97_spill] sm:$0xff] %v11466_v23  ;;  %v5103_v12 = vmul.f32 %v11466_v23, %v10949_v62  ;;  %v5138_v59 = vadd.f32 %v10957_v41, %v5101_v53 }
 0x4eb   : > { %8660 = vmatmul.mubr.msk.bf16.gmra.mxu0 %vm1091_vm0, %v5186_v28  ;;  %v5100_v28 = vmul.f32 %v11443_v61, %v10949_v62  ;;  %v11481_v3 = vpop.f32.mrf.mxu0 }
 0x4ec   : > { %8663 = vmatprep.mubr.msk.bf16.mxu0 %vm1091_vm0, %v5187_v1  ;;  %v5135_v1 = vadd.f32 %v10957_v41, %v5098_v43  ;;  %v5168_v43 = vmax.f32 %v5136_v29, 0.0  ;;  %v5140_v29 = vadd.f32 %v10957_v41, %v5103_v12  ;;  %v5170_v60 = vmax.f32 %v5138_v59, 0.0 }
 0x4ed   : > { %v5137_v7 = vadd.f32 %v10957_v41, %v5100_v28  ;;  %v11471_v28 = vld [vmem:[%s9179_s2 + $0xe8] sm:$0xff] }
 0x4ee   : > { %v5167_v0 = vmax.f32 %v5135_v1, 0.0  ;;  %13438 = vst [vmem:[#allocation98_spill] sm:$0xff] %v11471_v28 }
 0x4ef   : > { %v5169_v30 = vmax.f32 %v5137_v7, 0.0 }
 0x4f0   : > { %v5190_v1 = vpack.c.bf16 %v5167_v0, %v5166_v17  ;;  %v5105_v0 = vmul.f32 %v11485_v45, %v10949_v62  ;;  %v11490_v17 = vld [vmem:[%s9179_s2 + $0xf8] sm:$0xff] }
 0x4f1   : > { %v5191_v7 = vpack.c.bf16 %v5169_v30, %v5168_v43  ;;  %13440 = vst [vmem:[#allocation100_spill] sm:$0xff] %v11490_v17  ;;  %v5106_v53 = vmul.f32 %v11490_v17, %v10949_v62  ;;  %v11495_v30 = vpop.f32.mrf.mxu0 }
 0x4f3   : > { %8664 = vmatmul.mubr.msk.bf16.gmra.mxu0 %vm1091_vm0, %v5188_v26  ;;  %v5104_v26 = vmul.f32 %v11471_v28, %v10949_v62 }
 0x4f4   : > { %8667 = vmatprep.mubr.msk.bf16.mxu0 %vm1091_vm0, %v5189_v9  ;;  %v5139_v9 = vadd.f32 %v10957_v41, %v5102_v2  ;;  %v5172_v2 = vmax.f32 %v5140_v29, 0.0 }
 0x4f5   : > { %v5141_v42 = vadd.f32 %v10957_v41, %v5104_v26  ;;  %v5142_v26 = vadd.f32 %v10957_v41, %v5105_v0 }
 0x4f6   : > { %v5171_v35 = vmax.f32 %v5139_v9, 0.0 }
 0x4f7   : > { %v5173_v43 = vmax.f32 %v5141_v42, 0.0  ;;  %v11497_v12 = vpop.f32.mrf.mxu0  ;;  %v5174_v5 = vmax.f32 %v5142_v26, 0.0 }
 0x4f8   : > { %v5192_v59 = vpack.c.bf16 %v5171_v35, %v5170_v60 }
 0x4f9   : > { %v5193_v9 = vpack.c.bf16 %v5173_v43, %v5172_v2  ;;  %v11501_v22 = vpop.f32.mrf.mxu0  ;;  %v8543_v43 = vpop.f32.mrf.mxu1 }
 0x4fa   : > { %v4477_v27 = vadd.f32 %v8543_v43, %v11451_v46 }
 0x4fb   : > { %8668 = vmatmul.mubr.msk.bf16.gmra.mxu0 %vm1091_vm0, %v5190_v1  ;;  %v5143_v1 = vadd.f32 %v10957_v41, %v5106_v53 }
 0x4fc   : > { %8671 = vmatprep.mubr.msk.bf16.mxu0 %vm1091_vm0, %v5191_v7  ;;  %v11505_v7 = vpop.f32.mrf.mxu0 }
 0x4fd   : > { %v5175_v62 = vmax.f32 %v5143_v1, 0.0 }
 0x4fe   : > { %v11507_v29 = vpop.f32.mrf.mxu0 }
 0x4ff   : > { %v5194_v42 = vpack.c.bf16 %v5175_v62, %v5174_v5  ;;  %v4468_v5 = vpop.f32.mrf.mxu1 }
 0x500   : > { %v4469_v11 = vadd.f32 %v4468_v5, %v11475_v37 }
 0x501   : > { %v8544_v1 = vpop.f32.mrf.mxu1 }
 0x502   : > { %v4480_v32 = vadd.f32 %v8544_v1, %v11481_v3 }
 0x503   : > { %8672 = vmatmul.mubr.msk.bf16.gmra.mxu0 %vm1091_vm0, %v5192_v59  ;;  %v4471_v62 = vpop.f32.mrf.mxu1 }
 0x504   : > { %8675 = vmatprep.mubr.msk.bf16.mxu0 %vm1091_vm0, %v5193_v9  ;;  %v4472_v25 = vadd.f32 %v4471_v62, %v11495_v30 }
 0x505   : > { %v8547_v54 = vpop.f32.mrf.mxu1 }
 0x506   : > { %v4493_v30 = vadd.f32 %v8547_v54, %v11497_v12 }
 0x507   : > { %v11510_v35 = vpop.f32.mrf.mxu0  ;;  %v4484_v38 = vpop.f32.mrf.mxu1 }
 0x508   : > { %v4485_v1 = vadd.f32 %v4484_v38, %v11501_v22 }
 0x509   : > { %v11512_v60 = vpop.f32.mrf.mxu0  ;;  %v8548_v15 = vpop.f32.mrf.mxu1 }
 0x50a   : > { %v4496_v38 = vadd.f32 %v8548_v15, %v11505_v7 }
 0x50b   : > { %8676 = vmatmul.mubr.msk.bf16.gmra.mxu0 %vm1091_vm0, %v5194_v42  ;;  %v11514_v41 = vpop.f32.mrf.mxu0  ;;  %v4487_v58 = vpop.f32.mrf.mxu1 }
 0x50d   : > { %v11516_v0 = vpop.f32.mrf.mxu0  ;;  %v11538_v6 = vpop.f32.mrf.mxu1 }
 0x50f   : > { %v11542_v45 = vpop.f32.mrf.mxu1 }
 0x511   : > { %v11548_v13 = vpop.f32.mrf.mxu1 }
 0x513   : > { %v11554_v19 = vpop.f32.mrf.mxu1 }
 0x515   : > { %v11558_v49 = vpop.f32.mrf.mxu1 }
 0x517   : > { %v11518_v53 = vpop.f32.mrf.mxu0  ;;  %v11564_v39 = vpop.f32.mrf.mxu1 }
 0x519   : > { %v11520_v2 = vpop.f32.mrf.mxu0  ;;  %v11571_v48 = vpop.f32.mrf.mxu1 }
 0x51b   : > { %v11522_v59 = vpop.f32.mrf.mxu0  ;;  %v11581_v40 = vpop.f32.mrf.mxu1 }
 0x51d   : > { %v11524_v26 = vpop.f32.mrf.mxu0  ;;  %v11588_v37 = vpop.f32.mrf.mxu1 }
 0x527   : > { %v11526_v9 = vpop.f32.mrf.mxu0 }
 0x529   : > { %v11528_v42 = vpop.f32.mrf.mxu0 }
 0x52b   : > { %v11530_v24 = vpop.f32.mrf.mxu0 }
 0x52d   : > { %v11532_v44 = vpop.f32.mrf.mxu0 }
 0x537   : > { %v11534_v14 = vpop.f32.mrf.mxu0 }
 0x539   : > { %v11536_v36 = vpop.f32.mrf.mxu0 }
 0x53b   : > { %v11540_v17 = vpop.f32.mrf.mxu0 }
 0x53d   : > { %v11544_v28 = vpop.f32.mrf.mxu0 }
 0x543   : > { %v11546_v23 = vpop.f32.mrf.mxu0 }
 0x545   : > { %v11550_v21 = vpop.f32.mrf.mxu0 }
 0x547   : > { %v11552_v61 = vpop.f32.mrf.mxu0 }
 0x549   : > { %v11556_v8 = vpop.f32.mrf.mxu0 }
 0x54b   : > { %v11560_v31 = vpop.f32.mrf.mxu0 }
 0x54d   : > { %v11562_v55 = vpop.f32.mrf.mxu0 }
 0x54f   : > { %v11566_v20 = vpop.f32.mrf.mxu0 }
 0x551   : > { %v11568_v18 = vpop.f32.mrf.mxu0 }
 0x553   : > { %v8581_v57 = vpop.f32.mrf.mxu0 }
 0x554   : > { %v11574_v34 = vadd.f32 %v8581_v57, %v4477_v27  ;;  %v11592_v27 = vpop.permute.xlu1 %5773 }
 0x555   : > { %v4750_v4 = vpop.f32.mrf.mxu0 }
 0x556   : > { %13441 = vst [vmem:[#allocation101_spill] sm:$0xff] %v11574_v34  ;;  %v11579_v10 = vadd.f32 %v4750_v4, %v4469_v11  ;;  %v5743_v57 = vmul.f32 %v11577_v16, %v11574_v34  ;;  %v11604_v34 = vpop.f32.mrf.mxu1 }
 0x557   : > { %v8582_v33 = vpop.f32.mrf.mxu0 }
 0x558   : > { %13442 = vst [vmem:[#allocation102_spill] sm:$0xff] %v11579_v10  ;;  %v5741_v46 = vmul.f32 %v11577_v16, %v11579_v10  ;;  %v11586_v43 = vadd.f32 %v8582_v33, %v4480_v32  ;;  %v5778_v10 = vadd.f32 %v11592_v27, %v5743_v57 }
 0x559   : > { %v4753_v3 = vpop.f32.mrf.mxu0 }
 0x55a   : > { %13443 = vst [vmem:[#allocation103_spill] sm:$0xff] %v11586_v43  ;;  %v5744_v4 = vmul.f32 %v11577_v16, %v11586_v43  ;;  %v11596_v11 = vadd.f32 %v4753_v3, %v4472_v25  ;;  %v5776_v62 = vadd.f32 %v11592_v27, %v5741_v46  ;;  %v11614_v46 = vpop.f32.mrf.mxu1  ;;  %v5810_v56 = vmax.f32 %v5778_v10, 0.0 }
 0x55b   : > { %v8585_v5 = vpop.f32.mrf.mxu0  ;;  %v4509_v10 = vadd.f32 %v11538_v6, %v11510_v35 }
 0x55c   : > { %13444 = vst [vmem:[#allocation104_spill] sm:$0xff] %v11596_v11  ;;  %v5779_v33 = vadd.f32 %v11592_v27, %v5744_v4  ;;  %v5742_v32 = vmul.f32 %v11577_v16, %v11596_v11  ;;  %v11608_v3 = vadd.f32 %v8585_v5, %v4493_v30  ;;  %v4488_v4 = vadd.f32 %v4487_v58, %v11507_v29 }
 0x55d   : > { %v4766_v63 = vpop.f32.mrf.mxu0  ;;  %v5808_v11 = vmax.f32 %v5776_v62, 0.0 }
 0x55e   : > { %v5777_v25 = vadd.f32 %v11592_v27, %v5742_v32  ;;  %13445 = vst [vmem:[#allocation105_spill] sm:$0xff] %v11608_v3  ;;  %v11610_v54 = vadd.f32 %v4766_v63, %v4485_v1  ;;  %v5811_v22 = vmax.f32 %v5779_v33, 0.0  ;;  %v5747_v63 = vmul.f32 %v11577_v16, %v11608_v3 }
 0x55f   : > { %v8586_v12 = vpop.f32.mrf.mxu0  ;;  %v4501_v1 = vadd.f32 %v11542_v45, %v11512_v60  ;;  %v4512_v32 = vadd.f32 %v11548_v13, %v11514_v41  ;;  %v4504_v13 = vadd.f32 %v11554_v19, %v11516_v0  ;;  %v4525_v0 = vadd.f32 %v11558_v49, %v11518_v53 }
 0x560   : > { %13446 = vst [vmem:[#allocation106_spill] sm:$0xff] %v11610_v54  ;;  %v5809_v43 = vmax.f32 %v5777_v25, 0.0  ;;  %v5745_v57 = vmul.f32 %v11577_v16, %v11610_v54  ;;  %v11618_v50 = vadd.f32 %v8586_v12, %v4496_v38  ;;  %v5843_v7 = vpack.c.bf16 %v5811_v22, %v5810_v56 }
 0x561   : > { %v4769_v30 = vpop.f32.mrf.mxu0  ;;  %v5782_v6 = vadd.f32 %v11592_v27, %v5747_v63 }
 0x562   : > { %13447 = vst [vmem:[#allocation107_spill] sm:$0xff] %v11618_v50  ;;  %v11622_v5 = vadd.f32 %v4769_v30, %v4488_v4  ;;  %v5842_v15 = vpack.c.bf16 %v5809_v43, %v5808_v11  ;;  %v5748_v58 = vmul.f32 %v11577_v16, %v11618_v50  ;;  %v11635_v43 = vpop.f32.mrf.mxu1  ;;  %v5780_v56 = vadd.f32 %v11592_v27, %v5745_v57 }
 0x563   : > { %v8589_v29 = vpop.f32.mrf.mxu0  ;;  %v5814_v63 = vmax.f32 %v5782_v6, 0.0 }
 0x564   : > { %13448 = vst [vmem:[#allocation108_spill] sm:$0xff] %v11622_v5  ;;  %v5746_v33 = vmul.f32 %v11577_v16, %v11622_v5  ;;  %8681 = vmatprep.mubr.msk.bf16.mxu1 %vm3177_vm9, %v5842_v15  ;;  %v5783_v11 = vadd.f32 %v11592_v27, %v5748_v58  ;;  %v11642_v35 = vadd.f32 %v8589_v29, %v4509_v10  ;;  %v11648_v41 = vpop.f32.mrf.mxu1  ;;  %v5812_v57 = vmax.f32 %v5780_v56, 0.0 }
 0x565   : > { %v4782_v62 = vpop.f32.mrf.mxu0  ;;  %8682 = vmatmul.mubr.msk.bf16.vlgmr.msra.gmra.mxu1 %vm3177_vm9, %v5843_v7  ;;  %v4517_v58 = vadd.f32 %v11564_v39, %v11520_v2  ;;  %v4528_v2 = vadd.f32 %v11571_v48, %v11522_v59 }
 0x566   : > { %v5781_v45 = vadd.f32 %v11592_v27, %v5746_v33  ;;  %13449 = vst [vmem:[#allocation109_spill] sm:$0xff] %v11642_v35  ;;  %v11644_v60 = vadd.f32 %v4782_v62, %v4501_v1  ;;  %v5815_v38 = vmax.f32 %v5783_v11, 0.0  ;;  %v5751_v15 = vmul.f32 %v11577_v16, %v11642_v35  ;;  %v4548_v29 = vpop.f32.mrf.mxu1 }
 0x567   : > { %v8590_v25 = vpop.f32.mrf.mxu0 }
 0x568   : > { %13450 = vst [vmem:[#allocation110_spill] sm:$0xff] %v11644_v60  ;;  %v5813_v22 = vmax.f32 %v5781_v45, 0.0  ;;  %v5749_v12 = vmul.f32 %v11577_v16, %v11644_v60  ;;  %v11652_v4 = vadd.f32 %v8590_v25, %v4512_v32  ;;  %v5845_v33 = vpack.c.bf16 %v5815_v38, %v5814_v63  ;;  %v8564_v45 = vpop.f32.mrf.mxu1 }
 0x569   : > { %v4785_v30 = vpop.f32.mrf.mxu0  ;;  %v5786_v6 = vadd.f32 %v11592_v27, %v5751_v15  ;;  %v4520_v25 = vadd.f32 %v11581_v40, %v11524_v26 }
 0x56a   : > { %13451 = vst [vmem:[#allocation111_spill] sm:$0xff] %v11652_v4  ;;  %v5752_v7 = vmul.f32 %v11577_v16, %v11652_v4  ;;  %v11658_v19 = vadd.f32 %v4785_v30, %v4504_v13  ;;  %v5844_v1 = vpack.c.bf16 %v5813_v22, %v5812_v57  ;;  %v5784_v32 = vadd.f32 %v11592_v27, %v5749_v12  ;;  %v4551_v59 = vpop.f32.mrf.mxu1 }
 0x56b   : > { %v8593_v10 = vpop.f32.mrf.mxu0  ;;  %v5818_v15 = vmax.f32 %v5786_v6, 0.0 }
 0x56c   : > { %13452 = vst [vmem:[#allocation112_spill] sm:$0xff] %v11658_v19  ;;  %v5787_v56 = vadd.f32 %v11592_v27, %v5752_v7  ;;  %v5750_v11 = vmul.f32 %v11577_v16, %v11658_v19  ;;  %8685 = vmatprep.mubr.msk.bf16.mxu1 %vm3177_vm9, %v5844_v1  ;;  %v11671_v53 = vadd.f32 %v8593_v10, %v4525_v0  ;;  %v5816_v38 = vmax.f32 %v5784_v32, 0.0  ;;  %v11897_v19 = vld [vmem:[%s13107_s11 + $0x1] ss:$0 sm:$0xff] }
 0x56d   : > { %v4798_v62 = vpop.f32.mrf.mxu0  ;;  %8686 = vmatmul.mubr.msk.bf16.gmra.mxu1 %vm3177_vm9, %v5845_v33  ;;  %v4533_v10 = vadd.f32 %v11604_v34, %v11528_v42  ;;  %v4544_v32 = vadd.f32 %v11614_v46, %v11530_v24 }
 0x56e   : > { %v5785_v49 = vadd.f32 %v11592_v27, %v5750_v11  ;;  %13453 = vst [vmem:[#allocation113_spill] sm:$0xff] %v11671_v53  ;;  %v11673_v39 = vadd.f32 %v4798_v62, %v4517_v58  ;;  %v5819_v22 = vmax.f32 %v5787_v56, 0.0  ;;  %v5755_v7 = vmul.f32 %v11577_v16, %v11671_v53  ;;  %v8567_v56 = vpop.f32.mrf.mxu1 }
 0x56f   : > { %v8594_v13 = vpop.f32.mrf.mxu0  ;;  %v4541_v58 = vadd.f32 %v11588_v37, %v11526_v9 }
 0x570   : > { %13454 = vst [vmem:[#allocation114_spill] sm:$0xff] %v11673_v39  ;;  %v5817_v12 = vmax.f32 %v5785_v49, 0.0  ;;  %v5753_v57 = vmul.f32 %v11577_v16, %v11673_v39  ;;  %v11682_v30 = vadd.f32 %v8594_v13, %v4528_v2  ;;  %v5847_v1 = vpack.c.bf16 %v5819_v22, %v5818_v15 }
 0x571   : > { %v4801_v63 = vpop.f32.mrf.mxu0  ;;  %v5790_v9 = vadd.f32 %v11592_v27, %v5755_v7  ;;  %v4536_v49 = vadd.f32 %v11635_v43, %v11532_v44  ;;  %v4557_v44 = vadd.f32 %v11648_v41, %v11534_v14  ;;  %v4549_v43 = vadd.f32 %v4548_v29, %v11536_v36 }
 0x572   : > { %13455 = vst [vmem:[#allocation115_spill] sm:$0xff] %v11682_v30  ;;  %v11686_v0 = vadd.f32 %v4801_v63, %v4520_v25  ;;  %v5846_v48 = vpack.c.bf16 %v5817_v12, %v5816_v38  ;;  %v5756_v40 = vmul.f32 %v11577_v16, %v11682_v30  ;;  %v5788_v11 = vadd.f32 %v11592_v27, %v5753_v57  ;;  %v4564_v38 = vpop.f32.mrf.mxu1 }
 0x573   : > { %v8597_v26 = vpop.f32.mrf.mxu0  ;;  %v5822_v57 = vmax.f32 %v5790_v9, 0.0  ;;  %v4560_v29 = vadd.f32 %v8564_v45, %v11540_v17 }
 0x574   : > { %13456 = vst [vmem:[#allocation116_spill] sm:$0xff] %v11686_v0  ;;  %v5754_v33 = vmul.f32 %v11577_v16, %v11686_v0  ;;  %8689 = vmatprep.mubr.msk.bf16.mxu1 %vm3177_vm9, %v5846_v48  ;;  %v5791_v62 = vadd.f32 %v11592_v27, %v5756_v40  ;;  %v11703_v34 = vadd.f32 %v8597_v26, %v4541_v58  ;;  %v5820_v22 = vmax.f32 %v5788_v11, 0.0  ;;  %v11890_v0 = vld [vmem:[%s13107_s11] ss:$0 sm:$0xff] }
 0x575   : > { %v4814_v6 = vpop.f32.mrf.mxu0  ;;  %8690 = vmatmul.mubr.msk.bf16.gmra.mxu1 %vm3177_vm9, %v5847_v1 }
 0x576   : > { %v5789_v37 = vadd.f32 %v11592_v27, %v5754_v33  ;;  %13457 = vst [vmem:[#allocation117_spill] sm:$0xff] %v11703_v34  ;;  %v11705_v42 = vadd.f32 %v4814_v6, %v4533_v10  ;;  %v5823_v46 = vmax.f32 %v5791_v62, 0.0  ;;  %v5759_v63 = vmul.f32 %v11577_v16, %v11703_v34  ;;  %v8568_v33 = vpop.f32.mrf.mxu1 }
 0x577   : > { %v8598_v24 = vpop.f32.mrf.mxu0  ;;  %v4552_v62 = vadd.f32 %v4551_v59, %v11544_v28  ;;  %v4573_v28 = vadd.f32 %v8567_v56, %v11546_v23 }
 0x578   : > { %13458 = vst [vmem:[#allocation118_spill] sm:$0xff] %v11705_v42  ;;  %v5821_v2 = vmax.f32 %v5789_v37, 0.0  ;;  %v5757_v13 = vmul.f32 %v11577_v16, %v11705_v42  ;;  %v11712_v25 = vadd.f32 %v8598_v24, %v4544_v32  ;;  %v5849_v26 = vpack.c.bf16 %v5823_v46, %v5822_v57  ;;  %v4567_v46 = vpop.f32.mrf.mxu1 }
 0x579   : > { %v4817_v12 = vpop.f32.mrf.mxu0  ;;  %v5794_v11 = vadd.f32 %v11592_v27, %v5759_v63 }
 0x57a   : > { %13459 = vst [vmem:[#allocation119_spill] sm:$0xff] %v11712_v25  ;;  %v5760_v15 = vmul.f32 %v11577_v16, %v11712_v25  ;;  %v11718_v7 = vadd.f32 %v4817_v12, %v4536_v49  ;;  %v5848_v40 = vpack.c.bf16 %v5821_v2, %v5820_v22  ;;  %v5792_v58 = vadd.f32 %v11592_v27, %v5757_v13  ;;  %v8571_v17 = vpop.f32.mrf.mxu1 }
 0x57b   : > { %v8601_v48 = vpop.f32.mrf.mxu0  ;;  %v5826_v22 = vmax.f32 %v5794_v11, 0.0 }
 0x57c   : > { %13460 = vst [vmem:[#allocation120_spill] sm:$0xff] %v11718_v7  ;;  %v5795_v10 = vadd.f32 %v11592_v27, %v5760_v15  ;;  %v5758_v1 = vmul.f32 %v11577_v16, %v11718_v7  ;;  %8693 = vmatprep.mubr.msk.bf16.mxu1 %vm3177_vm9, %v5848_v40  ;;  %v11730_v41 = vadd.f32 %v8601_v48, %v4557_v44  ;;  %v5824_v9 = vmax.f32 %v5792_v58, 0.0 }
 0x57d   : > { %v4830_v32 = vpop.f32.mrf.mxu0  ;;  %8694 = vmatmul.mubr.msk.bf16.gmra.mxu1 %vm3177_vm9, %v5849_v26  ;;  %v4565_v15 = vadd.f32 %v4564_v38, %v11550_v21  ;;  %v4576_v40 = vadd.f32 %v8568_v33, %v11552_v61  ;;  %v4580_v38 = vpop.f32.mrf.mxu1  ;;  %v4568_v61 = vadd.f32 %v4567_v46, %v11556_v8 }
 0x57e   : > { %v5793_v14 = vadd.f32 %v11592_v27, %v5758_v1  ;;  %13461 = vst [vmem:[#allocation121_spill] sm:$0xff] %v11730_v41  ;;  %v11732_v36 = vadd.f32 %v4830_v32, %v4549_v43  ;;  %v5827_v37 = vmax.f32 %v5795_v10, 0.0  ;;  %v5763_v57 = vmul.f32 %v11577_v16, %v11730_v41 }
 0x57f   : > { %v8602_v6 = vpop.f32.mrf.mxu0  ;;  %v4581_v8 = vadd.f32 %v4580_v38, %v11562_v55 }
 0x580   : > { %13462 = vst [vmem:[#allocation122_spill] sm:$0xff] %v11732_v36  ;;  %v5825_v49 = vmax.f32 %v5793_v14, 0.0  ;;  %v5761_v24 = vmul.f32 %v11577_v16, %v11732_v36  ;;  %v11739_v2 = vadd.f32 %v8602_v6, %v4560_v29  ;;  %v5851_v44 = vpack.c.bf16 %v5827_v37, %v5826_v22 }
 0x581   : > { %v4833_v13 = vpop.f32.mrf.mxu0  ;;  %v5798_v56 = vadd.f32 %v11592_v27, %v5763_v57 }
 0x582   : > { %13463 = vst [vmem:[#allocation123_spill] sm:$0xff] %v11739_v2  ;;  %v5850_v12 = vpack.c.bf16 %v5825_v49, %v5824_v9  ;;  %v11743_v63 = vadd.f32 %v4833_v13, %v4552_v62  ;;  %v5764_v45 = vmul.f32 %v11577_v16, %v11739_v2  ;;  %v5796_v43 = vadd.f32 %v11592_v27, %v5761_v24  ;;  %v8572_v24 = vpop.f32.mrf.mxu1 }
 0x583   : > { %v8605_v59 = vpop.f32.mrf.mxu0  ;;  %v5830_v6 = vmax.f32 %v5798_v56, 0.0 }
 0x584   : > { %13464 = vst [vmem:[#allocation124_spill] sm:$0xff] %v11743_v63  ;;  %v5762_v48 = vmul.f32 %v11577_v16, %v11743_v63  ;;  %8697 = vmatprep.mubr.msk.bf16.mxu1 %vm3177_vm9, %v5850_v12  ;;  %v5799_v26 = vadd.f32 %v11592_v27, %v5764_v45  ;;  %v11757_v10 = vadd.f32 %v8605_v59, %v4573_v28  ;;  %v5828_v32 = vmax.f32 %v5796_v43, 0.0  ;;  %v4583_v55 = vpop.f32.mrf.mxu1 }
 0x585   : > { %v4846_v23 = vpop.f32.mrf.mxu0  ;;  %8698 = vmatmul.mubr.msk.bf16.gmra.mxu1 %vm3177_vm9, %v5851_v44  ;;  %v4589_v12 = vadd.f32 %v8571_v17, %v11560_v31 }
 0x586   : > { %v5797_v58 = vadd.f32 %v11592_v27, %v5762_v48  ;;  %13465 = vst [vmem:[#allocation125_spill] sm:$0xff] %v11757_v10  ;;  %v11759_v21 = vadd.f32 %v4846_v23, %v4565_v15  ;;  %v5831_v11 = vmax.f32 %v5799_v26, 0.0  ;;  %v5767_v37 = vmul.f32 %v11577_v16, %v11757_v10 }
 0x587   : > { %v8606_v1 = vpop.f32.mrf.mxu0  ;;  %v4592_v15 = vadd.f32 %v8572_v24, %v11566_v20 }
 0x588   : > { %13466 = vst [vmem:[#allocation126_spill] sm:$0xff] %v11759_v21  ;;  %v5829_v14 = vmax.f32 %v5797_v58, 0.0  ;;  %v11762_v29 = vadd.f32 %v8606_v1, %v4576_v40  ;;  %v5765_v33 = vmul.f32 %v11577_v16, %v11759_v21  ;;  %v5853_v46 = vpack.c.bf16 %v5831_v11, %v5830_v6 }
 0x589   : > { %v4849_v62 = vpop.f32.mrf.mxu0  ;;  %v5802_v44 = vadd.f32 %v11592_v27, %v5767_v37  ;;  %v4584_v40 = vadd.f32 %v4583_v55, %v11568_v18 }
 0x58a   : > { %13467 = vst [vmem:[#allocation127_spill] sm:$0xff] %v11762_v29  ;;  %v5852_v9 = vpack.c.bf16 %v5829_v14, %v5828_v32  ;;  %v5768_v49 = vmul.f32 %v11577_v16, %v11762_v29  ;;  %v11771_v13 = vadd.f32 %v4849_v62, %v4568_v61  ;;  %v5800_v28 = vadd.f32 %v11592_v27, %v5765_v33 }
 0x58b   : > { %v8609_v22 = vpop.f32.mrf.mxu0  ;;  %v5834_v1 = vmax.f32 %v5802_v44, 0.0 }
 0x58c   : > { %13468 = vst [vmem:[#allocation128_spill] sm:$0xff] %v11771_v13  ;;  %v5803_v57 = vadd.f32 %v11592_v27, %v5768_v49  ;;  %8701 = vmatprep.mubr.msk.bf16.mxu1 %vm3177_vm9, %v5852_v9  ;;  %v5766_v45 = vmul.f32 %v11577_v16, %v11771_v13  ;;  %v11782_v43 = vadd.f32 %v8609_v22, %v4589_v12  ;;  %v5832_v20 = vmax.f32 %v5800_v28, 0.0 }
 0x58d   : > { %v4862_v59 = vpop.f32.mrf.mxu0  ;;  %8702 = vmatmul.mubr.msk.bf16.gmra.mxu1 %vm3177_vm9, %v5853_v46 }
 0x58e   : > { %13469 = vst [vmem:[#allocation129_spill] sm:$0xff] %v11782_v43  ;;  %v11784_v31 = vadd.f32 %v4862_v59, %v4581_v8  ;;  %v5801_v17 = vadd.f32 %v11592_v27, %v5766_v45  ;;  %v5835_v26 = vmax.f32 %v5803_v57, 0.0  ;;  %v5771_v32 = vmul.f32 %v11577_v16, %v11782_v43  ;;  %v8615_v57 = vpop.f32.mrf.mxu1 }
 0x58f   : > { %v8610_v48 = vpop.f32.mrf.mxu0 }
 0x590   : > { %13470 = vst [vmem:[#allocation130_spill] sm:$0xff] %v11784_v31  ;;  %v5769_v23 = vmul.f32 %v11577_v16, %v11784_v31  ;;  %v11791_v56 = vadd.f32 %v8610_v48, %v4592_v15  ;;  %v5833_v58 = vmax.f32 %v5801_v17, 0.0  ;;  %v5855_v18 = vpack.c.bf16 %v5835_v26, %v5834_v1 }
 0x591   : > { %v4865_v38 = vpop.f32.mrf.mxu0  ;;  %v5806_v9 = vadd.f32 %v11592_v27, %v5771_v32 }
 0x592   : > { %13471 = vst [vmem:[#allocation131_spill] sm:$0xff] %v11791_v56  ;;  %v5772_v11 = vmul.f32 %v11577_v16, %v11791_v56  ;;  %v11797_v14 = vadd.f32 %v4865_v38, %v4584_v40  ;;  %v5854_v61 = vpack.c.bf16 %v5833_v58, %v5832_v20  ;;  %v5804_v33 = vadd.f32 %v11592_v27, %v5769_v23 }
 0x593   : > { %v5838_v12 = vmax.f32 %v5806_v9, 0.0  ;;  %v8649_v38 = vpop.f32.mrf.mxu0 }
 0x594   : > { %13472 = vst [vmem:[#allocation132_spill] sm:$0xff] %v11797_v14  ;;  %v5807_v62 = vadd.f32 %v11592_v27, %v5772_v11  ;;  %v5770_v6 = vmul.f32 %v11577_v16, %v11797_v14  ;;  %8705 = vmatprep.mubr.msk.bf16.mxu1 %vm3177_vm9, %v5854_v61  ;;  %v5836_v49 = vmax.f32 %v5804_v33, 0.0  ;;  %v5402_v16 = vpop.f32.mrf.mxu1  ;;  %v5620_v30 = vadd.f32 %v8649_v38, %v8615_v57 }
 0x595   : > { %8706 = vmatmul.mubr.msk.bf16.gmra.mxu1 %vm3177_vm9, %v5855_v18  ;;  %v5611_v32 = vpop.f32.mrf.mxu0 }
 0x596   : > { %v5805_v37 = vadd.f32 %v11592_v27, %v5770_v6  ;;  %v5839_v24 = vmax.f32 %v5807_v62, 0.0  ;;  %v8616_v28 = vpop.f32.mrf.mxu1  ;;  %v5612_v39 = vadd.f32 %v5611_v32, %v5402_v16 }
 0x597   : > { %v8650_v61 = vpop.f32.mrf.mxu0 }
 0x598   : > { %v5837_v22 = vmax.f32 %v5805_v37, 0.0  ;;  %v5857_v46 = vpack.c.bf16 %v5839_v24, %v5838_v12  ;;  %v5405_v45 = vpop.f32.mrf.mxu1  ;;  %v5623_v50 = vadd.f32 %v8650_v61, %v8616_v28 }
 0x599   : > { %v5614_v33 = vpop.f32.mrf.mxu0 }
 0x59a   : > { %v5856_v8 = vpack.c.bf16 %v5837_v22, %v5836_v49  ;;  %v11809_v59 = vpop.f32.mrf.mxu1  ;;  %v5615_v5 = vadd.f32 %v5614_v33, %v5405_v45  ;;  %v8899_v33 = vld [vmem:[%s13108_s12 + $0x8] sm:$0xff]  }
 0x59b   : > { %v8653_v6 = vpop.f32.mrf.mxu0 }
 0x59c   : > { %8709 = vmatprep.mubr.msk.bf16.mxu1 %vm3177_vm9, %v5856_v8  ;;  %v11811_v15 = vpop.f32.mrf.mxu1 }
 0x59d   : > { %8710 = vmatmul.mubr.msk.bf16.gmra.mxu1 %vm3177_vm9, %v5857_v46  ;;  %v5627_v37 = vpop.f32.mrf.mxu0 }
 0x59e   : > { %v11813_v27 = vpop.f32.mrf.mxu1 }
 0x59f   : > { %v11845_v24 = vpop.f32.mrf.mxu0 }
 0x5a0   : > { %v11815_v44 = vpop.f32.mrf.mxu1 }
 0x5a1   : > { %v11849_v12 = vpop.f32.mrf.mxu0 }
 0x5a2   : > { %v11817_v55 = vpop.f32.mrf.mxu1 }
 0x5a3   : > { %v11853_v46 = vpop.f32.mrf.mxu0 }
 0x5a4   : > { %v11819_v17 = vpop.f32.mrf.mxu1 }
 0x5a5   : > { %v11857_v43 = vpop.f32.mrf.mxu0 }
 0x5a6   : > { %v11821_v48 = vpop.f32.mrf.mxu1 }
 0x5a7   : > { %v11861_v31 = vpop.f32.mrf.mxu0 }
 0x5a8   : > { %v11823_v40 = vpop.f32.mrf.mxu1 }
 0x5a9   : > { %v11865_v10 = vpop.f32.mrf.mxu0 }
 0x5aa   : > { %v11825_v26 = vpop.f32.mrf.mxu1 }
 0x5ab   : > { %v11869_v21 = vpop.f32.mrf.mxu0 }
 0x5ac   : > { %v11827_v23 = vpop.f32.mrf.mxu1 }
 0x5ad   : > { %v11873_v41 = vpop.f32.mrf.mxu0 }
 0x5ae   : > { %v11829_v20 = vpop.f32.mrf.mxu1 }
 0x5af   : > { %v11877_v36 = vpop.f32.mrf.mxu0 }
 0x5b0   : > { %v11831_v58 = vpop.f32.mrf.mxu1 }
 0x5b1   : > { %v11881_v34 = vpop.f32.mrf.mxu0 }
 0x5b2   : > { %v11833_v1 = vpop.f32.mrf.mxu1 }
 0x5b3   : > { %v11885_v42 = vpop.f32.mrf.mxu0 }
 0x5b4   : > { %v11835_v11 = vpop.f32.mrf.mxu1 }
 0x5b5   : > { %v11892_v35 = vpop.f32.mrf.mxu0 }
 0x5b6   : > { %v11837_v18 = vpop.f32.mrf.mxu1 }
 0x5b8   : > { %v11839_v62 = vpop.f32.mrf.mxu1 }
 0x5ba   : > { %v11841_v9 = vpop.f32.mrf.mxu1 }
 0x5bc   : > { %v11843_v49 = vpop.f32.mrf.mxu1 }
 0x5be   : > { %v11847_v22 = vpop.f32.mrf.mxu1 }
 0x5c0   : > { %v11851_v8 = vpop.f32.mrf.mxu1 }
 0x5c2   : > { %v11855_v56 = vpop.f32.mrf.mxu1 }
 0x5c4   : > { %v11859_v14 = vpop.f32.mrf.mxu1 }
 0x5c6   : > { %v11863_v29 = vpop.f32.mrf.mxu1 }
 0x5c8   : > { %v11867_v13 = vpop.f32.mrf.mxu1 }
 0x5ca   : > { %v11871_v2 = vpop.f32.mrf.mxu1 }
 0x5cc   : > { %v11875_v63 = vpop.f32.mrf.mxu1 }
 0x5ce   : > { %v11879_v25 = vpop.f32.mrf.mxu1 }
 0x5cf   : > { %13473 = vst [vmem:[#allocation133_spill] sm:$0xff] %v11879_v25 }
 0x5d0   : > { %v11883_v7 = vpop.f32.mrf.mxu1 }
 0x5d1   : > { %13474 = vst [vmem:[#allocation134_spill] sm:$0xff] %v11883_v7 }
 0x625   : > { %v8683_v53 = vpop.f32.mrf.mxu1 }
 0x626   : > { %v6072_v4 = vadd.f32 %v8683_v53, %v5620_v30  ;;  %v11902_v53 = vpop.f32.mrf.mxu0 }
 0x627   : > { %v5943_v60 = vpop.f32.mrf.mxu1 }
 0x628   : > { %v6109_v3 = vmul.f32 %v11890_v0, %v6072_v4  ;;  %v6070_v57 = vadd.f32 %v5943_v60, %v5612_v39  ;;  %v8897_v60 = vld [vmem:[%s13108_s12 + $0x10] sm:$0xff]   ;;  %v5636_v4 = vadd.f32 %v8653_v6, %v11809_v59  ;;  %v5631_v6 = vadd.f32 %v11849_v12, %v11815_v44  ;;  %v13476_v44 = vld [vmem:[#allocation9_spill] sm:$0xff] }
 0x629   : > { %v8684_v38 = vpop.f32.mrf.mxu1  ;;  %8751 = vmatprep.subr.bf16.mxu1 %v8897_v60 }
 0x62a   : > { %v6146_v54 = vadd.f32 %v11897_v19, %v6109_v3  ;;  %v6107_v52 = vmul.f32 %v11890_v0, %v6070_v57  ;;  %v6073_v16 = vadd.f32 %v8684_v38, %v5623_v50  ;;  %8752 = vmatpush3.bf16.msra.mxu1 %v8897_v60  ;;  %v5652_v60 = vadd.f32 %v11853_v46, %v11817_v55 }
 0x62b   : > { %v5946_v30 = vpop.f32.mrf.mxu1  ;;  %8753 = vmatprep.subr.bf16.mxu1 %v8899_v33  ;;  %v5644_v55 = vadd.f32 %v11857_v43, %v11819_v17 }
 0x62c   : > { %v6178_v32 = vmax.f32 %v6146_v54, 0.0  ;;  %v6144_v51 = vadd.f32 %v11897_v19, %v6107_v52  ;;  %v6110_v7 = vmul.f32 %v11890_v0, %v6073_v16  ;;  %v6071_v25 = vadd.f32 %v5946_v30, %v5615_v5  ;;  %v11916_v5 = vpop.f32.mrf.mxu0 }
 0x62d   : > { %v8687_v28 = vpop.f32.mrf.mxu1  ;;  %v5628_v54 = vadd.f32 %v5627_v37, %v11811_v15  ;;  %v13475_v37 = vld [vmem:[#allocation6_spill] sm:$0xff] }
 0x62e   : > { %6242 = vst.msk [vmem:[#allocation2 + $0x21] sm:$0xff] %vm1091_vm0, %v6178_v32  ;;  %v6176_v3 = vmax.f32 %v6144_v51, 0.0  ;;  %v6147_v50 = vadd.f32 %v11897_v19, %v6110_v7  ;;  %v6108_v39 = vmul.f32 %v11890_v0, %v6071_v25  ;;  %6308 = vrot.lane.b32.xlu0 %v6178_v32, %s9033_s20  ;;  %v6434_v52 = vmul.f32 %v9325_v47, %v6178_v32  ;;  %v8898_v25 = vld [vmem:[%s13108_s12 + $0x28] sm:$0xff]   ;;  %v11934_v30 = vpop.f32.mrf.mxu0 }
 0x62f   : > { %v6076_v45 = vadd.f32 %v8687_v28, %v5636_v4  ;;  %v5959_v7 = vpop.f32.mrf.mxu1  ;;  %v5639_v47 = vadd.f32 %v11845_v24, %v11813_v27  ;;  %8713 = vmatprep.subr.bf16.mxu0 %v8898_v25  ;;  %8754 = vmatpush3.bf16.msra.mxu1 %v8899_v33 }
 0x630   : > { %6240 = vst.msk [vmem:[#allocation2 + $0x11] sm:$0xff] %vm1091_vm0, %v6176_v3  ;;  %v6179_v59 = vmax.f32 %v6147_v50, 0.0  ;;  %v6145_v51 = vadd.f32 %v11897_v19, %v6108_v39  ;;  %6500 = vrot.lane.b32.xlu1 %v6434_v52, %s9034_s21  ;;  %v6074_v61 = vadd.f32 %v5959_v7, %v5628_v54  ;;  %8714 = vmatpush3.bf16.msra.mxu0 %v8898_v25  ;;  %v8900_v54 = vld [vmem:[%s13108_s12] sm:$0xff]   ;;  %v11955_v7 = vpop.f32.mrf.mxu0 }
 0x631   : > { %v6113_v15 = vmul.f32 %v11890_v0, %v6076_v45  ;;  %v8688_v16 = vpop.f32.mrf.mxu1  ;;  %v13477_v45 = vld [vmem:[#allocation10_spill] sm:$0xff]  ;;  %8755 = vmatprep.subr.bf16.mxu1 %v8900_v54 }
 0x632   : > { %v6211_v57 = vmul.f32 %v13475_v37, %v6179_v59  ;;  %v6177_v38 = vmax.f32 %v6145_v51, 0.0  ;;  %6304 = vrot.lane.b32.xlu0 %v6176_v3, %s9033_s20  ;;  %v6111_v24 = vmul.f32 %v11890_v0, %v6074_v61  ;;  %v6077_v32 = vadd.f32 %v8688_v16, %v5639_v47  ;;  %v11975_v16 = vpop.f32.mrf.mxu0 }
 0x633   : > { %v6150_v27 = vadd.f32 %v11897_v19, %v6113_v15  ;;  %v5962_v4 = vpop.f32.mrf.mxu1  ;;  %v6432_v51 = vmul.f32 %v13477_v45, %v6176_v3  ;;  %8756 = vmatpush3.bf16.msra.mxu1 %v8900_v54  ;;  %v5647_v37 = vadd.f32 %v11865_v10, %v11823_v40  ;;  %v13479_v10 = vld [vmem:[#allocation15_spill] sm:$0xff] }
 0x634   : > { %6243 = vst.msk [vmem:[#allocation2 + $0x29] sm:$0xff] %vm1091_vm0, %v6211_v57  ;;  %v6209_v12 = vmul.f32 %v13476_v44, %v6177_v38  ;;  %6310 = vrot.lane.b32.xlu1 %v6179_v59, %s9033_s20  ;;  %v6148_v39 = vadd.f32 %v11897_v19, %v6111_v24  ;;  %v6114_v28 = vmul.f32 %v11890_v0, %v6077_v32 }
 0x635   : > { %v11943_v50 = vmax.f32 %v6150_v27, 0.0  ;;  %v6075_v52 = vadd.f32 %v5962_v4, %v5631_v6  ;;  %v8691_v46 = vpop.f32.mrf.mxu1  ;;  %v5655_v6 = vadd.f32 %v11861_v31, %v11821_v48  ;;  %v13478_v27 = vld [vmem:[#allocation13_spill] sm:$0xff]  ;;  %v5668_v31 = vadd.f32 %v11869_v21, %v11825_v26  ;;  %v8901_v21 = vld [vmem:[%s13108_s12 + $0x20] sm:$0xff]  }
 0x636   : > { %6241 = vst.msk [vmem:[#allocation2 + $0x19] sm:$0xff] %vm1091_vm0, %v6209_v12  ;;  %6502 = vrot.lane.b32.xlu0 %v6179_v59, %s9034_s21  ;;  %v11959_v25 = vmax.f32 %v6148_v39, 0.0  ;;  %v6151_v47 = vadd.f32 %v11897_v19, %v6114_v28  ;;  %v6080_v61 = vadd.f32 %v8691_v46, %v5652_v60  ;;  %v5660_v26 = vadd.f32 %v11873_v41, %v11827_v23 }
 0x637   : > { %6246 = vst.msk [vmem:[#allocation2 + $0x41] sm:$0xff] %vm1091_vm0, %v11943_v50  ;;  %v6112_v15 = vmul.f32 %v11890_v0, %v6075_v52  ;;  %v5975_v43 = vpop.f32.mrf.mxu1  ;;  %8715 = vmatprep.subr.bf16.mxu0 %v8901_v21  ;;  %v5671_v41 = vadd.f32 %v11877_v36, %v11829_v20  ;;  %v13480_v36 = vld [vmem:[#allocation25_spill] sm:$0xff] }
 0x638   : > { %6496 = vrot.lane.b32.xlu1 %v6432_v51, %s9034_s21  ;;  %6244 = vst.msk [vmem:[#allocation2 + $0x31] sm:$0xff] %vm1091_vm0, %v11959_v25  ;;  %v11966_v17 = vmax.f32 %v6151_v47, 0.0  ;;  %v6117_v59 = vmul.f32 %v11890_v0, %v6080_v61  ;;  %v6078_v33 = vadd.f32 %v5975_v43, %v5644_v55  ;;  %8716 = vmatpush3.bf16.msra.mxu0 %v8901_v21  ;;  %v8902_v43 = vld [vmem:[%s13108_s12 + $0x18] sm:$0xff]  }
 0x639   : > { %v6149_v3 = vadd.f32 %v11897_v19, %v6112_v15  ;;  %v8692_v57 = vpop.f32.mrf.mxu1  ;;  %v6438_v20 = vmul.f32 %v13480_v36, %v11943_v50  ;;  %8717 = vmatprep.subr.bf16.mxu0 %v8902_v43 }
 0x63a   : > { %6498 = vrot.lane.b32.xlu0 %v6177_v38, %s9034_s21  ;;  %v6215_v24 = vmul.f32 %v13478_v27, %v11966_v17  ;;  %v6154_v60 = vadd.f32 %v11897_v19, %v6117_v59  ;;  %v6115_v44 = vmul.f32 %v11890_v0, %v6078_v33  ;;  %v6081_v48 = vadd.f32 %v8692_v57, %v5655_v6 }
 0x63b   : > { %v11979_v32 = vmax.f32 %v6149_v3, 0.0  ;;  %v5978_v12 = vpop.f32.mrf.mxu1 }
 0x63c   : > { %6306 = vrot.lane.b32.xlu1 %v6177_v38, %s9033_s20  ;;  %6247 = vst.msk [vmem:[#allocation2 + $0x49] sm:$0xff] %vm1091_vm0, %v6215_v24  ;;  %v11989_v4 = vmax.f32 %v6154_v60, 0.0  ;;  %v6152_v39 = vadd.f32 %v11897_v19, %v6115_v44  ;;  %v6079_v28 = vadd.f32 %v5978_v12, %v5647_v37  ;;  %v6118_v52 = vmul.f32 %v11890_v0, %v6081_v48  ;;  %v12000_v38 = vpop.f32.mrf.mxu0  ;;  %v13481_v44 = vld [vmem:[#allocation16_spill] sm:$0xff]  ;;  %v13482_v48 = vld [vmem:[#allocation18_spill] sm:$0xff] }
 0x63d   : > { %v6213_v40 = vmul.f32 %v13479_v10, %v11979_v32  ;;  %v8695_v54 = vpop.f32.mrf.mxu1  ;;  %v5663_v24 = vadd.f32 %v11881_v34, %v11831_v58  ;;  %v5684_v60 = vadd.f32 %v11885_v42, %v11833_v1  ;;  %8718 = vmatpush3.bf16.msra.mxu0 %v8902_v43  ;;  %v13483_v58 = vld [vmem:[#allocation26_spill] sm:$0xff] }
 0x63e   : > { %6312 = vrot.lane.b32.xlu0 %v11959_v25, %s9033_s20  ;;  %6250 = vst.msk [vmem:[#allocation2 + $0x61] sm:$0xff] %vm1091_vm0, %v11989_v4  ;;  %v12005_v55 = vmax.f32 %v6152_v39, 0.0  ;;  %v6116_v46 = vmul.f32 %v11890_v0, %v6079_v28  ;;  %v6084_v45 = vadd.f32 %v8695_v54, %v5668_v31  ;;  %v6155_v51 = vadd.f32 %v11897_v19, %v6118_v52  ;;  %v12026_v33 = vpop.f32.mrf.mxu0 }
 0x63f   : > { %6245 = vst.msk [vmem:[#allocation2 + $0x39] sm:$0xff] %vm1091_vm0, %v6213_v40  ;;  %v5991_v47 = vpop.f32.mrf.mxu1  ;;  %v6436_v1 = vmul.f32 %v13483_v58, %v11959_v25  ;;  %v5676_v28 = vadd.f32 %v11892_v35, %v11835_v11  ;;  %v5687_v35 = vadd.f32 %v11902_v53, %v11837_v18  ;;  %v13484_v18 = vld [vmem:[#allocation19_spill] sm:$0xff]  ;;  %v13486_v58 = vld [vmem:[#allocation28_spill] sm:$0xff] }
 0x640   : > { %6316 = vrot.lane.b32.xlu1 %v11943_v50, %s9033_s20  ;;  %6248 = vst.msk [vmem:[#allocation2 + $0x51] sm:$0xff] %vm1091_vm0, %v12005_v55  ;;  %v6153_v23 = vadd.f32 %v11897_v19, %v6116_v46  ;;  %v6121_v15 = vmul.f32 %v11890_v0, %v6084_v45  ;;  %v6082_v61 = vadd.f32 %v5991_v47, %v5660_v26  ;;  %v12020_v3 = vmax.f32 %v6155_v51, 0.0  ;;  %v12052_v52 = vpop.f32.mrf.mxu0 }
 0x641   : > { %v8696_v59 = vpop.f32.mrf.mxu1  ;;  %v5679_v51 = vadd.f32 %v11916_v5, %v11839_v62 }
 0x642   : > { %6318 = vrot.lane.b32.xlu0 %v11966_v17, %s9033_s20  ;;  %v12028_v6 = vmax.f32 %v6153_v23, 0.0  ;;  %v6158_v37 = vadd.f32 %v11897_v19, %v6121_v15  ;;  %v6119_v57 = vmul.f32 %v11890_v0, %v6082_v61  ;;  %v6085_v27 = vadd.f32 %v8696_v59, %v5671_v41  ;;  %v12074_v23 = vpop.f32.mrf.mxu0 }
 0x643   : > { %v6219_v31 = vmul.f32 %v13481_v44, %v12020_v3  ;;  %v5994_v50 = vpop.f32.mrf.mxu1  ;;  %v5700_v59 = vadd.f32 %v11934_v30, %v11841_v9  ;;  %v13485_v9 = vld [vmem:[#allocation20_spill] sm:$0xff] }
 0x644   : > { %6508 = vrot.lane.b32.xlu1 %v6438_v20, %s9034_s21  ;;  %v6217_v12 = vmul.f32 %v13482_v48, %v12028_v6  ;;  %v12041_v10 = vmax.f32 %v6158_v37, 0.0  ;;  %v6156_v40 = vadd.f32 %v11897_v19, %v6119_v57  ;;  %v6122_v39 = vmul.f32 %v11890_v0, %v6085_v27 }
 0x645   : > { %6251 = vst.msk [vmem:[#allocation2 + $0x69] sm:$0xff] %vm1091_vm0, %v6219_v31  ;;  %v6083_v34 = vadd.f32 %v5994_v50, %v5663_v24  ;;  %v8699_v42 = vpop.f32.mrf.mxu1  ;;  %v5692_v27 = vadd.f32 %v11955_v7, %v11843_v49 }
 0x646   : > { %6510 = vrot.lane.b32.xlu0 %v11966_v17, %s9034_s21  ;;  %6249 = vst.msk [vmem:[#allocation2 + $0x59] sm:$0xff] %vm1091_vm0, %v6217_v12  ;;  %6254 = vst.msk [vmem:[#allocation2 + $0x81] sm:$0xff] %vm1091_vm0, %v12041_v10  ;;  %v12057_v54 = vmax.f32 %v6156_v40, 0.0  ;;  %v6159_v21 = vadd.f32 %v11897_v19, %v6122_v39  ;;  %v6088_v26 = vadd.f32 %v8699_v42, %v5684_v60  ;;  %v5710_v60 = vpop.f32.mrf.mxu0 }
 0x647   : > { %v6120_v17 = vmul.f32 %v11890_v0, %v6083_v34  ;;  %v6007_v46 = vpop.f32.mrf.mxu1  ;;  %v5703_v39 = vadd.f32 %v11975_v16, %v11847_v22  ;;  %v5695_v34 = vadd.f32 %v12000_v38, %v11851_v8  ;;  %v5716_v8 = vadd.f32 %v12026_v33, %v11855_v56  ;;  %v13489_v56 = vld [vmem:[#allocation29_spill] sm:$0xff] }
 0x648   : > { %6504 = vrot.lane.b32.xlu1 %v6436_v1, %s9034_s21  ;;  %6252 = vst.msk [vmem:[#allocation2 + $0x71] sm:$0xff] %vm1091_vm0, %v12057_v54  ;;  %v12066_v11 = vmax.f32 %v6159_v21, 0.0  ;;  %v6125_v25 = vmul.f32 %v11890_v0, %v6088_v26  ;;  %v6086_v45 = vadd.f32 %v6007_v46, %v5676_v28  ;;  %v6442_v1 = vmul.f32 %v13486_v58, %v11989_v4  ;;  %v8677_v28 = vpop.f32.mrf.mxu0  ;;  %v13487_v21 = vld [vmem:[#allocation7_spill] sm:$0xff] }
 0x649   : > { %v6157_v47 = vadd.f32 %v11897_v19, %v6120_v17  ;;  %v8700_v41 = vpop.f32.mrf.mxu1  ;;  %v6440_v33 = vmul.f32 %v13489_v56, %v12005_v55 }
 0x64a   : > { %6314 = vrot.lane.b32.xlu0 %v11979_v32, %s9033_s20  ;;  %v6223_v53 = vmul.f32 %v13484_v18, %v12066_v11  ;;  %v6162_v15 = vadd.f32 %v11897_v19, %v6125_v25  ;;  %v6123_v61 = vmul.f32 %v11890_v0, %v6086_v45  ;;  %v6089_v43 = vadd.f32 %v8700_v41, %v5687_v35 }
 0x64b   : > { %v12082_v62 = vmax.f32 %v6157_v47, 0.0  ;;  %v6010_v5 = vpop.f32.mrf.mxu1  ;;  %v5708_v18 = vadd.f32 %v12052_v52, %v11859_v14 }
 0x64c   : > { %6324 = vrot.lane.b32.xlu1 %v11989_v4, %s9033_s20  ;;  %6255 = vst.msk [vmem:[#allocation2 + $0x89] sm:$0xff] %vm1091_vm0, %v6223_v53  ;;  %v12087_v36 = vmax.f32 %v6162_v15, 0.0  ;;  %v6160_v20 = vadd.f32 %v11897_v19, %v6123_v61  ;;  %v6126_v37 = vmul.f32 %v11890_v0, %v6089_v43  ;;  %v6087_v57 = vadd.f32 %v6010_v5, %v5679_v51  ;;  %v13488_v4 = vld [vmem:[#allocation11_spill] sm:$0xff]  ;;  %v5723_v53 = vpop.f32.mrf.mxu0 }
 0x64d   : > { %v6221_v30 = vmul.f32 %v13485_v9, %v12082_v62  ;;  %v8703_v24 = vpop.f32.mrf.mxu1 }
 0x64e   : > { %6506 = vrot.lane.b32.xlu0 %v11979_v32, %s9034_s21  ;;  %6258 = vst.msk [vmem:[#allocation2 + $0xa1] sm:$0xff] %vm1091_vm0, %v12087_v36  ;;  %v12099_v44 = vmax.f32 %v6160_v20, 0.0  ;;  %v6163_v31 = vadd.f32 %v11897_v19, %v6126_v37  ;;  %v6124_v50 = vmul.f32 %v11890_v0, %v6087_v57  ;;  %v6092_v48 = vadd.f32 %v8703_v24, %v5700_v59  ;;  %v8678_v57 = vpop.f32.mrf.mxu0 }
 0x64f   : > { %6253 = vst.msk [vmem:[#allocation2 + $0x79] sm:$0xff] %vm1091_vm0, %v6221_v30  ;;  %v6023_v49 = vpop.f32.mrf.mxu1  ;;  %v5711_v30 = vadd.f32 %v5710_v60, %v11867_v13  ;;  %v5732_v24 = vadd.f32 %v8677_v28, %v11871_v2  ;;  %v5724_v60 = vadd.f32 %v5723_v53, %v11875_v63 }
 0x650   : > { %6320 = vrot.lane.b32.xlu1 %v12005_v55, %s9033_s20  ;;  %6256 = vst.msk [vmem:[#allocation2 + $0x91] sm:$0xff] %vm1091_vm0, %v12099_v44  ;;  %v12108_v7 = vmax.f32 %v6163_v31, 0.0  ;;  %v6161_v32 = vadd.f32 %v11897_v19, %v6124_v50  ;;  %v6129_v12 = vmul.f32 %v11890_v0, %v6092_v48  ;;  %v6090_v40 = vadd.f32 %v6023_v49, %v5692_v27  ;;  %v13490_v31 = vld [vmem:[#allocation14_spill] sm:$0xff]  ;;  %v13491_v49 = vld [vmem:[#allocation17_spill] sm:$0xff] }
 0x651   : > { %v8704_v42 = vpop.f32.mrf.mxu1  ;;  %v5719_v55 = vadd.f32 %v12074_v23, %v11863_v29 }
 0x652   : > { %6326 = vrot.lane.b32.xlu0 %v12020_v3, %s9033_s20  ;;  %v6227_v26 = vmul.f32 %v13487_v21, %v12108_v7  ;;  %v12122_v17 = vmax.f32 %v6161_v32, 0.0  ;;  %v6166_v46 = vadd.f32 %v11897_v19, %v6129_v12  ;;  %v6127_v22 = vmul.f32 %v11890_v0, %v6090_v40 }
 0x653   : > { %v6093_v16 = vadd.f32 %v8704_v42, %v5703_v39  ;;  %v6026_v38 = vpop.f32.mrf.mxu1 }
 0x654   : > { %6516 = vrot.lane.b32.xlu1 %v6442_v1, %s9034_s21  ;;  %6259 = vst.msk [vmem:[#allocation2 + $0xa9] sm:$0xff] %vm1091_vm0, %v6227_v26  ;;  %v6225_v35 = vmul.f32 %v13488_v4, %v12122_v17  ;;  %v12132_v25 = vmax.f32 %v6166_v46, 0.0  ;;  %v6164_v45 = vadd.f32 %v11897_v19, %v6127_v22  ;;  %v6091_v51 = vadd.f32 %v6026_v38, %v5695_v34  ;;  %v5726_v34 = vpop.f32.mrf.mxu0 }
 0x655   : > { %v6130_v47 = vmul.f32 %v11890_v0, %v6093_v16  ;;  %v8707_v41 = vpop.f32.mrf.mxu1 }
 0x656   : > { %6518 = vrot.lane.b32.xlu0 %v12020_v3, %s9034_s21  ;;  %6257 = vst.msk [vmem:[#allocation2 + $0x99] sm:$0xff] %vm1091_vm0, %v6225_v35  ;;  %6262 = vst.msk [vmem:[#allocation2 + $0xc1] sm:$0xff] %vm1091_vm0, %v12132_v25  ;;  %v12145_v15 = vmax.f32 %v6164_v45, 0.0  ;;  %v6128_v61 = vmul.f32 %v11890_v0, %v6091_v51  ;;  %v6096_v43 = vadd.f32 %v8707_v41, %v5716_v8  ;;  %v13493_v8 = vld [vmem:[#allocation134_spill] sm:$0xff]  ;;  %v13495_v51 = vld [vmem:[#allocation21_spill] sm:$0xff] }
 0x657   : > { %v6167_v59 = vadd.f32 %v11897_v19, %v6130_v47  ;;  %v6039_v3 = vpop.f32.mrf.mxu1  ;;  %v5727_v16 = vadd.f32 %v5726_v34, %v13493_v8  ;;  %v13494_v35 = vld [vmem:[#allocation30_spill] sm:$0xff]  ;;  %v13523_v8 = vld [vmem:[#allocation85_spill] sm:$0xff] }
 0x658   : > { %6512 = vrot.lane.b32.xlu1 %v6440_v33, %s9034_s21  ;;  %6260 = vst.msk [vmem:[#allocation2 + $0xb1] sm:$0xff] %vm1091_vm0, %v12145_v15  ;;  %v6165_v14 = vadd.f32 %v11897_v19, %v6128_v61  ;;  %v6133_v52 = vmul.f32 %v11890_v0, %v6096_v43  ;;  %v6094_v5 = vadd.f32 %v6039_v3, %v5708_v18  ;;  %v13496_v3 = vld [vmem:[#allocation22_spill] sm:$0xff]  ;;  %1108 = vst.msk [vmem:[%s12306_s30 + $0x80] sm:$0xff] %vm1091_vm0, %v13523_v8 }
 0x659   : > { %v12156_v20 = vmax.f32 %v6167_v59, 0.0  ;;  %v8708_v37 = vpop.f32.mrf.mxu1  ;;  %v6446_v45 = vmul.f32 %v13494_v35, %v12041_v10  ;;  %v13512_v34 = vld [vmem:[#allocation74_spill] sm:$0xff]  ;;  %v13527_v35 = vld [vmem:[#allocation89_spill] sm:$0xff] }
 0x65a   : > { %6322 = vrot.lane.b32.xlu0 %v12028_v6, %s9033_s20  ;;  %v12160_v27 = vmax.f32 %v6165_v14, 0.0  ;;  %v6170_v9 = vadd.f32 %v11897_v19, %v6133_v52  ;;  %v6131_v29 = vmul.f32 %v11890_v0, %v6094_v5  ;;  %v6097_v23 = vadd.f32 %v8708_v37, %v5719_v55  ;;  %v13497_v14 = vld [vmem:[#allocation31_spill] sm:$0xff]  ;;  %1097 = vst.msk [vmem:[%s12306_s30 + $0x28] sm:$0xff] %vm1091_vm0, %v13512_v34  ;;  %v13550_v34 = vld [vmem:[#allocation45_spill] sm:$0xff] }
 0x65b   : > { %v6231_v50 = vmul.f32 %v13490_v31, %v12156_v20  ;;  %v6042_v48 = vpop.f32.mrf.mxu1  ;;  %v6444_v52 = vmul.f32 %v13497_v14, %v12057_v54  ;;  %1112 = vst.msk [vmem:[%s12306_s30 + $0xa0] sm:$0xff] %vm1091_vm0, %v13527_v35  ;;  %v13555_v35 = vld [vmem:[#allocation51_spill] sm:$0xff] }
 0x65c   : > { %6332 = vrot.lane.b32.xlu1 %v12041_v10, %s9033_s20  ;;  %v6229_v32 = vmul.f32 %v13491_v49, %v12160_v27  ;;  %v12172_v12 = vmax.f32 %v6170_v9, 0.0  ;;  %v6168_v40 = vadd.f32 %v11897_v19, %v6131_v29  ;;  %v6134_v39 = vmul.f32 %v11890_v0, %v6097_v23 }
 0x65d   : > { %6263 = vst.msk [vmem:[#allocation2 + $0xc9] sm:$0xff] %vm1091_vm0, %v6231_v50  ;;  %v6095_v13 = vadd.f32 %v6042_v48, %v5711_v30  ;;  %v8711_v2 = vpop.f32.mrf.mxu1 }
 0x65e   : > { %6514 = vrot.lane.b32.xlu0 %v12028_v6, %s9034_s21  ;;  %6261 = vst.msk [vmem:[#allocation2 + $0xb9] sm:$0xff] %vm1091_vm0, %v6229_v32  ;;  %6266 = vst.msk [vmem:[#allocation2 + $0xe1] sm:$0xff] %vm1091_vm0, %v12172_v12  ;;  %v12183_v42 = vmax.f32 %v6168_v40, 0.0  ;;  %v6171_v58 = vadd.f32 %v11897_v19, %v6134_v39  ;;  %v6100_v1 = vadd.f32 %v8711_v2, %v5732_v24  ;;  %v13492_v6 = vld [vmem:[#allocation133_spill] sm:$0xff]  ;;  %v13500_v24 = vld [vmem:[#allocation8_spill] sm:$0xff] }
 0x65f   : > { %v6132_v28 = vmul.f32 %v11890_v0, %v6095_v13  ;;  %v6055_v21 = vpop.f32.mrf.mxu1  ;;  %v5735_v26 = vadd.f32 %v8678_v57, %v13492_v6  ;;  %v6450_v31 = vmul.f32 %v13500_v24, %v12087_v36  ;;  %v13506_v32 = vld [vmem:[#allocation35_spill] sm:$0xff]  ;;  %v13507_v40 = vld [vmem:[#allocation69_spill] sm:$0xff]  ;;  %v13508_v39 = vld [vmem:[#allocation70_spill] sm:$0xff] }
 0x660   : > { %6328 = vrot.lane.b32.xlu1 %v12057_v54, %s9033_s20  ;;  %6264 = vst.msk [vmem:[#allocation2 + $0xd1] sm:$0xff] %vm1091_vm0, %v12183_v42  ;;  %v12192_v63 = vmax.f32 %v6171_v58, 0.0  ;;  %v6137_v46 = vmul.f32 %v11890_v0, %v6100_v1  ;;  %v6098_v22 = vadd.f32 %v6055_v21, %v5724_v60  ;;  %v13498_v54 = vld [vmem:[#allocation23_spill] sm:$0xff]  ;;  %1092 = vst.msk [vmem:[%s12306_s30] sm:$0xff] %vm1091_vm0, %v13507_v40  ;;  %v13510_v2 = vld [vmem:[#allocation72_spill] sm:$0xff] }
 0x661   : > { %v6169_v38 = vadd.f32 %v11897_v19, %v6132_v28  ;;  %v8712_v4 = vpop.f32.mrf.mxu1  ;;  %1093 = vst.msk [vmem:[%s12306_s30 + $0x8] sm:$0xff] %vm1091_vm0, %v13508_v39  ;;  %v13509_v13 = vld [vmem:[#allocation71_spill] sm:$0xff]  ;;  %1095 = vst.msk [vmem:[%s12306_s30 + $0x18] sm:$0xff] %vm1091_vm0, %v13510_v2  ;;  %v13511_v60 = vld [vmem:[#allocation73_spill] sm:$0xff] }
 0x662   : > { %6334 = vrot.lane.b32.xlu0 %v12066_v11, %s9033_s20  ;;  %v6235_v47 = vmul.f32 %v13495_v51, %v12192_v63  ;;  %v6174_v41 = vadd.f32 %v11897_v19, %v6137_v46  ;;  %v6135_v56 = vmul.f32 %v11890_v0, %v6098_v22  ;;  %v6101_v33 = vadd.f32 %v8712_v4, %v5735_v26  ;;  %v13514_v58 = vld [vmem:[#allocation76_spill] sm:$0xff]  ;;  %v13515_v1 = vld [vmem:[#allocation77_spill] sm:$0xff]  ;;  %v13516_v28 = vld [vmem:[#allocation78_spill] sm:$0xff] }
 0x663   : > { %v6201_v18 = vmax.f32 %v6169_v38, 0.0  ;;  %v6058_v53 = vpop.f32.mrf.mxu1  ;;  %1094 = vst.msk [vmem:[%s12306_s30 + $0x10] sm:$0xff] %vm1091_vm0, %v13509_v13  ;;  %1096 = vst.msk [vmem:[%s12306_s30 + $0x20] sm:$0xff] %vm1091_vm0, %v13511_v60  ;;  %v13517_v21 = vld [vmem:[#allocation79_spill] sm:$0xff]  ;;  %v13518_v6 = vld [vmem:[#allocation80_spill] sm:$0xff] }
 0x664   : > { %6524 = vrot.lane.b32.xlu1 %v6446_v45, %s9034_s21  ;;  %6267 = vst.msk [vmem:[#allocation2 + $0xe9] sm:$0xff] %vm1091_vm0, %v6235_v47  ;;  %v12207_v61 = vmax.f32 %v6174_v41, 0.0  ;;  %v6172_v43 = vadd.f32 %v11897_v19, %v6135_v56  ;;  %v6138_v10 = vmul.f32 %v11890_v0, %v6101_v33  ;;  %v6099_v59 = vadd.f32 %v6058_v53, %v5727_v16  ;;  %v13519_v26 = vld [vmem:[#allocation81_spill] sm:$0xff]  ;;  %v13521_v46 = vld [vmem:[#allocation83_spill] sm:$0xff]  ;;  %v13522_v22 = vld [vmem:[#allocation84_spill] sm:$0xff] }
 0x665   : > { %v6233_v55 = vmul.f32 %v13496_v3, %v6201_v18  ;;  %1099 = vst.msk [vmem:[%s12306_s30 + $0x38] sm:$0xff] %vm1091_vm0, %v13514_v58  ;;  %1100 = vst.msk [vmem:[%s12306_s30 + $0x40] sm:$0xff] %vm1091_vm0, %v13515_v1  ;;  %v13524_v16 = vld [vmem:[#allocation86_spill] sm:$0xff]  ;;  %v13525_v38 = vld [vmem:[#allocation87_spill] sm:$0xff] }
 0x666   : > { %6526 = vrot.lane.b32.xlu0 %v12066_v11, %s9034_s21  ;;  %6270 = vst.msk [vmem:[#allocation2 + $0x101] sm:$0xff] %vm1091_vm0, %v12207_v61  ;;  %v6204_v5 = vmax.f32 %v6172_v43, 0.0  ;;  %v6175_v37 = vadd.f32 %v11897_v19, %v6138_v10  ;;  %v6136_v57 = vmul.f32 %v11890_v0, %v6099_v59  ;;  %v13499_v0 = vld [vmem:[#allocation24_spill] sm:$0xff]  ;;  %1101 = vst.msk [vmem:[%s12306_s30 + $0x48] sm:$0xff] %vm1091_vm0, %v13516_v28  ;;  %v13528_v45 = vld [vmem:[#allocation90_spill] sm:$0xff] }
 0x667   : > { %6265 = vst.msk [vmem:[#allocation2 + $0xd9] sm:$0xff] %vm1091_vm0, %v6233_v55  ;;  %1102 = vst.msk [vmem:[%s12306_s30 + $0x50] sm:$0xff] %vm1091_vm0, %v13517_v21  ;;  %v13526_v4 = vld [vmem:[#allocation88_spill] sm:$0xff]  ;;  %v13529_v51 = vld [vmem:[#allocation91_spill] sm:$0xff] }
 0x668   : > { %6520 = vrot.lane.b32.xlu1 %v6444_v52, %s9034_s21  ;;  %6268 = vst.msk [vmem:[#allocation2 + $0xf1] sm:$0xff] %vm1091_vm0, %v6204_v5  ;;  %v12223_v9 = vmax.f32 %v6175_v37, 0.0  ;;  %v6173_v11 = vadd.f32 %v11897_v19, %v6136_v57  ;;  %v12243_v19 = vld [vmem:[%s13108_s12 + $0x40] sm:$0xff]   ;;  %1103 = vst.msk [vmem:[%s12306_s30 + $0x58] sm:$0xff] %vm1091_vm0, %v13518_v6  ;;  %v13530_v47 = vld [vmem:[#allocation92_spill] sm:$0xff] }
 0x669   : > { %8789 = vmatprep.subr.bf16.mxu0 %v12243_v19  ;;  %1104 = vst.msk [vmem:[%s12306_s30 + $0x60] sm:$0xff] %vm1091_vm0, %v13519_v26  ;;  %1106 = vst.msk [vmem:[%s12306_s30 + $0x70] sm:$0xff] %vm1091_vm0, %v13521_v46  ;;  %v13531_v41 = vld [vmem:[#allocation93_spill] sm:$0xff]  ;;  %v13532_v56 = vld [vmem:[#allocation94_spill] sm:$0xff] }
 0x66a   : > { %6330 = vrot.lane.b32.xlu0 %v12082_v62, %s9033_s20  ;;  %v6239_v29 = vmul.f32 %v13498_v54, %v12223_v9  ;;  %v12230_v23 = vmax.f32 %v6173_v11, 0.0  ;;  %1107 = vst.msk [vmem:[%s12306_s30 + $0x78] sm:$0xff] %vm1091_vm0, %v13522_v22  ;;  %1109 = vst.msk [vmem:[%s12306_s30 + $0x88] sm:$0xff] %vm1091_vm0, %v13524_v16  ;;  %v13533_v33 = vld [vmem:[#allocation95_spill] sm:$0xff]  ;;  %v13535_v53 = vld [vmem:[#allocation97_spill] sm:$0xff] }
 0x66b   : > { %1110 = vst.msk [vmem:[%s12306_s30 + $0x90] sm:$0xff] %vm1091_vm0, %v13525_v38  ;;  %1111 = vst.msk [vmem:[%s12306_s30 + $0x98] sm:$0xff] %vm1091_vm0, %v13526_v4  ;;  %v13536_v43 = vld [vmem:[#allocation98_spill] sm:$0xff]  ;;  %v13537_v10 = vld [vmem:[#allocation99_spill] sm:$0xff] }
 0x66c   : > { %6340 = vrot.lane.b32.xlu1 %v12087_v36, %s9033_s20  ;;  %6271 = vst.msk [vmem:[#allocation2 + $0x109] sm:$0xff] %vm1091_vm0, %v6239_v29  ;;  %v6237_v30 = vmul.f32 %v13499_v0, %v12230_v23  ;;  %v13502_v36 = vld [vmem:[#allocation32_spill] sm:$0xff]  ;;  %1113 = vst.msk [vmem:[%s12306_s30 + $0xa8] sm:$0xff] %vm1091_vm0, %v13528_v45  ;;  %v13540_v54 = vld [vmem:[#allocation38_spill] sm:$0xff] }
 0x66d   : > { %1114 = vst.msk [vmem:[%s12306_s30 + $0xb0] sm:$0xff] %vm1091_vm0, %v13529_v51  ;;  %1115 = vst.msk [vmem:[%s12306_s30 + $0xb8] sm:$0xff] %vm1091_vm0, %v13530_v47  ;;  %v13538_v59 = vld [vmem:[#allocation100_spill] sm:$0xff]  ;;  %v8904_v58 = vld [vmem:[%s13108_s12 + $0x38] sm:$0xff]  }
 0x66e   : > { %6522 = vrot.lane.b32.xlu0 %v12082_v62, %s9034_s21  ;;  %6269 = vst.msk [vmem:[#allocation2 + $0xf9] sm:$0xff] %vm1091_vm0, %v6237_v30  ;;  %v13501_v62 = vld [vmem:[#allocation12_spill] sm:$0xff]  ;;  %1116 = vst.msk [vmem:[%s12306_s30 + $0xc0] sm:$0xff] %vm1091_vm0, %v13531_v41  ;;  %v13551_v28 = vld [vmem:[#allocation47_spill] sm:$0xff] }
 0x66f   : > { %v6448_v50 = vmul.f32 %v13501_v62, %v12099_v44  ;;  %1117 = vst.msk [vmem:[%s12306_s30 + $0xc8] sm:$0xff] %vm1091_vm0, %v13532_v56  ;;  %1118 = vst.msk [vmem:[%s12306_s30 + $0xd0] sm:$0xff] %vm1091_vm0, %v13533_v33  ;;  %v13539_v52 = vld [vmem:[#allocation36_spill] sm:$0xff]  ;;  %v13543_v62 = vld [vmem:[#allocation39_spill] sm:$0xff] }
 0x670   : > { %6336 = vrot.lane.b32.xlu1 %v12099_v44, %s9033_s20  ;;  %v6454_v44 = vmul.f32 %v13502_v36, %v12132_v25  ;;  %1120 = vst.msk [vmem:[%s12306_s30 + $0xe0] sm:$0xff] %vm1091_vm0, %v13535_v53  ;;  %1121 = vst.msk [vmem:[%s12306_s30 + $0xe8] sm:$0xff] %vm1091_vm0, %v13536_v43  ;;  %v13541_v29 = vld [vmem:[#allocation40_spill] sm:$0xff]  ;;  %v13544_v36 = vld [vmem:[#allocation42_spill] sm:$0xff] }
 0x671   : > { %1122 = vst.msk [vmem:[%s12306_s30 + $0xf0] sm:$0xff] %vm1091_vm0, %v13537_v10  ;;  %1123 = vst.msk [vmem:[%s12306_s30 + $0xf8] sm:$0xff] %vm1091_vm0, %v13538_v59  ;;  %v13549_v39 = vld [vmem:[#allocation48_spill] sm:$0xff]  ;;  %v13552_v6 = vld [vmem:[#allocation50_spill] sm:$0xff] }
 0x672   : > { %6342 = vrot.lane.b32.xlu0 %v12108_v7, %s9033_s20  ;;  %v8905_v16 = vld [vmem:[%s13108_s12 + $0x30] sm:$0xff]   ;;  %v13556_v51 = vld [vmem:[#allocation54_spill] sm:$0xff]  ;;  %v13558_v53 = vld [vmem:[#allocation53_spill] sm:$0xff] }
 0x673   : > { %v13557_v41 = vld [vmem:[#allocation56_spill] sm:$0xff]  ;;  %v13559_v59 = vld [vmem:[#allocation55_spill] sm:$0xff] }
 0x674   : > { %6532 = vrot.lane.b32.xlu1 %v6450_v31, %s9034_s21 }
 0x676   : > { %6534 = vrot.lane.b32.xlu0 %v12108_v7, %s9034_s21  ;;  %v13503_v7 = vld [vmem:[#allocation27_spill] sm:$0xff] }
 0x677   : > { %v6452_v48 = vmul.f32 %v13503_v7, %v12145_v15 }
 0x678   : > { %6528 = vrot.lane.b32.xlu1 %v6448_v50, %s9034_s21 }
 0x67a   : > { %6338 = vrot.lane.b32.xlu0 %v12122_v17, %s9033_s20 }
 0x67c   : > { %6348 = vrot.lane.b32.xlu1 %v12132_v25, %s9033_s20 }
 0x67e   : > { %6530 = vrot.lane.b32.xlu0 %v12122_v17, %s9034_s21  ;;  %v13504_v17 = vld [vmem:[#allocation34_spill] sm:$0xff] }
 0x67f   : > { %v6458_v25 = vmul.f32 %v13504_v17, %v12172_v12  ;;  %v13545_v17 = vld [vmem:[#allocation44_spill] sm:$0xff] }
 0x680   : > { %6344 = vrot.lane.b32.xlu1 %v12145_v15, %s9033_s20  ;;  %v13505_v15 = vld [vmem:[#allocation33_spill] sm:$0xff] }
 0x682   : > { %6350 = vrot.lane.b32.xlu0 %v12156_v20, %s9033_s20 }
 0x684   : > { %6540 = vrot.lane.b32.xlu1 %v6454_v44, %s9034_s21 }
 0x686   : > { %6542 = vrot.lane.b32.xlu0 %v12156_v20, %s9034_s21  ;;  %v6456_v20 = vmul.f32 %v13505_v15, %v12183_v42 }
 0x688   : > { %6536 = vrot.lane.b32.xlu1 %v6452_v48, %s9034_s21 }
 0x68a   : > { %6346 = vrot.lane.b32.xlu0 %v12160_v27, %s9033_s20 }
 0x68c   : > { %6356 = vrot.lane.b32.xlu1 %v12172_v12, %s9033_s20  ;;  %v6460_v12 = vmul.f32 %v13506_v32, %v6204_v5 }
 0x68e   : > { %6538 = vrot.lane.b32.xlu0 %v12160_v27, %s9034_s21 }
 0x690   : > { %6352 = vrot.lane.b32.xlu1 %v12183_v42, %s9033_s20  ;;  %v13513_v42 = vld [vmem:[#allocation75_spill] sm:$0xff] }
 0x691   : > { %1098 = vst.msk [vmem:[%s12306_s30 + $0x30] sm:$0xff] %vm1091_vm0, %v13513_v42 }
 0x692   : > { %6358 = vrot.lane.b32.xlu0 %v12192_v63, %s9033_s20 }
 0x694   : > { %6548 = vrot.lane.b32.xlu1 %v6458_v25, %s9034_s21 }
 0x696   : > { %6550 = vrot.lane.b32.xlu0 %v12192_v63, %s9034_s21  ;;  %v13520_v63 = vld [vmem:[#allocation82_spill] sm:$0xff] }
 0x697   : > { %1105 = vst.msk [vmem:[%s12306_s30 + $0x68] sm:$0xff] %vm1091_vm0, %v13520_v63  ;;  %v13553_v63 = vld [vmem:[#allocation52_spill] sm:$0xff] }
 0x698   : > { %6544 = vrot.lane.b32.xlu1 %v6456_v20, %s9034_s21  ;;  %v13546_v20 = vld [vmem:[#allocation41_spill] sm:$0xff] }
 0x69a   : > { %6354 = vrot.lane.b32.xlu0 %v6201_v18, %s9033_s20 }
 0x69c   : > { %6364 = vrot.lane.b32.xlu1 %v12207_v61, %s9033_s20 }
 0x69e   : > { %6546 = vrot.lane.b32.xlu0 %v6201_v18, %s9034_s21  ;;  %v13534_v18 = vld [vmem:[#allocation96_spill] sm:$0xff] }
 0x69f   : > { %1119 = vst.msk [vmem:[%s12306_s30 + $0xd8] sm:$0xff] %vm1091_vm0, %v13534_v18  ;;  %vm2897_vm0 = vcmask 195712  }
 0x6a0   : > { %v6309_v27 = vpop.permute.xlu0 %6308  ;;  %6360 = vrot.lane.b32.xlu1 %v6204_v5, %s9033_s20  ;;  %v6462_v5 = vmul.f32 %v13539_v52, %v12207_v61  ;;  %v13561_v52 = vld [vmem:[#allocation60_spill] sm:$0xff] }
 0x6a1   : > { %6402 = vst.msk [vmem:[#allocation2 + $0x20] sm:$0xff] %vm1756_vm5, %v6309_v27 }
 0x6a2   : > { %v6501_v49 = vpop.permute.xlu1 %6500  ;;  %6366 = vrot.lane.b32.xlu0 %v12223_v9, %s9033_s20 }
 0x6a4   : > { %v6305_v3 = vpop.permute.xlu0 %6304  ;;  %6552 = vrot.lane.b32.xlu1 %v6460_v12, %s9034_s21  ;;  %v13548_v12 = vld [vmem:[#allocation46_spill] sm:$0xff] }
 0x6a5   : > { %6400 = vst.msk [vmem:[#allocation2 + $0x10] sm:$0xff] %vm1756_vm5, %v6305_v3 }
 0x6a6   : > { %v6311_v55 = vpop.permute.xlu1 %6310  ;;  %6362 = vrot.lane.b32.xlu0 %v12230_v23, %s9033_s20 }
 0x6a7   : > { %6403 = vst.msk [vmem:[#allocation2 + $0x28] sm:$0xff] %vm1756_vm5, %v6311_v55  ;;  %v13560_v55 = vld [vmem:[#allocation58_spill] sm:$0xff] }
 0x6a8   : > { %v6503_v14 = vpop.permute.xlu0 %6502  ;;  %6554 = vrot.lane.b32.xlu1 %v12230_v23, %s9034_s21  ;;  %v6624_v23 = vld [vmem:[#allocation2] sm:$0xff] }
 0x6a9   : > { %6595 = vst.msk [vmem:[#allocation2 + $0x27] sm:$0xff] %vm1949_vm7, %v6503_v14 }
 0x6aa   : > { %v6497_v37 = vpop.permute.xlu1 %6496  ;;  %6556 = vrot.lane.b32.xlu0 %v6462_v5, %s9034_s21 }
 0x6ab   : > { %6592 = vst.msk [vmem:[#allocation2 + $0xf] sm:$0xff] %vm1949_vm7, %v6497_v37 }
 0x6ac   : > { %v6499_v57 = vpop.permute.xlu0 %6498  ;;  %6558 = vrot.lane.b32.xlu1 %v12223_v9, %s9034_s21  ;;  %v13542_v9 = vld [vmem:[#allocation37_spill] sm:$0xff] }
 0x6ae   : > { %v6307_v11 = vpop.permute.xlu1 %6306  ;;  %2801 = vrot.lane.b32.xlu0 %v13540_v54, %s9033_s20  ;;  %v13562_v54 = vld [vmem:[#allocation57_spill] sm:$0xff] }
 0x6af   : > { %6401 = vst.msk [vmem:[#allocation2 + $0x18] sm:$0xff] %vm1756_vm5, %v6307_v11 }
 0x6b0   : > { %6593 = vst.msk [vmem:[#allocation2 + $0x17] sm:$0xff] %vm1949_vm7, %v6499_v57  ;;  %6594 = vst.msk [vmem:[#allocation2 + $0x1f] sm:$0xff] %vm1949_vm7, %v6501_v49  ;;  %v6313_v61 = vpop.permute.xlu0 %6312  ;;  %2803 = vrot.lane.b32.xlu1 %v13541_v29, %s9033_s20  ;;  %v13547_v49 = vld [vmem:[#allocation43_spill] sm:$0xff] }
 0x6b1   : > { %6404 = vst.msk [vmem:[#allocation2 + $0x30] sm:$0xff] %vm1756_vm5, %v6313_v61  ;;  %v13563_v29 = vld [vmem:[#allocation59_spill] sm:$0xff] }
 0x6b2   : > { %v6317_v0 = vpop.permute.xlu1 %6316  ;;  %2805 = vrot.lane.b32.xlu0 %v13542_v9, %s9033_s20  ;;  %v6625_v30 = vld [vmem:[#allocation2 + $0x8] sm:$0xff] }
 0x6b3   : > { %6406 = vst.msk [vmem:[#allocation2 + $0x40] sm:$0xff] %vm1756_vm5, %v6317_v0  ;;  %v6656_v24 = vpack.c.bf16 %v6625_v30, %v6624_v23  ;;  %v13564_v0 = vld [vmem:[#allocation62_spill] sm:$0xff]  ;;  %v13565_v30 = vld [vmem:[#allocation64_spill] sm:$0xff] }
 0x6b4   : > { %v6319_v31 = vpop.permute.xlu0 %6318  ;;  %2807 = vrot.lane.b32.xlu1 %v13543_v62, %s9033_s20 }
 0x6b5   : > { %6407 = vst.msk [vmem:[#allocation2 + $0x48] sm:$0xff] %vm1756_vm5, %v6319_v31  ;;  %8757 = vmatprep.mubr.msk.bf16.mxu1 %vm443_vm1, %v6656_v24 }
 0x6b6   : > { %v6509_v50 = vpop.permute.xlu1 %6508  ;;  %2809 = vrot.lane.b32.xlu0 %v13544_v36, %s9033_s20 }
 0x6b7   : > { %v6626_v44 = vld [vmem:[#allocation2 + $0x10] sm:$0xff]  ;;  %v6627_v7 = vld [vmem:[#allocation2 + $0x18] sm:$0xff]  ;;  %v6628_v2 = vld [vmem:[#allocation2 + $0x20] sm:$0xff] }
 0x6b8   : > { %v6511_v48 = vpop.permute.xlu0 %6510  ;;  %2811 = vrot.lane.b32.xlu1 %v13545_v17, %s9033_s20  ;;  %v6657_v25 = vpack.c.bf16 %v6627_v7, %v6626_v44  ;;  %v13567_v7 = vld [vmem:[#allocation63_spill] sm:$0xff]  ;;  %v13568_v17 = vld [vmem:[#allocation66_spill] sm:$0xff] }
 0x6b9   : > { %6599 = vst.msk [vmem:[#allocation2 + $0x47] sm:$0xff] %vm1949_vm7, %v6511_v48 }
 0x6ba   : > { %v6505_v15 = vpop.permute.xlu1 %6504  ;;  %8719 = vmatprep.mubr.msk.bf16.mxu0 %vm443_vm1, %v6657_v25  ;;  %8758 = vmatmul.mubr.msk.bf16.vlgmr.msra.gmra.mxu1 %vm443_vm1, %v6657_v25 }
 0x6bb   : > { %6596 = vst.msk [vmem:[#allocation2 + $0x2f] sm:$0xff] %vm1949_vm7, %v6505_v15  ;;  %2813 = vrot.lane.b32.xlu0 %v13546_v20, %s9033_s20  ;;  %v13569_v15 = vld [vmem:[#allocation68_spill] sm:$0xff] }
 0x6bc   : > { %v6315_v27 = vpop.permute.xlu0 %6314  ;;  %2815 = vrot.lane.b32.xlu1 %v13547_v49, %s9033_s20 }
 0x6bd   : > { %6405 = vst.msk [vmem:[#allocation2 + $0x38] sm:$0xff] %vm1756_vm5, %v6315_v27 }
 0x6be   : > { %6598 = vst.msk [vmem:[#allocation2 + $0x3f] sm:$0xff] %vm1949_vm7, %v6509_v50  ;;  %v6325_v32 = vpop.permute.xlu1 %6324  ;;  %v13566_v50 = vld [vmem:[#allocation61_spill] sm:$0xff] }
 0x6bf   : > { %6410 = vst.msk [vmem:[#allocation2 + $0x60] sm:$0xff] %vm1756_vm5, %v6325_v32  ;;  %2817 = vrot.lane.b32.xlu0 %v13548_v12, %s9033_s20  ;;  %v13570_v12 = vld [vmem:[#allocation65_spill] sm:$0xff] }
 0x6c0   : > { %v6507_v40 = vpop.permute.xlu0 %6506  ;;  %2819 = vrot.lane.b32.xlu1 %v13549_v39, %s9033_s20  ;;  %v13571_v39 = vld [vmem:[#allocation67_spill] sm:$0xff] }
 0x6c1   : > { %6597 = vst.msk [vmem:[#allocation2 + $0x37] sm:$0xff] %vm1949_vm7, %v6507_v40 }
 0x6c2   : > { %v6321_v13 = vpop.permute.xlu1 %6320  ;;  %v6629_v60 = vld [vmem:[#allocation2 + $0x28] sm:$0xff] }
 0x6c3   : > { %6408 = vst.msk [vmem:[#allocation2 + $0x50] sm:$0xff] %vm1756_vm5, %v6321_v13  ;;  %2821 = vrot.lane.b32.xlu0 %v13550_v34, %s9033_s20  ;;  %v12456_v42 = vpack.c.bf16 %v6629_v60, %v6628_v2  ;;  %v13572_v2 = vld [vmem:[#allocation102_spill] sm:$0xff]  ;;  %v13573_v34 = vld [vmem:[#allocation104_spill] sm:$0xff] }
 0x6c4   : > { %v6327_v1 = vpop.permute.xlu0 %6326  ;;  %2823 = vrot.lane.b32.xlu1 %v13551_v28, %s9033_s20 }
 0x6c5   : > { %6411 = vst.msk [vmem:[#allocation2 + $0x68] sm:$0xff] %vm1756_vm5, %v6327_v1  ;;  %8720 = vmatmul.mubr.msk.bf16.vlgmr.msra.gmra.mxu0 %vm443_vm1, %v12456_v42  ;;  %8761 = vmatprep.mubr.msk.bf16.mxu1 %vm443_vm1, %v12456_v42  ;;  %v6632_v33 = vld [vmem:[#allocation2 + $0x40] sm:$0xff] }
 0x6c6   : > { %v6517_v21 = vpop.permute.xlu1 %6516  ;;  %8790 = vmatpush3.bf16.msra.mxu0 %v12243_v19  ;;  %v13554_v19 = vld [vmem:[#allocation49_spill] sm:$0xff] }
 0x6c7   : > { %2825 = vrot.lane.b32.xlu0 %v13552_v6, %s9033_s20  ;;  %8791 = vmatprep.subr.bf16.mxu0 %v8904_v58 }
 0x6c8   : > { %v6519_v26 = vpop.permute.xlu0 %6518  ;;  %2827 = vrot.lane.b32.xlu1 %v13553_v63, %s9033_s20  ;;  %v6630_v46 = vld [vmem:[#allocation2 + $0x30] sm:$0xff]  ;;  %v6631_v22 = vld [vmem:[#allocation2 + $0x38] sm:$0xff]  ;;  %v13575_v63 = vld [vmem:[#allocation103_spill] sm:$0xff] }
 0x6c9   : > { %6603 = vst.msk [vmem:[#allocation2 + $0x67] sm:$0xff] %vm1949_vm7, %v6519_v26  ;;  %v12474_v8 = vpack.c.bf16 %v6631_v22, %v6630_v46  ;;  %v13576_v22 = vld [vmem:[#allocation106_spill] sm:$0xff] }
 0x6ca   : > { %v6513_v38 = vpop.permute.xlu1 %6512  ;;  %8792 = vmatpush3.bf16.msra.mxu0 %v8904_v58 }
 0x6cb   : > { %6600 = vst.msk [vmem:[#allocation2 + $0x4f] sm:$0xff] %vm1949_vm7, %v6513_v38  ;;  %2829 = vrot.lane.b32.xlu0 %v13554_v19, %s9033_s20  ;;  %8723 = vmatprep.mubr.msk.bf16.mxu0 %vm443_vm1, %v12474_v8  ;;  %v13577_v38 = vld [vmem:[#allocation108_spill] sm:$0xff] }
 0x6cc   : > { %8762 = vmatmul.mubr.msk.bf16.gmra.mxu1 %vm443_vm1, %v12474_v8  ;;  %v6323_v4 = vpop.permute.xlu0 %6322  ;;  %2831 = vrot.lane.b32.xlu1 %v13555_v35, %s9033_s20 }
 0x6cd   : > { %6409 = vst.msk [vmem:[#allocation2 + $0x58] sm:$0xff] %vm1756_vm5, %v6323_v4  ;;  %8793 = vmatprep.subr.bf16.mxu0 %v8905_v16 }
 0x6ce   : > { %6602 = vst.msk [vmem:[#allocation2 + $0x5f] sm:$0xff] %vm1949_vm7, %v6517_v21  ;;  %v6333_v45 = vpop.permute.xlu1 %6332  ;;  %8794 = vmatpush3.bf16.msra.mxu0 %v8905_v16  ;;  %v13574_v21 = vld [vmem:[#allocation101_spill] sm:$0xff] }
 0x6cf   : > { %6414 = vst.msk [vmem:[#allocation2 + $0x80] sm:$0xff] %vm1756_vm5, %v6333_v45  ;;  %2833 = vrot.lane.b32.xlu0 %v13556_v51, %s9033_s20  ;;  %v13578_v51 = vld [vmem:[#allocation105_spill] sm:$0xff] }
 0x6d0   : > { %v6515_v47 = vpop.permute.xlu0 %6514  ;;  %2835 = vrot.lane.b32.xlu1 %v13557_v41, %s9033_s20  ;;  %v13579_v41 = vld [vmem:[#allocation107_spill] sm:$0xff] }
 0x6d1   : > { %6601 = vst.msk [vmem:[#allocation2 + $0x57] sm:$0xff] %vm1949_vm7, %v6515_v47 }
 0x6d2   : > { %v6329_v56 = vpop.permute.xlu1 %6328  ;;  %v6633_v18 = vld [vmem:[#allocation2 + $0x48] sm:$0xff] }
 0x6d3   : > { %6412 = vst.msk [vmem:[#allocation2 + $0x70] sm:$0xff] %vm1756_vm5, %v6329_v56  ;;  %2837 = vrot.lane.b32.xlu0 %v13558_v53, %s9033_s20  ;;  %v12499_v43 = vpack.c.bf16 %v6633_v18, %v6632_v33  ;;  %v13580_v33 = vld [vmem:[#allocation110_spill] sm:$0xff]  ;;  %v13581_v53 = vld [vmem:[#allocation112_spill] sm:$0xff] }
 0x6d4   : > { %v6335_v10 = vpop.permute.xlu0 %6334  ;;  %2839 = vrot.lane.b32.xlu1 %v13559_v59, %s9033_s20 }
 0x6d5   : > { %6415 = vst.msk [vmem:[#allocation2 + $0x88] sm:$0xff] %vm1756_vm5, %v6335_v10  ;;  %8724 = vmatmul.mubr.msk.bf16.gmra.mxu0 %vm443_vm1, %v12499_v43  ;;  %8765 = vmatprep.mubr.msk.bf16.mxu1 %vm443_vm1, %v12499_v43  ;;  %v6636_v31 = vld [vmem:[#allocation2 + $0x60] sm:$0xff] }
 0x6d6   : > { %v6525_v3 = vpop.permute.xlu1 %6524 }
 0x6d7   : > { %2841 = vrot.lane.b32.xlu0 %v13560_v55, %s9033_s20  ;;  %v13582_v55 = vld [vmem:[#allocation109_spill] sm:$0xff] }
 0x6d8   : > { %v6527_v14 = vpop.permute.xlu0 %6526  ;;  %2843 = vrot.lane.b32.xlu1 %v13561_v52, %s9033_s20  ;;  %v6634_v5 = vld [vmem:[#allocation2 + $0x50] sm:$0xff]  ;;  %v6635_v37 = vld [vmem:[#allocation2 + $0x58] sm:$0xff] }
 0x6d9   : > { %6607 = vst.msk [vmem:[#allocation2 + $0x87] sm:$0xff] %vm1949_vm7, %v6527_v14  ;;  %v12513_v57 = vpack.c.bf16 %v6635_v37, %v6634_v5  ;;  %v13583_v5 = vld [vmem:[#allocation111_spill] sm:$0xff] }
 0x6da   : > { %v6521_v11 = vpop.permute.xlu1 %6520 }
 0x6db   : > { %6604 = vst.msk [vmem:[#allocation2 + $0x6f] sm:$0xff] %vm1949_vm7, %v6521_v11  ;;  %2845 = vrot.lane.b32.xlu0 %v13562_v54, %s9033_s20  ;;  %8727 = vmatprep.mubr.msk.bf16.mxu0 %vm443_vm1, %v12513_v57  ;;  %v13584_v11 = vld [vmem:[#allocation114_spill] sm:$0xff] }
 0x6dc   : > { %8766 = vmatmul.mubr.msk.bf16.gmra.mxu1 %vm443_vm1, %v12513_v57  ;;  %v6331_v61 = vpop.permute.xlu0 %6330  ;;  %2847 = vrot.lane.b32.xlu1 %v13563_v29, %s9033_s20 }
 0x6dd   : > { %6413 = vst.msk [vmem:[#allocation2 + $0x78] sm:$0xff] %vm1756_vm5, %v6331_v61  ;;  %v13585_v61 = vld [vmem:[#allocation116_spill] sm:$0xff] }
 0x6de   : > { %6606 = vst.msk [vmem:[#allocation2 + $0x7f] sm:$0xff] %vm1949_vm7, %v6525_v3  ;;  %v6341_v23 = vpop.permute.xlu1 %6340 }
 0x6df   : > { %6418 = vst.msk [vmem:[#allocation2 + $0xa0] sm:$0xff] %vm1756_vm5, %v6341_v23  ;;  %2849 = vrot.lane.b32.xlu0 %v13564_v0, %s9033_s20 }
 0x6e0   : > { %v6523_v9 = vpop.permute.xlu0 %6522  ;;  %2851 = vrot.lane.b32.xlu1 %v13565_v30, %s9033_s20  ;;  %v13586_v30 = vld [vmem:[#allocation113_spill] sm:$0xff] }
 0x6e1   : > { %6605 = vst.msk [vmem:[#allocation2 + $0x77] sm:$0xff] %vm1949_vm7, %v6523_v9 }
 0x6e2   : > { %v6337_v24 = vpop.permute.xlu1 %6336  ;;  %v6637_v62 = vld [vmem:[#allocation2 + $0x68] sm:$0xff] }
 0x6e3   : > { %6416 = vst.msk [vmem:[#allocation2 + $0x90] sm:$0xff] %vm1756_vm5, %v6337_v24  ;;  %2853 = vrot.lane.b32.xlu0 %v13566_v50, %s9033_s20  ;;  %v12535_v36 = vpack.c.bf16 %v6637_v62, %v6636_v31  ;;  %v13587_v31 = vld [vmem:[#allocation115_spill] sm:$0xff]  ;;  %v13588_v50 = vld [vmem:[#allocation118_spill] sm:$0xff] }
 0x6e4   : > { %v6343_v44 = vpop.permute.xlu0 %6342  ;;  %2855 = vrot.lane.b32.xlu1 %v13567_v7, %s9033_s20  ;;  %v13589_v7 = vld [vmem:[#allocation120_spill] sm:$0xff] }
 0x6e5   : > { %6419 = vst.msk [vmem:[#allocation2 + $0xa8] sm:$0xff] %vm1756_vm5, %v6343_v44  ;;  %8728 = vmatmul.mubr.msk.bf16.gmra.mxu0 %vm443_vm1, %v12535_v36  ;;  %8769 = vmatprep.mubr.msk.bf16.mxu1 %vm443_vm1, %v12535_v36  ;;  %v6640_v1 = vld [vmem:[#allocation2 + $0x80] sm:$0xff] }
 0x6e6   : > { %v6533_v48 = vpop.permute.xlu1 %6532 }
 0x6e7   : > { %2857 = vrot.lane.b32.xlu0 %v13568_v17, %s9033_s20 }
 0x6e8   : > { %v6535_v25 = vpop.permute.xlu0 %6534  ;;  %2859 = vrot.lane.b32.xlu1 %v13569_v15, %s9033_s20  ;;  %v6638_v20 = vld [vmem:[#allocation2 + $0x70] sm:$0xff]  ;;  %v6639_v27 = vld [vmem:[#allocation2 + $0x78] sm:$0xff] }
 0x6e9   : > { %6611 = vst.msk [vmem:[#allocation2 + $0xa7] sm:$0xff] %vm1949_vm7, %v6535_v25  ;;  %v12549_v49 = vpack.c.bf16 %v6639_v27, %v6638_v20  ;;  %v13590_v15 = vld [vmem:[#allocation117_spill] sm:$0xff] }
 0x6ea   : > { %v6529_v32 = vpop.permute.xlu1 %6528 }
 0x6eb   : > { %6608 = vst.msk [vmem:[#allocation2 + $0x8f] sm:$0xff] %vm1949_vm7, %v6529_v32  ;;  %2861 = vrot.lane.b32.xlu0 %v13570_v12, %s9033_s20  ;;  %8731 = vmatprep.mubr.msk.bf16.mxu0 %vm443_vm1, %v12549_v49  ;;  %v13591_v32 = vld [vmem:[#allocation119_spill] sm:$0xff] }
 0x6ec   : > { %8770 = vmatmul.mubr.msk.bf16.gmra.mxu1 %vm443_vm1, %v12549_v49  ;;  %v6339_v40 = vpop.permute.xlu0 %6338  ;;  %2863 = vrot.lane.b32.xlu1 %v13571_v39, %s9033_s20  ;;  %v13593_v39 = vld [vmem:[#allocation124_spill] sm:$0xff]  ;;  %s8007_s20 = sshll.u32 %s9132_s29, 12  ;;  %s13056_s29 = scalar_lea.sflag [#allocation4], %s432_s23 }
 0x6ed   : > { %6417 = vst.msk [vmem:[#allocation2 + $0x98] sm:$0xff] %vm1756_vm5, %v6339_v40  ;;  %v13592_v40 = vld [vmem:[#allocation122_spill] sm:$0xff]  ;;  %s13048_s16 = scalar_lea.hbm %s13109_s13, %s8007_s20 }
 0x6ee   : > { %6610 = vst.msk [vmem:[#allocation2 + $0x9f] sm:$0xff] %vm1949_vm7, %v6533_v48  ;;  %v6349_v13 = vpop.permute.xlu1 %6348 }
 0x6ef   : > { %6422 = vst.msk [vmem:[#allocation2 + $0xc0] sm:$0xff] %vm1756_vm5, %v6349_v13  ;;  %4941 = vrot.lane.b32.xlu0 %v13572_v2, %s9037_s24 }
 0x6f0   : > { %v6531_v60 = vpop.permute.xlu0 %6530  ;;  %4943 = vrot.lane.b32.xlu1 %v13573_v34, %s9037_s24 }
 0x6f1   : > { %6609 = vst.msk [vmem:[#allocation2 + $0x97] sm:$0xff] %vm1949_vm7, %v6531_v60 }
 0x6f2   : > { %v6345_v58 = vpop.permute.xlu1 %6344  ;;  %v6641_v28 = vld [vmem:[#allocation2 + $0x88] sm:$0xff] }
 0x6f3   : > { %6420 = vst.msk [vmem:[#allocation2 + $0xb0] sm:$0xff] %vm1756_vm5, %v6345_v58  ;;  %4945 = vrot.lane.b32.xlu0 %v13574_v21, %s9037_s24  ;;  %v12571_v6 = vpack.c.bf16 %v6641_v28, %v6640_v1  ;;  %v13594_v1 = vld [vmem:[#allocation121_spill] sm:$0xff]  ;;  %v13595_v28 = vld [vmem:[#allocation123_spill] sm:$0xff] }
 0x6f4   : > { %v6351_v26 = vpop.permute.xlu0 %6350  ;;  %4947 = vrot.lane.b32.xlu1 %v13575_v63, %s9037_s24 }
 0x6f5   : > { %6423 = vst.msk [vmem:[#allocation2 + $0xc8] sm:$0xff] %vm1756_vm5, %v6351_v26  ;;  %8732 = vmatmul.mubr.msk.bf16.gmra.mxu0 %vm443_vm1, %v12571_v6  ;;  %8773 = vmatprep.mubr.msk.bf16.mxu1 %vm443_vm1, %v12571_v6  ;;  %v6644_v59 = vld [vmem:[#allocation2 + $0xa0] sm:$0xff] }
 0x6f6   : > { %v6541_v46 = vpop.permute.xlu1 %6540 }
 0x6f7   : > { %4949 = vrot.lane.b32.xlu0 %v13576_v22, %s9037_s24  ;;  %v13596_v22 = vld [vmem:[#allocation126_spill] sm:$0xff] }
 0x6f8   : > { %v6543_v16 = vpop.permute.xlu0 %6542  ;;  %4951 = vrot.lane.b32.xlu1 %v13577_v38, %s9037_s24  ;;  %v6642_v19 = vld [vmem:[#allocation2 + $0x90] sm:$0xff]  ;;  %v6643_v4 = vld [vmem:[#allocation2 + $0x98] sm:$0xff] }
 0x6f9   : > { %6615 = vst.msk [vmem:[#allocation2 + $0xc7] sm:$0xff] %vm1949_vm7, %v6543_v16  ;;  %v12585_v35 = vpack.c.bf16 %v6643_v4, %v6642_v19  ;;  %v13597_v38 = vld [vmem:[#allocation128_spill] sm:$0xff] }
 0x6fa   : > { %v6537_v45 = vpop.permute.xlu1 %6536 }
 0x6fb   : > { %6612 = vst.msk [vmem:[#allocation2 + $0xaf] sm:$0xff] %vm1949_vm7, %v6537_v45  ;;  %4953 = vrot.lane.b32.xlu0 %v13578_v51, %s9037_s24  ;;  %8735 = vmatprep.mubr.msk.bf16.mxu0 %vm443_vm1, %v12585_v35  ;;  %v13598_v45 = vld [vmem:[#allocation125_spill] sm:$0xff]  ;;  %v13599_v51 = vld [vmem:[#allocation127_spill] sm:$0xff] }
 0x6fc   : > { %8774 = vmatmul.mubr.msk.bf16.gmra.mxu1 %vm443_vm1, %v12585_v35  ;;  %v6347_v47 = vpop.permute.xlu0 %6346  ;;  %4955 = vrot.lane.b32.xlu1 %v13579_v41, %s9037_s24 }
 0x6fd   : > { %6421 = vst.msk [vmem:[#allocation2 + $0xb8] sm:$0xff] %vm1756_vm5, %v6347_v47 }
 0x6fe   : > { %6614 = vst.msk [vmem:[#allocation2 + $0xbf] sm:$0xff] %vm1949_vm7, %v6541_v46  ;;  %v6357_v56 = vpop.permute.xlu1 %6356 }
 0x6ff   : > { %6426 = vst.msk [vmem:[#allocation2 + $0xe0] sm:$0xff] %vm1756_vm5, %v6357_v56  ;;  %4957 = vrot.lane.b32.xlu0 %v13580_v33, %s9037_s24 }
 0x700   : > { %v6539_v18 = vpop.permute.xlu0 %6538  ;;  %4959 = vrot.lane.b32.xlu1 %v13581_v53, %s9037_s24 }
 0x701   : > { %6613 = vst.msk [vmem:[#allocation2 + $0xb7] sm:$0xff] %vm1949_vm7, %v6539_v18 }
 0x702   : > { %v6353_v10 = vpop.permute.xlu1 %6352  ;;  %v6645_v3 = vld [vmem:[#allocation2 + $0xa8] sm:$0xff] }
 0x703   : > { %6424 = vst.msk [vmem:[#allocation2 + $0xd0] sm:$0xff] %vm1756_vm5, %v6353_v10  ;;  %4961 = vrot.lane.b32.xlu0 %v13582_v55, %s9037_s24  ;;  %v12607_v14 = vpack.c.bf16 %v6645_v3, %v6644_v59  ;;  %v13600_v59 = vld [vmem:[#allocation130_spill] sm:$0xff]  ;;  %v13601_v55 = vld [vmem:[#allocation132_spill] sm:$0xff] }
 0x704   : > { %v6359_v52 = vpop.permute.xlu0 %6358  ;;  %4963 = vrot.lane.b32.xlu1 %v13583_v5, %s9037_s24 }
 0x705   : > { %6427 = vst.msk [vmem:[#allocation2 + $0xe8] sm:$0xff] %vm1756_vm5, %v6359_v52  ;;  %8736 = vmatmul.mubr.msk.bf16.gmra.mxu0 %vm443_vm1, %v12607_v14  ;;  %8777 = vmatprep.mubr.msk.bf16.mxu1 %vm443_vm1, %v12607_v14  ;;  %v6648_v17 = vld [vmem:[#allocation2 + $0xc0] sm:$0xff] }
 0x706   : > { %v6549_v37 = vpop.permute.xlu1 %6548 }
 0x707   : > { %4965 = vrot.lane.b32.xlu0 %v13584_v11, %s9037_s24  ;;  %v13603_v11 = vld [vmem:[#allocation131_spill] sm:$0xff] }
 0x708   : > { %v6551_v54 = vpop.permute.xlu0 %6550  ;;  %4967 = vrot.lane.b32.xlu1 %v13585_v61, %s9037_s24  ;;  %v6646_v29 = vld [vmem:[#allocation2 + $0xb0] sm:$0xff]  ;;  %v6647_v23 = vld [vmem:[#allocation2 + $0xb8] sm:$0xff] }
 0x709   : > { %6619 = vst.msk [vmem:[#allocation2 + $0xe7] sm:$0xff] %vm1949_vm7, %v6551_v54  ;;  %v12621_v0 = vpack.c.bf16 %v6647_v23, %v6646_v29 }
 0x70a   : > { %v6545_v9 = vpop.permute.xlu1 %6544 }
 0x70b   : > { %6616 = vst.msk [vmem:[#allocation2 + $0xcf] sm:$0xff] %vm1949_vm7, %v6545_v9  ;;  %4969 = vrot.lane.b32.xlu0 %v13586_v30, %s9037_s24  ;;  %8739 = vmatprep.mubr.msk.bf16.mxu0 %vm443_vm1, %v12621_v0 }
 0x70c   : > { %8778 = vmatmul.mubr.msk.bf16.gmra.mxu1 %vm443_vm1, %v12621_v0  ;;  %v6355_v24 = vpop.permute.xlu0 %6354  ;;  %4971 = vrot.lane.b32.xlu1 %v13587_v31, %s9037_s24 }
 0x70d   : > { %6425 = vst.msk [vmem:[#allocation2 + $0xd8] sm:$0xff] %vm1756_vm5, %v6355_v24 }
 0x70e   : > { %6618 = vst.msk [vmem:[#allocation2 + $0xdf] sm:$0xff] %vm1949_vm7, %v6549_v37  ;;  %v6365_v62 = vpop.permute.xlu1 %6364  ;;  %v13602_v37 = vld [vmem:[#allocation129_spill] sm:$0xff] }
 0x70f   : > { %6430 = vst.msk [vmem:[#allocation2 + $0x100] sm:$0xff] %vm1756_vm5, %v6365_v62  ;;  %4973 = vrot.lane.b32.xlu0 %v13588_v50, %s9037_s24 }
 0x710   : > { %v6547_v44 = vpop.permute.xlu0 %6546  ;;  %4975 = vrot.lane.b32.xlu1 %v13589_v7, %s9037_s24 }
 0x711   : > { %6617 = vst.msk [vmem:[#allocation2 + $0xd7] sm:$0xff] %vm1949_vm7, %v6547_v44 }
 0x712   : > { %v6361_v48 = vpop.permute.xlu1 %6360  ;;  %v6649_v25 = vld [vmem:[#allocation2 + $0xc8] sm:$0xff] }
 0x713   : > { %6428 = vst.msk [vmem:[#allocation2 + $0xf0] sm:$0xff] %vm1756_vm5, %v6361_v48  ;;  %4977 = vrot.lane.b32.xlu0 %v13590_v15, %s9037_s24  ;;  %v12643_v20 = vpack.c.bf16 %v6649_v25, %v6648_v17 }
 0x714   : > { %v6367_v27 = vpop.permute.xlu0 %6366  ;;  %4979 = vrot.lane.b32.xlu1 %v13591_v32, %s9037_s24  ;;  %v7127_v32 = vld [vmem:[#allocation2 + $0x110] sm:$0xff] }
 0x715   : > { %6431 = vst.msk [vmem:[#allocation2 + $0x108] sm:$0xff] %vm1756_vm5, %v6367_v27  ;;  %8740 = vmatmul.mubr.msk.bf16.gmra.mxu0 %vm443_vm1, %v12643_v20  ;;  %8781 = vmatprep.mubr.msk.bf16.mxu1 %vm443_vm1, %v12643_v20  ;;  %v6652_v63 = vld [vmem:[#allocation2 + $0xe0] sm:$0xff] }
 0x716   : > { %v6553_v12 = vpop.permute.xlu1 %6552 }
 0x717   : > { %6620 = vst.msk [vmem:[#allocation2 + $0xef] sm:$0xff] %vm1949_vm7, %v6553_v12  ;;  %4981 = vrot.lane.b32.xlu0 %v13592_v40, %s9037_s24  ;;  %v7128_v12 = vld [vmem:[#allocation2 + $0x118] sm:$0xff] }
 0x718   : > { %4983 = vrot.lane.b32.xlu1 %v13593_v39, %s9037_s24  ;;  %v6363_v13 = vpop.permute.xlu0 %6362  ;;  %v6650_v2 = vld [vmem:[#allocation2 + $0xd0] sm:$0xff]  ;;  %v6651_v60 = vld [vmem:[#allocation2 + $0xd8] sm:$0xff] }
 0x719   : > { %6429 = vst.msk [vmem:[#allocation2 + $0xf8] sm:$0xff] %vm1756_vm5, %v6363_v13  ;;  %v12658_v34 = vpack.c.bf16 %v6651_v60, %v6650_v2  ;;  %v7144_v13 = vpack.c.bf16 %v7128_v12, %v7127_v32 }
 0x71a   : > { %v6555_v58 = vpop.permute.xlu1 %6554 }
 0x71b   : > { %6621 = vst.msk [vmem:[#allocation2 + $0xf7] sm:$0xff] %vm1949_vm7, %v6555_v58  ;;  %4985 = vrot.lane.b32.xlu0 %v13594_v1, %s9037_s24  ;;  %8743 = vmatprep.mubr.msk.bf16.mxu0 %vm443_vm1, %v12658_v34 }
 0x71c   : > { %8782 = vmatmul.mubr.msk.bf16.gmra.mxu1 %vm443_vm1, %v12658_v34  ;;  %4987 = vrot.lane.b32.xlu1 %v13595_v28, %s9037_s24  ;;  %v6557_v21 = vpop.permute.xlu0 %6556 }
 0x71d   : > { %6622 = vst.msk [vmem:[#allocation2 + $0xff] sm:$0xff] %vm1949_vm7, %v6557_v21 }
 0x71e   : > { %v6559_v26 = vpop.permute.xlu1 %6558  ;;  %v6653_v46 = vld [vmem:[#allocation2 + $0xe8] sm:$0xff] }
 0x71f   : > { %6623 = vst.msk [vmem:[#allocation2 + $0x107] sm:$0xff] %vm1949_vm7, %v6559_v26  ;;  %4989 = vrot.lane.b32.xlu0 %v13596_v22, %s9037_s24  ;;  %v12673_v16 = vpack.c.bf16 %v6653_v46, %v6652_v63 }
 0x720   : > { %4991 = vrot.lane.b32.xlu1 %v13597_v38, %s9037_s24  ;;  %v2802_v19 = vpop.permute.xlu0 %2801 }
 0x721   : > { %2898 = vst.msk [vmem:[%s12306_s30] sm:$0xff] %vm2897_vm0, %v2802_v19  ;;  %8744 = vmatmul.mubr.msk.bf16.gmra.mxu0 %vm443_vm1, %v12673_v16  ;;  %8785 = vmatprep.mubr.msk.bf16.mxu1 %vm443_vm1, %v12673_v16 }
 0x722   : > { %v2804_v4 = vpop.permute.xlu1 %2803  ;;  %v6654_v41 = vld [vmem:[#allocation2 + $0xf0] sm:$0xff] }
 0x723   : > { %2899 = vst.msk [vmem:[%s12306_s30 + $0x8] sm:$0xff] %vm2897_vm0, %v2804_v4  ;;  %4993 = vrot.lane.b32.xlu0 %v13598_v45, %s9037_s24 }
 0x724   : > { %4995 = vrot.lane.b32.xlu1 %v13599_v51, %s9037_s24  ;;  %v2806_v47 = vpop.permute.xlu0 %2805  ;;  %v6655_v56 = vld [vmem:[#allocation2 + $0xf8] sm:$0xff] }
 0x725   : > { %2900 = vst.msk [vmem:[%s12306_s30 + $0x10] sm:$0xff] %vm2897_vm0, %v2806_v47  ;;  %v12691_v33 = vpack.c.bf16 %v6655_v56, %v6654_v41 }
 0x726   : > { %v2808_v18 = vpop.permute.xlu1 %2807  ;;  %v6678_v53 = vld [vmem:[#allocation2 + $0x100] sm:$0xff]  ;;  %v6679_v10 = vld [vmem:[#allocation2 + $0x108] sm:$0xff] }
 0x727   : > { %2901 = vst.msk [vmem:[%s12306_s30 + $0x18] sm:$0xff] %vm2897_vm0, %v2808_v18  ;;  %4997 = vrot.lane.b32.xlu0 %v13600_v59, %s9037_s24  ;;  %8747 = vmatprep.mubr.msk.bf16.mxu0 %vm443_vm1, %v12691_v33  ;;  %v12699_v3 = vpack.c.bf16 %v6679_v10, %v6678_v53 }
 0x728   : > { %8786 = vmatmul.mubr.msk.bf16.gmra.mxu1 %vm443_vm1, %v12691_v33  ;;  %4999 = vrot.lane.b32.xlu1 %v13601_v55, %s9037_s24  ;;  %v2810_v52 = vpop.permute.xlu0 %2809 }
 0x729   : > { %2902 = vst.msk [vmem:[%s12306_s30 + $0x20] sm:$0xff] %vm2897_vm0, %v2810_v52  ;;  %8748 = vmatmul.mubr.msk.bf16.gmra.mxu0 %vm443_vm1, %v12699_v3 }
 0x72a   : > { %v2812_v5 = vpop.permute.xlu1 %2811  ;;  %8795 = vmatprep.mubr.msk.bf16.mxu0 %vm443_vm1, %v12456_v42 }
 0x72b   : > { %2903 = vst.msk [vmem:[%s12306_s30 + $0x28] sm:$0xff] %vm2897_vm0, %v2812_v5  ;;  %5001 = vrot.lane.b32.xlu0 %v13602_v37, %s9037_s24 }
 0x72c   : > { %5003 = vrot.lane.b32.xlu1 %v13603_v11, %s9037_s24  ;;  %s9038_s24 = smov [#allocation3]  }
 0x72d   : > { %v2814_v54 = vpop.permute.xlu0 %2813  ;;  %s8974_s2 = sshll.u32 %s9038_s24, 4  ;;  %s8975_s2 = int_to_ptr.vmem [resolvable:$false] %s8974_s2 }
 0x72e   : > { %2904 = vst.msk [vmem:[%s12306_s30 + $0x30] sm:$0xff] %vm2897_vm0, %v2814_v54  ;;  %v2816_v61 = vpop.permute.xlu1 %2815  ;;  %s8976_s20 = scalar_lea.vmem %s8975_s2, 8192 }
 0x72f   : > { %2905 = vst.msk [vmem:[%s12306_s30 + $0x38] sm:$0xff] %vm2897_vm0, %v2816_v61 }
 0x731   : > { %v2818_v29 = vpop.permute.xlu0 %2817  ;;  %8796 = vmatmul.mubr.msk.bf16.vlgmr.msra.gmra.mxu0 %vm443_vm1, %v12474_v8 }
 0x732   : > { %2906 = vst.msk [vmem:[%s12306_s30 + $0x40] sm:$0xff] %vm2897_vm0, %v2818_v29  ;;  %v2820_v42 = vpop.permute.xlu1 %2819  ;;  %8799 = vmatprep.mubr.msk.bf16.mxu0 %vm443_vm1, %v12499_v43 }
 0x733   : > { %2907 = vst.msk [vmem:[%s12306_s30 + $0x48] sm:$0xff] %vm2897_vm0, %v2820_v42 }
 0x735   : > { %v2822_v23 = vpop.permute.xlu0 %2821 }
 0x736   : > { %2908 = vst.msk [vmem:[%s12306_s30 + $0x50] sm:$0xff] %vm2897_vm0, %v2822_v23  ;;  %v2824_v9 = vpop.permute.xlu1 %2823 }
 0x737   : > { %2909 = vst.msk [vmem:[%s12306_s30 + $0x58] sm:$0xff] %vm2897_vm0, %v2824_v9 }
 0x739   : > { %v2826_v30 = vpop.permute.xlu0 %2825  ;;  %8800 = vmatmul.mubr.msk.bf16.gmra.mxu0 %vm443_vm1, %v12513_v57 }
 0x73a   : > { %2910 = vst.msk [vmem:[%s12306_s30 + $0x60] sm:$0xff] %vm2897_vm0, %v2826_v30  ;;  %v2828_v8 = vpop.permute.xlu1 %2827  ;;  %8803 = vmatprep.mubr.msk.bf16.mxu0 %vm443_vm1, %v12535_v36 }
 0x73b   : > { %2911 = vst.msk [vmem:[%s12306_s30 + $0x68] sm:$0xff] %vm2897_vm0, %v2828_v8 }
 0x73d   : > { %v2830_v43 = vpop.permute.xlu0 %2829 }
 0x73e   : > { %2912 = vst.msk [vmem:[%s12306_s30 + $0x70] sm:$0xff] %vm2897_vm0, %v2830_v43  ;;  %v2832_v24 = vpop.permute.xlu1 %2831 }
 0x73f   : > { %2913 = vst.msk [vmem:[%s12306_s30 + $0x78] sm:$0xff] %vm2897_vm0, %v2832_v24 }
 0x741   : > { %v2834_v31 = vpop.permute.xlu0 %2833  ;;  %8804 = vmatmul.mubr.msk.bf16.gmra.mxu0 %vm443_vm1, %v12549_v49 }
 0x742   : > { %2914 = vst.msk [vmem:[%s12306_s30 + $0x80] sm:$0xff] %vm2897_vm0, %v2834_v31  ;;  %v2836_v57 = vpop.permute.xlu1 %2835  ;;  %8807 = vmatprep.mubr.msk.bf16.mxu0 %vm443_vm1, %v12571_v6 }
 0x743   : > { %2915 = vst.msk [vmem:[%s12306_s30 + $0x88] sm:$0xff] %vm2897_vm0, %v2836_v57 }
 0x745   : > { %v2838_v36 = vpop.permute.xlu0 %2837 }
 0x746   : > { %2916 = vst.msk [vmem:[%s12306_s30 + $0x90] sm:$0xff] %vm2897_vm0, %v2838_v36  ;;  %v2840_v62 = vpop.permute.xlu1 %2839 }
 0x747   : > { %2917 = vst.msk [vmem:[%s12306_s30 + $0x98] sm:$0xff] %vm2897_vm0, %v2840_v62 }
 0x749   : > { %v2842_v50 = vpop.permute.xlu0 %2841  ;;  %8808 = vmatmul.mubr.msk.bf16.gmra.mxu0 %vm443_vm1, %v12585_v35 }
 0x74a   : > { %2918 = vst.msk [vmem:[%s12306_s30 + $0xa0] sm:$0xff] %vm2897_vm0, %v2842_v50  ;;  %v2844_v49 = vpop.permute.xlu1 %2843  ;;  %8811 = vmatprep.mubr.msk.bf16.mxu0 %vm443_vm1, %v12607_v14 }
 0x74b   : > { %2919 = vst.msk [vmem:[%s12306_s30 + $0xa8] sm:$0xff] %vm2897_vm0, %v2844_v49 }
 0x74d   : > { %v2846_v6 = vpop.permute.xlu0 %2845 }
 0x74e   : > { %2920 = vst.msk [vmem:[%s12306_s30 + $0xb0] sm:$0xff] %vm2897_vm0, %v2846_v6  ;;  %v2848_v44 = vpop.permute.xlu1 %2847 }
 0x74f   : > { %2921 = vst.msk [vmem:[%s12306_s30 + $0xb8] sm:$0xff] %vm2897_vm0, %v2848_v44 }
 0x751   : > { %v2850_v7 = vpop.permute.xlu0 %2849  ;;  %8812 = vmatmul.mubr.msk.bf16.gmra.mxu0 %vm443_vm1, %v12621_v0 }
 0x752   : > { %2922 = vst.msk [vmem:[%s12306_s30 + $0xc0] sm:$0xff] %vm2897_vm0, %v2850_v7  ;;  %v2852_v35 = vpop.permute.xlu1 %2851  ;;  %8815 = vmatprep.mubr.msk.bf16.mxu0 %vm443_vm1, %v12643_v20 }
 0x753   : > { %2923 = vst.msk [vmem:[%s12306_s30 + $0xc8] sm:$0xff] %vm2897_vm0, %v2852_v35 }
 0x755   : > { %v2854_v14 = vpop.permute.xlu0 %2853 }
 0x756   : > { %2924 = vst.msk [vmem:[%s12306_s30 + $0xd0] sm:$0xff] %vm2897_vm0, %v2854_v14  ;;  %v2856_v48 = vpop.permute.xlu1 %2855 }
 0x757   : > { %2925 = vst.msk [vmem:[%s12306_s30 + $0xd8] sm:$0xff] %vm2897_vm0, %v2856_v48 }
 0x759   : > { %v2858_v17 = vpop.permute.xlu0 %2857  ;;  %8816 = vmatmul.mubr.msk.bf16.gmra.mxu0 %vm443_vm1, %v12658_v34 }
 0x75a   : > { %2926 = vst.msk [vmem:[%s12306_s30 + $0xe0] sm:$0xff] %vm2897_vm0, %v2858_v17  ;;  %v2860_v0 = vpop.permute.xlu1 %2859  ;;  %8819 = vmatprep.mubr.msk.bf16.mxu0 %vm443_vm1, %v12673_v16 }
 0x75b   : > { %2927 = vst.msk [vmem:[%s12306_s30 + $0xe8] sm:$0xff] %vm2897_vm0, %v2860_v0 }
 0x75d   : > { %v2862_v25 = vpop.permute.xlu0 %2861 }
 0x75e   : > { %2928 = vst.msk [vmem:[%s12306_s30 + $0xf0] sm:$0xff] %vm2897_vm0, %v2862_v25  ;;  %v2864_v15 = vpop.permute.xlu1 %2863 }
 0x75f   : > { %2929 = vst.msk [vmem:[%s12306_s30 + $0xf8] sm:$0xff] %vm2897_vm0, %v2864_v15 }
 0x761   : > { %v4942_v20 = vpop.permute.xlu0 %4941  ;;  %8820 = vmatmul.mubr.msk.bf16.gmra.mxu0 %vm443_vm1, %v12691_v33 }
 0x762   : > { %5038 = vst.msk [vmem:[%s12306_s30] sm:$0xff] %vm5037_vm10, %v4942_v20  ;;  %v4944_v27 = vpop.permute.xlu1 %4943  ;;  %8823 = vmatprep.mubr.msk.bf16.mxu0 %vm443_vm1, %v12699_v3 }
 0x763   : > { %5039 = vst.msk [vmem:[%s12306_s30 + $0x8] sm:$0xff] %vm5037_vm10, %v4944_v27 }
 0x765   : > { %v4946_v40 = vpop.permute.xlu0 %4945 }
 0x766   : > { %5040 = vst.msk [vmem:[%s12306_s30 + $0x10] sm:$0xff] %vm5037_vm10, %v4946_v40  ;;  %v4948_v39 = vpop.permute.xlu1 %4947 }
 0x767   : > { %5041 = vst.msk [vmem:[%s12306_s30 + $0x18] sm:$0xff] %vm5037_vm10, %v4948_v39 }
 0x769   : > { %v4950_v2 = vpop.permute.xlu0 %4949  ;;  %8824 = vmatmul.mubr.msk.bf16.gmra.mxu0 %vm443_vm1, %v7144_v13  ;;  %vm7539_vm1 = vcmask 326912  }
 0x76a   : > { %5042 = vst.msk [vmem:[%s12306_s30 + $0x20] sm:$0xff] %vm5037_vm10, %v4950_v2  ;;  %v4952_v60 = vpop.permute.xlu1 %4951 }
 0x76b   : > { %5043 = vst.msk [vmem:[%s12306_s30 + $0x28] sm:$0xff] %vm5037_vm10, %v4952_v60 }
 0x76d   : > { %v4954_v34 = vpop.permute.xlu0 %4953 }
 0x76e   : > { %5044 = vst.msk [vmem:[%s12306_s30 + $0x30] sm:$0xff] %vm5037_vm10, %v4954_v34  ;;  %v4956_v58 = vpop.permute.xlu1 %4955 }
 0x76f   : > { %5045 = vst.msk [vmem:[%s12306_s30 + $0x38] sm:$0xff] %vm5037_vm10, %v4956_v58 }
 0x771   : > { %v4958_v1 = vpop.permute.xlu0 %4957 }
 0x772   : > { %5046 = vst.msk [vmem:[%s12306_s30 + $0x40] sm:$0xff] %vm5037_vm10, %v4958_v1  ;;  %v4960_v28 = vpop.permute.xlu1 %4959 }
 0x773   : > { %5047 = vst.msk [vmem:[%s12306_s30 + $0x48] sm:$0xff] %vm5037_vm10, %v4960_v28 }
 0x775   : > { %v4962_v21 = vpop.permute.xlu0 %4961 }
 0x776   : > { %5048 = vst.msk [vmem:[%s12306_s30 + $0x50] sm:$0xff] %vm5037_vm10, %v4962_v21  ;;  %v4964_v26 = vpop.permute.xlu1 %4963 }
 0x777   : > { %5049 = vst.msk [vmem:[%s12306_s30 + $0x58] sm:$0xff] %vm5037_vm10, %v4964_v26 }
 0x779   : > { %v4966_v63 = vpop.permute.xlu0 %4965 }
 0x77a   : > { %5050 = vst.msk [vmem:[%s12306_s30 + $0x60] sm:$0xff] %vm5037_vm10, %v4966_v63  ;;  %v4968_v46 = vpop.permute.xlu1 %4967  ;;  %v8759_v57 = vpop.f32.mrf.mxu1 }
 0x77b   : > { %5051 = vst.msk [vmem:[%s12306_s30 + $0x68] sm:$0xff] %vm5037_vm10, %v4968_v46 }
 0x77c   : > { %v6970_v62 = vpop.f32.mrf.mxu1 }
 0x77d   : > { %v4970_v22 = vpop.permute.xlu0 %4969 }
 0x77e   : > { %5052 = vst.msk [vmem:[%s12306_s30 + $0x70] sm:$0xff] %vm5037_vm10, %v4970_v22  ;;  %v4972_v16 = vpop.permute.xlu1 %4971  ;;  %v8760_v49 = vpop.f32.mrf.mxu1 }
 0x77f   : > { %5053 = vst.msk [vmem:[%s12306_s30 + $0x78] sm:$0xff] %vm5037_vm10, %v4972_v16 }
 0x780   : > { %v6973_v44 = vpop.f32.mrf.mxu1 }
 0x781   : > { %v4974_v38 = vpop.permute.xlu0 %4973 }
 0x782   : > { %5054 = vst.msk [vmem:[%s12306_s30 + $0x80] sm:$0xff] %vm5037_vm10, %v4974_v38  ;;  %v4976_v19 = vpop.permute.xlu1 %4975 }
 0x783   : > { %5055 = vst.msk [vmem:[%s12306_s30 + $0x88] sm:$0xff] %vm5037_vm10, %v4976_v19 }
 0x785   : > { %v4978_v4 = vpop.permute.xlu0 %4977  ;;  %v12844_v33 = vpop.f32.mrf.mxu0 }
 0x786   : > { %5056 = vst.msk [vmem:[%s12306_s30 + $0x90] sm:$0xff] %vm5037_vm10, %v4978_v4  ;;  %v4980_v45 = vpop.permute.xlu1 %4979  ;;  %v6979_v22 = vadd.f32 %v8759_v57, %v12844_v33 }
 0x787   : > { %5057 = vst.msk [vmem:[%s12306_s30 + $0x98] sm:$0xff] %vm5037_vm10, %v4980_v45  ;;  %v12850_v10 = vpop.f32.mrf.mxu0 }
 0x788   : > { %v6971_v45 = vadd.f32 %v6970_v62, %v12850_v10 }
 0x789   : > { %v4982_v51 = vpop.permute.xlu0 %4981  ;;  %v8722_v55 = vpop.f32.mrf.mxu0 }
 0x78a   : > { %5058 = vst.msk [vmem:[%s12306_s30 + $0xa0] sm:$0xff] %vm5037_vm10, %v4982_v51  ;;  %v4984_v47 = vpop.permute.xlu1 %4983  ;;  %v6982_v51 = vadd.f32 %v8760_v49, %v8722_v55 }
 0x78b   : > { %5059 = vst.msk [vmem:[%s12306_s30 + $0xa8] sm:$0xff] %vm5037_vm10, %v4984_v47  ;;  %v6791_v37 = vpop.f32.mrf.mxu0 }
 0x78c   : > { %v8763_v35 = vpop.f32.mrf.mxu1 }
 0x78d   : > { %v4986_v41 = vpop.permute.xlu0 %4985 }
 0x78e   : > { %5060 = vst.msk [vmem:[%s12306_s30 + $0xb0] sm:$0xff] %vm5037_vm10, %v4986_v41  ;;  %v4988_v56 = vpop.permute.xlu1 %4987  ;;  %v6986_v48 = vpop.f32.mrf.mxu1 }
 0x78f   : > { %5061 = vst.msk [vmem:[%s12306_s30 + $0xb8] sm:$0xff] %vm5037_vm10, %v4988_v56 }
 0x790   : > { %v8764_v0 = vpop.f32.mrf.mxu1 }
 0x791   : > { %v4990_v18 = vpop.permute.xlu0 %4989 }
 0x792   : > { %5062 = vst.msk [vmem:[%s12306_s30 + $0xc0] sm:$0xff] %vm5037_vm10, %v4990_v18  ;;  %v4992_v53 = vpop.permute.xlu1 %4991  ;;  %v6989_v20 = vpop.f32.mrf.mxu1 }
 0x793   : > { %5063 = vst.msk [vmem:[%s12306_s30 + $0xc8] sm:$0xff] %vm5037_vm10, %v4992_v53 }
 0x795   : > { %v4994_v59 = vpop.permute.xlu0 %4993  ;;  %v8725_v11 = vpop.f32.mrf.mxu0 }
 0x796   : > { %5064 = vst.msk [vmem:[%s12306_s30 + $0xd0] sm:$0xff] %vm5037_vm10, %v4994_v59  ;;  %v4996_v3 = vpop.permute.xlu1 %4995 }
 0x797   : > { %5065 = vst.msk [vmem:[%s12306_s30 + $0xd8] sm:$0xff] %vm5037_vm10, %v4996_v3  ;;  %v12866_v29 = vpop.f32.mrf.mxu0  ;;  %v6974_v3 = vadd.f32 %v6973_v44, %v6791_v37 }
 0x798   : > { %v6987_v55 = vadd.f32 %v6986_v48, %v12866_v29 }
 0x799   : > { %v4998_v52 = vpop.permute.xlu0 %4997  ;;  %v12868_v42 = vpop.f32.mrf.mxu0 }
 0x79a   : > { %5066 = vst.msk [vmem:[%s12306_s30 + $0xe0] sm:$0xff] %vm5037_vm10, %v4998_v52  ;;  %v5000_v5 = vpop.permute.xlu1 %4999  ;;  %v6995_v52 = vadd.f32 %v8763_v35, %v8725_v11  ;;  %v6998_v57 = vadd.f32 %v8764_v0, %v12868_v42 }
 0x79b   : > { %5067 = vst.msk [vmem:[%s12306_s30 + $0xe8] sm:$0xff] %vm5037_vm10, %v5000_v5  ;;  %v12870_v23 = vpop.f32.mrf.mxu0 }
 0x79c   : > { %v8767_v27 = vpop.f32.mrf.mxu1  ;;  %v6990_v35 = vadd.f32 %v6989_v20, %v12870_v23 }
 0x79d   : > { %v5002_v54 = vpop.permute.xlu0 %5001 }
 0x79e   : > { %5068 = vst.msk [vmem:[%s12306_s30 + $0xf0] sm:$0xff] %vm5037_vm10, %v5002_v54  ;;  %v5004_v61 = vpop.permute.xlu1 %5003  ;;  %v7002_v12 = vpop.f32.mrf.mxu1 }
 0x79f   : > { %5069 = vst.msk [vmem:[%s12306_s30 + $0xf8] sm:$0xff] %vm5037_vm10, %v5004_v61 }
 0x7a0   : > { %v8768_v13 = vpop.f32.mrf.mxu1 }
 0x7a2   : > { %v7005_v34 = vpop.f32.mrf.mxu1 }
 0x7a5   : > { %v12872_v9 = vpop.f32.mrf.mxu0 }
 0x7a7   : > { %v12874_v30 = vpop.f32.mrf.mxu0 }
 0x7a9   : > { %v12876_v8 = vpop.f32.mrf.mxu0 }
 0x7ab   : > { %v12878_v43 = vpop.f32.mrf.mxu0 }
 0x7ac   : > { %v8771_v1 = vpop.f32.mrf.mxu1 }
 0x7ae   : > { %v7018_v26 = vpop.f32.mrf.mxu1 }
 0x7b0   : > { %v8772_v16 = vpop.f32.mrf.mxu1 }
 0x7b2   : > { %v7021_v47 = vpop.f32.mrf.mxu1 }
 0x7b5   : > { %v12880_v24 = vpop.f32.mrf.mxu0 }
 0x7b7   : > { %v12882_v31 = vpop.f32.mrf.mxu0 }
 0x7b9   : > { %v12884_v36 = vpop.f32.mrf.mxu0 }
 0x7bb   : > { %v12886_v50 = vpop.f32.mrf.mxu0 }
 0x7bc   : > { %v8775_v53 = vpop.f32.mrf.mxu1 }
 0x7be   : > { %v7034_v61 = vpop.f32.mrf.mxu1 }
 0x7c0   : > { %v8776_v49 = vpop.f32.mrf.mxu1 }
 0x7c2   : > { %v7037_v0 = vpop.f32.mrf.mxu1 }
 0x7c5   : > { %v12888_v6 = vpop.f32.mrf.mxu0 }
 0x7c7   : > { %v12890_v7 = vpop.f32.mrf.mxu0 }
 0x7c9   : > { %v12892_v14 = vpop.f32.mrf.mxu0 }
 0x7cb   : > { %v12894_v17 = vpop.f32.mrf.mxu0 }
 0x7cc   : > { %v8779_v23 = vpop.f32.mrf.mxu1 }
 0x7d5   : > { %v12896_v25 = vpop.f32.mrf.mxu0 }
 0x7d7   : > { %v12898_v15 = vpop.f32.mrf.mxu0 }
 0x7d9   : > { %v12900_v32 = vpop.f32.mrf.mxu0 }
 0x7db   : > { %v12902_v40 = vpop.f32.mrf.mxu0 }
 0x7e1   : > { %v12904_v39 = vpop.f32.mrf.mxu0 }
 0x7e3   : > { %v12906_v2 = vpop.f32.mrf.mxu0 }
 0x7e5   : > { %v12908_v60 = vpop.f32.mrf.mxu0 }
 0x7e7   : > { %v12910_v58 = vpop.f32.mrf.mxu0 }
 0x7e9   : > { %v12912_v28 = vpop.f32.mrf.mxu0 }
 0x7eb   : > { %v12914_v21 = vpop.f32.mrf.mxu0 }
 0x7ed   : > { %v12916_v63 = vpop.f32.mrf.mxu0 }
 0x7ef   : > { %v12918_v46 = vpop.f32.mrf.mxu0 }
 0x7f1   : > { %v8797_v38 = vpop.f32.mrf.mxu0 }
 0x7f2   : > { %v7381_v19 = vadd.f32 %v8797_v38, %v6979_v22  ;;  %v7011_v22 = vadd.f32 %v8767_v27, %v12872_v9 }
 0x7f3   : > { %v7252_v4 = vpop.f32.mrf.mxu0 }
 0x7f4   : > { %7447 = vrot.lane.b32.xlu0 %v7381_v19, %s9034_s21  ;;  %v7379_v56 = vadd.f32 %v7252_v4, %v6971_v45  ;;  %v7003_v19 = vadd.f32 %v7002_v12, %v12874_v30  ;;  %v7014_v4 = vadd.f32 %v8768_v13, %v12876_v8  ;;  %v7050_v30 = vpop.f32.mrf.mxu1 }
 0x7f5   : > { %v8798_v41 = vpop.f32.mrf.mxu0 }
 0x7f6   : > { %v7382_v18 = vadd.f32 %v8798_v41, %v6982_v51  ;;  %v7006_v51 = vadd.f32 %v7005_v34, %v12878_v43  ;;  %v7027_v41 = vadd.f32 %v8771_v1, %v12880_v24  ;;  %v8780_v43 = vpop.f32.mrf.mxu1 }
 0x7f7   : > { %v7255_v59 = vpop.f32.mrf.mxu0 }
 0x7f8   : > { %7443 = vrot.lane.b32.xlu0 %v7379_v56, %s9034_s21  ;;  %7449 = vrot.lane.b32.xlu1 %v7382_v18, %s9034_s21  ;;  %v7380_v5 = vadd.f32 %v7255_v59, %v6974_v3  ;;  %v7019_v18 = vadd.f32 %v7018_v26, %v12882_v31  ;;  %v7030_v59 = vadd.f32 %v8772_v16, %v12884_v36  ;;  %v7053_v31 = vpop.f32.mrf.mxu1 }
 0x7f9   : > { %v8801_v33 = vpop.f32.mrf.mxu0 }
 0x7fa   : > { %v7385_v54 = vadd.f32 %v8801_v33, %v6995_v52  ;;  %v7022_v52 = vadd.f32 %v7021_v47, %v12886_v50  ;;  %v7043_v33 = vadd.f32 %v8775_v53, %v12888_v6 }
 0x7fb   : > { %v7268_v10 = vpop.f32.mrf.mxu0 }
 0x7fc   : > { %7445 = vrot.lane.b32.xlu1 %v7380_v5, %s9034_s21  ;;  %7455 = vrot.lane.b32.xlu0 %v7385_v54, %s9034_s21  ;;  %v7383_v37 = vadd.f32 %v7268_v10, %v6987_v55  ;;  %v8783_v5 = vpop.f32.mrf.mxu1  ;;  %v7035_v10 = vadd.f32 %v7034_v61, %v12890_v7  ;;  %v7046_v55 = vadd.f32 %v8776_v49, %v12892_v14 }
 0x7fd   : > { %v8802_v62 = vpop.f32.mrf.mxu0 }
 0x7fe   : > { %v7386_v11 = vadd.f32 %v8802_v62, %v6998_v57  ;;  %v7066_v53 = vpop.f32.mrf.mxu1  ;;  %v7038_v62 = vadd.f32 %v7037_v0, %v12894_v17  ;;  %v7075_v0 = vadd.f32 %v8783_v5, %v12904_v39 }
 0x7ff   : > { %v7271_v44 = vpop.f32.mrf.mxu0 }
 0x800   : > { %7451 = vrot.lane.b32.xlu0 %v7383_v37, %s9034_s21  ;;  %7457 = vrot.lane.b32.xlu1 %v7386_v11, %s9034_s21  ;;  %v7384_v48 = vadd.f32 %v7271_v44, %v6990_v35  ;;  %v7059_v37 = vadd.f32 %v8779_v23, %v12896_v25  ;;  %v8784_v11 = vpop.f32.mrf.mxu1  ;;  %v7051_v44 = vadd.f32 %v7050_v30, %v12898_v15 }
 0x801   : > { %v8805_v29 = vpop.f32.mrf.mxu0  ;;  %v7062_v35 = vadd.f32 %v8780_v43, %v12900_v32  ;;  %v7067_v23 = vadd.f32 %v7066_v53, %v12906_v2 }
 0x802   : > { %v7389_v42 = vadd.f32 %v8805_v29, %v7011_v22  ;;  %v7069_v29 = vpop.f32.mrf.mxu1 }
 0x803   : > { %v7284_v38 = vpop.f32.mrf.mxu0 }
 0x804   : > { %7453 = vrot.lane.b32.xlu1 %v7384_v48, %s9034_s21  ;;  %7463 = vrot.lane.b32.xlu0 %v7389_v42, %s9034_s21  ;;  %v7387_v9 = vadd.f32 %v7284_v38, %v7003_v19  ;;  %v7054_v42 = vadd.f32 %v7053_v31, %v12902_v40  ;;  %v8787_v15 = vpop.f32.mrf.mxu1 }
 0x805   : > { %v8806_v20 = vpop.f32.mrf.mxu0 }
 0x806   : > { %v7390_v27 = vadd.f32 %v8806_v20, %v7014_v4  ;;  %v7078_v20 = vadd.f32 %v8784_v11, %v12908_v60  ;;  %v7082_v40 = vpop.f32.mrf.mxu1 }
 0x807   : > { %v7287_v45 = vpop.f32.mrf.mxu0  ;;  %v7083_v2 = vadd.f32 %v7082_v40, %v12914_v21 }
 0x808   : > { %7459 = vrot.lane.b32.xlu0 %v7387_v9, %s9034_s21  ;;  %7465 = vrot.lane.b32.xlu1 %v7390_v27, %s9034_s21  ;;  %v7388_v8 = vadd.f32 %v7287_v45, %v7006_v51  ;;  %v7070_v51 = vadd.f32 %v7069_v29, %v12910_v58 }
 0x809   : > { %v8809_v12 = vpop.f32.mrf.mxu0 }
 0x80a   : > { %v7393_v13 = vadd.f32 %v8809_v12, %v7027_v41  ;;  %v8788_v41 = vpop.f32.mrf.mxu1 }
 0x80b   : > { %v7300_v56 = vpop.f32.mrf.mxu0 }
 0x80c   : > { %7461 = vrot.lane.b32.xlu1 %v7388_v8, %s9034_s21  ;;  %7471 = vrot.lane.b32.xlu0 %v7393_v13, %s9034_s21  ;;  %v7391_v24 = vadd.f32 %v7300_v56, %v7019_v18  ;;  %v7085_v13 = vpop.f32.mrf.mxu1  ;;  %v7091_v18 = vadd.f32 %v8787_v15, %v12912_v28 }
 0x80d   : > { %v8810_v34 = vpop.f32.mrf.mxu0  ;;  %v7086_v58 = vadd.f32 %v7085_v13, %v12918_v46 }
 0x80e   : > { %v7394_v1 = vadd.f32 %v8810_v34, %v7030_v59  ;;  %v7094_v34 = vadd.f32 %v8788_v41, %v12916_v63 }
 0x80f   : > { %v7303_v3 = vpop.f32.mrf.mxu0 }
 0x810   : > { %7467 = vrot.lane.b32.xlu0 %v7391_v24, %s9034_s21  ;;  %7473 = vrot.lane.b32.xlu1 %v7394_v1, %s9034_s21  ;;  %v7392_v36 = vadd.f32 %v7303_v3, %v7022_v52 }
 0x811   : > { %v8813_v26 = vpop.f32.mrf.mxu0 }
 0x812   : > { %v7397_v16 = vadd.f32 %v8813_v26, %v7043_v33 }
 0x813   : > { %v7316_v54 = vpop.f32.mrf.mxu0 }
 0x814   : > { %7469 = vrot.lane.b32.xlu1 %v7392_v36, %s9034_s21  ;;  %7479 = vrot.lane.b32.xlu0 %v7397_v16, %s9034_s21  ;;  %v7395_v6 = vadd.f32 %v7316_v54, %v7035_v10 }
 0x815   : > { %v8814_v50 = vpop.f32.mrf.mxu0 }
 0x816   : > { %v7398_v47 = vadd.f32 %v8814_v50, %v7046_v55 }
 0x817   : > { %v7319_v57 = vpop.f32.mrf.mxu0 }
 0x818   : > { %7475 = vrot.lane.b32.xlu0 %v7395_v6, %s9034_s21  ;;  %7481 = vrot.lane.b32.xlu1 %v7398_v47, %s9034_s21  ;;  %v7396_v61 = vadd.f32 %v7319_v57, %v7038_v62 }
 0x819   : > { %v8817_v7 = vpop.f32.mrf.mxu0 }
 0x81a   : > { %v7401_v14 = vadd.f32 %v8817_v7, %v7059_v37 }
 0x81b   : > { %v7332_v49 = vpop.f32.mrf.mxu0 }
 0x81c   : > { %7477 = vrot.lane.b32.xlu1 %v7396_v61, %s9034_s21  ;;  %7487 = vrot.lane.b32.xlu0 %v7401_v14, %s9034_s21  ;;  %v7399_v22 = vadd.f32 %v7332_v49, %v7051_v44 }
 0x81d   : > { %v8818_v17 = vpop.f32.mrf.mxu0 }
 0x81e   : > { %v7402_v25 = vadd.f32 %v8818_v17, %v7062_v35 }
 0x81f   : > { %v7335_v48 = vpop.f32.mrf.mxu0 }
 0x820   : > { %7483 = vrot.lane.b32.xlu0 %v7399_v22, %s9034_s21  ;;  %7489 = vrot.lane.b32.xlu1 %v7402_v25, %s9034_s21  ;;  %v7400_v32 = vadd.f32 %v7335_v48, %v7054_v42 }
 0x821   : > { %v8821_v38 = vpop.f32.mrf.mxu0 }
 0x822   : > { %v7405_v19 = vadd.f32 %v8821_v38, %v7075_v0 }
 0x823   : > { %v7348_v4 = vpop.f32.mrf.mxu0 }
 0x824   : > { %7485 = vrot.lane.b32.xlu1 %v7400_v32, %s9034_s21  ;;  %7495 = vrot.lane.b32.xlu0 %v7405_v19, %s9034_s21  ;;  %v7403_v39 = vadd.f32 %v7348_v4, %v7067_v23 }
 0x825   : > { %v8822_v9 = vpop.f32.mrf.mxu0 }
 0x826   : > { %v7406_v27 = vadd.f32 %v8822_v9, %v7078_v20 }
 0x827   : > { %v7351_v45 = vpop.f32.mrf.mxu0 }
 0x828   : > { %7491 = vrot.lane.b32.xlu0 %v7403_v39, %s9034_s21  ;;  %7497 = vrot.lane.b32.xlu1 %v7406_v27, %s9034_s21  ;;  %v7404_v60 = vadd.f32 %v7351_v45, %v7070_v51 }
 0x829   : > { %v8825_v30 = vpop.f32.mrf.mxu0 }
 0x82a   : > { %v7409_v43 = vadd.f32 %v8825_v30, %v7091_v18 }
 0x82b   : > { %v7364_v12 = vpop.f32.mrf.mxu0 }
 0x82c   : > { %v7407_v8 = vadd.f32 %v7364_v12, %v7083_v2  ;;  %7493 = vrot.lane.b32.xlu1 %v7404_v60, %s9034_s21 }
 0x82d   : > { %v8826_v56 = vpop.f32.mrf.mxu0 }
 0x82e   : > { %7499 = vrot.lane.b32.xlu0 %v7407_v8, %s9034_s21  ;;  %v7410_v24 = vadd.f32 %v8826_v56, %v7094_v34 }
 0x82f   : > { %v7367_v59 = vpop.f32.mrf.mxu0 }
 0x830   : > { %v7408_v21 = vadd.f32 %v7367_v59, %v7086_v58 }
 0x832   : > { %7503 = vrot.lane.b32.xlu0 %v7409_v43, %s9034_s21  ;;  %7501 = vrot.lane.b32.xlu1 %v7408_v21, %s9034_s21 }
 0x836   : > { %7505 = vrot.lane.b32.xlu1 %v7410_v24, %s9034_s21  ;;  %s7586_s21 = sshll.u32 %s12306_s30, 4  ;;  %s13050_s21 = int_to_ptr.vmem [resolvable:$true] %s7586_s21 }
 0x837   : > { %s8970_s22 = scalar_lea.vmem %s13050_s21, 4096  ;;  %p8977_p0 = scmp.lt.s32.totalorder %s13050_s21, %s8975_s2 }
 0x838   : > { %p8971_p11 = scmp.ne.s32.totalorder %s13050_s21, %s8970_s22  ;;  %p8978_p1 = scmp.lt.s32.totalorder %s8976_s20, %s8970_s22 }
 0x83a   : > { %p8972_p12 = pnand %p8971_p11, %p9149_p5  ;;  %p8979_p2 = por %p8978_p1, %p8977_p0 }
 0x83c   : > { %p8973_p13 = pneg %p8972_p12 }
 0x83e   : > { %p8980_p3 = pnand %p8979_p2, %p8973_p13 }
 0x866   : > { %v7448_v28 = vpop.permute.xlu0 %7447 }
 0x867   : > { %7542 = vst.msk [vmem:[%s12306_s30 + $0x10] sm:$0xff] %vm7539_vm1, %v7448_v28 }
 0x86a   : > { %v7444_v46 = vpop.permute.xlu0 %7443  ;;  %v7450_v1 = vpop.permute.xlu1 %7449 }
 0x86b   : > { %7540 = vst.msk [vmem:[%s12306_s30] sm:$0xff] %vm7539_vm1, %v7444_v46  ;;  %7543 = vst.msk [vmem:[%s12306_s30 + $0x18] sm:$0xff] %vm7539_vm1, %v7450_v1 }
 0x86e   : > { %v7446_v63 = vpop.permute.xlu1 %7445  ;;  %v7456_v3 = vpop.permute.xlu0 %7455 }
 0x86f   : > { %7541 = vst.msk [vmem:[%s12306_s30 + $0x8] sm:$0xff] %vm7539_vm1, %v7446_v63  ;;  %7546 = vst.msk [vmem:[%s12306_s30 + $0x30] sm:$0xff] %vm7539_vm1, %v7456_v3 }
 0x872   : > { %v7452_v52 = vpop.permute.xlu0 %7451  ;;  %v7458_v33 = vpop.permute.xlu1 %7457 }
 0x873   : > { %7544 = vst.msk [vmem:[%s12306_s30 + $0x20] sm:$0xff] %vm7539_vm1, %v7452_v52  ;;  %7547 = vst.msk [vmem:[%s12306_s30 + $0x38] sm:$0xff] %vm7539_vm1, %v7458_v33 }
 0x876   : > { %v7454_v31 = vpop.permute.xlu1 %7453  ;;  %v7464_v26 = vpop.permute.xlu0 %7463 }
 0x877   : > { %7545 = vst.msk [vmem:[%s12306_s30 + $0x28] sm:$0xff] %vm7539_vm1, %v7454_v31  ;;  %7550 = vst.msk [vmem:[%s12306_s30 + $0x50] sm:$0xff] %vm7539_vm1, %v7464_v26 }
 0x87a   : > { %v7460_v36 = vpop.permute.xlu0 %7459  ;;  %v7466_v16 = vpop.permute.xlu1 %7465 }
 0x87b   : > { %7548 = vst.msk [vmem:[%s12306_s30 + $0x40] sm:$0xff] %vm7539_vm1, %v7460_v36  ;;  %7551 = vst.msk [vmem:[%s12306_s30 + $0x58] sm:$0xff] %vm7539_vm1, %v7466_v16 }
 0x87e   : > { %v7462_v5 = vpop.permute.xlu1 %7461  ;;  %v7472_v54 = vpop.permute.xlu0 %7471 }
 0x87f   : > { %7549 = vst.msk [vmem:[%s12306_s30 + $0x48] sm:$0xff] %vm7539_vm1, %v7462_v5  ;;  %7554 = vst.msk [vmem:[%s12306_s30 + $0x70] sm:$0xff] %vm7539_vm1, %v7472_v54 }
 0x882   : > { %v7468_v10 = vpop.permute.xlu0 %7467  ;;  %v7474_v55 = vpop.permute.xlu1 %7473 }
 0x883   : > { %7552 = vst.msk [vmem:[%s12306_s30 + $0x60] sm:$0xff] %vm7539_vm1, %v7468_v10  ;;  %7555 = vst.msk [vmem:[%s12306_s30 + $0x78] sm:$0xff] %vm7539_vm1, %v7474_v55 }
 0x886   : > { %v7470_v50 = vpop.permute.xlu1 %7469  ;;  %v7480_v6 = vpop.permute.xlu0 %7479 }
 0x887   : > { %7553 = vst.msk [vmem:[%s12306_s30 + $0x68] sm:$0xff] %vm7539_vm1, %v7470_v50  ;;  %7558 = vst.msk [vmem:[%s12306_s30 + $0x90] sm:$0xff] %vm7539_vm1, %v7480_v6 }
 0x88a   : > { %v7476_v47 = vpop.permute.xlu0 %7475  ;;  %v7482_v53 = vpop.permute.xlu1 %7481 }
 0x88b   : > { %7556 = vst.msk [vmem:[%s12306_s30 + $0x80] sm:$0xff] %vm7539_vm1, %v7476_v47  ;;  %7559 = vst.msk [vmem:[%s12306_s30 + $0x98] sm:$0xff] %vm7539_vm1, %v7482_v53 }
 0x88e   : > { %v7478_v57 = vpop.permute.xlu1 %7477  ;;  %v7488_v62 = vpop.permute.xlu0 %7487 }
 0x88f   : > { %7557 = vst.msk [vmem:[%s12306_s30 + $0x88] sm:$0xff] %vm7539_vm1, %v7478_v57  ;;  %7562 = vst.msk [vmem:[%s12306_s30 + $0xb0] sm:$0xff] %vm7539_vm1, %v7488_v62 }
 0x892   : > { %v7484_v37 = vpop.permute.xlu0 %7483  ;;  %v7490_v7 = vpop.permute.xlu1 %7489 }
 0x893   : > { %7560 = vst.msk [vmem:[%s12306_s30 + $0xa0] sm:$0xff] %vm7539_vm1, %v7484_v37  ;;  %7563 = vst.msk [vmem:[%s12306_s30 + $0xb8] sm:$0xff] %vm7539_vm1, %v7490_v7 }
 0x896   : > { %v7486_v61 = vpop.permute.xlu1 %7485  ;;  %v7496_v14 = vpop.permute.xlu0 %7495 }
 0x897   : > { %7561 = vst.msk [vmem:[%s12306_s30 + $0xa8] sm:$0xff] %vm7539_vm1, %v7486_v61  ;;  %7566 = vst.msk [vmem:[%s12306_s30 + $0xd0] sm:$0xff] %vm7539_vm1, %v7496_v14 }
 0x89a   : > { %v7492_v11 = vpop.permute.xlu0 %7491  ;;  %v7498_v49 = vpop.permute.xlu1 %7497 }
 0x89b   : > { %7564 = vst.msk [vmem:[%s12306_s30 + $0xc0] sm:$0xff] %vm7539_vm1, %v7492_v11  ;;  %7567 = vst.msk [vmem:[%s12306_s30 + $0xd8] sm:$0xff] %vm7539_vm1, %v7498_v49 }
 0x89e   : > { %v7494_v44 = vpop.permute.xlu1 %7493 }
 0x89f   : > { %7565 = vst.msk [vmem:[%s12306_s30 + $0xc8] sm:$0xff] %vm7539_vm1, %v7494_v44 }
 0x8a0   : > { %v7500_v35 = vpop.permute.xlu0 %7499 }
 0x8a1   : > { %7568 = vst.msk [vmem:[%s12306_s30 + $0xe0] sm:$0xff] %vm7539_vm1, %v7500_v35 }
 0x8a4   : > { %v7504_v17 = vpop.permute.xlu0 %7503  ;;  %v7502_v22 = vpop.permute.xlu1 %7501 }
 0x8a5   : > { %7570 = vst.msk [vmem:[%s12306_s30 + $0xf0] sm:$0xff] %vm7539_vm1, %v7504_v17  ;;  %7569 = vst.msk [vmem:[%s12306_s30 + $0xe8] sm:$0xff] %vm7539_vm1, %v7502_v22 }
 0x8a8   : > { %v7506_v25 = vpop.permute.xlu1 %7505 }
 0x8a9   : > { %7571 = vst.msk [vmem:[%s12306_s30 + $0xf8] sm:$0xff] %vm7539_vm1, %v7506_v25 }
 0x8aa   : > { %8983 = shalt.err (!%p8980_p3)
}
 0x8ab   : > { %s8984_s23 = scalar_lea.hbm %s13048_s16, 4096  ;;  %s8988_s24 = scalar_lea.hbm %s13109_s13, 8192 }
 0x8ac   : > { %p8985_p4 = scmp.ne.s32.totalorder %s13048_s16, %s8984_s23  ;;  %p8989_p9 = scmp.lt.s32.totalorder %s13048_s16, %s13109_s13 }
 0x8ad   : > { %p8990_p10 = scmp.lt.s32.totalorder %s8988_s24, %s8984_s23 }
 0x8ae   : > { %p8986_p7 = pnand %p8985_p4, %p9149_p5 }
 0x8af   : > { %p8991_p11 = por %p8990_p10, %p8989_p9 }
 0x8b0   : > { %p8987_p8 = pneg %p8986_p7 }
 0x8b2   : > { %p8992_p12 = pnand %p8991_p11, %p8987_p8 }
 0x8b4   : > { %8995 = shalt.err (!%p8992_p12)
}
 0x8b5   : > { %s9039_s22 = smov 128   ;;  %s9040_s2 = smov 8  }
 0x8b6   : > { %8832 = dma.vmem_to_hbm [thread:$0]  (%p9149_p5), %s13050_s21, 4096, %s13048_s16, %s13056_s29, %s9039_s22, %s9039_s22, %s9040_s2  }
 0x8b7 PF: > { %p8838_p13 = scmp.ge.s32.totalorder %s9030_s28, 2  ;;  %s7601_s20 = sand.u32 1, %s9018_s25  }
 0x8b8   : > { %s7602_s0 = scalar_lea.sflag [#allocation4], %s7601_s20 }
 0x8b9   : > { %p8835_p0 = pnand %p8838_p13, %p9153_p6 }
 0x8bb   : > { %p8836_p1 = pneg %p8835_p0 }
 0x8bd   : > { %9013 = dma.done.wait (%p8836_p1), %s7602_s0, 4096  }
 0x8be   : > { %9015 = vsyncadd (%p8836_p1), %s7602_s0, 4294963200  ;;  %p23_p2 = scmp.ge.s32.totalorder %s9136_s14, 4   ;;  %s13604_s25 = smov %s9022_s26 }
 0x8bf   : > { %s13605_s26 = smov %s9026_s27  ;;  %s13606_s27 = smov %s9147_s17 }
 0x8c0   : > { %s13607_s28 = smov %s9136_s14  ;;  %25 = sbr.rel (!%p23_p2) target bundleno = 7 (0x7), region = 113 }
 0x8c5   :  { %7607 = vsyncpa [#allocation4], 1 }
 0x8c6   :  { %7609 = vsyncpa [#allocation4 + $0x1], 1 }

</bundles_post_ra>
